<compile_context>
chip_gen: v7x
topology: tpu7x:2x2x1
jax: 0.10.0
libtpu: 0.0.40
codegen_flags: <defaults>
</compile_context>

<pallas_src>
import functools

import jax
import jax.numpy as jnp
from jax import lax
from jax.experimental import pallas as pl
from jax.experimental.pallas import tpu as pltpu


_VMEM_LIMIT = 40 * 1024 * 1024   # safely under physical VMEM on v5e/v6e/v7x


# ----------------------------------------------------------------------------
# Fused 3x3 conv + folded BN + ReLU + 2x2 max-pool.  One image per grid step.
#
#   se_ref / so_ref : (1, H+2, W/2, 3*cin) bf16 tap slabs for even / odd
#                     output columns.  slab_p[h, u, dw*cin + c] is the padded
#                     input pixel (h, 2u + p + dw, c), so per kernel row dh the
#                     conv is a single (rows*W/2, 3*cin) @ (3*cin, cout) matmul.
#   w_ref           : (3, 3*cin, cout) bf16 (dh, dw-major/cin-minor, cout)
#   scale/shift     : (1, cout) f32 folded BatchNorm
#   o_ref           : (1, (H/2)*(W/2), cout) pooled output, bf16
#
# Rows are processed in chunks of `hc` pre-pool rows so the f32 accumulators
# stay small; every ref slice is along a leading (untiled) dim and every
# reshape splits/merges whole 8-sublane groups, so no relayout copies.
# ----------------------------------------------------------------------------
def _conv_bn_relu_pool_kernel(se_ref, so_ref, w_ref, scale_ref, shift_ref,
                              o_ref, *, hc, h, wh, k, cout):
    scale = scale_ref[...]                       # (1, cout)
    shift = shift_ref[...]
    rows_out = (hc // 2) * wh                    # pooled rows written per chunk

    def chunk(ci, carry):
        r0 = ci * hc                             # first pre-pool row of chunk
        acc_e = jnp.zeros((hc * wh, cout), jnp.float32)
        acc_o = jnp.zeros((hc * wh, cout), jnp.float32)
        for dh in range(3):                      # static unroll over taps rows
            wd = w_ref[dh]                       # (3*cin, cout)
            xe = se_ref[0, pl.ds(r0 + dh, hc)].reshape(hc * wh, k)
            xo = so_ref[0, pl.ds(r0 + dh, hc)].reshape(hc * wh, k)
            acc_e += jnp.dot(xe, wd, preferred_element_type=jnp.float32)
            acc_o += jnp.dot(xo, wd, preferred_element_type=jnp.float32)
        ye = jnp.maximum(acc_e * scale + shift, 0.0)   # even output columns
        yo = jnp.maximum(acc_o * scale + shift, 0.0)   # odd output columns
        wmax = jnp.maximum(ye, yo)                     # max over the W pair
        wmax = wmax.reshape(hc // 2, 2, wh, cout)
        pooled = jnp.maximum(wmax[:, 0], wmax[:, 1])   # max over the H pair
        off = pl.multiple_of(ci * rows_out, rows_out)
        o_ref[0, pl.ds(off, rows_out)] = (
            pooled.reshape(rows_out, cout).astype(o_ref.dtype))
        return carry

    lax.fori_loop(0, h // hc, chunk, 0)


def _build_parity_slabs(x):
    """x: (N, H, W, C) -> two (N, H+2, W/2, 3C) slabs (even / odd columns).

    slab_p[n, h, u, dw*C + c] = xpad[n, h, 2u + p + dw, c].  Built with cheap
    XLA pad / strided-slice / concat ops in HBM so the Pallas kernel never has
    to do a misaligned or strided sublane access.
    """
    n, h, w, c = x.shape
    xp = jnp.pad(x, ((0, 0), (1, 1), (1, 1), (0, 0)))

    def slab(p):
        taps = [xp[:, :, p + dw::2, :][:, :, :w // 2, :] for dw in range(3)]
        return jnp.concatenate(taps, axis=-1)

    return slab(0), slab(1)


def conv3x3_bn_relu_pool(x, p, *, hc=4):
    n, h, w, cin = x.shape
    cout = p["w"].shape[-1]
    wh = w // 2
    assert h % 2 == 0 and w % 2 == 0 and hc % 2 == 0 and h % hc == 0
    se, so = _build_parity_slabs(x.astype(jnp.bfloat16))
    wk = p["w"].reshape(3, 3 * cin, cout).astype(jnp.bfloat16)
    scale, shift = fold_bn(p)
    scale = scale.reshape(1, cout).astype(jnp.float32)
    shift = shift.reshape(1, cout).astype(jnp.float32)
    out = pl.pallas_call(
        functools.partial(_conv_bn_relu_pool_kernel, hc=hc, h=h, wh=wh,
                          k=3 * cin, cout=cout),
        out_shape=jax.ShapeDtypeStruct((n, (h // 2) * wh, cout), jnp.bfloat16),
        grid_spec=pltpu.PrefetchScalarGridSpec(
            num_scalar_prefetch=0,
            grid=(n,),
            in_specs=[
                pl.BlockSpec((1, h + 2, wh, 3 * cin), lambda b: (b, 0, 0, 0)),
                pl.BlockSpec((1, h + 2, wh, 3 * cin), lambda b: (b, 0, 0, 0)),
                pl.BlockSpec((3, 3 * cin, cout), lambda b: (0, 0, 0)),
                pl.BlockSpec((1, cout), lambda b: (0, 0)),
                pl.BlockSpec((1, cout), lambda b: (0, 0)),
            ],
            out_specs=pl.BlockSpec((1, (h // 2) * wh, cout),
                                   lambda b: (b, 0, 0)),
        ),
        # Batch axis is "parallel" so a dual-TensorCore chip (v7x) splits the
        # images across cores.  (At N == 1 one core idles; acceptable here.)
        compiler_params=pltpu.CompilerParams(
            dimension_semantics=("parallel",),
            vmem_limit_bytes=_VMEM_LIMIT),
    )(se, so, wk, scale, shift)
    return out.reshape(n, h // 2, wh, cout)


# ----------------------------------------------------------------------------
# Fused matmul + bias (+ ReLU):  out = relu(X @ W + b)
# Grid = (M//tm, N//tn, K//tk); K (last axis) is the reduction axis.  The
# output block is resident across it, so we accumulate straight into o_ref.
# ----------------------------------------------------------------------------
def _matmul_bias_kernel(x_ref, w_ref, b_ref, o_ref, *, relu):
    l = pl.program_id(2)

    @pl.when(l == 0)
    def _():
        o_ref[...] = jnp.zeros_like(o_ref)

    o_ref[...] += jnp.dot(x_ref[...], w_ref[...],
                          preferred_element_type=jnp.float32)

    @pl.when(l == pl.num_programs(2) - 1)
    def _():
        y = o_ref[...] + b_ref[...]
        if relu:
            y = jnp.maximum(y, 0.0)
        o_ref[...] = y


def matmul_bias(x, w, b, *, relu, tm, tn, tk):
    m, k = x.shape
    k2, n = w.shape
    assert k == k2 and m % tm == 0 and k % tk == 0 and n % tn == 0
    b = b.reshape(1, n).astype(jnp.float32)
    return pl.pallas_call(
        functools.partial(_matmul_bias_kernel, relu=relu),
        out_shape=jax.ShapeDtypeStruct((m, n), jnp.float32),
        grid_spec=pltpu.PrefetchScalarGridSpec(
            num_scalar_prefetch=0,
            grid=(m // tm, n // tn, k // tk),
            in_specs=[
                pl.BlockSpec((tm, tk), lambda i, j, l: (i, l)),
                pl.BlockSpec((tk, tn), lambda i, j, l: (l, j)),
                pl.BlockSpec((1, tn), lambda i, j, l: (0, j)),
            ],
            out_specs=pl.BlockSpec((tm, tn), lambda i, j, l: (i, j)),
        ),
        compiler_params=pltpu.CompilerParams(
            dimension_semantics=("parallel", "parallel", "arbitrary"),
            vmem_limit_bytes=_VMEM_LIMIT),
    )(x, w, b)


# ----------------------------------------------------------------------------
# Glue: BN folding, parameter init, forward pass.
# ----------------------------------------------------------------------------
def fold_bn(p, eps=1e-5):
    scale = p["gamma"] / jnp.sqrt(p["var"] + eps)
    shift = p["beta"] + (p["b"] - p["mean"]) * scale
    return scale, shift


def init_params(key):
    ks = jax.random.split(key, 5)

    def conv_block(k, cin, cout):
        kw, kb, kg, kbe, km, kv = jax.random.split(k, 6)
        return dict(
            # Stored HWIO; a torch OIHW checkpoint maps via w.transpose(2,3,1,0).
            w=jax.random.normal(kw, (3, 3, cin, cout), jnp.float32)
              * (1.0 / jnp.sqrt(9.0 * cin)),
            b=0.01 * jax.random.normal(kb, (cout,), jnp.float32),
            gamma=1.0 + 0.1 * jax.random.normal(kg, (cout,), jnp.float32),
            beta=0.1 * jax.random.normal(kbe, (cout,), jnp.float32),
            mean=0.1 * jax.random.normal(km, (cout,), jnp.float32),
            var=1.0 + 0.1 * jax.random.uniform(kv, (cout,), jnp.float32),
        )

    def linear(k, cin, cout, dtype=jnp.float32):
        kw, kb = jax.random.split(k)
        return dict(
            w=(jax.random.normal(kw, (cin, cout), jnp.float32)
               * (1.0 / jnp.sqrt(float(cin)))).astype(dtype),
            b=0.01 * jax.random.normal(kb, (cout,), jnp.float32),
        )

    # fc1 weight rows are stored in NHWC-flatten order (h, w, c) and in bf16 so
    # the dominant HBM weight stream is halved.  A torch checkpoint (rows in
    # (c, h, w) order) must be permuted once at load time:
    #   w_nhwc = w_torch.T.reshape(128, 8, 32, 512).transpose(1, 2, 0, 3)
    #                     .reshape(8 * 32 * 128, 512)
    return dict(
        conv1=conv_block(ks[0], 3, 32),
        conv2=conv_block(ks[1], 32, 64),
        conv3=conv_block(ks[2], 64, 128),
        fc1=linear(ks[3], 8 * 32 * 128, 512, dtype=jnp.bfloat16),
        fc2=linear(ks[4], 512, 8),
    )


@jax.jit
def lpr_corner_net(params, x_nchw):
    # NCHW -> NHWC once at the boundary.
    x = jnp.transpose(x_nchw, (0, 2, 3, 1)).astype(jnp.float32)  # (N,64,256,3)

    x = conv3x3_bn_relu_pool(x, params["conv1"])   # (N, 32, 128, 32) bf16
    x = conv3x3_bn_relu_pool(x, params["conv2"])   # (N, 16,  64, 64) bf16
    x = conv3x3_bn_relu_pool(x, params["conv3"])   # (N,  8,  32, 128) bf16

    n = x.shape[0]
    # fc1 weights are pre-permuted to NHWC-flatten order, so a plain reshape
    # matches torch's x.view(B, -1); the small feature stream stays bf16.
    feat = x.reshape(n, 8 * 32 * 128)

    h = matmul_bias(feat, params["fc1"]["w"], params["fc1"]["b"],
                    relu=True, tm=n, tn=256, tk=8192)
    coords = matmul_bias(h, params["fc2"]["w"], params["fc2"]["b"],
                         relu=False, tm=n, tn=8, tk=512)
    return coords


if __name__ == "__main__":
    key = jax.random.PRNGKey(0)
    kp, kx = jax.random.split(key)
    params = init_params(kp)
    # fc1 = Linear(128*8*32, 512) with three 2x2 pools => input spatial 64x256.
    x = jax.random.normal(kx, (2, 3, 64, 256), jnp.float32)
    coords = lpr_corner_net(params, x)
    coords = jax.block_until_ready(coords)
    assert coords.shape == (2, 8) and coords.dtype == jnp.float32
    print("KERNEL_OK")
</pallas_src>

<mosaic_0001>
module attributes {stable_mosaic.version = 11 : i64} {
  func.func @_conv_bn_relu_pool_kernel(%arg0: i32, %arg1: memref<1x66x128x9xbf16, #tpu.memory_space<vmem>>, %arg2: memref<1x66x128x9xbf16, #tpu.memory_space<vmem>>, %arg3: memref<3x9x32xbf16, #tpu.memory_space<vmem>>, %arg4: memref<1x32xf32, #tpu.memory_space<vmem>>, %arg5: memref<1x32xf32, #tpu.memory_space<vmem>>, %arg6: memref<1x4096x32xbf16, #tpu.memory_space<vmem>>) attributes {dimension_semantics = [#tpu.dimension_semantics<parallel>], iteration_bounds = array<i64: 2>, scalar_prefetch = 0 : i64, scratch_operands = 0 : i64, tpu.core_type = #tpu.core_type<tc>, window_params = [{transform_indices = @transform_0, window_bounds = array<i64: 1, 66, 128, 9>}, {transform_indices = @transform_1, window_bounds = array<i64: 1, 66, 128, 9>}, {pipeline_mode = #tpu.pipeline_mode<synchronous>, transform_indices = @transform_2, window_bounds = array<i64: 3, 9, 32>}, {pipeline_mode = #tpu.pipeline_mode<synchronous>, transform_indices = @transform_3, window_bounds = array<i64: 1, 32>}, {pipeline_mode = #tpu.pipeline_mode<synchronous>, transform_indices = @transform_4, window_bounds = array<i64: 1, 32>}, {transform_indices = @transform_5, window_bounds = array<i64: 1, 4096, 32>}]} {
    %c0 = arith.constant 0 : index
    %c0_0 = arith.constant 0 : index
    %0 = vector.load %arg4[%c0, %c0_0] : memref<1x32xf32, #tpu.memory_space<vmem>>, vector<1x32xf32>
    %c0_1 = arith.constant 0 : index
    %c0_2 = arith.constant 0 : index
    %1 = vector.load %arg5[%c0_1, %c0_2] : memref<1x32xf32, #tpu.memory_space<vmem>>, vector<1x32xf32>
    %c0_i32 = arith.constant 0 : i32
    %c16_i32 = arith.constant 16 : i32
    %2 = arith.addi %c0_i32, %c16_i32 : i32
    %c1_i32 = arith.constant 1 : i32
    scf.for %arg7 = %c0_i32 to %2 step %c1_i32  : i32 {
      %c4_i32 = arith.constant 4 : i32
      %3 = arith.muli %arg7, %c4_i32 : i32
      %cst = arith.constant 0.000000e+00 : f32
      %4 = vector.broadcast %cst : f32 to vector<512x32xf32>
      %cst_4 = arith.constant 0.000000e+00 : f32
      %5 = vector.broadcast %cst_4 : f32 to vector<512x32xf32>
      %c0_5 = arith.constant 0 : index
      %c0_6 = arith.constant 0 : index
      %c0_7 = arith.constant 0 : index
      %6 = vector.load %arg3[%c0_5, %c0_6, %c0_7] : memref<3x9x32xbf16, #tpu.memory_space<vmem>>, vector<1x9x32xbf16>
      %7 = vector.shape_cast %6 : vector<1x9x32xbf16> to vector<9x32xbf16>
      %c0_i32_8 = arith.constant 0 : i32
      %8 = arith.addi %3, %c0_i32_8 : i32
      %c0_9 = arith.constant 0 : index
      %9 = arith.index_cast %8 : i32 to index
      %c0_10 = arith.constant 0 : index
      %c0_11 = arith.constant 0 : index
      %10 = vector.load %arg1[%c0_9, %9, %c0_10, %c0_11] : memref<1x66x128x9xbf16, #tpu.memory_space<vmem>>, vector<1x4x128x9xbf16>
      %11 = vector.shape_cast %10 : vector<1x4x128x9xbf16> to vector<4x128x9xbf16>
      %12 = vector.shape_cast %11 : vector<4x128x9xbf16> to vector<512x9xbf16>
      %c0_i32_12 = arith.constant 0 : i32
      %13 = arith.addi %3, %c0_i32_12 : i32
      %c0_13 = arith.constant 0 : index
      %14 = arith.index_cast %13 : i32 to index
      %c0_14 = arith.constant 0 : index
      %c0_15 = arith.constant 0 : index
      %15 = vector.load %arg2[%c0_13, %14, %c0_14, %c0_15] : memref<1x66x128x9xbf16, #tpu.memory_space<vmem>>, vector<1x4x128x9xbf16>
      %16 = vector.shape_cast %15 : vector<1x4x128x9xbf16> to vector<4x128x9xbf16>
      %17 = vector.shape_cast %16 : vector<4x128x9xbf16> to vector<512x9xbf16>
      %cst_16 = arith.constant dense<0.000000e+00> : vector<512x32xf32>
      %18 = tpu.matmul %12, %7, %cst_16 {dimension_numbers = #tpu.dot_dimension_numbers<[1], [0], [0], [1], [0, 0, 1, 1], [], []>} : vector<512x9xbf16>, vector<9x32xbf16>, vector<512x32xf32> -> vector<512x32xf32>
      %19 = arith.addf %4, %18 : vector<512x32xf32>
      %cst_17 = arith.constant dense<0.000000e+00> : vector<512x32xf32>
      %20 = tpu.matmul %17, %7, %cst_17 {dimension_numbers = #tpu.dot_dimension_numbers<[1], [0], [0], [1], [0, 0, 1, 1], [], []>} : vector<512x9xbf16>, vector<9x32xbf16>, vector<512x32xf32> -> vector<512x32xf32>
      %21 = arith.addf %5, %20 : vector<512x32xf32>
      %c1 = arith.constant 1 : index
      %c0_18 = arith.constant 0 : index
      %c0_19 = arith.constant 0 : index
      %22 = vector.load %arg3[%c1, %c0_18, %c0_19] : memref<3x9x32xbf16, #tpu.memory_space<vmem>>, vector<1x9x32xbf16>
      %23 = vector.shape_cast %22 : vector<1x9x32xbf16> to vector<9x32xbf16>
      %c1_i32_20 = arith.constant 1 : i32
      %24 = arith.addi %3, %c1_i32_20 : i32
      %c0_21 = arith.constant 0 : index
      %25 = arith.index_cast %24 : i32 to index
      %c0_22 = arith.constant 0 : index
      %c0_23 = arith.constant 0 : index
      %26 = vector.load %arg1[%c0_21, %25, %c0_22, %c0_23] : memref<1x66x128x9xbf16, #tpu.memory_space<vmem>>, vector<1x4x128x9xbf16>
      %27 = vector.shape_cast %26 : vector<1x4x128x9xbf16> to vector<4x128x9xbf16>
      %28 = vector.shape_cast %27 : vector<4x128x9xbf16> to vector<512x9xbf16>
      %c1_i32_24 = arith.constant 1 : i32
      %29 = arith.addi %3, %c1_i32_24 : i32
      %c0_25 = arith.constant 0 : index
      %30 = arith.index_cast %29 : i32 to index
      %c0_26 = arith.constant 0 : index
      %c0_27 = arith.constant 0 : index
      %31 = vector.load %arg2[%c0_25, %30, %c0_26, %c0_27] : memref<1x66x128x9xbf16, #tpu.memory_space<vmem>>, vector<1x4x128x9xbf16>
      %32 = vector.shape_cast %31 : vector<1x4x128x9xbf16> to vector<4x128x9xbf16>
      %33 = vector.shape_cast %32 : vector<4x128x9xbf16> to vector<512x9xbf16>
      %cst_28 = arith.constant dense<0.000000e+00> : vector<512x32xf32>
      %34 = tpu.matmul %28, %23, %cst_28 {dimension_numbers = #tpu.dot_dimension_numbers<[1], [0], [0], [1], [0, 0, 1, 1], [], []>} : vector<512x9xbf16>, vector<9x32xbf16>, vector<512x32xf32> -> vector<512x32xf32>
      %35 = arith.addf %19, %34 : vector<512x32xf32>
      %cst_29 = arith.constant dense<0.000000e+00> : vector<512x32xf32>
      %36 = tpu.matmul %33, %23, %cst_29 {dimension_numbers = #tpu.dot_dimension_numbers<[1], [0], [0], [1], [0, 0, 1, 1], [], []>} : vector<512x9xbf16>, vector<9x32xbf16>, vector<512x32xf32> -> vector<512x32xf32>
      %37 = arith.addf %21, %36 : vector<512x32xf32>
      %c2 = arith.constant 2 : index
      %c0_30 = arith.constant 0 : index
      %c0_31 = arith.constant 0 : index
      %38 = vector.load %arg3[%c2, %c0_30, %c0_31] : memref<3x9x32xbf16, #tpu.memory_space<vmem>>, vector<1x9x32xbf16>
      %39 = vector.shape_cast %38 : vector<1x9x32xbf16> to vector<9x32xbf16>
      %c2_i32 = arith.constant 2 : i32
      %40 = arith.addi %3, %c2_i32 : i32
      %c0_32 = arith.constant 0 : index
      %41 = arith.index_cast %40 : i32 to index
      %c0_33 = arith.constant 0 : index
      %c0_34 = arith.constant 0 : index
      %42 = vector.load %arg1[%c0_32, %41, %c0_33, %c0_34] : memref<1x66x128x9xbf16, #tpu.memory_space<vmem>>, vector<1x4x128x9xbf16>
      %43 = vector.shape_cast %42 : vector<1x4x128x9xbf16> to vector<4x128x9xbf16>
      %44 = vector.shape_cast %43 : vector<4x128x9xbf16> to vector<512x9xbf16>
      %c2_i32_35 = arith.constant 2 : i32
      %45 = arith.addi %3, %c2_i32_35 : i32
      %c0_36 = arith.constant 0 : index
      %46 = arith.index_cast %45 : i32 to index
      %c0_37 = arith.constant 0 : index
      %c0_38 = arith.constant 0 : index
      %47 = vector.load %arg2[%c0_36, %46, %c0_37, %c0_38] : memref<1x66x128x9xbf16, #tpu.memory_space<vmem>>, vector<1x4x128x9xbf16>
      %48 = vector.shape_cast %47 : vector<1x4x128x9xbf16> to vector<4x128x9xbf16>
      %49 = vector.shape_cast %48 : vector<4x128x9xbf16> to vector<512x9xbf16>
      %cst_39 = arith.constant dense<0.000000e+00> : vector<512x32xf32>
      %50 = tpu.matmul %44, %39, %cst_39 {dimension_numbers = #tpu.dot_dimension_numbers<[1], [0], [0], [1], [0, 0, 1, 1], [], []>} : vector<512x9xbf16>, vector<9x32xbf16>, vector<512x32xf32> -> vector<512x32xf32>
      %51 = arith.addf %35, %50 : vector<512x32xf32>
      %cst_40 = arith.constant dense<0.000000e+00> : vector<512x32xf32>
      %52 = tpu.matmul %49, %39, %cst_40 {dimension_numbers = #tpu.dot_dimension_numbers<[1], [0], [0], [1], [0, 0, 1, 1], [], []>} : vector<512x9xbf16>, vector<9x32xbf16>, vector<512x32xf32> -> vector<512x32xf32>
      %53 = arith.addf %37, %52 : vector<512x32xf32>
      %54 = vector.broadcast %0 : vector<1x32xf32> to vector<512x32xf32>
      %55 = arith.mulf %51, %54 : vector<512x32xf32>
      %56 = vector.broadcast %1 : vector<1x32xf32> to vector<512x32xf32>
      %57 = arith.addf %55, %56 : vector<512x32xf32>
      %cst_41 = arith.constant 0.000000e+00 : f32
      %58 = vector.broadcast %cst_41 : f32 to vector<512x32xf32>
      %59 = arith.maximumf %57, %58 : vector<512x32xf32>
      %60 = vector.broadcast %0 : vector<1x32xf32> to vector<512x32xf32>
      %61 = arith.mulf %53, %60 : vector<512x32xf32>
      %62 = vector.broadcast %1 : vector<1x32xf32> to vector<512x32xf32>
      %63 = arith.addf %61, %62 : vector<512x32xf32>
      %cst_42 = arith.constant 0.000000e+00 : f32
      %64 = vector.broadcast %cst_42 : f32 to vector<512x32xf32>
      %65 = arith.maximumf %63, %64 : vector<512x32xf32>
      %66 = arith.maximumf %59, %65 : vector<512x32xf32>
      %67 = vector.shape_cast %66 : vector<512x32xf32> to vector<2x2x128x32xf32>
      %68 = vector.extract_strided_slice %67 {offsets = [0, 0, 0, 0], sizes = [2, 1, 128, 32], strides = [1, 1, 1, 1]} : vector<2x2x128x32xf32> to vector<2x1x128x32xf32>
      %69 = vector.shape_cast %68 : vector<2x1x128x32xf32> to vector<2x128x32xf32>
      %70 = vector.extract_strided_slice %67 {offsets = [0, 1, 0, 0], sizes = [2, 1, 128, 32], strides = [1, 1, 1, 1]} : vector<2x2x128x32xf32> to vector<2x1x128x32xf32>
      %71 = vector.shape_cast %70 : vector<2x1x128x32xf32> to vector<2x128x32xf32>
      %72 = arith.maximumf %69, %71 : vector<2x128x32xf32>
      %c256_i32 = arith.constant 256 : i32
      %73 = arith.muli %arg7, %c256_i32 : i32
      %74 = tpu.assume_multiple %73, 256 : i32
      %75 = vector.shape_cast %72 : vector<2x128x32xf32> to vector<256x32xf32>
      %76 = arith.truncf %75 : vector<256x32xf32> to vector<256x32xbf16>
      %c0_43 = arith.constant 0 : index
      %77 = arith.index_cast %74 : i32 to index
      %c0_44 = arith.constant 0 : index
      %78 = vector.load %arg6[%c0_43, %77, %c0_44] : memref<1x4096x32xbf16, #tpu.memory_space<vmem>>, vector<1x256x32xbf16>
      %79 = vector.shape_cast %78 : vector<1x256x32xbf16> to vector<256x32xbf16>
      %80 = vector.shape_cast %76 : vector<256x32xbf16> to vector<1x256x32xbf16>
      tpu.vector_store %arg6[%c0_43, %77, %c0_44], %80 {strides = array<i32>} : memref<1x4096x32xbf16, #tpu.memory_space<vmem>>, vector<1x256x32xbf16>,
    }
    %c16_i32_3 = arith.constant 16 : i32
    return
  }
  func.func @transform_0(%arg0: i32) -> (i32, i32, i32, i32) {
    %c0_i32 = arith.constant 0 : i32
    %c0_i32_0 = arith.constant 0 : i32
    %c0_i32_1 = arith.constant 0 : i32
    %c0_i32_2 = arith.constant 0 : i32
    return %arg0, %c0_i32, %c0_i32_0, %c0_i32_1 : i32, i32, i32, i32
  }
  func.func @transform_1(%arg0: i32) -> (i32, i32, i32, i32) {
    %c0_i32 = arith.constant 0 : i32
    %c0_i32_0 = arith.constant 0 : i32
    %c0_i32_1 = arith.constant 0 : i32
    %c0_i32_2 = arith.constant 0 : i32
    return %arg0, %c0_i32, %c0_i32_0, %c0_i32_1 : i32, i32, i32, i32
  }
  func.func @transform_2(%arg0: i32) -> (i32, i32, i32) {
    %c0_i32 = arith.constant 0 : i32
    %c0_i32_0 = arith.constant 0 : i32
    %c0_i32_1 = arith.constant 0 : i32
    %c0_i32_2 = arith.constant 0 : i32
    return %c0_i32, %c0_i32_0, %c0_i32_1 : i32, i32, i32
  }
  func.func @transform_3(%arg0: i32) -> (i32, i32) {
    %c0_i32 = arith.constant 0 : i32
    %c0_i32_0 = arith.constant 0 : i32
    %c0_i32_1 = arith.constant 0 : i32
    return %c0_i32, %c0_i32_0 : i32, i32
  }
  func.func @transform_4(%arg0: i32) -> (i32, i32) {
    %c0_i32 = arith.constant 0 : i32
    %c0_i32_0 = arith.constant 0 : i32
    %c0_i32_1 = arith.constant 0 : i32
    return %c0_i32, %c0_i32_0 : i32, i32
  }
  func.func @transform_5(%arg0: i32) -> (i32, i32, i32) {
    %c0_i32 = arith.constant 0 : i32
    %c0_i32_0 = arith.constant 0 : i32
    %c0_i32_1 = arith.constant 0 : i32
    return %arg0, %c0_i32, %c0_i32_0 : i32, i32, i32
  }
}

module attributes {stable_mosaic.version = 11 : i64} {
  func.func @_conv_bn_relu_pool_kernel(%arg0: i32, %arg1: memref<1x34x64x96xbf16, #tpu.memory_space<vmem>>, %arg2: memref<1x34x64x96xbf16, #tpu.memory_space<vmem>>, %arg3: memref<3x96x64xbf16, #tpu.memory_space<vmem>>, %arg4: memref<1x64xf32, #tpu.memory_space<vmem>>, %arg5: memref<1x64xf32, #tpu.memory_space<vmem>>, %arg6: memref<1x1024x64xbf16, #tpu.memory_space<vmem>>) attributes {dimension_semantics = [#tpu.dimension_semantics<parallel>], iteration_bounds = array<i64: 2>, scalar_prefetch = 0 : i64, scratch_operands = 0 : i64, tpu.core_type = #tpu.core_type<tc>, window_params = [{transform_indices = @transform_0, window_bounds = array<i64: 1, 34, 64, 96>}, {transform_indices = @transform_1, window_bounds = array<i64: 1, 34, 64, 96>}, {pipeline_mode = #tpu.pipeline_mode<synchronous>, transform_indices = @transform_2, window_bounds = array<i64: 3, 96, 64>}, {pipeline_mode = #tpu.pipeline_mode<synchronous>, transform_indices = @transform_3, window_bounds = array<i64: 1, 64>}, {pipeline_mode = #tpu.pipeline_mode<synchronous>, transform_indices = @transform_4, window_bounds = array<i64: 1, 64>}, {transform_indices = @transform_5, window_bounds = array<i64: 1, 1024, 64>}]} {
    %c0 = arith.constant 0 : index
    %c0_0 = arith.constant 0 : index
    %0 = vector.load %arg4[%c0, %c0_0] : memref<1x64xf32, #tpu.memory_space<vmem>>, vector<1x64xf32>
    %c0_1 = arith.constant 0 : index
    %c0_2 = arith.constant 0 : index
    %1 = vector.load %arg5[%c0_1, %c0_2] : memref<1x64xf32, #tpu.memory_space<vmem>>, vector<1x64xf32>
    %c0_i32 = arith.constant 0 : i32
    %c8_i32 = arith.constant 8 : i32
    %2 = arith.addi %c0_i32, %c8_i32 : i32
    %c1_i32 = arith.constant 1 : i32
    scf.for %arg7 = %c0_i32 to %2 step %c1_i32  : i32 {
      %c4_i32 = arith.constant 4 : i32
      %3 = arith.muli %arg7, %c4_i32 : i32
      %cst = arith.constant 0.000000e+00 : f32
      %4 = vector.broadcast %cst : f32 to vector<256x64xf32>
      %cst_4 = arith.constant 0.000000e+00 : f32
      %5 = vector.broadcast %cst_4 : f32 to vector<256x64xf32>
      %c0_5 = arith.constant 0 : index
      %c0_6 = arith.constant 0 : index
      %c0_7 = arith.constant 0 : index
      %6 = vector.load %arg3[%c0_5, %c0_6, %c0_7] : memref<3x96x64xbf16, #tpu.memory_space<vmem>>, vector<1x96x64xbf16>
      %7 = vector.shape_cast %6 : vector<1x96x64xbf16> to vector<96x64xbf16>
      %c0_i32_8 = arith.constant 0 : i32
      %8 = arith.addi %3, %c0_i32_8 : i32
      %c0_9 = arith.constant 0 : index
      %9 = arith.index_cast %8 : i32 to index
      %c0_10 = arith.constant 0 : index
      %c0_11 = arith.constant 0 : index
      %10 = vector.load %arg1[%c0_9, %9, %c0_10, %c0_11] : memref<1x34x64x96xbf16, #tpu.memory_space<vmem>>, vector<1x4x64x96xbf16>
      %11 = vector.shape_cast %10 : vector<1x4x64x96xbf16> to vector<4x64x96xbf16>
      %12 = vector.shape_cast %11 : vector<4x64x96xbf16> to vector<256x96xbf16>
      %c0_i32_12 = arith.constant 0 : i32
      %13 = arith.addi %3, %c0_i32_12 : i32
      %c0_13 = arith.constant 0 : index
      %14 = arith.index_cast %13 : i32 to index
      %c0_14 = arith.constant 0 : index
      %c0_15 = arith.constant 0 : index
      %15 = vector.load %arg2[%c0_13, %14, %c0_14, %c0_15] : memref<1x34x64x96xbf16, #tpu.memory_space<vmem>>, vector<1x4x64x96xbf16>
      %16 = vector.shape_cast %15 : vector<1x4x64x96xbf16> to vector<4x64x96xbf16>
      %17 = vector.shape_cast %16 : vector<4x64x96xbf16> to vector<256x96xbf16>
      %cst_16 = arith.constant dense<0.000000e+00> : vector<256x64xf32>
      %18 = tpu.matmul %12, %7, %cst_16 {dimension_numbers = #tpu.dot_dimension_numbers<[1], [0], [0], [1], [0, 0, 1, 1], [], []>} : vector<256x96xbf16>, vector<96x64xbf16>, vector<256x64xf32> -> vector<256x64xf32>
      %19 = arith.addf %4, %18 : vector<256x64xf32>
      %cst_17 = arith.constant dense<0.000000e+00> : vector<256x64xf32>
      %20 = tpu.matmul %17, %7, %cst_17 {dimension_numbers = #tpu.dot_dimension_numbers<[1], [0], [0], [1], [0, 0, 1, 1], [], []>} : vector<256x96xbf16>, vector<96x64xbf16>, vector<256x64xf32> -> vector<256x64xf32>
      %21 = arith.addf %5, %20 : vector<256x64xf32>
      %c1 = arith.constant 1 : index
      %c0_18 = arith.constant 0 : index
      %c0_19 = arith.constant 0 : index
      %22 = vector.load %arg3[%c1, %c0_18, %c0_19] : memref<3x96x64xbf16, #tpu.memory_space<vmem>>, vector<1x96x64xbf16>
      %23 = vector.shape_cast %22 : vector<1x96x64xbf16> to vector<96x64xbf16>
      %c1_i32_20 = arith.constant 1 : i32
      %24 = arith.addi %3, %c1_i32_20 : i32
      %c0_21 = arith.constant 0 : index
      %25 = arith.index_cast %24 : i32 to index
      %c0_22 = arith.constant 0 : index
      %c0_23 = arith.constant 0 : index
      %26 = vector.load %arg1[%c0_21, %25, %c0_22, %c0_23] : memref<1x34x64x96xbf16, #tpu.memory_space<vmem>>, vector<1x4x64x96xbf16>
      %27 = vector.shape_cast %26 : vector<1x4x64x96xbf16> to vector<4x64x96xbf16>
      %28 = vector.shape_cast %27 : vector<4x64x96xbf16> to vector<256x96xbf16>
      %c1_i32_24 = arith.constant 1 : i32
      %29 = arith.addi %3, %c1_i32_24 : i32
      %c0_25 = arith.constant 0 : index
      %30 = arith.index_cast %29 : i32 to index
      %c0_26 = arith.constant 0 : index
      %c0_27 = arith.constant 0 : index
      %31 = vector.load %arg2[%c0_25, %30, %c0_26, %c0_27] : memref<1x34x64x96xbf16, #tpu.memory_space<vmem>>, vector<1x4x64x96xbf16>
      %32 = vector.shape_cast %31 : vector<1x4x64x96xbf16> to vector<4x64x96xbf16>
      %33 = vector.shape_cast %32 : vector<4x64x96xbf16> to vector<256x96xbf16>
      %cst_28 = arith.constant dense<0.000000e+00> : vector<256x64xf32>
      %34 = tpu.matmul %28, %23, %cst_28 {dimension_numbers = #tpu.dot_dimension_numbers<[1], [0], [0], [1], [0, 0, 1, 1], [], []>} : vector<256x96xbf16>, vector<96x64xbf16>, vector<256x64xf32> -> vector<256x64xf32>
      %35 = arith.addf %19, %34 : vector<256x64xf32>
      %cst_29 = arith.constant dense<0.000000e+00> : vector<256x64xf32>
      %36 = tpu.matmul %33, %23, %cst_29 {dimension_numbers = #tpu.dot_dimension_numbers<[1], [0], [0], [1], [0, 0, 1, 1], [], []>} : vector<256x96xbf16>, vector<96x64xbf16>, vector<256x64xf32> -> vector<256x64xf32>
      %37 = arith.addf %21, %36 : vector<256x64xf32>
      %c2 = arith.constant 2 : index
      %c0_30 = arith.constant 0 : index
      %c0_31 = arith.constant 0 : index
      %38 = vector.load %arg3[%c2, %c0_30, %c0_31] : memref<3x96x64xbf16, #tpu.memory_space<vmem>>, vector<1x96x64xbf16>
      %39 = vector.shape_cast %38 : vector<1x96x64xbf16> to vector<96x64xbf16>
      %c2_i32 = arith.constant 2 : i32
      %40 = arith.addi %3, %c2_i32 : i32
      %c0_32 = arith.constant 0 : index
      %41 = arith.index_cast %40 : i32 to index
      %c0_33 = arith.constant 0 : index
      %c0_34 = arith.constant 0 : index
      %42 = vector.load %arg1[%c0_32, %41, %c0_33, %c0_34] : memref<1x34x64x96xbf16, #tpu.memory_space<vmem>>, vector<1x4x64x96xbf16>
      %43 = vector.shape_cast %42 : vector<1x4x64x96xbf16> to vector<4x64x96xbf16>
      %44 = vector.shape_cast %43 : vector<4x64x96xbf16> to vector<256x96xbf16>
      %c2_i32_35 = arith.constant 2 : i32
      %45 = arith.addi %3, %c2_i32_35 : i32
      %c0_36 = arith.constant 0 : index
      %46 = arith.index_cast %45 : i32 to index
      %c0_37 = arith.constant 0 : index
      %c0_38 = arith.constant 0 : index
      %47 = vector.load %arg2[%c0_36, %46, %c0_37, %c0_38] : memref<1x34x64x96xbf16, #tpu.memory_space<vmem>>, vector<1x4x64x96xbf16>
      %48 = vector.shape_cast %47 : vector<1x4x64x96xbf16> to vector<4x64x96xbf16>
      %49 = vector.shape_cast %48 : vector<4x64x96xbf16> to vector<256x96xbf16>
      %cst_39 = arith.constant dense<0.000000e+00> : vector<256x64xf32>
      %50 = tpu.matmul %44, %39, %cst_39 {dimension_numbers = #tpu.dot_dimension_numbers<[1], [0], [0], [1], [0, 0, 1, 1], [], []>} : vector<256x96xbf16>, vector<96x64xbf16>, vector<256x64xf32> -> vector<256x64xf32>
      %51 = arith.addf %35, %50 : vector<256x64xf32>
      %cst_40 = arith.constant dense<0.000000e+00> : vector<256x64xf32>
      %52 = tpu.matmul %49, %39, %cst_40 {dimension_numbers = #tpu.dot_dimension_numbers<[1], [0], [0], [1], [0, 0, 1, 1], [], []>} : vector<256x96xbf16>, vector<96x64xbf16>, vector<256x64xf32> -> vector<256x64xf32>
      %53 = arith.addf %37, %52 : vector<256x64xf32>
      %54 = vector.broadcast %0 : vector<1x64xf32> to vector<256x64xf32>
      %55 = arith.mulf %51, %54 : vector<256x64xf32>
      %56 = vector.broadcast %1 : vector<1x64xf32> to vector<256x64xf32>
      %57 = arith.addf %55, %56 : vector<256x64xf32>
      %cst_41 = arith.constant 0.000000e+00 : f32
      %58 = vector.broadcast %cst_41 : f32 to vector<256x64xf32>
      %59 = arith.maximumf %57, %58 : vector<256x64xf32>
      %60 = vector.broadcast %0 : vector<1x64xf32> to vector<256x64xf32>
      %61 = arith.mulf %53, %60 : vector<256x64xf32>
      %62 = vector.broadcast %1 : vector<1x64xf32> to vector<256x64xf32>
      %63 = arith.addf %61, %62 : vector<256x64xf32>
      %cst_42 = arith.constant 0.000000e+00 : f32
      %64 = vector.broadcast %cst_42 : f32 to vector<256x64xf32>
      %65 = arith.maximumf %63, %64 : vector<256x64xf32>
      %66 = arith.maximumf %59, %65 : vector<256x64xf32>
      %67 = vector.shape_cast %66 : vector<256x64xf32> to vector<2x2x64x64xf32>
      %68 = vector.extract_strided_slice %67 {offsets = [0, 0, 0, 0], sizes = [2, 1, 64, 64], strides = [1, 1, 1, 1]} : vector<2x2x64x64xf32> to vector<2x1x64x64xf32>
      %69 = vector.shape_cast %68 : vector<2x1x64x64xf32> to vector<2x64x64xf32>
      %70 = vector.extract_strided_slice %67 {offsets = [0, 1, 0, 0], sizes = [2, 1, 64, 64], strides = [1, 1, 1, 1]} : vector<2x2x64x64xf32> to vector<2x1x64x64xf32>
      %71 = vector.shape_cast %70 : vector<2x1x64x64xf32> to vector<2x64x64xf32>
      %72 = arith.maximumf %69, %71 : vector<2x64x64xf32>
      %c128_i32 = arith.constant 128 : i32
      %73 = arith.muli %arg7, %c128_i32 : i32
      %74 = tpu.assume_multiple %73, 128 : i32
      %75 = vector.shape_cast %72 : vector<2x64x64xf32> to vector<128x64xf32>
      %76 = arith.truncf %75 : vector<128x64xf32> to vector<128x64xbf16>
      %c0_43 = arith.constant 0 : index
      %77 = arith.index_cast %74 : i32 to index
      %c0_44 = arith.constant 0 : index
      %78 = vector.load %arg6[%c0_43, %77, %c0_44] : memref<1x1024x64xbf16, #tpu.memory_space<vmem>>, vector<1x128x64xbf16>
      %79 = vector.shape_cast %78 : vector<1x128x64xbf16> to vector<128x64xbf16>
      %80 = vector.shape_cast %76 : vector<128x64xbf16> to vector<1x128x64xbf16>
      tpu.vector_store %arg6[%c0_43, %77, %c0_44], %80 {strides = array<i32>} : memref<1x1024x64xbf16, #tpu.memory_space<vmem>>, vector<1x128x64xbf16>,
    }
    %c8_i32_3 = arith.constant 8 : i32
    return
  }
  func.func @transform_0(%arg0: i32) -> (i32, i32, i32, i32) {
    %c0_i32 = arith.constant 0 : i32
    %c0_i32_0 = arith.constant 0 : i32
    %c0_i32_1 = arith.constant 0 : i32
    %c0_i32_2 = arith.constant 0 : i32
    return %arg0, %c0_i32, %c0_i32_0, %c0_i32_1 : i32, i32, i32, i32
  }
  func.func @transform_1(%arg0: i32) -> (i32, i32, i32, i32) {
    %c0_i32 = arith.constant 0 : i32
    %c0_i32_0 = arith.constant 0 : i32
    %c0_i32_1 = arith.constant 0 : i32
    %c0_i32_2 = arith.constant 0 : i32
    return %arg0, %c0_i32, %c0_i32_0, %c0_i32_1 : i32, i32, i32, i32
  }
  func.func @transform_2(%arg0: i32) -> (i32, i32, i32) {
    %c0_i32 = arith.constant 0 : i32
    %c0_i32_0 = arith.constant 0 : i32
    %c0_i32_1 = arith.constant 0 : i32
    %c0_i32_2 = arith.constant 0 : i32
    return %c0_i32, %c0_i32_0, %c0_i32_1 : i32, i32, i32
  }
  func.func @transform_3(%arg0: i32) -> (i32, i32) {
    %c0_i32 = arith.constant 0 : i32
    %c0_i32_0 = arith.constant 0 : i32
    %c0_i32_1 = arith.constant 0 : i32
    return %c0_i32, %c0_i32_0 : i32, i32
  }
  func.func @transform_4(%arg0: i32) -> (i32, i32) {
    %c0_i32 = arith.constant 0 : i32
    %c0_i32_0 = arith.constant 0 : i32
    %c0_i32_1 = arith.constant 0 : i32
    return %c0_i32, %c0_i32_0 : i32, i32
  }
  func.func @transform_5(%arg0: i32) -> (i32, i32, i32) {
    %c0_i32 = arith.constant 0 : i32
    %c0_i32_0 = arith.constant 0 : i32
    %c0_i32_1 = arith.constant 0 : i32
    return %arg0, %c0_i32, %c0_i32_0 : i32, i32, i32
  }
}

module attributes {stable_mosaic.version = 11 : i64} {
  func.func @_conv_bn_relu_pool_kernel(%arg0: i32, %arg1: memref<1x18x32x192xbf16, #tpu.memory_space<vmem>>, %arg2: memref<1x18x32x192xbf16, #tpu.memory_space<vmem>>, %arg3: memref<3x192x128xbf16, #tpu.memory_space<vmem>>, %arg4: memref<1x128xf32, #tpu.memory_space<vmem>>, %arg5: memref<1x128xf32, #tpu.memory_space<vmem>>, %arg6: memref<1x256x128xbf16, #tpu.memory_space<vmem>>) attributes {dimension_semantics = [#tpu.dimension_semantics<parallel>], iteration_bounds = array<i64: 2>, scalar_prefetch = 0 : i64, scratch_operands = 0 : i64, tpu.core_type = #tpu.core_type<tc>, window_params = [{transform_indices = @transform_0, window_bounds = array<i64: 1, 18, 32, 192>}, {transform_indices = @transform_1, window_bounds = array<i64: 1, 18, 32, 192>}, {pipeline_mode = #tpu.pipeline_mode<synchronous>, transform_indices = @transform_2, window_bounds = array<i64: 3, 192, 128>}, {pipeline_mode = #tpu.pipeline_mode<synchronous>, transform_indices = @transform_3, window_bounds = array<i64: 1, 128>}, {pipeline_mode = #tpu.pipeline_mode<synchronous>, transform_indices = @transform_4, window_bounds = array<i64: 1, 128>}, {transform_indices = @transform_5, window_bounds = array<i64: 1, 256, 128>}]} {
    %c0 = arith.constant 0 : index
    %c0_0 = arith.constant 0 : index
    %0 = vector.load %arg4[%c0, %c0_0] : memref<1x128xf32, #tpu.memory_space<vmem>>, vector<1x128xf32>
    %c0_1 = arith.constant 0 : index
    %c0_2 = arith.constant 0 : index
    %1 = vector.load %arg5[%c0_1, %c0_2] : memref<1x128xf32, #tpu.memory_space<vmem>>, vector<1x128xf32>
    %c0_i32 = arith.constant 0 : i32
    %c4_i32 = arith.constant 4 : i32
    %2 = arith.addi %c0_i32, %c4_i32 : i32
    %c1_i32 = arith.constant 1 : i32
    scf.for %arg7 = %c0_i32 to %2 step %c1_i32  : i32 {
      %c4_i32_4 = arith.constant 4 : i32
      %3 = arith.muli %arg7, %c4_i32_4 : i32
      %cst = arith.constant 0.000000e+00 : f32
      %4 = vector.broadcast %cst : f32 to vector<128x128xf32>
      %cst_5 = arith.constant 0.000000e+00 : f32
      %5 = vector.broadcast %cst_5 : f32 to vector<128x128xf32>
      %c0_6 = arith.constant 0 : index
      %c0_7 = arith.constant 0 : index
      %c0_8 = arith.constant 0 : index
      %6 = vector.load %arg3[%c0_6, %c0_7, %c0_8] : memref<3x192x128xbf16, #tpu.memory_space<vmem>>, vector<1x192x128xbf16>
      %7 = vector.shape_cast %6 : vector<1x192x128xbf16> to vector<192x128xbf16>
      %c0_i32_9 = arith.constant 0 : i32
      %8 = arith.addi %3, %c0_i32_9 : i32
      %c0_10 = arith.constant 0 : index
      %9 = arith.index_cast %8 : i32 to index
      %c0_11 = arith.constant 0 : index
      %c0_12 = arith.constant 0 : index
      %10 = vector.load %arg1[%c0_10, %9, %c0_11, %c0_12] : memref<1x18x32x192xbf16, #tpu.memory_space<vmem>>, vector<1x4x32x192xbf16>
      %11 = vector.shape_cast %10 : vector<1x4x32x192xbf16> to vector<4x32x192xbf16>
      %12 = vector.shape_cast %11 : vector<4x32x192xbf16> to vector<128x192xbf16>
      %c0_i32_13 = arith.constant 0 : i32
      %13 = arith.addi %3, %c0_i32_13 : i32
      %c0_14 = arith.constant 0 : index
      %14 = arith.index_cast %13 : i32 to index
      %c0_15 = arith.constant 0 : index
      %c0_16 = arith.constant 0 : index
      %15 = vector.load %arg2[%c0_14, %14, %c0_15, %c0_16] : memref<1x18x32x192xbf16, #tpu.memory_space<vmem>>, vector<1x4x32x192xbf16>
      %16 = vector.shape_cast %15 : vector<1x4x32x192xbf16> to vector<4x32x192xbf16>
      %17 = vector.shape_cast %16 : vector<4x32x192xbf16> to vector<128x192xbf16>
      %cst_17 = arith.constant dense<0.000000e+00> : vector<128x128xf32>
      %18 = tpu.matmul %12, %7, %cst_17 {dimension_numbers = #tpu.dot_dimension_numbers<[1], [0], [0], [1], [0, 0, 1, 1], [], []>} : vector<128x192xbf16>, vector<192x128xbf16>, vector<128x128xf32> -> vector<128x128xf32>
      %19 = arith.addf %4, %18 : vector<128x128xf32>
      %cst_18 = arith.constant dense<0.000000e+00> : vector<128x128xf32>
      %20 = tpu.matmul %17, %7, %cst_18 {dimension_numbers = #tpu.dot_dimension_numbers<[1], [0], [0], [1], [0, 0, 1, 1], [], []>} : vector<128x192xbf16>, vector<192x128xbf16>, vector<128x128xf32> -> vector<128x128xf32>
      %21 = arith.addf %5, %20 : vector<128x128xf32>
      %c1 = arith.constant 1 : index
      %c0_19 = arith.constant 0 : index
      %c0_20 = arith.constant 0 : index
      %22 = vector.load %arg3[%c1, %c0_19, %c0_20] : memref<3x192x128xbf16, #tpu.memory_space<vmem>>, vector<1x192x128xbf16>
      %23 = vector.shape_cast %22 : vector<1x192x128xbf16> to vector<192x128xbf16>
      %c1_i32_21 = arith.constant 1 : i32
      %24 = arith.addi %3, %c1_i32_21 : i32
      %c0_22 = arith.constant 0 : index
      %25 = arith.index_cast %24 : i32 to index
      %c0_23 = arith.constant 0 : index
      %c0_24 = arith.constant 0 : index
      %26 = vector.load %arg1[%c0_22, %25, %c0_23, %c0_24] : memref<1x18x32x192xbf16, #tpu.memory_space<vmem>>, vector<1x4x32x192xbf16>
      %27 = vector.shape_cast %26 : vector<1x4x32x192xbf16> to vector<4x32x192xbf16>
      %28 = vector.shape_cast %27 : vector<4x32x192xbf16> to vector<128x192xbf16>
      %c1_i32_25 = arith.constant 1 : i32
      %29 = arith.addi %3, %c1_i32_25 : i32
      %c0_26 = arith.constant 0 : index
      %30 = arith.index_cast %29 : i32 to index
      %c0_27 = arith.constant 0 : index
      %c0_28 = arith.constant 0 : index
      %31 = vector.load %arg2[%c0_26, %30, %c0_27, %c0_28] : memref<1x18x32x192xbf16, #tpu.memory_space<vmem>>, vector<1x4x32x192xbf16>
      %32 = vector.shape_cast %31 : vector<1x4x32x192xbf16> to vector<4x32x192xbf16>
      %33 = vector.shape_cast %32 : vector<4x32x192xbf16> to vector<128x192xbf16>
      %cst_29 = arith.constant dense<0.000000e+00> : vector<128x128xf32>
      %34 = tpu.matmul %28, %23, %cst_29 {dimension_numbers = #tpu.dot_dimension_numbers<[1], [0], [0], [1], [0, 0, 1, 1], [], []>} : vector<128x192xbf16>, vector<192x128xbf16>, vector<128x128xf32> -> vector<128x128xf32>
      %35 = arith.addf %19, %34 : vector<128x128xf32>
      %cst_30 = arith.constant dense<0.000000e+00> : vector<128x128xf32>
      %36 = tpu.matmul %33, %23, %cst_30 {dimension_numbers = #tpu.dot_dimension_numbers<[1], [0], [0], [1], [0, 0, 1, 1], [], []>} : vector<128x192xbf16>, vector<192x128xbf16>, vector<128x128xf32> -> vector<128x128xf32>
      %37 = arith.addf %21, %36 : vector<128x128xf32>
      %c2 = arith.constant 2 : index
      %c0_31 = arith.constant 0 : index
      %c0_32 = arith.constant 0 : index
      %38 = vector.load %arg3[%c2, %c0_31, %c0_32] : memref<3x192x128xbf16, #tpu.memory_space<vmem>>, vector<1x192x128xbf16>
      %39 = vector.shape_cast %38 : vector<1x192x128xbf16> to vector<192x128xbf16>
      %c2_i32 = arith.constant 2 : i32
      %40 = arith.addi %3, %c2_i32 : i32
      %c0_33 = arith.constant 0 : index
      %41 = arith.index_cast %40 : i32 to index
      %c0_34 = arith.constant 0 : index
      %c0_35 = arith.constant 0 : index
      %42 = vector.load %arg1[%c0_33, %41, %c0_34, %c0_35] : memref<1x18x32x192xbf16, #tpu.memory_space<vmem>>, vector<1x4x32x192xbf16>
      %43 = vector.shape_cast %42 : vector<1x4x32x192xbf16> to vector<4x32x192xbf16>
      %44 = vector.shape_cast %43 : vector<4x32x192xbf16> to vector<128x192xbf16>
      %c2_i32_36 = arith.constant 2 : i32
      %45 = arith.addi %3, %c2_i32_36 : i32
      %c0_37 = arith.constant 0 : index
      %46 = arith.index_cast %45 : i32 to index
      %c0_38 = arith.constant 0 : index
      %c0_39 = arith.constant 0 : index
      %47 = vector.load %arg2[%c0_37, %46, %c0_38, %c0_39] : memref<1x18x32x192xbf16, #tpu.memory_space<vmem>>, vector<1x4x32x192xbf16>
      %48 = vector.shape_cast %47 : vector<1x4x32x192xbf16> to vector<4x32x192xbf16>
      %49 = vector.shape_cast %48 : vector<4x32x192xbf16> to vector<128x192xbf16>
      %cst_40 = arith.constant dense<0.000000e+00> : vector<128x128xf32>
      %50 = tpu.matmul %44, %39, %cst_40 {dimension_numbers = #tpu.dot_dimension_numbers<[1], [0], [0], [1], [0, 0, 1, 1], [], []>} : vector<128x192xbf16>, vector<192x128xbf16>, vector<128x128xf32> -> vector<128x128xf32>
      %51 = arith.addf %35, %50 : vector<128x128xf32>
      %cst_41 = arith.constant dense<0.000000e+00> : vector<128x128xf32>
      %52 = tpu.matmul %49, %39, %cst_41 {dimension_numbers = #tpu.dot_dimension_numbers<[1], [0], [0], [1], [0, 0, 1, 1], [], []>} : vector<128x192xbf16>, vector<192x128xbf16>, vector<128x128xf32> -> vector<128x128xf32>
      %53 = arith.addf %37, %52 : vector<128x128xf32>
      %54 = vector.broadcast %0 : vector<1x128xf32> to vector<128x128xf32>
      %55 = arith.mulf %51, %54 : vector<128x128xf32>
      %56 = vector.broadcast %1 : vector<1x128xf32> to vector<128x128xf32>
      %57 = arith.addf %55, %56 : vector<128x128xf32>
      %cst_42 = arith.constant 0.000000e+00 : f32
      %58 = vector.broadcast %cst_42 : f32 to vector<128x128xf32>
      %59 = arith.maximumf %57, %58 : vector<128x128xf32>
      %60 = vector.broadcast %0 : vector<1x128xf32> to vector<128x128xf32>
      %61 = arith.mulf %53, %60 : vector<128x128xf32>
      %62 = vector.broadcast %1 : vector<1x128xf32> to vector<128x128xf32>
      %63 = arith.addf %61, %62 : vector<128x128xf32>
      %cst_43 = arith.constant 0.000000e+00 : f32
      %64 = vector.broadcast %cst_43 : f32 to vector<128x128xf32>
      %65 = arith.maximumf %63, %64 : vector<128x128xf32>
      %66 = arith.maximumf %59, %65 : vector<128x128xf32>
      %67 = vector.shape_cast %66 : vector<128x128xf32> to vector<2x2x32x128xf32>
      %68 = vector.extract_strided_slice %67 {offsets = [0, 0, 0, 0], sizes = [2, 1, 32, 128], strides = [1, 1, 1, 1]} : vector<2x2x32x128xf32> to vector<2x1x32x128xf32>
      %69 = vector.shape_cast %68 : vector<2x1x32x128xf32> to vector<2x32x128xf32>
      %70 = vector.extract_strided_slice %67 {offsets = [0, 1, 0, 0], sizes = [2, 1, 32, 128], strides = [1, 1, 1, 1]} : vector<2x2x32x128xf32> to vector<2x1x32x128xf32>
      %71 = vector.shape_cast %70 : vector<2x1x32x128xf32> to vector<2x32x128xf32>
      %72 = arith.maximumf %69, %71 : vector<2x32x128xf32>
      %c64_i32 = arith.constant 64 : i32
      %73 = arith.muli %arg7, %c64_i32 : i32
      %74 = tpu.assume_multiple %73, 64 : i32
      %75 = vector.shape_cast %72 : vector<2x32x128xf32> to vector<64x128xf32>
      %76 = arith.truncf %75 : vector<64x128xf32> to vector<64x128xbf16>
      %c0_44 = arith.constant 0 : index
      %77 = arith.index_cast %74 : i32 to index
      %c0_45 = arith.constant 0 : index
      %78 = vector.load %arg6[%c0_44, %77, %c0_45] : memref<1x256x128xbf16, #tpu.memory_space<vmem>>, vector<1x64x128xbf16>
      %79 = vector.shape_cast %78 : vector<1x64x128xbf16> to vector<64x128xbf16>
      %80 = vector.shape_cast %76 : vector<64x128xbf16> to vector<1x64x128xbf16>
      tpu.vector_store %arg6[%c0_44, %77, %c0_45], %80 {strides = array<i32>} : memref<1x256x128xbf16, #tpu.memory_space<vmem>>, vector<1x64x128xbf16>,
    }
    %c4_i32_3 = arith.constant 4 : i32
    return
  }
  func.func @transform_0(%arg0: i32) -> (i32, i32, i32, i32) {
    %c0_i32 = arith.constant 0 : i32
    %c0_i32_0 = arith.constant 0 : i32
    %c0_i32_1 = arith.constant 0 : i32
    %c0_i32_2 = arith.constant 0 : i32
    return %arg0, %c0_i32, %c0_i32_0, %c0_i32_1 : i32, i32, i32, i32
  }
  func.func @transform_1(%arg0: i32) -> (i32, i32, i32, i32) {
    %c0_i32 = arith.constant 0 : i32
    %c0_i32_0 = arith.constant 0 : i32
    %c0_i32_1 = arith.constant 0 : i32
    %c0_i32_2 = arith.constant 0 : i32
    return %arg0, %c0_i32, %c0_i32_0, %c0_i32_1 : i32, i32, i32, i32
  }
  func.func @transform_2(%arg0: i32) -> (i32, i32, i32) {
    %c0_i32 = arith.constant 0 : i32
    %c0_i32_0 = arith.constant 0 : i32
    %c0_i32_1 = arith.constant 0 : i32
    %c0_i32_2 = arith.constant 0 : i32
    return %c0_i32, %c0_i32_0, %c0_i32_1 : i32, i32, i32
  }
  func.func @transform_3(%arg0: i32) -> (i32, i32) {
    %c0_i32 = arith.constant 0 : i32
    %c0_i32_0 = arith.constant 0 : i32
    %c0_i32_1 = arith.constant 0 : i32
    return %c0_i32, %c0_i32_0 : i32, i32
  }
  func.func @transform_4(%arg0: i32) -> (i32, i32) {
    %c0_i32 = arith.constant 0 : i32
    %c0_i32_0 = arith.constant 0 : i32
    %c0_i32_1 = arith.constant 0 : i32
    return %c0_i32, %c0_i32_0 : i32, i32
  }
  func.func @transform_5(%arg0: i32) -> (i32, i32, i32) {
    %c0_i32 = arith.constant 0 : i32
    %c0_i32_0 = arith.constant 0 : i32
    %c0_i32_1 = arith.constant 0 : i32
    return %arg0, %c0_i32, %c0_i32_0 : i32, i32, i32
  }
}

module attributes {stable_mosaic.version = 11 : i64} {
  func.func @_matmul_bias_kernel(%arg0: i32, %arg1: i32, %arg2: i32, %arg3: memref<2x8192xbf16, #tpu.memory_space<vmem>>, %arg4: memref<8192x256xbf16, #tpu.memory_space<vmem>>, %arg5: memref<1x256xf32, #tpu.memory_space<vmem>>, %arg6: memref<2x256xf32, #tpu.memory_space<vmem>>) attributes {dimension_semantics = [#tpu.dimension_semantics<parallel>, #tpu.dimension_semantics<parallel>, #tpu.dimension_semantics<arbitrary>], iteration_bounds = array<i64: 1, 2, 4>, scalar_prefetch = 0 : i64, scratch_operands = 0 : i64, tpu.core_type = #tpu.core_type<tc>, window_params = [{transform_indices = @transform_0, window_bounds = array<i64: 2, 8192>}, {transform_indices = @transform_1, window_bounds = array<i64: 8192, 256>}, {transform_indices = @transform_2, window_bounds = array<i64: 1, 256>}, {transform_indices = @transform_3, window_bounds = array<i64: 2, 256>}]} {
    %c0_i32 = arith.constant 0 : i32
    %0 = arith.cmpi eq, %arg2, %c0_i32 : i32
    %1 = arith.extui %0 : i1 to i32
    %c0_i32_0 = arith.constant 0 : i32
    %2 = arith.cmpi ne, %1, %c0_i32_0 : i32
    scf.if %2 {
      %cst_9 = arith.constant 0.000000e+00 : f32
      %12 = vector.broadcast %cst_9 : f32 to vector<2x256xf32>
      %c0_10 = arith.constant 0 : index
      %c0_11 = arith.constant 0 : index
      %13 = vector.load %arg6[%c0_10, %c0_11] : memref<2x256xf32, #tpu.memory_space<vmem>>, vector<2x256xf32>
      tpu.vector_store %arg6[%c0_10, %c0_11], %12 {strides = array<i32>} : memref<2x256xf32, #tpu.memory_space<vmem>>, vector<2x256xf32>,
    } else {
    }
    %c0 = arith.constant 0 : index
    %c0_1 = arith.constant 0 : index
    %3 = vector.load %arg6[%c0, %c0_1] : memref<2x256xf32, #tpu.memory_space<vmem>>, vector<2x256xf32>
    %c0_2 = arith.constant 0 : index
    %c0_3 = arith.constant 0 : index
    %4 = vector.load %arg3[%c0_2, %c0_3] : memref<2x8192xbf16, #tpu.memory_space<vmem>>, vector<2x8192xbf16>
    %c0_4 = arith.constant 0 : index
    %c0_5 = arith.constant 0 : index
    %5 = vector.load %arg4[%c0_4, %c0_5] : memref<8192x256xbf16, #tpu.memory_space<vmem>>, vector<8192x256xbf16>
    %cst = arith.constant dense<0.000000e+00> : vector<2x256xf32>
    %6 = tpu.matmul %4, %5, %cst {dimension_numbers = #tpu.dot_dimension_numbers<[1], [0], [0], [1], [0, 0, 1, 1], [], []>} : vector<2x8192xbf16>, vector<8192x256xbf16>, vector<2x256xf32> -> vector<2x256xf32>
    %7 = arith.addf %3, %6 : vector<2x256xf32>
    %c0_6 = arith.constant 0 : index
    %c0_7 = arith.constant 0 : index
    %8 = vector.load %arg6[%c0_6, %c0_7] : memref<2x256xf32, #tpu.memory_space<vmem>>, vector<2x256xf32>
    tpu.vector_store %arg6[%c0_6, %c0_7], %7 {strides = array<i32>} : memref<2x256xf32, #tpu.memory_space<vmem>>, vector<2x256xf32>,
    %c3_i32 = arith.constant 3 : i32
    %9 = arith.cmpi eq, %arg2, %c3_i32 : i32
    %10 = arith.extui %9 : i1 to i32
    %c0_i32_8 = arith.constant 0 : i32
    %11 = arith.cmpi ne, %10, %c0_i32_8 : i32
    scf.if %11 {
      %c0_9 = arith.constant 0 : index
      %c0_10 = arith.constant 0 : index
      %12 = vector.load %arg6[%c0_9, %c0_10] : memref<2x256xf32, #tpu.memory_space<vmem>>, vector<2x256xf32>
      %c0_11 = arith.constant 0 : index
      %c0_12 = arith.constant 0 : index
      %13 = vector.load %arg5[%c0_11, %c0_12] : memref<1x256xf32, #tpu.memory_space<vmem>>, vector<1x256xf32>
      %14 = vector.broadcast %13 : vector<1x256xf32> to vector<2x256xf32>
      %15 = arith.addf %12, %14 : vector<2x256xf32>
      %cst_13 = arith.constant 0.000000e+00 : f32
      %16 = vector.broadcast %cst_13 : f32 to vector<2x256xf32>
      %17 = arith.maximumf %15, %16 : vector<2x256xf32>
      %c0_14 = arith.constant 0 : index
      %c0_15 = arith.constant 0 : index
      %18 = vector.load %arg6[%c0_14, %c0_15] : memref<2x256xf32, #tpu.memory_space<vmem>>, vector<2x256xf32>
      tpu.vector_store %arg6[%c0_14, %c0_15], %17 {strides = array<i32>} : memref<2x256xf32, #tpu.memory_space<vmem>>, vector<2x256xf32>,
    } else {
    }
    return
  }
  func.func @transform_0(%arg0: i32, %arg1: i32, %arg2: i32) -> (i32, i32) {
    %c0_i32 = arith.constant 0 : i32
    return %arg0, %arg2 : i32, i32
  }
  func.func @transform_1(%arg0: i32, %arg1: i32, %arg2: i32) -> (i32, i32) {
    %c0_i32 = arith.constant 0 : i32
    return %arg2, %arg1 : i32, i32
  }
  func.func @transform_2(%arg0: i32, %arg1: i32, %arg2: i32) -> (i32, i32) {
    %c0_i32 = arith.constant 0 : i32
    %c0_i32_0 = arith.constant 0 : i32
    return %c0_i32, %arg1 : i32, i32
  }
  func.func @transform_3(%arg0: i32, %arg1: i32, %arg2: i32) -> (i32, i32) {
    %c0_i32 = arith.constant 0 : i32
    return %arg0, %arg1 : i32, i32
  }
}

module attributes {stable_mosaic.version = 11 : i64} {
  func.func @_matmul_bias_kernel(%arg0: i32, %arg1: i32, %arg2: i32, %arg3: memref<2x512xf32, #tpu.memory_space<vmem>>, %arg4: memref<512x8xf32, #tpu.memory_space<vmem>>, %arg5: memref<1x8xf32, #tpu.memory_space<vmem>>, %arg6: memref<2x8xf32, #tpu.memory_space<vmem>>) attributes {dimension_semantics = [#tpu.dimension_semantics<parallel>, #tpu.dimension_semantics<parallel>, #tpu.dimension_semantics<arbitrary>], iteration_bounds = array<i64: 1, 1, 1>, scalar_prefetch = 0 : i64, scratch_operands = 0 : i64, tpu.core_type = #tpu.core_type<tc>, window_params = [{transform_indices = @transform_0, window_bounds = array<i64: 2, 512>}, {transform_indices = @transform_1, window_bounds = array<i64: 512, 8>}, {transform_indices = @transform_2, window_bounds = array<i64: 1, 8>}, {transform_indices = @transform_3, window_bounds = array<i64: 2, 8>}]} {
    %c0_i32 = arith.constant 0 : i32
    %0 = arith.cmpi eq, %arg2, %c0_i32 : i32
    %1 = arith.extui %0 : i1 to i32
    %c0_i32_0 = arith.constant 0 : i32
    %2 = arith.cmpi ne, %1, %c0_i32_0 : i32
    scf.if %2 {
      %cst_10 = arith.constant 0.000000e+00 : f32
      %12 = vector.broadcast %cst_10 : f32 to vector<2x8xf32>
      %c0_11 = arith.constant 0 : index
      %c0_12 = arith.constant 0 : index
      %13 = vector.load %arg6[%c0_11, %c0_12] : memref<2x8xf32, #tpu.memory_space<vmem>>, vector<2x8xf32>
      tpu.vector_store %arg6[%c0_11, %c0_12], %12 {strides = array<i32>} : memref<2x8xf32, #tpu.memory_space<vmem>>, vector<2x8xf32>,
    } else {
    }
    %c0 = arith.constant 0 : index
    %c0_1 = arith.constant 0 : index
    %3 = vector.load %arg6[%c0, %c0_1] : memref<2x8xf32, #tpu.memory_space<vmem>>, vector<2x8xf32>
    %c0_2 = arith.constant 0 : index
    %c0_3 = arith.constant 0 : index
    %4 = vector.load %arg3[%c0_2, %c0_3] : memref<2x512xf32, #tpu.memory_space<vmem>>, vector<2x512xf32>
    %c0_4 = arith.constant 0 : index
    %c0_5 = arith.constant 0 : index
    %5 = vector.load %arg4[%c0_4, %c0_5] : memref<512x8xf32, #tpu.memory_space<vmem>>, vector<512x8xf32>
    %cst = arith.constant dense<0.000000e+00> : vector<2x8xf32>
    %6 = tpu.matmul %4, %5, %cst {dimension_numbers = #tpu.dot_dimension_numbers<[1], [0], [0], [1], [0, 0, 1, 1], [], []>} : vector<2x512xf32>, vector<512x8xf32>, vector<2x8xf32> -> vector<2x8xf32>
    %7 = arith.addf %3, %6 : vector<2x8xf32>
    %c0_6 = arith.constant 0 : index
    %c0_7 = arith.constant 0 : index
    %8 = vector.load %arg6[%c0_6, %c0_7] : memref<2x8xf32, #tpu.memory_space<vmem>>, vector<2x8xf32>
    tpu.vector_store %arg6[%c0_6, %c0_7], %7 {strides = array<i32>} : memref<2x8xf32, #tpu.memory_space<vmem>>, vector<2x8xf32>,
    %c0_i32_8 = arith.constant 0 : i32
    %9 = arith.cmpi eq, %arg2, %c0_i32_8 : i32
    %10 = arith.extui %9 : i1 to i32
    %c0_i32_9 = arith.constant 0 : i32
    %11 = arith.cmpi ne, %10, %c0_i32_9 : i32
    scf.if %11 {
      %c0_10 = arith.constant 0 : index
      %c0_11 = arith.constant 0 : index
      %12 = vector.load %arg6[%c0_10, %c0_11] : memref<2x8xf32, #tpu.memory_space<vmem>>, vector<2x8xf32>
      %c0_12 = arith.constant 0 : index
      %c0_13 = arith.constant 0 : index
      %13 = vector.load %arg5[%c0_12, %c0_13] : memref<1x8xf32, #tpu.memory_space<vmem>>, vector<1x8xf32>
      %14 = vector.broadcast %13 : vector<1x8xf32> to vector<2x8xf32>
      %15 = arith.addf %12, %14 : vector<2x8xf32>
      %c0_14 = arith.constant 0 : index
      %c0_15 = arith.constant 0 : index
      %16 = vector.load %arg6[%c0_14, %c0_15] : memref<2x8xf32, #tpu.memory_space<vmem>>, vector<2x8xf32>
      tpu.vector_store %arg6[%c0_14, %c0_15], %15 {strides = array<i32>} : memref<2x8xf32, #tpu.memory_space<vmem>>, vector<2x8xf32>,
    } else {
    }
    return
  }
  func.func @transform_0(%arg0: i32, %arg1: i32, %arg2: i32) -> (i32, i32) {
    %c0_i32 = arith.constant 0 : i32
    return %arg0, %arg2 : i32, i32
  }
  func.func @transform_1(%arg0: i32, %arg1: i32, %arg2: i32) -> (i32, i32) {
    %c0_i32 = arith.constant 0 : i32
    return %arg2, %arg1 : i32, i32
  }
  func.func @transform_2(%arg0: i32, %arg1: i32, %arg2: i32) -> (i32, i32) {
    %c0_i32 = arith.constant 0 : i32
    %c0_i32_0 = arith.constant 0 : i32
    return %c0_i32, %arg1 : i32, i32
  }
  func.func @transform_3(%arg0: i32, %arg1: i32, %arg2: i32) -> (i32, i32) {
    %c0_i32 = arith.constant 0 : i32
    return %arg0, %arg1 : i32, i32
  }
}

</mosaic_0001>

<bundles_post_ra>
// kernel: lpr_corner_net.5
= control target key start
LH: loop header
LB: loop body
LE: loop exit
PB: predicated region body
PF: predicated region fallthrough
CT: control target
= control target key end

     0   :  { %s6699_s18 = smov 0   ;;  %s7578_s0 = inlined_call_operand.vmem [shape: bf16[2,66,128,9], index: 0, kind: input, shape index: {}]   ;;  %s7579_s1 = inlined_call_operand.vmem [shape: bf16[2,66,128,9], index: 1, kind: input, shape index: {}]   ;;  %s7580_s2 = inlined_call_operand.vmem [shape: bf16[3,9,32], index: 2, kind: input, shape index: {}]   ;;  %s7581_s3 = inlined_call_operand.vmem [shape: f32[1,32], index: 3, kind: input, shape index: {}]   ;;  %s7582_s4 = inlined_call_operand.vmem [shape: f32[1,32], index: 4, kind: input, shape index: {}]   ;;  %s7583_s5 = inlined_call_operand.vmem [shape: bf16[2,4096,32], index: 5, kind: output, shape index: {}]  }
   0x1 LB: > { %s4843_s19 = sadd.s32 4294967295, %s6662_s18   ;;  %p4847_p0 = scmp.ge.s32.totalorder %s6662_s18, 1  ;;  %s6662_s18 = sphi %s6699_s18, %s15_s18  }
   0x2   : > { %p197_p1 = scmp.lt.s32.totalorder %s6662_s18, 3 }
   0x4   : > { %p198_p2 = pnand %p4847_p0, %p197_p1 }
   0x5   : > { %p230_p3 = scmp.lt.s32.totalorder (!%p198_p2), %s4843_s19, 1  ;;  %v6710_v0 = vld [vmem:[%s7581_s3] ss:$0 sm:$0xff] (!%p198_p2)  ;;  %s6732_s10 = smov (!%p198_p2), 0  }
   0x6   : > { %201 = sbr.rel (%p198_p2) target bundleno = 636 (0x27c), region = 40  ;;  %v6715_v1 = vld [vmem:[%s7582_s4] ss:$0 sm:$0xff] (!%p198_p2) }
   0xd   : > { %s7585_s19 = smov (!%p230_p3, %s4843_s19), 1 }
   0xe   : > { %s6439_s24 = smul.u32 4224, %s7585_s19  ;;  %s5549_s25 = sshll.u32 %s7585_s19, 11 }
   0xf   : > { %s6720_s28 = scalar_lea.vmem %s7583_s5, %s5549_s25 }
  0x10   : > { %s6725_s6 = scalar_lea.vmem %s7578_s0, %s6439_s24  ;;  %s6730_s9 = scalar_lea.vmem %s7579_s1, %s6439_s24 }
  0x11 LB: >> { %v6457_v2 = vld [vmem:[%s7580_s2 + $0x8] sm:$0x1f]   ;;  %vm789_vm0 = vcmask 1043456   ;;  %vm790_vm1 = vcmask 1044480   ;;  %v6668_v3 = vmov 65535   ;;  %s6741_s13 = sshll.u32 %s6666_s10, 8  ;;  %s6666_s10 = sphi %s6732_s10, %s253_s10  }
  0x12   : >> { %v791_v4 = vsel %vm789_vm0, 4294967295, %v6668_v3  ;;  %v6461_v5 = vld [vmem:[%s7580_s2] sm:$0x1f]   ;;  %s6750_s16 = scalar_lea.vmem %s6725_s6, %s6741_s13  ;;  %s6754_s17 = scalar_lea.vmem %s6730_s9, %s6741_s13  ;;  %vm692_vm2 = vcmask 72704   ;;  %v6527_v47 = vld [vmem:[%s7580_s2 + $0x10] sm:$0x1f]  }
  0x13   : >> { %v6746_v6 = vsel %vm790_vm1, %v791_v4, 0  ;;  %v6458_v8 = vld [vmem:[%s6750_s16 + $0x40] sm:$0xff]   ;;  %v6460_v11 = vld [vmem:[%s6750_s16 + $0x48] sm:$0xff]   ;;  %v6463_v13 = vld [vmem:[%s6750_s16 + $0x50] sm:$0xff]   ;;  %s4712_s21 = sshra.s32 %s6741_s13, 3  ;;  %vm4716_vm3 = vcmask 257024  }
  0x14   : >> { %v794_v7 = vand.u32 %v6457_v2, %v6746_v6  ;;  %v6459_v9 = vld [vmem:[%s6754_s17 + $0x40] sm:$0xff]   ;;  %v1347_v10 = vand.u32 %v6461_v5, %v6746_v6  ;;  %v6462_v12 = vld [vmem:[%s6754_s17 + $0x48] sm:$0xff]   ;;  %5789 = vmatprep.mubr.msk.bf16.mxu0 %vm692_vm2, %v6458_v8  ;;  %v6464_v14 = vld [vmem:[%s6754_s17 + $0x50] sm:$0xff]   ;;  %v6836_v48 = vand.u32 %v6527_v47, %v6746_v6  ;;  %s5546_s22 = sshll.u32 %s4712_s21, 2  ;;  %s253_s10 = sadd.s32 1, %s6666_s10  }
  0x15   : >> { %5921 = vmatprep.mubr.msk.bf16.mxu1 %vm692_vm2, %v6459_v9  ;;  %v6465_v15 = vld [vmem:[%s6750_s16 + $0x58] sm:$0xff]   ;;  %v6467_v17 = vld [vmem:[%s6750_s16 + $0x60] sm:$0xff]   ;;  %v6469_v19 = vld [vmem:[%s6750_s16 + $0x68] sm:$0xff]   ;;  %s7269_s23 = scalar_lea.vmem %s6720_s28, %s5546_s22  ;;  %p250_p4 = scmp.ge.s32.totalorder %s253_s10, 16  }
  0x16   : >> { %5787 = vmatprep.subr.bf16.mxu0 %v794_v7  ;;  %5919 = vmatprep.subr.bf16.mxu1 %v794_v7  ;;  %v6466_v16 = vld [vmem:[%s6754_s17 + $0x58] sm:$0xff]   ;;  %v6468_v18 = vld [vmem:[%s6754_s17 + $0x60] sm:$0xff]   ;;  %v6470_v20 = vld [vmem:[%s6754_s17 + $0x68] sm:$0xff]  }
  0x17   : >> { %5788 = vmatpush3.bf16.msra.mxu0 %v794_v7  ;;  %5920 = vmatpush3.bf16.msra.mxu1 %v794_v7  ;;  %v6471_v21 = vld [vmem:[%s6750_s16 + $0x70] sm:$0xff]   ;;  %v6473_v23 = vld [vmem:[%s6750_s16 + $0x78] sm:$0xff]   ;;  %v6475_v25 = vld [vmem:[%s6750_s16 + $0x80] sm:$0xff]  }
  0x18   : >> { %5853 = vmatprep.subr.bf16.mxu0 %v1347_v10  ;;  %5985 = vmatprep.subr.bf16.mxu1 %v1347_v10  ;;  %v6472_v22 = vld [vmem:[%s6754_s17 + $0x70] sm:$0xff]   ;;  %v6474_v24 = vld [vmem:[%s6754_s17 + $0x78] sm:$0xff]   ;;  %v6476_v26 = vld [vmem:[%s6754_s17 + $0x80] sm:$0xff]  }
  0x19   : >> { %v6477_v27 = vld [vmem:[%s6750_s16 + $0x88] sm:$0xff]   ;;  %v6479_v29 = vld [vmem:[%s6750_s16 + $0x90] sm:$0xff]   ;;  %v6481_v31 = vld [vmem:[%s6750_s16 + $0x98] sm:$0xff]  }
  0x1a   : >> { %5790 = vmatmul.mubr.msk.bf16.vlgmr.msra.gmra.mrb[0].mxu0 %vm692_vm2, %v6460_v11  ;;  %5922 = vmatmul.mubr.msk.bf16.vlgmr.msra.gmra.mrb[0].mxu1 %vm692_vm2, %v6462_v12  ;;  %v6478_v28 = vld [vmem:[%s6754_s17 + $0x88] sm:$0xff]   ;;  %v6480_v30 = vld [vmem:[%s6754_s17 + $0x90] sm:$0xff]   ;;  %v6482_v32 = vld [vmem:[%s6754_s17 + $0x98] sm:$0xff]  }
  0x1b   : >> { %5854 = vmatpush3.bf16.msra.mxu0 %v1347_v10  ;;  %5986 = vmatpush3.bf16.msra.mxu1 %v1347_v10  ;;  %v6483_v33 = vld [vmem:[%s6750_s16 + $0xa0] sm:$0xff]   ;;  %v6485_v35 = vld [vmem:[%s6750_s16 + $0xa8] sm:$0xff]   ;;  %v6487_v37 = vld [vmem:[%s6750_s16 + $0xb0] sm:$0xff]  }
  0x1c   : >> { %5793 = vmatprep.mubr.msk.bf16.mxu0 %vm692_vm2, %v6463_v13  ;;  %5925 = vmatprep.mubr.msk.bf16.mxu1 %vm692_vm2, %v6464_v14  ;;  %v6484_v34 = vld [vmem:[%s6754_s17 + $0xa0] sm:$0xff]   ;;  %v6486_v36 = vld [vmem:[%s6754_s17 + $0xa8] sm:$0xff]   ;;  %v6488_v38 = vld [vmem:[%s6754_s17 + $0xb0] sm:$0xff]  }
  0x1d   : >> { %v6489_v39 = vld [vmem:[%s6750_s16 + $0xb8] sm:$0xff]   ;;  %v6491_v41 = vld [vmem:[%s6750_s16 + $0xc0] sm:$0xff]   ;;  %v6493_v43 = vld [vmem:[%s6750_s16 + $0xc8] sm:$0xff]   ;;  %6051 = vmatprep.subr.bf16.mxu0 %v6836_v48  ;;  %6117 = vmatprep.subr.bf16.mxu1 %v6836_v48 }
  0x1e   : >> { %v6490_v40 = vld [vmem:[%s6754_s17 + $0xb8] sm:$0xff]   ;;  %v6492_v42 = vld [vmem:[%s6754_s17 + $0xc0] sm:$0xff]   ;;  %v6494_v44 = vld [vmem:[%s6754_s17 + $0xc8] sm:$0xff]  }
  0x1f   : >> { %v6495_v45 = vld [vmem:[%s6750_s16 + $0xd0] sm:$0xff]   ;;  %v6497_v49 = vld [vmem:[%s6750_s16 + $0xd8] sm:$0xff]   ;;  %v6499_v51 = vld [vmem:[%s6750_s16 + $0xe0] sm:$0xff]  }
  0x20   : >> { %v6496_v46 = vld [vmem:[%s6754_s17 + $0xd0] sm:$0xff]   ;;  %v6498_v50 = vld [vmem:[%s6754_s17 + $0xd8] sm:$0xff]   ;;  %v6500_v52 = vld [vmem:[%s6754_s17 + $0xe0] sm:$0xff]  }
  0x21   : >> { %v6501_v53 = vld [vmem:[%s6750_s16 + $0xe8] sm:$0xff]   ;;  %v6503_v55 = vld [vmem:[%s6750_s16 + $0xf0] sm:$0xff]   ;;  %v6505_v57 = vld [vmem:[%s6750_s16 + $0xf8] sm:$0xff]  }
  0x22   : >> { %5794 = vmatmul.mubr.msk.bf16.gmra.mrb[4].mxu0 %vm692_vm2, %v6465_v15  ;;  %5926 = vmatmul.mubr.msk.bf16.gmra.mrb[4].mxu1 %vm692_vm2, %v6466_v16  ;;  %v6502_v54 = vld [vmem:[%s6754_s17 + $0xe8] sm:$0xff]   ;;  %v6504_v56 = vld [vmem:[%s6754_s17 + $0xf0] sm:$0xff]   ;;  %v6506_v58 = vld [vmem:[%s6754_s17 + $0xf8] sm:$0xff]  }
  0x23   : >> { %5797 = vmatprep.mubr.msk.bf16.mxu0 %vm692_vm2, %v6467_v17  ;;  %5929 = vmatprep.mubr.msk.bf16.mxu1 %vm692_vm2, %v6468_v18  ;;  %v6507_v59 = vld [vmem:[%s6750_s16 + $0x100] sm:$0xff]   ;;  %v6509_v61 = vld [vmem:[%s6750_s16 + $0x108] sm:$0xff]   ;;  %v6511_v63 = vld [vmem:[%s6750_s16 + $0x110] sm:$0xff]  }
  0x24   : >> { %v6508_v60 = vld [vmem:[%s6754_s17 + $0x100] sm:$0xff]   ;;  %v6510_v62 = vld [vmem:[%s6754_s17 + $0x108] sm:$0xff]   ;;  %v6512_v2 = vld [vmem:[%s6754_s17 + $0x110] sm:$0xff]  }
  0x25   : >> { %v6513_v3 = vld [vmem:[%s6750_s16 + $0x118] sm:$0xff]   ;;  %v6515_v5 = vld [vmem:[%s6750_s16 + $0x120] sm:$0xff]   ;;  %v6517_v7 = vld [vmem:[%s6750_s16 + $0x128] sm:$0xff]  }
  0x26   : >> { %v6514_v4 = vld [vmem:[%s6754_s17 + $0x118] sm:$0xff]   ;;  %v6516_v6 = vld [vmem:[%s6754_s17 + $0x120] sm:$0xff]   ;;  %v6518_v8 = vld [vmem:[%s6754_s17 + $0x128] sm:$0xff]  }
  0x27   : >> { %v6519_v9 = vld [vmem:[%s6750_s16 + $0x130] sm:$0xff]   ;;  %v6521_v11 = vld [vmem:[%s6750_s16 + $0x138] sm:$0xff]   ;;  %v6523_v13 = vld [vmem:[%s6750_s16] sm:$0xff]  }
  0x28   : >> { %v6520_v10 = vld [vmem:[%s6754_s17 + $0x130] sm:$0xff]   ;;  %v6522_v12 = vld [vmem:[%s6754_s17 + $0x138] sm:$0xff]   ;;  %v6524_v14 = vld [vmem:[%s6754_s17] sm:$0xff]  }
  0x29   : >> { %v6525_v15 = vld [vmem:[%s6750_s16 + $0x8] sm:$0xff]   ;;  %v6528_v17 = vld [vmem:[%s6750_s16 + $0x10] sm:$0xff]  }
  0x2a   : >> { %5798 = vmatmul.mubr.msk.bf16.gmra.mrb[8].mxu0 %vm692_vm2, %v6469_v19  ;;  %5930 = vmatmul.mubr.msk.bf16.gmra.mrb[8].mxu1 %vm692_vm2, %v6470_v20  ;;  %v6526_v16 = vld [vmem:[%s6754_s17 + $0x8] sm:$0xff]   ;;  %v6529_v18 = vld [vmem:[%s6754_s17 + $0x10] sm:$0xff]   ;;  %v6530_v19 = vld [vmem:[%s6750_s16 + $0x18] sm:$0xff]  }
  0x2b   : >> { %5801 = vmatprep.mubr.msk.bf16.mxu0 %vm692_vm2, %v6471_v21  ;;  %5933 = vmatprep.mubr.msk.bf16.mxu1 %vm692_vm2, %v6472_v22  ;;  %v6531_v20 = vld [vmem:[%s6754_s17 + $0x18] sm:$0xff]   ;;  %v6532_v21 = vld [vmem:[%s6750_s16 + $0x20] sm:$0xff]   ;;  %v6558_v47 = vld [vmem:[%s6750_s16 + $0x88] sm:$0xff]  }
  0x2c   : >> { %v6533_v22 = vld [vmem:[%s6754_s17 + $0x20] sm:$0xff]  }
  0x32   : >> { %5802 = vmatmul.mubr.msk.bf16.gmra.mrb[12].mxu0 %vm692_vm2, %v6473_v23  ;;  %5934 = vmatmul.mubr.msk.bf16.gmra.mrb[12].mxu1 %vm692_vm2, %v6474_v24  ;;  %v6534_v23 = vld [vmem:[%s6750_s16 + $0x28] sm:$0xff]  }
  0x33   : >> { %5805 = vmatprep.mubr.msk.bf16.mxu0 %vm692_vm2, %v6475_v25  ;;  %5937 = vmatprep.mubr.msk.bf16.mxu1 %vm692_vm2, %v6476_v26  ;;  %v6535_v24 = vld [vmem:[%s6754_s17 + $0x28] sm:$0xff]   ;;  %v6536_v25 = vld [vmem:[%s6750_s16 + $0x30] sm:$0xff]  }
  0x34   : >> { %v6537_v26 = vld [vmem:[%s6754_s17 + $0x30] sm:$0xff]  }
  0x3a   : >> { %5806 = vmatmul.mubr.msk.bf16.gmra.mrb[16].mxu0 %vm692_vm2, %v6477_v27  ;;  %5938 = vmatmul.mubr.msk.bf16.gmra.mrb[16].mxu1 %vm692_vm2, %v6478_v28  ;;  %v6538_v27 = vld [vmem:[%s6750_s16 + $0x38] sm:$0xff]  }
  0x3b   : >> { %5809 = vmatprep.mubr.msk.bf16.mxu0 %vm692_vm2, %v6479_v29  ;;  %5941 = vmatprep.mubr.msk.bf16.mxu1 %vm692_vm2, %v6480_v30  ;;  %v6539_v28 = vld [vmem:[%s6754_s17 + $0x38] sm:$0xff]   ;;  %v6540_v29 = vld [vmem:[%s6750_s16 + $0x40] sm:$0xff]  }
  0x3c   : >> { %v6541_v30 = vld [vmem:[%s6754_s17 + $0x40] sm:$0xff]  }
  0x42   : >> { %5810 = vmatmul.mubr.msk.bf16.gmra.mrb[20].mxu0 %vm692_vm2, %v6481_v31  ;;  %5942 = vmatmul.mubr.msk.bf16.gmra.mrb[20].mxu1 %vm692_vm2, %v6482_v32  ;;  %v6542_v31 = vld [vmem:[%s6750_s16 + $0x48] sm:$0xff]  }
  0x43   : >> { %5813 = vmatprep.mubr.msk.bf16.mxu0 %vm692_vm2, %v6483_v33  ;;  %5945 = vmatprep.mubr.msk.bf16.mxu1 %vm692_vm2, %v6484_v34  ;;  %v6543_v32 = vld [vmem:[%s6754_s17 + $0x48] sm:$0xff]   ;;  %v6544_v33 = vld [vmem:[%s6750_s16 + $0x50] sm:$0xff]  }
  0x44   : >> { %v6545_v34 = vld [vmem:[%s6754_s17 + $0x50] sm:$0xff]  }
  0x4a   : >> { %5814 = vmatmul.mubr.msk.bf16.gmra.mrb[24].mxu0 %vm692_vm2, %v6485_v35  ;;  %5946 = vmatmul.mubr.msk.bf16.gmra.mrb[24].mxu1 %vm692_vm2, %v6486_v36  ;;  %v6546_v35 = vld [vmem:[%s6750_s16 + $0x58] sm:$0xff]  }
  0x4b   : >> { %5817 = vmatprep.mubr.msk.bf16.mxu0 %vm692_vm2, %v6487_v37  ;;  %5949 = vmatprep.mubr.msk.bf16.mxu1 %vm692_vm2, %v6488_v38  ;;  %v6547_v36 = vld [vmem:[%s6754_s17 + $0x58] sm:$0xff]   ;;  %v6548_v37 = vld [vmem:[%s6750_s16 + $0x60] sm:$0xff]  }
  0x4c   : >> { %v6549_v38 = vld [vmem:[%s6754_s17 + $0x60] sm:$0xff]  }
  0x52   : >> { %5818 = vmatmul.mubr.msk.bf16.gmra.mrb[28].mxu0 %vm692_vm2, %v6489_v39  ;;  %5950 = vmatmul.mubr.msk.bf16.gmra.mrb[28].mxu1 %vm692_vm2, %v6490_v40  ;;  %v6550_v39 = vld [vmem:[%s6750_s16 + $0x68] sm:$0xff]  }
  0x53   : >> { %5821 = vmatprep.mubr.msk.bf16.mxu0 %vm692_vm2, %v6491_v41  ;;  %5953 = vmatprep.mubr.msk.bf16.mxu1 %vm692_vm2, %v6492_v42  ;;  %v6551_v40 = vld [vmem:[%s6754_s17 + $0x68] sm:$0xff]   ;;  %v6552_v41 = vld [vmem:[%s6750_s16 + $0x70] sm:$0xff]  }
  0x54   : >> { %v6553_v42 = vld [vmem:[%s6754_s17 + $0x70] sm:$0xff]  }
  0x5a   : >> { %5822 = vmatmul.mubr.msk.bf16.gmra.mrb[32].mxu0 %vm692_vm2, %v6493_v43  ;;  %5954 = vmatmul.mubr.msk.bf16.gmra.mrb[32].mxu1 %vm692_vm2, %v6494_v44  ;;  %v6554_v43 = vld [vmem:[%s6750_s16 + $0x78] sm:$0xff]  }
  0x5b   : >> { %5825 = vmatprep.mubr.msk.bf16.mxu0 %vm692_vm2, %v6495_v45  ;;  %5957 = vmatprep.mubr.msk.bf16.mxu1 %vm692_vm2, %v6496_v46  ;;  %v6555_v44 = vld [vmem:[%s6754_s17 + $0x78] sm:$0xff]   ;;  %v6556_v45 = vld [vmem:[%s6750_s16 + $0x80] sm:$0xff]  }
  0x5c   : >> { %v6557_v46 = vld [vmem:[%s6754_s17 + $0x80] sm:$0xff]  }
  0x62   : >> { %5826 = vmatmul.mubr.msk.bf16.gmra.mrb[36].mxu0 %vm692_vm2, %v6497_v49  ;;  %5958 = vmatmul.mubr.msk.bf16.gmra.mrb[36].mxu1 %vm692_vm2, %v6498_v50  ;;  %v6560_v49 = vld [vmem:[%s6750_s16 + $0x90] sm:$0xff]  }
  0x63   : >> { %5829 = vmatprep.mubr.msk.bf16.mxu0 %vm692_vm2, %v6499_v51  ;;  %5961 = vmatprep.mubr.msk.bf16.mxu1 %vm692_vm2, %v6500_v52  ;;  %v6561_v50 = vld [vmem:[%s6754_s17 + $0x90] sm:$0xff]   ;;  %v6562_v51 = vld [vmem:[%s6750_s16 + $0x98] sm:$0xff]  }
  0x64   : >> { %v6563_v52 = vld [vmem:[%s6754_s17 + $0x98] sm:$0xff]  }
  0x6a   : >> { %5830 = vmatmul.mubr.msk.bf16.gmra.mrb[40].mxu0 %vm692_vm2, %v6501_v53  ;;  %5962 = vmatmul.mubr.msk.bf16.gmra.mrb[40].mxu1 %vm692_vm2, %v6502_v54  ;;  %v6564_v53 = vld [vmem:[%s6750_s16 + $0xa0] sm:$0xff]  }
  0x6b   : >> { %5833 = vmatprep.mubr.msk.bf16.mxu0 %vm692_vm2, %v6503_v55  ;;  %5965 = vmatprep.mubr.msk.bf16.mxu1 %vm692_vm2, %v6504_v56  ;;  %v6565_v54 = vld [vmem:[%s6754_s17 + $0xa0] sm:$0xff]   ;;  %v6566_v55 = vld [vmem:[%s6750_s16 + $0xa8] sm:$0xff]  }
  0x6c   : >> { %v6567_v56 = vld [vmem:[%s6754_s17 + $0xa8] sm:$0xff]  }
  0x72   : >> { %5834 = vmatmul.mubr.msk.bf16.gmra.mrb[44].mxu0 %vm692_vm2, %v6505_v57  ;;  %5966 = vmatmul.mubr.msk.bf16.gmra.mrb[44].mxu1 %vm692_vm2, %v6506_v58  ;;  %v6568_v57 = vld [vmem:[%s6750_s16 + $0xb0] sm:$0xff]  }
  0x73   : >> { %5837 = vmatprep.mubr.msk.bf16.mxu0 %vm692_vm2, %v6507_v59  ;;  %5969 = vmatprep.mubr.msk.bf16.mxu1 %vm692_vm2, %v6508_v60  ;;  %v6569_v58 = vld [vmem:[%s6754_s17 + $0xb0] sm:$0xff]   ;;  %v6570_v59 = vld [vmem:[%s6750_s16 + $0xb8] sm:$0xff]  }
  0x74   : >> { %v6571_v60 = vld [vmem:[%s6754_s17 + $0xb8] sm:$0xff]  }
  0x7a   : >> { %5838 = vmatmul.mubr.msk.bf16.gmra.mrb[48].mxu0 %vm692_vm2, %v6509_v61  ;;  %5970 = vmatmul.mubr.msk.bf16.gmra.mrb[48].mxu1 %vm692_vm2, %v6510_v62  ;;  %v6572_v61 = vld [vmem:[%s6750_s16 + $0xc0] sm:$0xff]  }
  0x7b   : >> { %5841 = vmatprep.mubr.msk.bf16.mxu0 %vm692_vm2, %v6511_v63  ;;  %5973 = vmatprep.mubr.msk.bf16.mxu1 %vm692_vm2, %v6512_v2  ;;  %v6573_v62 = vld [vmem:[%s6754_s17 + $0xc0] sm:$0xff]   ;;  %v6574_v63 = vld [vmem:[%s6750_s16 + $0xc8] sm:$0xff]  }
  0x7c   : >> { %v6575_v2 = vld [vmem:[%s6754_s17 + $0xc8] sm:$0xff]  }
  0x82   : >> { %5842 = vmatmul.mubr.msk.bf16.gmra.mrb[52].mxu0 %vm692_vm2, %v6513_v3  ;;  %5974 = vmatmul.mubr.msk.bf16.gmra.mrb[52].mxu1 %vm692_vm2, %v6514_v4  ;;  %v6576_v3 = vld [vmem:[%s6750_s16 + $0xd0] sm:$0xff]  }
  0x83   : >> { %5845 = vmatprep.mubr.msk.bf16.mxu0 %vm692_vm2, %v6515_v5  ;;  %5977 = vmatprep.mubr.msk.bf16.mxu1 %vm692_vm2, %v6516_v6  ;;  %v6577_v4 = vld [vmem:[%s6754_s17 + $0xd0] sm:$0xff]   ;;  %v6578_v5 = vld [vmem:[%s6750_s16 + $0xd8] sm:$0xff]  }
  0x84   : >> { %v6579_v6 = vld [vmem:[%s6754_s17 + $0xd8] sm:$0xff]  }
  0x8a   : >> { %5846 = vmatmul.mubr.msk.bf16.gmra.mrb[56].mxu0 %vm692_vm2, %v6517_v7  ;;  %5978 = vmatmul.mubr.msk.bf16.gmra.mrb[56].mxu1 %vm692_vm2, %v6518_v8  ;;  %v6580_v7 = vld [vmem:[%s6750_s16 + $0xe0] sm:$0xff]  }
  0x8b   : >> { %5849 = vmatprep.mubr.msk.bf16.mxu0 %vm692_vm2, %v6519_v9  ;;  %5981 = vmatprep.mubr.msk.bf16.mxu1 %vm692_vm2, %v6520_v10  ;;  %v6581_v8 = vld [vmem:[%s6754_s17 + $0xe0] sm:$0xff]   ;;  %v6582_v9 = vld [vmem:[%s6750_s16 + $0xe8] sm:$0xff]  }
  0x8c   : >> { %v6583_v10 = vld [vmem:[%s6754_s17 + $0xe8] sm:$0xff]  }
  0x92   : >> { %5850 = vmatmul.mubr.msk.bf16.gmra.mrb[60].mxu0 %vm692_vm2, %v6521_v11  ;;  %5982 = vmatmul.mubr.msk.bf16.gmra.mrb[60].mxu1 %vm692_vm2, %v6522_v12  ;;  %v6584_v11 = vld [vmem:[%s6750_s16 + $0xf0] sm:$0xff]  }
  0x93   : >> { %5855 = vmatprep.mubr.msk.bf16.mxu0 %vm692_vm2, %v6523_v13  ;;  %5987 = vmatprep.mubr.msk.bf16.mxu1 %vm692_vm2, %v6524_v14  ;;  %v6585_v12 = vld [vmem:[%s6754_s17 + $0xf0] sm:$0xff]   ;;  %v6586_v13 = vld [vmem:[%s6750_s16 + $0xf8] sm:$0xff]  }
  0x94   : >> { %v6587_v14 = vld [vmem:[%s6754_s17 + $0xf8] sm:$0xff]  }
  0x9a   : >> { %5856 = vmatmul.mubr.msk.bf16.vlgmr.msra.gmra.mrb[0].mxu0 %vm692_vm2, %v6525_v15  ;;  %5988 = vmatmul.mubr.msk.bf16.vlgmr.msra.gmra.mrb[0].mxu1 %vm692_vm2, %v6526_v16  ;;  %v6588_v15 = vld [vmem:[%s6750_s16 + $0x80] sm:$0xff]  }
  0x9b   : >> { %6052 = vmatpush3.bf16.msra.mxu0 %v6836_v48  ;;  %6118 = vmatpush3.bf16.msra.mxu1 %v6836_v48  ;;  %v6559_v48 = vld [vmem:[%s6754_s17 + $0x88] sm:$0xff]   ;;  %v6589_v16 = vld [vmem:[%s6754_s17 + $0x80] sm:$0xff]  }
  0x9c   : >> { %5859 = vmatprep.mubr.msk.bf16.mxu0 %vm692_vm2, %v6528_v17  ;;  %5991 = vmatprep.mubr.msk.bf16.mxu1 %vm692_vm2, %v6529_v18  ;;  %v6590_v17 = vld [vmem:[%s6750_s16 + $0x88] sm:$0xff]  }
  0x9d   : >> { %v6591_v18 = vld [vmem:[%s6754_s17 + $0x88] sm:$0xff]  }
  0xa2   : >> { %5860 = vmatmul.mubr.msk.bf16.gmra.mrb[4].mxu0 %vm692_vm2, %v6530_v19  ;;  %5992 = vmatmul.mubr.msk.bf16.gmra.mrb[4].mxu1 %vm692_vm2, %v6531_v20  ;;  %v6592_v19 = vld [vmem:[%s6750_s16 + $0x90] sm:$0xff]  }
  0xa3   : >> { %5863 = vmatprep.mubr.msk.bf16.mxu0 %vm692_vm2, %v6532_v21  ;;  %5995 = vmatprep.mubr.msk.bf16.mxu1 %vm692_vm2, %v6533_v22  ;;  %v6593_v20 = vld [vmem:[%s6754_s17 + $0x90] sm:$0xff]   ;;  %v6594_v21 = vld [vmem:[%s6750_s16 + $0x98] sm:$0xff]  }
  0xa4   : >> { %v6595_v22 = vld [vmem:[%s6754_s17 + $0x98] sm:$0xff]  }
  0xaa   : >> { %5864 = vmatmul.mubr.msk.bf16.gmra.mrb[8].mxu0 %vm692_vm2, %v6534_v23  ;;  %5996 = vmatmul.mubr.msk.bf16.gmra.mrb[8].mxu1 %vm692_vm2, %v6535_v24  ;;  %v6596_v23 = vld [vmem:[%s6750_s16 + $0xa0] sm:$0xff]  }
  0xab   : >> { %5867 = vmatprep.mubr.msk.bf16.mxu0 %vm692_vm2, %v6536_v25  ;;  %5999 = vmatprep.mubr.msk.bf16.mxu1 %vm692_vm2, %v6537_v26  ;;  %v6597_v24 = vld [vmem:[%s6754_s17 + $0xa0] sm:$0xff]   ;;  %v6598_v25 = vld [vmem:[%s6750_s16 + $0xa8] sm:$0xff]  }
  0xac   : >> { %v6599_v26 = vld [vmem:[%s6754_s17 + $0xa8] sm:$0xff]  }
  0xb2   : >> { %5868 = vmatmul.mubr.msk.bf16.gmra.mrb[12].mxu0 %vm692_vm2, %v6538_v27  ;;  %6000 = vmatmul.mubr.msk.bf16.gmra.mrb[12].mxu1 %vm692_vm2, %v6539_v28  ;;  %v6600_v27 = vld [vmem:[%s6750_s16 + $0xb0] sm:$0xff]  }
  0xb3   : >> { %5871 = vmatprep.mubr.msk.bf16.mxu0 %vm692_vm2, %v6540_v29  ;;  %6003 = vmatprep.mubr.msk.bf16.mxu1 %vm692_vm2, %v6541_v30  ;;  %v6601_v28 = vld [vmem:[%s6754_s17 + $0xb0] sm:$0xff]   ;;  %v6602_v29 = vld [vmem:[%s6750_s16 + $0xb8] sm:$0xff]  }
  0xb4   : >> { %v6603_v30 = vld [vmem:[%s6754_s17 + $0xb8] sm:$0xff]  }
  0xba   : >> { %5872 = vmatmul.mubr.msk.bf16.gmra.mrb[16].mxu0 %vm692_vm2, %v6542_v31  ;;  %6004 = vmatmul.mubr.msk.bf16.gmra.mrb[16].mxu1 %vm692_vm2, %v6543_v32  ;;  %v6604_v31 = vld [vmem:[%s6750_s16 + $0xc0] sm:$0xff]  }
  0xbb   : >> { %5875 = vmatprep.mubr.msk.bf16.mxu0 %vm692_vm2, %v6544_v33  ;;  %6007 = vmatprep.mubr.msk.bf16.mxu1 %vm692_vm2, %v6545_v34  ;;  %v6605_v32 = vld [vmem:[%s6754_s17 + $0xc0] sm:$0xff]   ;;  %v6606_v33 = vld [vmem:[%s6750_s16 + $0xc8] sm:$0xff]  }
  0xbc   : >> { %v6607_v34 = vld [vmem:[%s6754_s17 + $0xc8] sm:$0xff]  }
  0xc2   : >> { %5876 = vmatmul.mubr.msk.bf16.gmra.mrb[20].mxu0 %vm692_vm2, %v6546_v35  ;;  %6008 = vmatmul.mubr.msk.bf16.gmra.mrb[20].mxu1 %vm692_vm2, %v6547_v36  ;;  %v6608_v35 = vld [vmem:[%s6750_s16 + $0xd0] sm:$0xff]  }
  0xc3   : >> { %5879 = vmatprep.mubr.msk.bf16.mxu0 %vm692_vm2, %v6548_v37  ;;  %6011 = vmatprep.mubr.msk.bf16.mxu1 %vm692_vm2, %v6549_v38  ;;  %v6609_v36 = vld [vmem:[%s6754_s17 + $0xd0] sm:$0xff]   ;;  %v6610_v37 = vld [vmem:[%s6750_s16 + $0xd8] sm:$0xff]  }
  0xc4   : >> { %v6611_v38 = vld [vmem:[%s6754_s17 + $0xd8] sm:$0xff]  }
  0xca   : >> { %5880 = vmatmul.mubr.msk.bf16.gmra.mrb[24].mxu0 %vm692_vm2, %v6550_v39  ;;  %6012 = vmatmul.mubr.msk.bf16.gmra.mrb[24].mxu1 %vm692_vm2, %v6551_v40  ;;  %v6612_v39 = vld [vmem:[%s6750_s16 + $0xe0] sm:$0xff]  }
  0xcb   : >> { %5883 = vmatprep.mubr.msk.bf16.mxu0 %vm692_vm2, %v6552_v41  ;;  %6015 = vmatprep.mubr.msk.bf16.mxu1 %vm692_vm2, %v6553_v42  ;;  %v6613_v40 = vld [vmem:[%s6754_s17 + $0xe0] sm:$0xff]   ;;  %v6614_v41 = vld [vmem:[%s6750_s16 + $0xe8] sm:$0xff]  }
  0xcc   : >> { %v6615_v42 = vld [vmem:[%s6754_s17 + $0xe8] sm:$0xff]  }
  0xd2   : >> { %5884 = vmatmul.mubr.msk.bf16.gmra.mrb[28].mxu0 %vm692_vm2, %v6554_v43  ;;  %6016 = vmatmul.mubr.msk.bf16.gmra.mrb[28].mxu1 %vm692_vm2, %v6555_v44  ;;  %v6616_v43 = vld [vmem:[%s6750_s16 + $0xf0] sm:$0xff]  }
  0xd3   : >> { %5887 = vmatprep.mubr.msk.bf16.mxu0 %vm692_vm2, %v6556_v45  ;;  %6019 = vmatprep.mubr.msk.bf16.mxu1 %vm692_vm2, %v6557_v46  ;;  %v6617_v44 = vld [vmem:[%s6754_s17 + $0xf0] sm:$0xff]   ;;  %v6618_v45 = vld [vmem:[%s6750_s16 + $0xf8] sm:$0xff]  }
  0xd4   : >> { %v6619_v46 = vld [vmem:[%s6754_s17 + $0xf8] sm:$0xff]  }
  0xda   : >> { %5888 = vmatmul.mubr.msk.bf16.gmra.mrb[32].mxu0 %vm692_vm2, %v6558_v47  ;;  %6020 = vmatmul.mubr.msk.bf16.gmra.mrb[32].mxu1 %vm692_vm2, %v6559_v48  ;;  %v6620_v47 = vld [vmem:[%s6750_s16 + $0x100] sm:$0xff]  }
  0xdb   : >> { %5891 = vmatprep.mubr.msk.bf16.mxu0 %vm692_vm2, %v6560_v49  ;;  %6023 = vmatprep.mubr.msk.bf16.mxu1 %vm692_vm2, %v6561_v50  ;;  %v6621_v48 = vld [vmem:[%s6754_s17 + $0x100] sm:$0xff]   ;;  %v6622_v49 = vld [vmem:[%s6750_s16 + $0x108] sm:$0xff]  }
  0xdc   : >> { %v6623_v50 = vld [vmem:[%s6754_s17 + $0x108] sm:$0xff]  }
  0xe2   : >> { %5892 = vmatmul.mubr.msk.bf16.gmra.mrb[36].mxu0 %vm692_vm2, %v6562_v51  ;;  %6024 = vmatmul.mubr.msk.bf16.gmra.mrb[36].mxu1 %vm692_vm2, %v6563_v52  ;;  %v6624_v51 = vld [vmem:[%s6750_s16 + $0x110] sm:$0xff]  }
  0xe3   : >> { %5895 = vmatprep.mubr.msk.bf16.mxu0 %vm692_vm2, %v6564_v53  ;;  %6027 = vmatprep.mubr.msk.bf16.mxu1 %vm692_vm2, %v6565_v54  ;;  %v6625_v52 = vld [vmem:[%s6754_s17 + $0x110] sm:$0xff]   ;;  %v6626_v53 = vld [vmem:[%s6750_s16 + $0x118] sm:$0xff]  }
  0xe4   : >> { %v6627_v54 = vld [vmem:[%s6754_s17 + $0x118] sm:$0xff]  }
  0xea   : >> { %5896 = vmatmul.mubr.msk.bf16.gmra.mrb[40].mxu0 %vm692_vm2, %v6566_v55  ;;  %6028 = vmatmul.mubr.msk.bf16.gmra.mrb[40].mxu1 %vm692_vm2, %v6567_v56  ;;  %v6628_v55 = vld [vmem:[%s6750_s16 + $0x120] sm:$0xff]  }
  0xeb   : >> { %5899 = vmatprep.mubr.msk.bf16.mxu0 %vm692_vm2, %v6568_v57  ;;  %6031 = vmatprep.mubr.msk.bf16.mxu1 %vm692_vm2, %v6569_v58  ;;  %v6629_v56 = vld [vmem:[%s6754_s17 + $0x120] sm:$0xff]   ;;  %v6630_v57 = vld [vmem:[%s6750_s16 + $0x128] sm:$0xff]  }
  0xec   : >> { %v6631_v58 = vld [vmem:[%s6754_s17 + $0x128] sm:$0xff]  }
  0xf2   : >> { %5900 = vmatmul.mubr.msk.bf16.gmra.mrb[44].mxu0 %vm692_vm2, %v6570_v59  ;;  %6032 = vmatmul.mubr.msk.bf16.gmra.mrb[44].mxu1 %vm692_vm2, %v6571_v60  ;;  %v6632_v59 = vld [vmem:[%s6750_s16 + $0x130] sm:$0xff]  }
  0xf3   : >> { %5903 = vmatprep.mubr.msk.bf16.mxu0 %vm692_vm2, %v6572_v61  ;;  %6035 = vmatprep.mubr.msk.bf16.mxu1 %vm692_vm2, %v6573_v62  ;;  %v6633_v60 = vld [vmem:[%s6754_s17 + $0x130] sm:$0xff]   ;;  %v6634_v61 = vld [vmem:[%s6750_s16 + $0x138] sm:$0xff]  }
  0xf4   : >> { %v6635_v62 = vld [vmem:[%s6754_s17 + $0x138] sm:$0xff]  }
  0xfa   : >> { %5904 = vmatmul.mubr.msk.bf16.gmra.mrb[48].mxu0 %vm692_vm2, %v6574_v63  ;;  %6036 = vmatmul.mubr.msk.bf16.gmra.mrb[48].mxu1 %vm692_vm2, %v6575_v2  ;;  %v6636_v63 = vld [vmem:[%s6750_s16 + $0x140] sm:$0xff]  }
  0xfb   : >> { %5907 = vmatprep.mubr.msk.bf16.mxu0 %vm692_vm2, %v6576_v3  ;;  %6039 = vmatprep.mubr.msk.bf16.mxu1 %vm692_vm2, %v6577_v4  ;;  %v6637_v2 = vld [vmem:[%s6754_s17 + $0x140] sm:$0xff]   ;;  %v6638_v3 = vld [vmem:[%s6750_s16 + $0x148] sm:$0xff]  }
  0xfc   : >> { %v6639_v4 = vld [vmem:[%s6754_s17 + $0x148] sm:$0xff]  }
 0x102   : >> { %5908 = vmatmul.mubr.msk.bf16.gmra.mrb[52].mxu0 %vm692_vm2, %v6578_v5  ;;  %6040 = vmatmul.mubr.msk.bf16.gmra.mrb[52].mxu1 %vm692_vm2, %v6579_v6  ;;  %v6640_v5 = vld [vmem:[%s6750_s16 + $0x150] sm:$0xff]  }
 0x103   : >> { %5911 = vmatprep.mubr.msk.bf16.mxu0 %vm692_vm2, %v6580_v7  ;;  %6043 = vmatprep.mubr.msk.bf16.mxu1 %vm692_vm2, %v6581_v8  ;;  %v6641_v6 = vld [vmem:[%s6754_s17 + $0x150] sm:$0xff]   ;;  %v6642_v7 = vld [vmem:[%s6750_s16 + $0x158] sm:$0xff]  }
 0x104   : >> { %v6643_v8 = vld [vmem:[%s6754_s17 + $0x158] sm:$0xff]  }
 0x10a   : >> { %5912 = vmatmul.mubr.msk.bf16.gmra.mrb[56].mxu0 %vm692_vm2, %v6582_v9  ;;  %6044 = vmatmul.mubr.msk.bf16.gmra.mrb[56].mxu1 %vm692_vm2, %v6583_v10  ;;  %v6644_v9 = vld [vmem:[%s6750_s16 + $0x160] sm:$0xff]  }
 0x10b   : >> { %5915 = vmatprep.mubr.msk.bf16.mxu0 %vm692_vm2, %v6584_v11  ;;  %6047 = vmatprep.mubr.msk.bf16.mxu1 %vm692_vm2, %v6585_v12  ;;  %v6645_v10 = vld [vmem:[%s6754_s17 + $0x160] sm:$0xff]   ;;  %v6646_v11 = vld [vmem:[%s6750_s16 + $0x168] sm:$0xff]  }
 0x10c   : >> { %v6647_v12 = vld [vmem:[%s6754_s17 + $0x168] sm:$0xff]  }
 0x112   : >> { %5916 = vmatmul.mubr.msk.bf16.gmra.mrb[60].mxu0 %vm692_vm2, %v6586_v13  ;;  %6048 = vmatmul.mubr.msk.bf16.gmra.mrb[60].mxu1 %vm692_vm2, %v6587_v14  ;;  %v6648_v13 = vld [vmem:[%s6750_s16 + $0x170] sm:$0xff]  }
 0x113   : >> { %6053 = vmatprep.mubr.msk.bf16.mxu0 %vm692_vm2, %v6588_v15  ;;  %6119 = vmatprep.mubr.msk.bf16.mxu1 %vm692_vm2, %v6589_v16  ;;  %v6649_v14 = vld [vmem:[%s6754_s17 + $0x170] sm:$0xff]   ;;  %v6650_v15 = vld [vmem:[%s6750_s16 + $0x178] sm:$0xff]  }
 0x114   : >> { %v6651_v16 = vld [vmem:[%s6754_s17 + $0x178] sm:$0xff]  }
 0x11a   : >> { %6054 = vmatmul.mubr.msk.bf16.vlgmr.msra.gmra.mrb[0].mxu0 %vm692_vm2, %v6590_v17  ;;  %6120 = vmatmul.mubr.msk.bf16.vlgmr.msra.gmra.mrb[0].mxu1 %vm692_vm2, %v6591_v18 }
 0x11b   : >> { %6057 = vmatprep.mubr.msk.bf16.mxu0 %vm692_vm2, %v6592_v19  ;;  %6123 = vmatprep.mubr.msk.bf16.mxu1 %vm692_vm2, %v6593_v20 }
 0x122   : >> { %6058 = vmatmul.mubr.msk.bf16.gmra.mrb[4].mxu0 %vm692_vm2, %v6594_v21  ;;  %6124 = vmatmul.mubr.msk.bf16.gmra.mrb[4].mxu1 %vm692_vm2, %v6595_v22 }
 0x123   : >> { %6061 = vmatprep.mubr.msk.bf16.mxu0 %vm692_vm2, %v6596_v23  ;;  %6127 = vmatprep.mubr.msk.bf16.mxu1 %vm692_vm2, %v6597_v24 }
 0x12a   : >> { %6062 = vmatmul.mubr.msk.bf16.gmra.mrb[8].mxu0 %vm692_vm2, %v6598_v25  ;;  %6128 = vmatmul.mubr.msk.bf16.gmra.mrb[8].mxu1 %vm692_vm2, %v6599_v26 }
 0x12b   : >> { %6065 = vmatprep.mubr.msk.bf16.mxu0 %vm692_vm2, %v6600_v27  ;;  %6131 = vmatprep.mubr.msk.bf16.mxu1 %vm692_vm2, %v6601_v28 }
 0x132   : >> { %6066 = vmatmul.mubr.msk.bf16.gmra.mrb[12].mxu0 %vm692_vm2, %v6602_v29  ;;  %6132 = vmatmul.mubr.msk.bf16.gmra.mrb[12].mxu1 %vm692_vm2, %v6603_v30 }
 0x133   : >> { %6069 = vmatprep.mubr.msk.bf16.mxu0 %vm692_vm2, %v6604_v31  ;;  %6135 = vmatprep.mubr.msk.bf16.mxu1 %vm692_vm2, %v6605_v32 }
 0x13a   : >> { %6070 = vmatmul.mubr.msk.bf16.gmra.mrb[16].mxu0 %vm692_vm2, %v6606_v33  ;;  %6136 = vmatmul.mubr.msk.bf16.gmra.mrb[16].mxu1 %vm692_vm2, %v6607_v34 }
 0x13b   : >> { %6073 = vmatprep.mubr.msk.bf16.mxu0 %vm692_vm2, %v6608_v35  ;;  %6139 = vmatprep.mubr.msk.bf16.mxu1 %vm692_vm2, %v6609_v36 }
 0x142   : >> { %6074 = vmatmul.mubr.msk.bf16.gmra.mrb[20].mxu0 %vm692_vm2, %v6610_v37  ;;  %6140 = vmatmul.mubr.msk.bf16.gmra.mrb[20].mxu1 %vm692_vm2, %v6611_v38 }
 0x143   : >> { %6077 = vmatprep.mubr.msk.bf16.mxu0 %vm692_vm2, %v6612_v39  ;;  %6143 = vmatprep.mubr.msk.bf16.mxu1 %vm692_vm2, %v6613_v40 }
 0x14a   : >> { %6078 = vmatmul.mubr.msk.bf16.gmra.mrb[24].mxu0 %vm692_vm2, %v6614_v41  ;;  %6144 = vmatmul.mubr.msk.bf16.gmra.mrb[24].mxu1 %vm692_vm2, %v6615_v42 }
 0x14b   : >> { %6081 = vmatprep.mubr.msk.bf16.mxu0 %vm692_vm2, %v6616_v43  ;;  %6147 = vmatprep.mubr.msk.bf16.mxu1 %vm692_vm2, %v6617_v44 }
 0x152   : >> { %6082 = vmatmul.mubr.msk.bf16.gmra.mrb[28].mxu0 %vm692_vm2, %v6618_v45  ;;  %6148 = vmatmul.mubr.msk.bf16.gmra.mrb[28].mxu1 %vm692_vm2, %v6619_v46 }
 0x153   : >> { %6085 = vmatprep.mubr.msk.bf16.mxu0 %vm692_vm2, %v6620_v47  ;;  %6151 = vmatprep.mubr.msk.bf16.mxu1 %vm692_vm2, %v6621_v48 }
 0x15a   : >> { %6086 = vmatmul.mubr.msk.bf16.gmra.mrb[32].mxu0 %vm692_vm2, %v6622_v49  ;;  %6152 = vmatmul.mubr.msk.bf16.gmra.mrb[32].mxu1 %vm692_vm2, %v6623_v50 }
 0x15b   : >> { %6089 = vmatprep.mubr.msk.bf16.mxu0 %vm692_vm2, %v6624_v51  ;;  %6155 = vmatprep.mubr.msk.bf16.mxu1 %vm692_vm2, %v6625_v52 }
 0x162   : >> { %6090 = vmatmul.mubr.msk.bf16.gmra.mrb[36].mxu0 %vm692_vm2, %v6626_v53  ;;  %6156 = vmatmul.mubr.msk.bf16.gmra.mrb[36].mxu1 %vm692_vm2, %v6627_v54 }
 0x163   : >> { %6093 = vmatprep.mubr.msk.bf16.mxu0 %vm692_vm2, %v6628_v55  ;;  %6159 = vmatprep.mubr.msk.bf16.mxu1 %vm692_vm2, %v6629_v56 }
 0x16a   : >> { %6094 = vmatmul.mubr.msk.bf16.gmra.mrb[40].mxu0 %vm692_vm2, %v6630_v57  ;;  %6160 = vmatmul.mubr.msk.bf16.gmra.mrb[40].mxu1 %vm692_vm2, %v6631_v58 }
 0x16b   : >> { %6097 = vmatprep.mubr.msk.bf16.mxu0 %vm692_vm2, %v6632_v59  ;;  %6163 = vmatprep.mubr.msk.bf16.mxu1 %vm692_vm2, %v6633_v60 }
 0x172   : >> { %6098 = vmatmul.mubr.msk.bf16.gmra.mrb[44].mxu0 %vm692_vm2, %v6634_v61  ;;  %6164 = vmatmul.mubr.msk.bf16.gmra.mrb[44].mxu1 %vm692_vm2, %v6635_v62 }
 0x173   : >> { %6101 = vmatprep.mubr.msk.bf16.mxu0 %vm692_vm2, %v6636_v63  ;;  %6167 = vmatprep.mubr.msk.bf16.mxu1 %vm692_vm2, %v6637_v2 }
 0x17a   : >> { %6102 = vmatmul.mubr.msk.bf16.gmra.mrb[48].mxu0 %vm692_vm2, %v6638_v3  ;;  %6168 = vmatmul.mubr.msk.bf16.gmra.mrb[48].mxu1 %vm692_vm2, %v6639_v4 }
 0x17b   : >> { %6105 = vmatprep.mubr.msk.bf16.mxu0 %vm692_vm2, %v6640_v5  ;;  %6171 = vmatprep.mubr.msk.bf16.mxu1 %vm692_vm2, %v6641_v6 }
 0x182   : >> { %6106 = vmatmul.mubr.msk.bf16.gmra.mrb[52].mxu0 %vm692_vm2, %v6642_v7  ;;  %6172 = vmatmul.mubr.msk.bf16.gmra.mrb[52].mxu1 %vm692_vm2, %v6643_v8 }
 0x183   : >> { %6109 = vmatprep.mubr.msk.bf16.mxu0 %vm692_vm2, %v6644_v9  ;;  %6175 = vmatprep.mubr.msk.bf16.mxu1 %vm692_vm2, %v6645_v10 }
 0x18a   : >> { %6110 = vmatmul.mubr.msk.bf16.gmra.mrb[56].mxu0 %vm692_vm2, %v6646_v11  ;;  %6176 = vmatmul.mubr.msk.bf16.gmra.mrb[56].mxu1 %vm692_vm2, %v6647_v12 }
 0x18b   : >> { %6113 = vmatprep.mubr.msk.bf16.mxu0 %vm692_vm2, %v6648_v13  ;;  %6179 = vmatprep.mubr.msk.bf16.mxu1 %vm692_vm2, %v6649_v14 }
 0x192   : >> { %6114 = vmatmul.mubr.msk.bf16.gmra.mrb[60].mxu0 %vm692_vm2, %v6650_v15  ;;  %6180 = vmatmul.mubr.msk.bf16.gmra.mrb[60].mxu1 %vm692_vm2, %v6651_v16 }
 0x1ed   : >> { %v6055_v17 = vpop.f32.mrb[0].mxu0  ;;  %v6121_v18 = vpop.f32.mrb[0].mxu1 }
 0x1ee   : >> { %v4099_v19 = vmul.f32 %v6055_v17, %v6710_v0  ;;  %v4297_v20 = vmul.f32 %v6121_v18, %v6710_v0  ;;  %v3163_v21 = vpop.f32.mrb[1].mxu0  ;;  %v3772_v22 = vpop.f32.mrb[1].mxu1 }
 0x1ef   : >> { %v4097_v23 = vmul.f32 %v6710_v0, %v3163_v21  ;;  %v4295_v24 = vmul.f32 %v6710_v0, %v3772_v22  ;;  %v6056_v25 = vpop.f32.mrb[2].mxu0  ;;  %v6122_v26 = vpop.f32.mrb[2].mxu1 }
 0x1f0   : >> { %v4169_v27 = vadd.f32 %v6715_v1, %v4099_v19  ;;  %v4361_v28 = vadd.f32 %v6715_v1, %v4297_v20  ;;  %v4100_v29 = vmul.f32 %v6056_v25, %v6710_v0  ;;  %v4298_v30 = vmul.f32 %v6122_v26, %v6710_v0  ;;  %v3166_v31 = vpop.f32.mrb[3].mxu0  ;;  %v3775_v32 = vpop.f32.mrb[3].mxu1 }
 0x1f1   : >> { %v4167_v33 = vadd.f32 %v6715_v1, %v4097_v23  ;;  %v4359_v34 = vadd.f32 %v6715_v1, %v4295_v24  ;;  %v4098_v35 = vmul.f32 %v6710_v0, %v3166_v31  ;;  %v4296_v36 = vmul.f32 %v6710_v0, %v3775_v32 }
 0x1f2   : >> { %v4233_v37 = vmax.f32 %v4169_v27, 0.0  ;;  %v4425_v38 = vmax.f32 %v4361_v28, 0.0  ;;  %v4170_v39 = vadd.f32 %v6715_v1, %v4100_v29  ;;  %v4362_v40 = vadd.f32 %v6715_v1, %v4298_v30 }
 0x1f3   : >> { %v4231_v41 = vmax.f32 %v4167_v33, 0.0  ;;  %v4423_v42 = vmax.f32 %v4359_v34, 0.0  ;;  %v4168_v43 = vadd.f32 %v6715_v1, %v4098_v35  ;;  %v4360_v44 = vadd.f32 %v6715_v1, %v4296_v36 }
 0x1f4   : >> { %v7168_v45 = vmax.f32 %v4233_v37, %v4425_v38  ;;  %v4234_v46 = vmax.f32 %v4170_v39, 0.0  ;;  %v4426_v47 = vmax.f32 %v4362_v40, 0.0 }
 0x1f5   : >> { %v7170_v48 = vmax.f32 %v4231_v41, %v4423_v42  ;;  %v4232_v49 = vmax.f32 %v4168_v43, 0.0  ;;  %v4424_v50 = vmax.f32 %v4360_v44, 0.0  ;;  %v6059_v51 = vpop.f32.mrb[4].mxu0  ;;  %v6125_v52 = vpop.f32.mrb[4].mxu1 }
 0x1f6   : >> { %v7172_v53 = vmax.f32 %v4234_v46, %v4426_v47  ;;  %v4103_v54 = vmul.f32 %v6059_v51, %v6710_v0  ;;  %v4301_v55 = vmul.f32 %v6125_v52, %v6710_v0  ;;  %v3179_v56 = vpop.f32.mrb[5].mxu0  ;;  %v3788_v57 = vpop.f32.mrb[5].mxu1 }
 0x1f7   : >> { %v7176_v58 = vmax.f32 %v4232_v49, %v4424_v50  ;;  %v4101_v59 = vmul.f32 %v6710_v0, %v3179_v56  ;;  %v4299_v60 = vmul.f32 %v6710_v0, %v3788_v57  ;;  %v6060_v61 = vpop.f32.mrb[6].mxu0  ;;  %v6126_v62 = vpop.f32.mrb[6].mxu1 }
 0x1f8   : >> { %v4173_v63 = vadd.f32 %v6715_v1, %v4103_v54  ;;  %v4365_v2 = vadd.f32 %v6715_v1, %v4301_v55  ;;  %v4104_v3 = vmul.f32 %v6060_v61, %v6710_v0  ;;  %v4302_v4 = vmul.f32 %v6126_v62, %v6710_v0  ;;  %v3182_v5 = vpop.f32.mrb[7].mxu0  ;;  %v3791_v6 = vpop.f32.mrb[7].mxu1 }
 0x1f9   : >> { %v4171_v7 = vadd.f32 %v6715_v1, %v4101_v59  ;;  %v4363_v8 = vadd.f32 %v6715_v1, %v4299_v60  ;;  %v4102_v9 = vmul.f32 %v6710_v0, %v3182_v5  ;;  %v4300_v10 = vmul.f32 %v6710_v0, %v3791_v6 }
 0x1fa   : >> { %v4237_v11 = vmax.f32 %v4173_v63, 0.0  ;;  %v4429_v12 = vmax.f32 %v4365_v2, 0.0  ;;  %v4174_v13 = vadd.f32 %v6715_v1, %v4104_v3  ;;  %v4366_v14 = vadd.f32 %v6715_v1, %v4302_v4 }
 0x1fb   : >> { %v4235_v15 = vmax.f32 %v4171_v7, 0.0  ;;  %v4427_v16 = vmax.f32 %v4363_v8, 0.0  ;;  %v4172_v17 = vadd.f32 %v6715_v1, %v4102_v9  ;;  %v4364_v18 = vadd.f32 %v6715_v1, %v4300_v10 }
 0x1fc   : >> { %v7192_v19 = vmax.f32 %v4237_v11, %v4429_v12  ;;  %v4238_v20 = vmax.f32 %v4174_v13, 0.0  ;;  %v4430_v21 = vmax.f32 %v4366_v14, 0.0 }
 0x1fd   : >> { %v7194_v22 = vmax.f32 %v4235_v15, %v4427_v16  ;;  %v4236_v23 = vmax.f32 %v4172_v17, 0.0  ;;  %v4428_v24 = vmax.f32 %v4364_v18, 0.0  ;;  %v6063_v25 = vpop.f32.mrb[8].mxu0  ;;  %v6129_v26 = vpop.f32.mrb[8].mxu1 }
 0x1fe   : >> { %v7196_v27 = vmax.f32 %v4238_v20, %v4430_v21  ;;  %v4107_v28 = vmul.f32 %v6063_v25, %v6710_v0  ;;  %v4305_v29 = vmul.f32 %v6129_v26, %v6710_v0  ;;  %v3195_v30 = vpop.f32.mrb[9].mxu0  ;;  %v3804_v31 = vpop.f32.mrb[9].mxu1 }
 0x1ff   : >> { %v7200_v32 = vmax.f32 %v4236_v23, %v4428_v24  ;;  %v4105_v33 = vmul.f32 %v6710_v0, %v3195_v30  ;;  %v4303_v34 = vmul.f32 %v6710_v0, %v3804_v31  ;;  %v6064_v35 = vpop.f32.mrb[10].mxu0  ;;  %v6130_v36 = vpop.f32.mrb[10].mxu1 }
 0x200   : >> { %v4177_v37 = vadd.f32 %v6715_v1, %v4107_v28  ;;  %v4369_v38 = vadd.f32 %v6715_v1, %v4305_v29  ;;  %v4108_v39 = vmul.f32 %v6064_v35, %v6710_v0  ;;  %v4306_v40 = vmul.f32 %v6130_v36, %v6710_v0  ;;  %v3198_v41 = vpop.f32.mrb[11].mxu0  ;;  %v3807_v42 = vpop.f32.mrb[11].mxu1 }
 0x201   : >> { %v4175_v43 = vadd.f32 %v6715_v1, %v4105_v33  ;;  %v4367_v44 = vadd.f32 %v6715_v1, %v4303_v34  ;;  %v4106_v46 = vmul.f32 %v6710_v0, %v3198_v41  ;;  %v4304_v47 = vmul.f32 %v6710_v0, %v3807_v42 }
 0x202   : >> { %v4241_v49 = vmax.f32 %v4177_v37, 0.0  ;;  %v4433_v50 = vmax.f32 %v4369_v38, 0.0  ;;  %v4178_v51 = vadd.f32 %v6715_v1, %v4108_v39  ;;  %v4370_v52 = vadd.f32 %v6715_v1, %v4306_v40 }
 0x203   : >> { %v4239_v54 = vmax.f32 %v4175_v43, 0.0  ;;  %v4431_v55 = vmax.f32 %v4367_v44, 0.0  ;;  %v4176_v56 = vadd.f32 %v6715_v1, %v4106_v46  ;;  %v4368_v57 = vadd.f32 %v6715_v1, %v4304_v47 }
 0x204   : >> { %v7216_v59 = vmax.f32 %v4241_v49, %v4433_v50  ;;  %v4242_v60 = vmax.f32 %v4178_v51, 0.0  ;;  %v4434_v61 = vmax.f32 %v4370_v52, 0.0 }
 0x205   : >> { %v7218_v62 = vmax.f32 %v4239_v54, %v4431_v55  ;;  %v4240_v63 = vmax.f32 %v4176_v56, 0.0  ;;  %v4432_v2 = vmax.f32 %v4368_v57, 0.0  ;;  %v6067_v3 = vpop.f32.mrb[12].mxu0  ;;  %v6133_v4 = vpop.f32.mrb[12].mxu1 }
 0x206   : >> { %v7220_v5 = vmax.f32 %v4242_v60, %v4434_v61  ;;  %v4111_v6 = vmul.f32 %v6067_v3, %v6710_v0  ;;  %v4309_v7 = vmul.f32 %v6133_v4, %v6710_v0  ;;  %v3211_v8 = vpop.f32.mrb[13].mxu0  ;;  %v3820_v9 = vpop.f32.mrb[13].mxu1 }
 0x207   : >> { %v7224_v10 = vmax.f32 %v4240_v63, %v4432_v2  ;;  %v4109_v11 = vmul.f32 %v6710_v0, %v3211_v8  ;;  %v4307_v12 = vmul.f32 %v6710_v0, %v3820_v9  ;;  %v6068_v13 = vpop.f32.mrb[14].mxu0  ;;  %v6134_v14 = vpop.f32.mrb[14].mxu1 }
 0x208   : >> { %v4181_v15 = vadd.f32 %v6715_v1, %v4111_v6  ;;  %v4373_v16 = vadd.f32 %v6715_v1, %v4309_v7  ;;  %v4112_v17 = vmul.f32 %v6068_v13, %v6710_v0  ;;  %v4310_v18 = vmul.f32 %v6134_v14, %v6710_v0  ;;  %v3214_v20 = vpop.f32.mrb[15].mxu0  ;;  %v3823_v21 = vpop.f32.mrb[15].mxu1 }
 0x209   : >> { %v4179_v23 = vadd.f32 %v6715_v1, %v4109_v11  ;;  %v4371_v24 = vadd.f32 %v6715_v1, %v4307_v12  ;;  %v4110_v25 = vmul.f32 %v6710_v0, %v3214_v20  ;;  %v4308_v26 = vmul.f32 %v6710_v0, %v3823_v21 }
 0x20a   : >> { %v4245_v28 = vmax.f32 %v4181_v15, 0.0  ;;  %v4437_v29 = vmax.f32 %v4373_v16, 0.0  ;;  %v4182_v30 = vadd.f32 %v6715_v1, %v4112_v17  ;;  %v4374_v31 = vadd.f32 %v6715_v1, %v4310_v18 }
 0x20b   : >> { %v4243_v33 = vmax.f32 %v4179_v23, 0.0  ;;  %v4435_v34 = vmax.f32 %v4371_v24, 0.0  ;;  %v4180_v35 = vadd.f32 %v6715_v1, %v4110_v25  ;;  %v4372_v36 = vadd.f32 %v6715_v1, %v4308_v26 }
 0x20c   : >> { %v7240_v37 = vmax.f32 %v4245_v28, %v4437_v29  ;;  %v4246_v38 = vmax.f32 %v4182_v30, 0.0  ;;  %v4438_v39 = vmax.f32 %v4374_v31, 0.0 }
 0x20d   : >> { %v7242_v40 = vmax.f32 %v4243_v33, %v4435_v34  ;;  %v4244_v41 = vmax.f32 %v4180_v35, 0.0  ;;  %v4436_v42 = vmax.f32 %v4372_v36, 0.0  ;;  %v6071_v43 = vpop.f32.mrb[16].mxu0  ;;  %v6137_v44 = vpop.f32.mrb[16].mxu1 }
 0x20e   : >> { %v7244_v46 = vmax.f32 %v4246_v38, %v4438_v39  ;;  %v4115_v47 = vmul.f32 %v6071_v43, %v6710_v0  ;;  %v4313_v49 = vmul.f32 %v6137_v44, %v6710_v0  ;;  %v3227_v50 = vpop.f32.mrb[17].mxu0  ;;  %v3836_v51 = vpop.f32.mrb[17].mxu1 }
 0x20f   : >> { %v7248_v52 = vmax.f32 %v4244_v41, %v4436_v42  ;;  %v4113_v54 = vmul.f32 %v6710_v0, %v3227_v50  ;;  %v4311_v55 = vmul.f32 %v6710_v0, %v3836_v51  ;;  %v6072_v56 = vpop.f32.mrb[18].mxu0  ;;  %v6138_v57 = vpop.f32.mrb[18].mxu1 }
 0x210   : >> { %v4185_v60 = vadd.f32 %v6715_v1, %v4115_v47  ;;  %v4377_v61 = vadd.f32 %v6715_v1, %v4313_v49  ;;  %v4116_v63 = vmul.f32 %v6072_v56, %v6710_v0  ;;  %v4314_v2 = vmul.f32 %v6138_v57, %v6710_v0  ;;  %v3230_v3 = vpop.f32.mrb[19].mxu0  ;;  %v3839_v4 = vpop.f32.mrb[19].mxu1 }
 0x211   : >> { %v4183_v6 = vadd.f32 %v6715_v1, %v4113_v54  ;;  %v4375_v7 = vadd.f32 %v6715_v1, %v4311_v55  ;;  %v4114_v8 = vmul.f32 %v6710_v0, %v3230_v3  ;;  %v4312_v9 = vmul.f32 %v6710_v0, %v3839_v4 }
 0x212   : >> { %v4249_v11 = vmax.f32 %v4185_v60, 0.0  ;;  %v4441_v12 = vmax.f32 %v4377_v61, 0.0  ;;  %v4186_v13 = vadd.f32 %v6715_v1, %v4116_v63  ;;  %v4378_v14 = vadd.f32 %v6715_v1, %v4314_v2 }
 0x213   : >> { %v4247_v15 = vmax.f32 %v4183_v6, 0.0  ;;  %v4439_v16 = vmax.f32 %v4375_v7, 0.0  ;;  %v4184_v17 = vadd.f32 %v6715_v1, %v4114_v8  ;;  %v4376_v18 = vadd.f32 %v6715_v1, %v4312_v9 }
 0x214   : >> { %v4505_v20 = vmax.f32 %v4249_v11, %v4441_v12  ;;  %v4250_v21 = vmax.f32 %v4186_v13, 0.0  ;;  %v4442_v23 = vmax.f32 %v4378_v14, 0.0 }
 0x215   : >> { %v4503_v24 = vmax.f32 %v4247_v15, %v4439_v16  ;;  %v4248_v25 = vmax.f32 %v4184_v17, 0.0  ;;  %v4440_v26 = vmax.f32 %v4376_v18, 0.0  ;;  %v6075_v28 = vpop.f32.mrb[20].mxu0  ;;  %v6141_v29 = vpop.f32.mrb[20].mxu1 }
 0x216   : >> { %v4553_v30 = vmax.f32 %v7168_v45, %v4505_v20  ;;  %v4506_v31 = vmax.f32 %v4250_v21, %v4442_v23  ;;  %v4119_v33 = vmul.f32 %v6075_v28, %v6710_v0  ;;  %v4317_v34 = vmul.f32 %v6141_v29, %v6710_v0  ;;  %v3243_v35 = vpop.f32.mrb[21].mxu0  ;;  %v3852_v36 = vpop.f32.mrb[21].mxu1 }
 0x217   : >> { %v4551_v38 = vmax.f32 %v7170_v48, %v4503_v24  ;;  %v4504_v39 = vmax.f32 %v4248_v25, %v4440_v26  ;;  %v4117_v41 = vmul.f32 %v6710_v0, %v3243_v35  ;;  %v4315_v42 = vmul.f32 %v6710_v0, %v3852_v36  ;;  %v6076_v43 = vpop.f32.mrb[22].mxu0  ;;  %v6142_v44 = vpop.f32.mrb[22].mxu1 }
 0x218   : >> { %v5559_v45 = vpack.c.bf16 %v4553_v30, %v4553_v30  ;;  %v4554_v47 = vmax.f32 %v7172_v53, %v4506_v31  ;;  %v4189_v49 = vadd.f32 %v6715_v1, %v4119_v33  ;;  %v4381_v50 = vadd.f32 %v6715_v1, %v4317_v34  ;;  %v3246_v51 = vpop.f32.mrb[23].mxu0  ;;  %v3855_v54 = vpop.f32.mrb[23].mxu1 }
 0x219   : >> { %v5557_v48 = vpack.c.bf16 %v4551_v38, %v4551_v38  ;;  %v4552_v55 = vmax.f32 %v7176_v58, %v4504_v39  ;;  %v4187_v56 = vadd.f32 %v6715_v1, %v4117_v41  ;;  %v4379_v57 = vadd.f32 %v6715_v1, %v4315_v42 }
 0x21a   : >> { %4719 = vst.msk [vmem:[%s7269_s23 + $0x8] sm:$0xf] %vm4716_vm3, %v5559_v45  ;;  %v5560_v60 = vpack.c.bf16 %v4554_v47, %v4554_v47  ;;  %v4253_v61 = vmax.f32 %v4189_v49, 0.0  ;;  %v4445_v53 = vmax.f32 %v4381_v50, 0.0  ;;  %v4120_v63 = vmul.f32 %v6076_v43, %v6710_v0 }
 0x21b   : >> { %4717 = vst.msk [vmem:[%s7269_s23] sm:$0xf] %vm4716_vm3, %v5557_v48  ;;  %v5558_v2 = vpack.c.bf16 %v4552_v55, %v4552_v55  ;;  %v4251_v3 = vmax.f32 %v4187_v56, 0.0  ;;  %v4443_v4 = vmax.f32 %v4379_v57, 0.0  ;;  %v4318_v6 = vmul.f32 %v6142_v44, %v6710_v0 }
 0x21c   : >> { %4720 = vst.msk [vmem:[%s7269_s23 + $0xc] sm:$0xf] %vm4716_vm3, %v5560_v60  ;;  %v4509_v58 = vmax.f32 %v4253_v61, %v4445_v53  ;;  %v4190_v7 = vadd.f32 %v6715_v1, %v4120_v63  ;;  %v4118_v8 = vmul.f32 %v6710_v0, %v3246_v51  ;;  %v4316_v9 = vmul.f32 %v6710_v0, %v3855_v54 }
 0x21d   : >> { %4718 = vst.msk [vmem:[%s7269_s23 + $0x4] sm:$0xf] %vm4716_vm3, %v5558_v2  ;;  %v4507_v11 = vmax.f32 %v4251_v3, %v4443_v4  ;;  %v4382_v12 = vadd.f32 %v6715_v1, %v4318_v6  ;;  %v6079_v13 = vpop.f32.mrb[24].mxu0  ;;  %v6145_v14 = vpop.f32.mrb[24].mxu1 }
 0x21e   : >> { %v4557_v15 = vmax.f32 %v7192_v19, %v4509_v58  ;;  %v4254_v16 = vmax.f32 %v4190_v7, 0.0  ;;  %v4188_v17 = vadd.f32 %v6715_v1, %v4118_v8  ;;  %v4380_v18 = vadd.f32 %v6715_v1, %v4316_v9  ;;  %v3259_v20 = vpop.f32.mrb[25].mxu0  ;;  %v3868_v21 = vpop.f32.mrb[25].mxu1 }
 0x21f   : >> { %v4555_v23 = vmax.f32 %v7194_v22, %v4507_v11  ;;  %v4446_v24 = vmax.f32 %v4382_v12, 0.0  ;;  %v4123_v25 = vmul.f32 %v6079_v13, %v6710_v0  ;;  %v4321_v26 = vmul.f32 %v6145_v14, %v6710_v0  ;;  %v6080_v28 = vpop.f32.mrb[26].mxu0  ;;  %v6146_v29 = vpop.f32.mrb[26].mxu1 }
 0x220   : >> { %v5563_v30 = vpack.c.bf16 %v4557_v15, %v4557_v15  ;;  %v4252_v19 = vmax.f32 %v4188_v17, 0.0  ;;  %v4444_v31 = vmax.f32 %v4380_v18, 0.0  ;;  %v4121_v33 = vmul.f32 %v6710_v0, %v3259_v20  ;;  %v3262_v34 = vpop.f32.mrb[27].mxu0  ;;  %v3871_v35 = vpop.f32.mrb[27].mxu1 }
 0x221   : >> { %v5561_v36 = vpack.c.bf16 %v4555_v23, %v4555_v23  ;;  %v4510_v38 = vmax.f32 %v4254_v16, %v4446_v24  ;;  %v4193_v22 = vadd.f32 %v6715_v1, %v4123_v25  ;;  %v4385_v39 = vadd.f32 %v6715_v1, %v4321_v26 }
 0x222   : >> { %4723 = vst.msk [vmem:[%s7269_s23 + $0x18] sm:$0xf] %vm4716_vm3, %v5563_v30  ;;  %v4508_v41 = vmax.f32 %v4252_v19, %v4444_v31  ;;  %v4191_v42 = vadd.f32 %v6715_v1, %v4121_v33  ;;  %v4319_v43 = vmul.f32 %v6710_v0, %v3868_v21  ;;  %v4124_v44 = vmul.f32 %v6080_v28, %v6710_v0 }
 0x223   : >> { %4721 = vst.msk [vmem:[%s7269_s23 + $0x10] sm:$0xf] %vm4716_vm3, %v5561_v36  ;;  %v4558_v45 = vmax.f32 %v7196_v27, %v4510_v38  ;;  %v4257_v47 = vmax.f32 %v4193_v22, 0.0  ;;  %v4449_v49 = vmax.f32 %v4385_v39, 0.0  ;;  %v4322_v50 = vmul.f32 %v6146_v29, %v6710_v0 }
 0x224   : >> { %v4556_v51 = vmax.f32 %v7200_v32, %v4508_v41  ;;  %v4255_v54 = vmax.f32 %v4191_v42, 0.0  ;;  %v4383_v48 = vadd.f32 %v6715_v1, %v4319_v43  ;;  %v4194_v55 = vadd.f32 %v6715_v1, %v4124_v44 }
 0x225   : >> { %v5564_v56 = vpack.c.bf16 %v4558_v45, %v4558_v45  ;;  %v4513_v57 = vmax.f32 %v4257_v47, %v4449_v49  ;;  %v4386_v60 = vadd.f32 %v6715_v1, %v4322_v50  ;;  %v4122_v61 = vmul.f32 %v6710_v0, %v3262_v34  ;;  %v6083_v27 = vpop.f32.mrb[28].mxu0  ;;  %v6149_v53 = vpop.f32.mrb[28].mxu1 }
 0x226   : >> { %v5562_v63 = vpack.c.bf16 %v4556_v51, %v4556_v51  ;;  %v4447_v2 = vmax.f32 %v4383_v48, 0.0  ;;  %v4258_v3 = vmax.f32 %v4194_v55, 0.0  ;;  %v4320_v32 = vmul.f32 %v6710_v0, %v3871_v35  ;;  %v3275_v4 = vpop.f32.mrb[29].mxu0  ;;  %v3884_v6 = vpop.f32.mrb[29].mxu1 }
 0x227   : >> { %4724 = vst.msk [vmem:[%s7269_s23 + $0x1c] sm:$0xf] %vm4716_vm3, %v5564_v56  ;;  %v4561_v58 = vmax.f32 %v7216_v59, %v4513_v57  ;;  %v4450_v7 = vmax.f32 %v4386_v60, 0.0  ;;  %v4192_v8 = vadd.f32 %v6715_v1, %v4122_v61  ;;  %v4127_v9 = vmul.f32 %v6083_v27, %v6710_v0  ;;  %v6084_v11 = vpop.f32.mrb[30].mxu0  ;;  %v6150_v12 = vpop.f32.mrb[30].mxu1 }
 0x228   : >> { %4722 = vst.msk [vmem:[%s7269_s23 + $0x14] sm:$0xf] %vm4716_vm3, %v5562_v63  ;;  %v4511_v13 = vmax.f32 %v4255_v54, %v4447_v2  ;;  %v4384_v14 = vadd.f32 %v6715_v1, %v4320_v32  ;;  %v4325_v15 = vmul.f32 %v6149_v53, %v6710_v0  ;;  %v4125_v16 = vmul.f32 %v6710_v0, %v3275_v4  ;;  %v3278_v17 = vpop.f32.mrb[31].mxu0  ;;  %v3887_v18 = vpop.f32.mrb[31].mxu1 }
 0x229   : >> { %v5567_v59 = vpack.c.bf16 %v4561_v58, %v4561_v58  ;;  %v4514_v20 = vmax.f32 %v4258_v3, %v4450_v7  ;;  %v4256_v21 = vmax.f32 %v4192_v8, 0.0  ;;  %v4197_v23 = vadd.f32 %v6715_v1, %v4127_v9 }
 0x22a   : >> { %v4559_v24 = vmax.f32 %v7218_v62, %v4511_v13  ;;  %v4448_v25 = vmax.f32 %v4384_v14, 0.0  ;;  %v4389_v26 = vadd.f32 %v6715_v1, %v4325_v15  ;;  %v4195_v28 = vadd.f32 %v6715_v1, %v4125_v16 }
 0x22b   : >> { %4727 = vst.msk [vmem:[%s7269_s23 + $0x28] sm:$0xf] %vm4716_vm3, %v5567_v59  ;;  %v4562_v29 = vmax.f32 %v7220_v5, %v4514_v20  ;;  %v4261_v30 = vmax.f32 %v4197_v23, 0.0  ;;  %v4323_v19 = vmul.f32 %v6710_v0, %v3884_v6  ;;  %v4128_v31 = vmul.f32 %v6084_v11, %v6710_v0 }
 0x22c   : >> { %v5565_v33 = vpack.c.bf16 %v4559_v24, %v4559_v24  ;;  %v4512_v34 = vmax.f32 %v4256_v21, %v4448_v25  ;;  %v4453_v35 = vmax.f32 %v4389_v26, 0.0  ;;  %v4259_v62 = vmax.f32 %v4195_v28, 0.0 }
 0x22d   : >> { %v5568_v36 = vpack.c.bf16 %v4562_v29, %v4562_v29  ;;  %v4387_v38 = vadd.f32 %v6715_v1, %v4323_v19  ;;  %v4198_v22 = vadd.f32 %v6715_v1, %v4128_v31  ;;  %v4326_v39 = vmul.f32 %v6150_v12, %v6710_v0  ;;  %v6087_v41 = vpop.f32.mrb[32].mxu0  ;;  %v6153_v42 = vpop.f32.mrb[32].mxu1 }
 0x22e   : >> { %4725 = vst.msk [vmem:[%s7269_s23 + $0x20] sm:$0xf] %vm4716_vm3, %v5565_v33  ;;  %v4560_v5 = vmax.f32 %v7224_v10, %v4512_v34  ;;  %v4517_v43 = vmax.f32 %v4261_v30, %v4453_v35  ;;  %v4126_v44 = vmul.f32 %v6710_v0, %v3278_v17  ;;  %v4324_v45 = vmul.f32 %v6710_v0, %v3887_v18  ;;  %v3291_v47 = vpop.f32.mrb[33].mxu0  ;;  %v3900_v49 = vpop.f32.mrb[33].mxu1 }
 0x22f   : >> { %4728 = vst.msk [vmem:[%s7269_s23 + $0x2c] sm:$0xf] %vm4716_vm3, %v5568_v36  ;;  %v4451_v50 = vmax.f32 %v4387_v38, 0.0  ;;  %v4262_v51 = vmax.f32 %v4198_v22, 0.0  ;;  %v4390_v54 = vadd.f32 %v6715_v1, %v4326_v39  ;;  %v4131_v48 = vmul.f32 %v6087_v41, %v6710_v0  ;;  %v6088_v55 = vpop.f32.mrb[34].mxu0  ;;  %v6154_v56 = vpop.f32.mrb[34].mxu1 }
 0x230   : >> { %v5566_v57 = vpack.c.bf16 %v4560_v5, %v4560_v5  ;;  %v4565_v10 = vmax.f32 %v7240_v37, %v4517_v43  ;;  %v4196_v60 = vadd.f32 %v6715_v1, %v4126_v44  ;;  %v4388_v61 = vadd.f32 %v6715_v1, %v4324_v45  ;;  %v3294_v27 = vpop.f32.mrb[35].mxu0  ;;  %v3903_v53 = vpop.f32.mrb[35].mxu1 }
 0x231   : >> { %v4515_v63 = vmax.f32 %v4259_v62, %v4451_v50  ;;  %v4454_v2 = vmax.f32 %v4390_v54, 0.0  ;;  %v4201_v3 = vadd.f32 %v6715_v1, %v4131_v48  ;;  %v4329_v32 = vmul.f32 %v6153_v42, %v6710_v0 }
 0x232   : >> { %4726 = vst.msk [vmem:[%s7269_s23 + $0x24] sm:$0xf] %vm4716_vm3, %v5566_v57  ;;  %v5571_v4 = vpack.c.bf16 %v4565_v10, %v4565_v10  ;;  %v4260_v6 = vmax.f32 %v4196_v60, 0.0  ;;  %v4452_v58 = vmax.f32 %v4388_v61, 0.0  ;;  %v4129_v37 = vmul.f32 %v6710_v0, %v3291_v47 }
 0x233   : >> { %v4563_v7 = vmax.f32 %v7242_v40, %v4515_v63  ;;  %v4518_v8 = vmax.f32 %v4262_v51, %v4454_v2  ;;  %v4265_v9 = vmax.f32 %v4201_v3, 0.0  ;;  %v4393_v11 = vadd.f32 %v6715_v1, %v4329_v32 }
 0x234   : >> { %4731 = vst.msk [vmem:[%s7269_s23 + $0x38] sm:$0xf] %vm4716_vm3, %v5571_v4  ;;  %v4516_v12 = vmax.f32 %v4260_v6, %v4452_v58  ;;  %v4199_v13 = vadd.f32 %v6715_v1, %v4129_v37  ;;  %v4327_v14 = vmul.f32 %v6710_v0, %v3900_v49  ;;  %v4132_v15 = vmul.f32 %v6088_v55, %v6710_v0 }
 0x235   : >> { %v5569_v16 = vpack.c.bf16 %v4563_v7, %v4563_v7  ;;  %v4566_v17 = vmax.f32 %v7244_v46, %v4518_v8  ;;  %v4457_v18 = vmax.f32 %v4393_v11, 0.0  ;;  %v4330_v40 = vmul.f32 %v6154_v56, %v6710_v0  ;;  %v6091_v59 = vpop.f32.mrb[36].mxu0  ;;  %v6157_v20 = vpop.f32.mrb[36].mxu1 }
 0x236   : >> { %v4564_v21 = vmax.f32 %v7248_v52, %v4516_v12  ;;  %v4263_v23 = vmax.f32 %v4199_v13, 0.0  ;;  %v4391_v24 = vadd.f32 %v6715_v1, %v4327_v14  ;;  %v4202_v25 = vadd.f32 %v6715_v1, %v4132_v15  ;;  %v3307_v26 = vpop.f32.mrb[37].mxu0  ;;  %v3916_v28 = vpop.f32.mrb[37].mxu1 }
 0x237   : >> { %4729 = vst.msk [vmem:[%s7269_s23 + $0x30] sm:$0xf] %vm4716_vm3, %v5569_v16  ;;  %v5572_v29 = vpack.c.bf16 %v4566_v17, %v4566_v17  ;;  %v7371_v30 = vmax.f32 %v4265_v9, %v4457_v18  ;;  %v4394_v46 = vadd.f32 %v6715_v1, %v4330_v40  ;;  %v4130_v19 = vmul.f32 %v6710_v0, %v3294_v27  ;;  %v6092_v31 = vpop.f32.mrb[38].mxu0  ;;  %v6158_v52 = vpop.f32.mrb[38].mxu1 }
 0x238   : >> { %v5570_v33 = vpack.c.bf16 %v4564_v21, %v4564_v21  ;;  %v4455_v34 = vmax.f32 %v4391_v24, 0.0  ;;  %v4266_v35 = vmax.f32 %v4202_v25, 0.0  ;;  %v4328_v62 = vmul.f32 %v6710_v0, %v3903_v53  ;;  %v3310_v36 = vpop.f32.mrb[39].mxu0  ;;  %v3919_v38 = vpop.f32.mrb[39].mxu1 }
 0x239   : >> { %4732 = vst.msk [vmem:[%s7269_s23 + $0x3c] sm:$0xf] %vm4716_vm3, %v5572_v29  ;;  %v4458_v22 = vmax.f32 %v4394_v46, 0.0  ;;  %v4200_v39 = vadd.f32 %v6715_v1, %v4130_v19  ;;  %v4135_v41 = vmul.f32 %v6091_v59, %v6710_v0  ;;  %v4333_v42 = vmul.f32 %v6157_v20, %v6710_v0 }
 0x23a   : >> { %4730 = vst.msk [vmem:[%s7269_s23 + $0x34] sm:$0xf] %vm4716_vm3, %v5570_v33  ;;  %v7383_v5 = vmax.f32 %v4263_v23, %v4455_v34  ;;  %v4392_v43 = vadd.f32 %v6715_v1, %v4328_v62  ;;  %v4133_v44 = vmul.f32 %v6710_v0, %v3307_v26  ;;  %v4331_v45 = vmul.f32 %v6710_v0, %v3916_v28 }
 0x23b   : >> { %v7388_v47 = vmax.f32 %v4266_v35, %v4458_v22  ;;  %v4264_v49 = vmax.f32 %v4200_v39, 0.0  ;;  %v4205_v50 = vadd.f32 %v6715_v1, %v4135_v41  ;;  %v4397_v51 = vadd.f32 %v6715_v1, %v4333_v42 }
 0x23c   : >> { %v4456_v54 = vmax.f32 %v4392_v43, 0.0  ;;  %v4203_v48 = vadd.f32 %v6715_v1, %v4133_v44  ;;  %v4395_v55 = vadd.f32 %v6715_v1, %v4331_v45  ;;  %v4136_v56 = vmul.f32 %v6092_v31, %v6710_v0 }
 0x23d   : >> { %v4269_v57 = vmax.f32 %v4205_v50, 0.0  ;;  %v4461_v10 = vmax.f32 %v4397_v51, 0.0  ;;  %v4334_v60 = vmul.f32 %v6158_v52, %v6710_v0  ;;  %v4134_v61 = vmul.f32 %v6710_v0, %v3310_v36  ;;  %v6095_v27 = vpop.f32.mrb[40].mxu0  ;;  %v6161_v53 = vpop.f32.mrb[40].mxu1 }
 0x23e   : >> { %v7397_v63 = vmax.f32 %v4264_v49, %v4456_v54  ;;  %v4267_v2 = vmax.f32 %v4203_v48, 0.0  ;;  %v4459_v3 = vmax.f32 %v4395_v55, 0.0  ;;  %v4206_v32 = vadd.f32 %v6715_v1, %v4136_v56  ;;  %v3323_v4 = vpop.f32.mrb[41].mxu0  ;;  %v3932_v6 = vpop.f32.mrb[41].mxu1 }
 0x23f   : >> { %v7400_v58 = vmax.f32 %v4269_v57, %v4461_v10  ;;  %v4398_v37 = vadd.f32 %v6715_v1, %v4334_v60  ;;  %v4204_v7 = vadd.f32 %v6715_v1, %v4134_v61  ;;  %v4332_v8 = vmul.f32 %v6710_v0, %v3919_v38  ;;  %v6096_v9 = vpop.f32.mrb[42].mxu0  ;;  %v6162_v11 = vpop.f32.mrb[42].mxu1 }
 0x240   : >> { %v7405_v12 = vmax.f32 %v4267_v2, %v4459_v3  ;;  %v4270_v13 = vmax.f32 %v4206_v32, 0.0  ;;  %v4139_v14 = vmul.f32 %v6095_v27, %v6710_v0  ;;  %v4337_v15 = vmul.f32 %v6161_v53, %v6710_v0  ;;  %v3326_v16 = vpop.f32.mrb[43].mxu0  ;;  %v3935_v17 = vpop.f32.mrb[43].mxu1 }
 0x241   : >> { %v4462_v18 = vmax.f32 %v4398_v37, 0.0  ;;  %v4268_v40 = vmax.f32 %v4204_v7, 0.0  ;;  %v4396_v59 = vadd.f32 %v6715_v1, %v4332_v8  ;;  %v4137_v20 = vmul.f32 %v6710_v0, %v3323_v4 }
 0x242   : >> { %v4209_v21 = vadd.f32 %v6715_v1, %v4139_v14  ;;  %v4401_v23 = vadd.f32 %v6715_v1, %v4337_v15  ;;  %v4335_v24 = vmul.f32 %v6710_v0, %v3932_v6  ;;  %v4140_v25 = vmul.f32 %v6096_v9, %v6710_v0 }
 0x243   : >> { %v7415_v26 = vmax.f32 %v4270_v13, %v4462_v18  ;;  %v4460_v28 = vmax.f32 %v4396_v59, 0.0  ;;  %v4207_v29 = vadd.f32 %v6715_v1, %v4137_v20  ;;  %v4338_v46 = vmul.f32 %v6162_v11, %v6710_v0 }
 0x244   : >> { %v4273_v19 = vmax.f32 %v4209_v21, 0.0  ;;  %v4465_v31 = vmax.f32 %v4401_v23, 0.0  ;;  %v4399_v52 = vadd.f32 %v6715_v1, %v4335_v24  ;;  %v4210_v33 = vadd.f32 %v6715_v1, %v4140_v25 }
 0x245   : >> { %v7421_v34 = vmax.f32 %v4268_v40, %v4460_v28  ;;  %v4271_v35 = vmax.f32 %v4207_v29, 0.0  ;;  %v4402_v62 = vadd.f32 %v6715_v1, %v4338_v46  ;;  %v4138_v36 = vmul.f32 %v6710_v0, %v3326_v16  ;;  %v6099_v38 = vpop.f32.mrb[44].mxu0  ;;  %v6165_v22 = vpop.f32.mrb[44].mxu1 }
 0x246   : >> { %v7425_v39 = vmax.f32 %v4273_v19, %v4465_v31  ;;  %v4463_v41 = vmax.f32 %v4399_v52, 0.0  ;;  %v4274_v42 = vmax.f32 %v4210_v33, 0.0  ;;  %v4336_v43 = vmul.f32 %v6710_v0, %v3935_v17  ;;  %v3339_v44 = vpop.f32.mrb[45].mxu0  ;;  %v3948_v45 = vpop.f32.mrb[45].mxu1 }
 0x247   : >> { %v4466_v49 = vmax.f32 %v4402_v62, 0.0  ;;  %v4208_v50 = vadd.f32 %v6715_v1, %v4138_v36  ;;  %v4143_v51 = vmul.f32 %v6099_v38, %v6710_v0  ;;  %v4341_v54 = vmul.f32 %v6165_v22, %v6710_v0  ;;  %v6100_v48 = vpop.f32.mrb[46].mxu0  ;;  %v6166_v55 = vpop.f32.mrb[46].mxu1 }
 0x248   : >> { %v7431_v56 = vmax.f32 %v4271_v35, %v4463_v41  ;;  %v4400_v57 = vadd.f32 %v6715_v1, %v4336_v43  ;;  %v4141_v10 = vmul.f32 %v6710_v0, %v3339_v44  ;;  %v4339_v60 = vmul.f32 %v6710_v0, %v3948_v45  ;;  %v3342_v61 = vpop.f32.mrb[47].mxu0  ;;  %v3951_v27 = vpop.f32.mrb[47].mxu1 }
 0x249   : >> { %v7436_v53 = vmax.f32 %v4274_v42, %v4466_v49  ;;  %v4272_v2 = vmax.f32 %v4208_v50, 0.0  ;;  %v4213_v3 = vadd.f32 %v6715_v1, %v4143_v51  ;;  %v4405_v32 = vadd.f32 %v6715_v1, %v4341_v54 }
 0x24a   : >> { %v4464_v4 = vmax.f32 %v4400_v57, 0.0  ;;  %v4211_v6 = vadd.f32 %v6715_v1, %v4141_v10  ;;  %v4403_v37 = vadd.f32 %v6715_v1, %v4339_v60  ;;  %v4144_v7 = vmul.f32 %v6100_v48, %v6710_v0 }
 0x24b   : >> { %v4277_v8 = vmax.f32 %v4213_v3, 0.0  ;;  %v4469_v9 = vmax.f32 %v4405_v32, 0.0  ;;  %v4342_v11 = vmul.f32 %v6166_v55, %v6710_v0  ;;  %v4142_v13 = vmul.f32 %v6710_v0, %v3342_v61 }
 0x24c   : >> { %v7445_v14 = vmax.f32 %v4272_v2, %v4464_v4  ;;  %v4275_v15 = vmax.f32 %v4211_v6, 0.0  ;;  %v4467_v16 = vmax.f32 %v4403_v37, 0.0  ;;  %v4214_v17 = vadd.f32 %v6715_v1, %v4144_v7 }
 0x24d   : >> { %v7448_v18 = vmax.f32 %v4277_v8, %v4469_v9  ;;  %v4406_v40 = vadd.f32 %v6715_v1, %v4342_v11  ;;  %v4212_v59 = vadd.f32 %v6715_v1, %v4142_v13  ;;  %v4340_v20 = vmul.f32 %v6710_v0, %v3951_v27  ;;  %v6103_v21 = vpop.f32.mrb[48].mxu0  ;;  %v6169_v23 = vpop.f32.mrb[48].mxu1 }
 0x24e   : >> { %v7453_v24 = vmax.f32 %v4275_v15, %v4467_v16  ;;  %v4278_v25 = vmax.f32 %v4214_v17, 0.0  ;;  %v4147_v28 = vmul.f32 %v6103_v21, %v6710_v0  ;;  %v4345_v29 = vmul.f32 %v6169_v23, %v6710_v0  ;;  %v3355_v46 = vpop.f32.mrb[49].mxu0  ;;  %v3964_v19 = vpop.f32.mrb[49].mxu1 }
 0x24f   : >> { %v4470_v31 = vmax.f32 %v4406_v40, 0.0  ;;  %v4276_v52 = vmax.f32 %v4212_v59, 0.0  ;;  %v4404_v33 = vadd.f32 %v6715_v1, %v4340_v20  ;;  %v4145_v35 = vmul.f32 %v6710_v0, %v3355_v46  ;;  %v6104_v62 = vpop.f32.mrb[50].mxu0  ;;  %v6170_v36 = vpop.f32.mrb[50].mxu1 }
 0x250   : >> { %v4217_v38 = vadd.f32 %v6715_v1, %v4147_v28  ;;  %v4409_v22 = vadd.f32 %v6715_v1, %v4345_v29  ;;  %v4343_v41 = vmul.f32 %v6710_v0, %v3964_v19  ;;  %v4148_v42 = vmul.f32 %v6104_v62, %v6710_v0  ;;  %v3358_v43 = vpop.f32.mrb[51].mxu0  ;;  %v3967_v44 = vpop.f32.mrb[51].mxu1 }
 0x251   : >> { %v7463_v45 = vmax.f32 %v4278_v25, %v4470_v31  ;;  %v4468_v49 = vmax.f32 %v4404_v33, 0.0  ;;  %v4215_v50 = vadd.f32 %v6715_v1, %v4145_v35  ;;  %v4346_v51 = vmul.f32 %v6170_v36, %v6710_v0 }
 0x252   : >> { %v4281_v54 = vmax.f32 %v4217_v38, 0.0  ;;  %v4473_v48 = vmax.f32 %v4409_v22, 0.0  ;;  %v4407_v55 = vadd.f32 %v6715_v1, %v4343_v41  ;;  %v4218_v57 = vadd.f32 %v6715_v1, %v4148_v42 }
 0x253   : >> { %v7469_v10 = vmax.f32 %v4276_v52, %v4468_v49  ;;  %v4279_v60 = vmax.f32 %v4215_v50, 0.0  ;;  %v4410_v61 = vadd.f32 %v6715_v1, %v4346_v51  ;;  %v4146_v27 = vmul.f32 %v6710_v0, %v3358_v43 }
 0x254   : >> { %v4537_v2 = vmax.f32 %v4281_v54, %v4473_v48  ;;  %v4471_v3 = vmax.f32 %v4407_v55, 0.0  ;;  %v4282_v32 = vmax.f32 %v4218_v57, 0.0  ;;  %v4344_v4 = vmul.f32 %v6710_v0, %v3967_v44 }
 0x255   : >> { %v4474_v6 = vmax.f32 %v4410_v61, 0.0  ;;  %v4216_v37 = vadd.f32 %v6715_v1, %v4146_v27  ;;  %v6107_v7 = vpop.f32.mrb[52].mxu0  ;;  %v6173_v8 = vpop.f32.mrb[52].mxu1 }
 0x256   : >> { %v4569_v9 = vmax.f32 %v7371_v30, %v4537_v2  ;;  %v4535_v11 = vmax.f32 %v4279_v60, %v4471_v3  ;;  %v4408_v13 = vadd.f32 %v6715_v1, %v4344_v4  ;;  %v4151_v15 = vmul.f32 %v6107_v7, %v6710_v0  ;;  %v3371_v16 = vpop.f32.mrb[53].mxu0  ;;  %v3980_v17 = vpop.f32.mrb[53].mxu1 }
 0x257   : >> { %v4538_v40 = vmax.f32 %v4282_v32, %v4474_v6  ;;  %v4280_v59 = vmax.f32 %v4216_v37, 0.0  ;;  %v4349_v20 = vmul.f32 %v6173_v8, %v6710_v0  ;;  %v4149_v21 = vmul.f32 %v6710_v0, %v3371_v16  ;;  %v6108_v23 = vpop.f32.mrb[54].mxu0  ;;  %v6174_v25 = vpop.f32.mrb[54].mxu1 }
 0x258   : >> { %v5575_v28 = vpack.c.bf16 %v4569_v9, %v4569_v9  ;;  %v4567_v29 = vmax.f32 %v7383_v5, %v4535_v11  ;;  %v4472_v30 = vmax.f32 %v4408_v13, 0.0  ;;  %v4221_v46 = vadd.f32 %v6715_v1, %v4151_v15  ;;  %v3374_v19 = vpop.f32.mrb[55].mxu0  ;;  %v3983_v31 = vpop.f32.mrb[55].mxu1 }
 0x259   : >> { %v4570_v52 = vmax.f32 %v7388_v47, %v4538_v40  ;;  %v4413_v33 = vadd.f32 %v6715_v1, %v4349_v20  ;;  %v4219_v35 = vadd.f32 %v6715_v1, %v4149_v21  ;;  %v4347_v62 = vmul.f32 %v6710_v0, %v3980_v17 }
 0x25a   : >> { %4735 = vst.msk [vmem:[%s7269_s23 + $0x48] sm:$0xf] %vm4716_vm3, %v5575_v28  ;;  %v5573_v36 = vpack.c.bf16 %v4567_v29, %v4567_v29  ;;  %v4536_v38 = vmax.f32 %v4280_v59, %v4472_v30  ;;  %v4285_v5 = vmax.f32 %v4221_v46, 0.0  ;;  %v4152_v22 = vmul.f32 %v6108_v23, %v6710_v0 }
 0x25b   : >> { %v5576_v41 = vpack.c.bf16 %v4570_v52, %v4570_v52  ;;  %v4477_v42 = vmax.f32 %v4413_v33, 0.0  ;;  %v4283_v43 = vmax.f32 %v4219_v35, 0.0  ;;  %v4411_v44 = vadd.f32 %v6715_v1, %v4347_v62 }
 0x25c   : >> { %4733 = vst.msk [vmem:[%s7269_s23 + $0x40] sm:$0xf] %vm4716_vm3, %v5573_v36  ;;  %v4568_v47 = vmax.f32 %v7397_v63, %v4536_v38  ;;  %v4222_v49 = vadd.f32 %v6715_v1, %v4152_v22  ;;  %v4350_v50 = vmul.f32 %v6174_v25, %v6710_v0  ;;  %v4150_v51 = vmul.f32 %v6710_v0, %v3374_v19 }
 0x25d   : >> { %4736 = vst.msk [vmem:[%s7269_s23 + $0x4c] sm:$0xf] %vm4716_vm3, %v5576_v41  ;;  %v4541_v54 = vmax.f32 %v4285_v5, %v4477_v42  ;;  %v4475_v48 = vmax.f32 %v4411_v44, 0.0  ;;  %v4348_v55 = vmul.f32 %v6710_v0, %v3983_v31  ;;  %v6111_v57 = vpop.f32.mrb[56].mxu0  ;;  %v6177_v60 = vpop.f32.mrb[56].mxu1 }
 0x25e   : >> { %v5574_v61 = vpack.c.bf16 %v4568_v47, %v4568_v47  ;;  %v4286_v27 = vmax.f32 %v4222_v49, 0.0  ;;  %v4414_v2 = vadd.f32 %v6715_v1, %v4350_v50  ;;  %v4220_v63 = vadd.f32 %v6715_v1, %v4150_v51  ;;  %v3387_v3 = vpop.f32.mrb[57].mxu0  ;;  %v3996_v32 = vpop.f32.mrb[57].mxu1 }
 0x25f   : >> { %v4573_v4 = vmax.f32 %v7400_v58, %v4541_v54  ;;  %v4539_v6 = vmax.f32 %v4283_v43, %v4475_v48  ;;  %v4412_v37 = vadd.f32 %v6715_v1, %v4348_v55  ;;  %v4155_v7 = vmul.f32 %v6111_v57, %v6710_v0  ;;  %v6112_v8 = vpop.f32.mrb[58].mxu0  ;;  %v6178_v9 = vpop.f32.mrb[58].mxu1 }
 0x260   : >> { %4734 = vst.msk [vmem:[%s7269_s23 + $0x44] sm:$0xf] %vm4716_vm3, %v5574_v61  ;;  %v4478_v11 = vmax.f32 %v4414_v2, 0.0  ;;  %v4284_v13 = vmax.f32 %v4220_v63, 0.0  ;;  %v4353_v15 = vmul.f32 %v6177_v60, %v6710_v0  ;;  %v4153_v16 = vmul.f32 %v6710_v0, %v3387_v3  ;;  %v3390_v17 = vpop.f32.mrb[59].mxu0  ;;  %v3999_v40 = vpop.f32.mrb[59].mxu1 }
 0x261   : >> { %v5579_v59 = vpack.c.bf16 %v4573_v4, %v4573_v4  ;;  %v4571_v58 = vmax.f32 %v7405_v12, %v4539_v6  ;;  %v4476_v20 = vmax.f32 %v4412_v37, 0.0  ;;  %v4225_v21 = vadd.f32 %v6715_v1, %v4155_v7 }
 0x262   : >> { %v4542_v23 = vmax.f32 %v4286_v27, %v4478_v11  ;;  %v4417_v25 = vadd.f32 %v6715_v1, %v4353_v15  ;;  %v4223_v28 = vadd.f32 %v6715_v1, %v4153_v16  ;;  %v4351_v29 = vmul.f32 %v6710_v0, %v3996_v32 }
 0x263   : >> { %4739 = vst.msk [vmem:[%s7269_s23 + $0x58] sm:$0xf] %vm4716_vm3, %v5579_v59  ;;  %v5577_v30 = vpack.c.bf16 %v4571_v58, %v4571_v58  ;;  %v4540_v46 = vmax.f32 %v4284_v13, %v4476_v20  ;;  %v4289_v19 = vmax.f32 %v4225_v21, 0.0  ;;  %v4156_v31 = vmul.f32 %v6112_v8, %v6710_v0 }
 0x264   : >> { %v4574_v12 = vmax.f32 %v7415_v26, %v4542_v23  ;;  %v4481_v52 = vmax.f32 %v4417_v25, 0.0  ;;  %v4287_v33 = vmax.f32 %v4223_v28, 0.0  ;;  %v4415_v35 = vadd.f32 %v6715_v1, %v4351_v29 }
 0x265   : >> { %4737 = vst.msk [vmem:[%s7269_s23 + $0x50] sm:$0xf] %vm4716_vm3, %v5577_v30  ;;  %v4572_v62 = vmax.f32 %v7421_v34, %v4540_v46  ;;  %v4226_v36 = vadd.f32 %v6715_v1, %v4156_v31  ;;  %v4354_v38 = vmul.f32 %v6178_v9, %v6710_v0  ;;  %v4154_v5 = vmul.f32 %v6710_v0, %v3390_v17  ;;  %v6115_v22 = vpop.f32.mrb[60].mxu0  ;;  %v6181_v41 = vpop.f32.mrb[60].mxu1 }
 0x266   : >> { %v5580_v42 = vpack.c.bf16 %v4574_v12, %v4574_v12  ;;  %v4545_v43 = vmax.f32 %v4289_v19, %v4481_v52  ;;  %v4479_v26 = vmax.f32 %v4415_v35, 0.0  ;;  %v4352_v44 = vmul.f32 %v6710_v0, %v3999_v40  ;;  %v3403_v47 = vpop.f32.mrb[61].mxu0  ;;  %v4012_v49 = vpop.f32.mrb[61].mxu1 }
 0x267   : >> { %v5578_v50 = vpack.c.bf16 %v4572_v62, %v4572_v62  ;;  %v4290_v51 = vmax.f32 %v4226_v36, 0.0  ;;  %v4418_v34 = vadd.f32 %v6715_v1, %v4354_v38  ;;  %v4224_v54 = vadd.f32 %v6715_v1, %v4154_v5  ;;  %v6116_v48 = vpop.f32.mrb[62].mxu0  ;;  %v6182_v55 = vpop.f32.mrb[62].mxu1 }
 0x268   : >> { %4740 = vst.msk [vmem:[%s7269_s23 + $0x5c] sm:$0xf] %vm4716_vm3, %v5580_v42  ;;  %v4577_v57 = vmax.f32 %v7425_v39, %v4545_v43  ;;  %v4543_v60 = vmax.f32 %v4287_v33, %v4479_v26  ;;  %v4416_v61 = vadd.f32 %v6715_v1, %v4352_v44  ;;  %v4159_v27 = vmul.f32 %v6115_v22, %v6710_v0  ;;  %v3406_v2 = vpop.f32.mrb[63].mxu0  ;;  %v4015_v63 = vpop.f32.mrb[63].mxu1 }
 0x269   : >> { %4738 = vst.msk [vmem:[%s7269_s23 + $0x54] sm:$0xf] %vm4716_vm3, %v5578_v50  ;;  %v4482_v3 = vmax.f32 %v4418_v34, 0.0  ;;  %v4288_v32 = vmax.f32 %v4224_v54, 0.0  ;;  %v4357_v4 = vmul.f32 %v6181_v41, %v6710_v0  ;;  %v4157_v6 = vmul.f32 %v6710_v0, %v3403_v47 }
 0x26a   : >> { %v5583_v37 = vpack.c.bf16 %v4577_v57, %v4577_v57  ;;  %v4575_v7 = vmax.f32 %v7431_v56, %v4543_v60  ;;  %v4480_v39 = vmax.f32 %v4416_v61, 0.0  ;;  %v4229_v8 = vadd.f32 %v6715_v1, %v4159_v27 }
 0x26b   : >> { %v4546_v9 = vmax.f32 %v4290_v51, %v4482_v3  ;;  %v4421_v11 = vadd.f32 %v6715_v1, %v4357_v4  ;;  %v4227_v13 = vadd.f32 %v6715_v1, %v4157_v6  ;;  %v4355_v15 = vmul.f32 %v6710_v0, %v4012_v49 }
 0x26c   : >> { %4743 = vst.msk [vmem:[%s7269_s23 + $0x68] sm:$0xf] %vm4716_vm3, %v5583_v37  ;;  %v5581_v16 = vpack.c.bf16 %v4575_v7, %v4575_v7  ;;  %v4544_v17 = vmax.f32 %v4288_v32, %v4480_v39  ;;  %v4293_v40 = vmax.f32 %v4229_v8, 0.0  ;;  %v4160_v59 = vmul.f32 %v6116_v48, %v6710_v0 }
 0x26d   : >> { %v4578_v56 = vmax.f32 %v7436_v53, %v4546_v9  ;;  %v4485_v58 = vmax.f32 %v4421_v11, 0.0  ;;  %v4291_v20 = vmax.f32 %v4227_v13, 0.0  ;;  %v4419_v21 = vadd.f32 %v6715_v1, %v4355_v15 }
 0x26e   : >> { %4741 = vst.msk [vmem:[%s7269_s23 + $0x60] sm:$0xf] %vm4716_vm3, %v5581_v16  ;;  %v4576_v23 = vmax.f32 %v7445_v14, %v4544_v17  ;;  %v4230_v25 = vadd.f32 %v6715_v1, %v4160_v59  ;;  %v4358_v28 = vmul.f32 %v6182_v55, %v6710_v0  ;;  %v4158_v29 = vmul.f32 %v6710_v0, %v3406_v2 }
 0x26f   : >> { %v5584_v30 = vpack.c.bf16 %v4578_v56, %v4578_v56  ;;  %v4549_v46 = vmax.f32 %v4293_v40, %v4485_v58  ;;  %v4483_v19 = vmax.f32 %v4419_v21, 0.0  ;;  %v4356_v53 = vmul.f32 %v6710_v0, %v4015_v63 }
 0x270   : >> { %v5582_v31 = vpack.c.bf16 %v4576_v23, %v4576_v23  ;;  %v4294_v12 = vmax.f32 %v4230_v25, 0.0  ;;  %v4422_v52 = vadd.f32 %v6715_v1, %v4358_v28  ;;  %v4228_v33 = vadd.f32 %v6715_v1, %v4158_v29 }
 0x271   : >> { %4744 = vst.msk [vmem:[%s7269_s23 + $0x6c] sm:$0xf] %vm4716_vm3, %v5584_v30  ;;  %v4581_v14 = vmax.f32 %v7448_v18, %v4549_v46  ;;  %v4547_v35 = vmax.f32 %v4291_v20, %v4483_v19  ;;  %v4420_v62 = vadd.f32 %v6715_v1, %v4356_v53 }
 0x272   : >> { %4742 = vst.msk [vmem:[%s7269_s23 + $0x64] sm:$0xf] %vm4716_vm3, %v5582_v31  ;;  %v4486_v36 = vmax.f32 %v4422_v52, 0.0  ;;  %v4292_v38 = vmax.f32 %v4228_v33, 0.0 }
 0x273   : >> { %v5587_v5 = vpack.c.bf16 %v4581_v14, %v4581_v14  ;;  %v4579_v22 = vmax.f32 %v7453_v24, %v4547_v35  ;;  %v4484_v41 = vmax.f32 %v4420_v62, 0.0 }
 0x274   : >> { %v4550_v42 = vmax.f32 %v4294_v12, %v4486_v36 }
 0x275   : >> { %4747 = vst.msk [vmem:[%s7269_s23 + $0x78] sm:$0xf] %vm4716_vm3, %v5587_v5  ;;  %v5585_v43 = vpack.c.bf16 %v4579_v22, %v4579_v22  ;;  %v4548_v26 = vmax.f32 %v4292_v38, %v4484_v41  ;;  %252 = sbr.rel (!%p250_p4) target bundleno = 17 (0x11), region = 89 }
 0x276   : >> { %v4582_v18 = vmax.f32 %v7463_v45, %v4550_v42 }
 0x277   : >> { %4745 = vst.msk [vmem:[%s7269_s23 + $0x70] sm:$0xf] %vm4716_vm3, %v5585_v43  ;;  %v4580_v44 = vmax.f32 %v7469_v10, %v4548_v26 }
 0x278   : >> { %v5588_v47 = vpack.c.bf16 %v4582_v18, %v4582_v18 }
 0x279   : >> { %v5586_v49 = vpack.c.bf16 %v4580_v44, %v4580_v44 }
 0x27a   : >> { %4748 = vst.msk [vmem:[%s7269_s23 + $0x7c] sm:$0xf] %vm4716_vm3, %v5588_v47 }
 0x27b   : >> { %4746 = vst.msk [vmem:[%s7269_s23 + $0x74] sm:$0xf] %vm4716_vm3, %v5586_v49 }
 0x27c PF: > { %s15_s18 = sadd.s32 1, %s6662_s18  }
 0x27d   : > { %p12_p5 = scmp.ge.s32.totalorder %s15_s18, 4  }
 0x27f   :  { %14 = sbr.rel (!%p12_p5) target bundleno = 1 (0x1), region = 100 }

// kernel: lpr_corner_net.6
= control target key start
LH: loop header
LB: loop body
LE: loop exit
PB: predicated region body
PF: predicated region fallthrough
CT: control target
= control target key end

     0   :  { %s3971_s18 = smov 0   ;;  %s4484_s0 = inlined_call_operand.vmem [shape: bf16[2,34,64,96], index: 0, kind: input, shape index: {}]   ;;  %s4485_s1 = inlined_call_operand.vmem [shape: bf16[2,34,64,96], index: 1, kind: input, shape index: {}]   ;;  %s4486_s2 = inlined_call_operand.vmem [shape: bf16[3,96,64], index: 2, kind: input, shape index: {}]   ;;  %s4487_s3 = inlined_call_operand.vmem [shape: f32[1,64], index: 3, kind: input, shape index: {}]   ;;  %s4488_s4 = inlined_call_operand.vmem [shape: f32[1,64], index: 4, kind: input, shape index: {}]   ;;  %s4489_s5 = inlined_call_operand.vmem [shape: bf16[2,1024,64], index: 5, kind: output, shape index: {}]  }
   0x1 LB: > { %s2841_s19 = sadd.s32 4294967295, %s3935_s18   ;;  %p2845_p0 = scmp.ge.s32.totalorder %s3935_s18, 1  ;;  %s3935_s18 = sphi %s3971_s18, %s15_s18  }
   0x2   : > { %p197_p1 = scmp.lt.s32.totalorder %s3935_s18, 3 }
   0x4   : > { %p198_p2 = pnand %p2845_p0, %p197_p1 }
   0x5   : > { %p230_p3 = scmp.lt.s32.totalorder (!%p198_p2), %s2841_s19, 1  ;;  %v3982_v0 = vld [vmem:[%s4487_s3] ss:$0 sm:$0xff] (!%p198_p2)  ;;  %s4004_s10 = smov (!%p198_p2), 0  }
   0x6   : > { %201 = sbr.rel (%p198_p2) target bundleno = 458 (0x1ca), region = 40  ;;  %v3987_v1 = vld [vmem:[%s4488_s4] ss:$0 sm:$0xff] (!%p198_p2) }
   0xd   : > { %s4491_s19 = smov (!%p230_p3, %s2841_s19), 1 }
   0xe   : > { %s3794_s24 = smul.u32 1088, %s4491_s19  ;;  %s3246_s25 = sshll.u32 %s4491_s19, 9 }
   0xf   : > { %s3992_s28 = scalar_lea.vmem %s4489_s5, %s3246_s25 }
  0x10   : > { %s3997_s6 = scalar_lea.vmem %s4484_s0, %s3794_s24  ;;  %s4002_s9 = scalar_lea.vmem %s4485_s1, %s3794_s24 }
  0x11 LB: >> { %v3811_v2 = vld [vmem:[%s4486_s2 + $0x30] sm:$0xff]   ;;  %v3812_v3 = vld [vmem:[%s4486_s2 + $0x38] sm:$0xff]   ;;  %s4016_s15 = sshll.u32 %s3939_s10, 7  ;;  %v3813_v4 = vld [vmem:[%s4486_s2 + $0x40] sm:$0xff]   ;;  %vm535_vm0 = vcmask 785408   ;;  %vm2730_vm1 = vcmask 519168   ;;  %s3939_s10 = sphi %s4004_s10, %s253_s10  }
  0x12   : >> { %3402 = vmatprep.subr.bf16.mxu0 %v3811_v2  ;;  %3490 = vmatprep.subr.bf16.mxu1 %v3811_v2  ;;  %s4020_s16 = scalar_lea.vmem %s3997_s6, %s4016_s15  ;;  %s4027_s20 = scalar_lea.vmem %s4002_s9, %s4016_s15  ;;  %v3814_v7 = vld [vmem:[%s4486_s2 + $0x48] sm:$0xff]   ;;  %v3815_v8 = vld [vmem:[%s4486_s2 + $0x50] sm:$0xff]   ;;  %v3816_v9 = vld [vmem:[%s4486_s2 + $0x58] sm:$0xff]  }
  0x13   : >> { %3403 = vmatpush3.bf16.msra.mxu0 %v3811_v2  ;;  %3491 = vmatpush3.bf16.msra.mxu1 %v3811_v2  ;;  %v3817_v5 = vld [vmem:[%s4020_s16 + $0x20] sm:$0xff]   ;;  %v3819_v11 = vld [vmem:[%s4020_s16 + $0x28] sm:$0xff]   ;;  %v3822_v13 = vld [vmem:[%s4020_s16 + $0x30] sm:$0xff]   ;;  %s253_s10 = sadd.s32 1, %s3939_s10  }
  0x14   : >> { %3404 = vmatprep.subr.bf16.mxu0 %v3812_v3  ;;  %3492 = vmatprep.subr.bf16.mxu1 %v3812_v3  ;;  %v3818_v6 = vld [vmem:[%s4027_s20 + $0x20] sm:$0xff]   ;;  %v3821_v12 = vld [vmem:[%s4027_s20 + $0x28] sm:$0xff]   ;;  %v3823_v14 = vld [vmem:[%s4027_s20 + $0x30] sm:$0xff]   ;;  %p250_p4 = scmp.ge.s32.totalorder %s253_s10, 8  }
  0x15   : >> { %3414 = vmatprep.mubr.msk.bf16.mxu0 %vm535_vm0, %v3817_v5  ;;  %3502 = vmatprep.mubr.msk.bf16.mxu1 %vm535_vm0, %v3818_v6  ;;  %v3820_v10 = vld [vmem:[%s4486_s2] sm:$0xff]   ;;  %v3826_v15 = vld [vmem:[%s4486_s2 + $0x8] sm:$0xff]   ;;  %v3824_v16 = vld [vmem:[%s4020_s16 + $0x38] sm:$0xff]  }
  0x16   : >> { %v3831_v17 = vld [vmem:[%s4486_s2 + $0x10] sm:$0xff]   ;;  %v3825_v18 = vld [vmem:[%s4027_s20 + $0x38] sm:$0xff]   ;;  %v3827_v19 = vld [vmem:[%s4020_s16 + $0x40] sm:$0xff]  }
  0x17   : >> { %3405 = vmatpush3.bf16.msra.mxu0 %v3812_v3  ;;  %3493 = vmatpush3.bf16.msra.mxu1 %v3812_v3  ;;  %v3828_v20 = vld [vmem:[%s4027_s20 + $0x40] sm:$0xff]   ;;  %v3839_v21 = vld [vmem:[%s4486_s2 + $0x18] sm:$0xff]   ;;  %v3829_v22 = vld [vmem:[%s4020_s16 + $0x48] sm:$0xff]  }
  0x18   : >> { %3406 = vmatprep.subr.bf16.mxu0 %v3813_v4  ;;  %3494 = vmatprep.subr.bf16.mxu1 %v3813_v4  ;;  %v3830_v23 = vld [vmem:[%s4027_s20 + $0x48] sm:$0xff]   ;;  %v3845_v24 = vld [vmem:[%s4486_s2 + $0x20] sm:$0xff]   ;;  %v3832_v25 = vld [vmem:[%s4020_s16 + $0x50] sm:$0xff]  }
  0x19   : >> { %v3833_v26 = vld [vmem:[%s4027_s20 + $0x50] sm:$0xff]   ;;  %v3850_v27 = vld [vmem:[%s4486_s2 + $0x28] sm:$0xff]   ;;  %v3834_v28 = vld [vmem:[%s4020_s16 + $0x58] sm:$0xff]  }
  0x1a   : >> { %v3835_v29 = vld [vmem:[%s4027_s20 + $0x58] sm:$0xff]   ;;  %v3836_v30 = vld [vmem:[%s4020_s16 + $0x60] sm:$0xff]   ;;  %v3838_v33 = vld [vmem:[%s4020_s16 + $0x68] sm:$0xff]  }
  0x1b   : >> { %3407 = vmatpush3.bf16.msra.mxu0 %v3813_v4  ;;  %3495 = vmatpush3.bf16.msra.mxu1 %v3813_v4  ;;  %v3837_v31 = vld [vmem:[%s4027_s20 + $0x60] sm:$0xff]   ;;  %v3840_v34 = vld [vmem:[%s4027_s20 + $0x68] sm:$0xff]   ;;  %v3841_v35 = vld [vmem:[%s4020_s16 + $0x70] sm:$0xff]  }
  0x1c   : >> { %3408 = vmatprep.subr.bf16.mxu0 %v3814_v7  ;;  %3496 = vmatprep.subr.bf16.mxu1 %v3814_v7  ;;  %v3859_v32 = vld [vmem:[%s4486_s2 + $0x60] sm:$0xff]   ;;  %v3842_v36 = vld [vmem:[%s4027_s20 + $0x70] sm:$0xff]   ;;  %v3843_v37 = vld [vmem:[%s4020_s16 + $0x78] sm:$0xff]  }
  0x1d   : >> { %v3844_v38 = vld [vmem:[%s4027_s20 + $0x78] sm:$0xff]   ;;  %v3846_v39 = vld [vmem:[%s4020_s16 + $0x80] sm:$0xff]   ;;  %v3848_v41 = vld [vmem:[%s4020_s16 + $0x88] sm:$0xff]  }
  0x1e   : >> { %v3847_v40 = vld [vmem:[%s4027_s20 + $0x80] sm:$0xff]   ;;  %v3849_v42 = vld [vmem:[%s4027_s20 + $0x88] sm:$0xff]   ;;  %v3851_v43 = vld [vmem:[%s4020_s16 + $0x90] sm:$0xff]  }
  0x1f   : >> { %3409 = vmatpush3.bf16.msra.mxu0 %v3814_v7  ;;  %3497 = vmatpush3.bf16.msra.mxu1 %v3814_v7  ;;  %v3852_v44 = vld [vmem:[%s4027_s20 + $0x90] sm:$0xff]   ;;  %v3853_v45 = vld [vmem:[%s4020_s16 + $0x98] sm:$0xff]   ;;  %v3855_v47 = vld [vmem:[%s4020_s16] sm:$0xff]  }
  0x20   : >> { %3410 = vmatprep.subr.bf16.mxu0 %v3815_v8  ;;  %3498 = vmatprep.subr.bf16.mxu1 %v3815_v8  ;;  %v3854_v46 = vld [vmem:[%s4027_s20 + $0x98] sm:$0xff]   ;;  %v3856_v48 = vld [vmem:[%s4027_s20] sm:$0xff]   ;;  %v3857_v49 = vld [vmem:[%s4020_s16 + $0x8] sm:$0xff]  }
  0x21   : >> { %v3858_v50 = vld [vmem:[%s4027_s20 + $0x8] sm:$0xff]   ;;  %v3860_v51 = vld [vmem:[%s4020_s16 + $0x10] sm:$0xff]   ;;  %v3862_v54 = vld [vmem:[%s4020_s16 + $0x18] sm:$0xff]  }
  0x22   : >> { %v3861_v52 = vld [vmem:[%s4027_s20 + $0x10] sm:$0xff]   ;;  %v3864_v53 = vld [vmem:[%s4486_s2 + $0x68] sm:$0xff]   ;;  %v3863_v56 = vld [vmem:[%s4027_s20 + $0x18] sm:$0xff]  }
  0x23   : >> { %3411 = vmatpush3.bf16.msra.mxu0 %v3815_v8  ;;  %3499 = vmatpush3.bf16.msra.mxu1 %v3815_v8  ;;  %v3869_v55 = vld [vmem:[%s4486_s2 + $0x70] sm:$0xff]   ;;  %v3865_v57 = vld [vmem:[%s4020_s16 + $0x20] sm:$0xff]   ;;  %v3878_v59 = vld [vmem:[%s4486_s2 + $0x78] sm:$0xff]  }
  0x24   : >> { %3412 = vmatprep.subr.bf16.mxu0 %v3816_v9  ;;  %3500 = vmatprep.subr.bf16.mxu1 %v3816_v9  ;;  %v3866_v58 = vld [vmem:[%s4027_s20 + $0x20] sm:$0xff]   ;;  %v3867_v60 = vld [vmem:[%s4020_s16 + $0x28] sm:$0xff]   ;;  %v3870_v63 = vld [vmem:[%s4020_s16 + $0x30] sm:$0xff]  }
  0x25   : >> { %v3868_v61 = vld [vmem:[%s4027_s20 + $0x28] sm:$0xff]   ;;  %v3883_v62 = vld [vmem:[%s4486_s2 + $0x80] sm:$0xff]   ;;  %v3871_v2 = vld [vmem:[%s4027_s20 + $0x30] sm:$0xff]  }
  0x26   : >> { %v3888_v3 = vld [vmem:[%s4486_s2 + $0x88] sm:$0xff]   ;;  %v3872_v4 = vld [vmem:[%s4020_s16 + $0x38] sm:$0xff]   ;;  %v3874_v6 = vld [vmem:[%s4020_s16 + $0x40] sm:$0xff]  }
  0x27   : >> { %3413 = vmatpush3.bf16.msra.mxu0 %v3816_v9  ;;  %3501 = vmatpush3.bf16.msra.mxu1 %v3816_v9  ;;  %v3873_v5 = vld [vmem:[%s4027_s20 + $0x38] sm:$0xff]   ;;  %v3875_v7 = vld [vmem:[%s4027_s20 + $0x40] sm:$0xff]   ;;  %v3876_v8 = vld [vmem:[%s4020_s16 + $0x48] sm:$0xff]  }
  0x28   : >> { %3446 = vmatprep.subr.bf16.mxu0 %v3820_v10  ;;  %3534 = vmatprep.subr.bf16.mxu1 %v3820_v10  ;;  %v3877_v9 = vld [vmem:[%s4027_s20 + $0x48] sm:$0xff]  }
  0x2a   : >> { %3415 = vmatmul.mubr.msk.bf16.vlgmr.msra.gmra.mrb[0].mxu0 %vm535_vm0, %v3819_v11  ;;  %3503 = vmatmul.mubr.msk.bf16.vlgmr.msra.gmra.mrb[0].mxu1 %vm535_vm0, %v3821_v12  ;;  %v3880_v11 = vld [vmem:[%s4027_s20 + $0x50] sm:$0xff]   ;;  %v3881_v12 = vld [vmem:[%s4020_s16 + $0x58] sm:$0xff]  }
  0x2b   : >> { %3447 = vmatpush3.bf16.msra.mxu0 %v3820_v10  ;;  %3535 = vmatpush3.bf16.msra.mxu1 %v3820_v10  ;;  %v3879_v10 = vld [vmem:[%s4020_s16 + $0x50] sm:$0xff]  }
  0x2c   : >> { %3418 = vmatprep.mubr.msk.bf16.mxu0 %vm535_vm0, %v3822_v13  ;;  %3506 = vmatprep.mubr.msk.bf16.mxu1 %vm535_vm0, %v3823_v14  ;;  %v3882_v13 = vld [vmem:[%s4027_s20 + $0x58] sm:$0xff]   ;;  %v3884_v14 = vld [vmem:[%s4020_s16 + $0x60] sm:$0xff]  }
  0x2d   : >> { %3448 = vmatprep.subr.bf16.mxu0 %v3826_v15  ;;  %3536 = vmatprep.subr.bf16.mxu1 %v3826_v15 }
  0x2f   : >> { %3449 = vmatpush3.bf16.msra.mxu0 %v3826_v15  ;;  %3537 = vmatpush3.bf16.msra.mxu1 %v3826_v15  ;;  %v3885_v15 = vld [vmem:[%s4027_s20 + $0x60] sm:$0xff]  }
  0x30   : >> { %3450 = vmatprep.subr.bf16.mxu0 %v3831_v17  ;;  %3538 = vmatprep.subr.bf16.mxu1 %v3831_v17 }
  0x32   : >> { %3419 = vmatmul.mubr.msk.bf16.gmra.mrb[4].mxu0 %vm535_vm0, %v3824_v16  ;;  %3507 = vmatmul.mubr.msk.bf16.gmra.mrb[4].mxu1 %vm535_vm0, %v3825_v18  ;;  %v3886_v16 = vld [vmem:[%s4020_s16 + $0x68] sm:$0xff]   ;;  %v3889_v18 = vld [vmem:[%s4020_s16 + $0x70] sm:$0xff]  }
  0x33   : >> { %3422 = vmatprep.mubr.msk.bf16.mxu0 %vm535_vm0, %v3827_v19  ;;  %3510 = vmatprep.mubr.msk.bf16.mxu1 %vm535_vm0, %v3828_v20  ;;  %v3890_v19 = vld [vmem:[%s4027_s20 + $0x70] sm:$0xff]   ;;  %v3891_v20 = vld [vmem:[%s4020_s16 + $0x78] sm:$0xff]  }
  0x34   : >> { %3451 = vmatpush3.bf16.msra.mxu0 %v3831_v17  ;;  %3539 = vmatpush3.bf16.msra.mxu1 %v3831_v17  ;;  %v3887_v17 = vld [vmem:[%s4027_s20 + $0x68] sm:$0xff]  }
  0x35   : >> { %3452 = vmatprep.subr.bf16.mxu0 %v3839_v21  ;;  %3540 = vmatprep.subr.bf16.mxu1 %v3839_v21 }
  0x38   : >> { %3453 = vmatpush3.bf16.msra.mxu0 %v3839_v21  ;;  %3541 = vmatpush3.bf16.msra.mxu1 %v3839_v21  ;;  %v3892_v21 = vld [vmem:[%s4027_s20 + $0x78] sm:$0xff]  }
  0x39   : >> { %3454 = vmatprep.subr.bf16.mxu0 %v3845_v24  ;;  %3542 = vmatprep.subr.bf16.mxu1 %v3845_v24 }
  0x3a   : >> { %3423 = vmatmul.mubr.msk.bf16.gmra.mrb[8].mxu0 %vm535_vm0, %v3829_v22  ;;  %3511 = vmatmul.mubr.msk.bf16.gmra.mrb[8].mxu1 %vm535_vm0, %v3830_v23  ;;  %v3893_v22 = vld [vmem:[%s4020_s16 + $0x40] sm:$0xff]  }
  0x3b   : >> { %3426 = vmatprep.mubr.msk.bf16.mxu0 %vm535_vm0, %v3832_v25  ;;  %3514 = vmatprep.mubr.msk.bf16.mxu1 %vm535_vm0, %v3833_v26  ;;  %v3894_v23 = vld [vmem:[%s4027_s20 + $0x40] sm:$0xff]   ;;  %v3896_v25 = vld [vmem:[%s4027_s20 + $0x48] sm:$0xff]   ;;  %v3897_v26 = vld [vmem:[%s4020_s16 + $0x50] sm:$0xff]  }
  0x3c   : >> { %3455 = vmatpush3.bf16.msra.mxu0 %v3845_v24  ;;  %3543 = vmatpush3.bf16.msra.mxu1 %v3845_v24  ;;  %v3895_v24 = vld [vmem:[%s4020_s16 + $0x48] sm:$0xff]  }
  0x3d   : >> { %3456 = vmatprep.subr.bf16.mxu0 %v3850_v27  ;;  %3544 = vmatprep.subr.bf16.mxu1 %v3850_v27 }
  0x40   : >> { %3457 = vmatpush3.bf16.msra.mxu0 %v3850_v27  ;;  %3545 = vmatpush3.bf16.msra.mxu1 %v3850_v27  ;;  %v3898_v27 = vld [vmem:[%s4027_s20 + $0x50] sm:$0xff]  }
  0x41   : >> { %3578 = vmatprep.subr.bf16.mxu0 %v3859_v32  ;;  %3622 = vmatprep.subr.bf16.mxu1 %v3859_v32 }
  0x42   : >> { %3427 = vmatmul.mubr.msk.bf16.gmra.mrb[12].mxu0 %vm535_vm0, %v3834_v28  ;;  %3515 = vmatmul.mubr.msk.bf16.gmra.mrb[12].mxu1 %vm535_vm0, %v3835_v29  ;;  %v3899_v28 = vld [vmem:[%s4020_s16 + $0x58] sm:$0xff]  }
  0x43   : >> { %3430 = vmatprep.mubr.msk.bf16.mxu0 %vm535_vm0, %v3836_v30  ;;  %3518 = vmatprep.mubr.msk.bf16.mxu1 %vm535_vm0, %v3837_v31  ;;  %v3900_v29 = vld [vmem:[%s4027_s20 + $0x58] sm:$0xff]   ;;  %v3901_v30 = vld [vmem:[%s4020_s16 + $0x60] sm:$0xff]  }
  0x44   : >> { %v3902_v31 = vld [vmem:[%s4027_s20 + $0x60] sm:$0xff]  }
  0x4a   : >> { %3431 = vmatmul.mubr.msk.bf16.gmra.mrb[16].mxu0 %vm535_vm0, %v3838_v33  ;;  %3519 = vmatmul.mubr.msk.bf16.gmra.mrb[16].mxu1 %vm535_vm0, %v3840_v34  ;;  %v3904_v33 = vld [vmem:[%s4027_s20 + $0x68] sm:$0xff]   ;;  %v3905_v34 = vld [vmem:[%s4020_s16 + $0x70] sm:$0xff]  }
  0x4b   : >> { %3434 = vmatprep.mubr.msk.bf16.mxu0 %vm535_vm0, %v3841_v35  ;;  %3522 = vmatprep.mubr.msk.bf16.mxu1 %vm535_vm0, %v3842_v36  ;;  %v3906_v35 = vld [vmem:[%s4027_s20 + $0x70] sm:$0xff]   ;;  %v3907_v36 = vld [vmem:[%s4020_s16 + $0x78] sm:$0xff]  }
  0x52   : >> { %3435 = vmatmul.mubr.msk.bf16.gmra.mrb[20].mxu0 %vm535_vm0, %v3843_v37  ;;  %3523 = vmatmul.mubr.msk.bf16.gmra.mrb[20].mxu1 %vm535_vm0, %v3844_v38  ;;  %v3908_v37 = vld [vmem:[%s4027_s20 + $0x78] sm:$0xff]   ;;  %v3909_v38 = vld [vmem:[%s4020_s16 + $0x80] sm:$0xff]  }
  0x53   : >> { %3438 = vmatprep.mubr.msk.bf16.mxu0 %vm535_vm0, %v3846_v39  ;;  %3526 = vmatprep.mubr.msk.bf16.mxu1 %vm535_vm0, %v3847_v40  ;;  %v3910_v39 = vld [vmem:[%s4027_s20 + $0x80] sm:$0xff]   ;;  %v3911_v40 = vld [vmem:[%s4020_s16 + $0x88] sm:$0xff]  }
  0x5a   : >> { %3439 = vmatmul.mubr.msk.bf16.gmra.mrb[24].mxu0 %vm535_vm0, %v3848_v41  ;;  %3527 = vmatmul.mubr.msk.bf16.gmra.mrb[24].mxu1 %vm535_vm0, %v3849_v42  ;;  %v3912_v41 = vld [vmem:[%s4027_s20 + $0x88] sm:$0xff]   ;;  %v3913_v42 = vld [vmem:[%s4020_s16 + $0x90] sm:$0xff]  }
  0x5b   : >> { %3442 = vmatprep.mubr.msk.bf16.mxu0 %vm535_vm0, %v3851_v43  ;;  %3530 = vmatprep.mubr.msk.bf16.mxu1 %vm535_vm0, %v3852_v44  ;;  %v3914_v43 = vld [vmem:[%s4027_s20 + $0x90] sm:$0xff]   ;;  %v3915_v44 = vld [vmem:[%s4020_s16 + $0x98] sm:$0xff]  }
  0x62   : >> { %3443 = vmatmul.mubr.msk.bf16.gmra.mrb[28].mxu0 %vm535_vm0, %v3853_v45  ;;  %3531 = vmatmul.mubr.msk.bf16.gmra.mrb[28].mxu1 %vm535_vm0, %v3854_v46  ;;  %v3916_v45 = vld [vmem:[%s4027_s20 + $0x98] sm:$0xff]   ;;  %v3917_v46 = vld [vmem:[%s4020_s16 + $0xa0] sm:$0xff]  }
  0x63   : >> { %3458 = vmatprep.mubr.msk.bf16.mxu0 %vm535_vm0, %v3855_v47  ;;  %3546 = vmatprep.mubr.msk.bf16.mxu1 %vm535_vm0, %v3856_v48  ;;  %v3918_v47 = vld [vmem:[%s4027_s20 + $0xa0] sm:$0xff]   ;;  %v3919_v48 = vld [vmem:[%s4020_s16 + $0xa8] sm:$0xff]  }
  0x6a   : >> { %3459 = vmatmul.mubr.msk.bf16.vlgmr.msra.gmra.mrb[0].mxu0 %vm535_vm0, %v3857_v49  ;;  %3547 = vmatmul.mubr.msk.bf16.vlgmr.msra.gmra.mrb[0].mxu1 %vm535_vm0, %v3858_v50  ;;  %v3920_v49 = vld [vmem:[%s4027_s20 + $0xa8] sm:$0xff]   ;;  %v3921_v50 = vld [vmem:[%s4020_s16 + $0xb0] sm:$0xff]  }
  0x6b   : >> { %3579 = vmatpush3.bf16.msra.mxu0 %v3859_v32  ;;  %3623 = vmatpush3.bf16.msra.mxu1 %v3859_v32  ;;  %v3903_v32 = vld [vmem:[%s4020_s16 + $0x68] sm:$0xff]  }
  0x6c   : >> { %3462 = vmatprep.mubr.msk.bf16.mxu0 %vm535_vm0, %v3860_v51  ;;  %3550 = vmatprep.mubr.msk.bf16.mxu1 %vm535_vm0, %v3861_v52  ;;  %v3922_v51 = vld [vmem:[%s4027_s20 + $0xb0] sm:$0xff]   ;;  %v3923_v52 = vld [vmem:[%s4020_s16 + $0xb8] sm:$0xff]   ;;  %s2726_s16 = sshra.s32 %s4016_s15, 3 }
  0x6d   : >> { %3580 = vmatprep.subr.bf16.mxu0 %v3864_v53  ;;  %3624 = vmatprep.subr.bf16.mxu1 %v3864_v53  ;;  %s3243_s15 = sshll.u32 %s2726_s16, 2 }
  0x6f   : >> { %3581 = vmatpush3.bf16.msra.mxu0 %v3864_v53  ;;  %3625 = vmatpush3.bf16.msra.mxu1 %v3864_v53  ;;  %v3924_v53 = vld [vmem:[%s4027_s20 + $0xb8] sm:$0xff]   ;;  %s4335_s20 = scalar_lea.vmem %s3992_s28, %s3243_s15 }
  0x70   : >> { %3582 = vmatprep.subr.bf16.mxu0 %v3869_v55  ;;  %3626 = vmatprep.subr.bf16.mxu1 %v3869_v55 }
  0x72   : >> { %3463 = vmatmul.mubr.msk.bf16.gmra.mrb[4].mxu0 %vm535_vm0, %v3862_v54  ;;  %3551 = vmatmul.mubr.msk.bf16.gmra.mrb[4].mxu1 %vm535_vm0, %v3863_v56 }
  0x73   : >> { %3466 = vmatprep.mubr.msk.bf16.mxu0 %vm535_vm0, %v3865_v57  ;;  %3554 = vmatprep.mubr.msk.bf16.mxu1 %vm535_vm0, %v3866_v58 }
  0x74   : >> { %3583 = vmatpush3.bf16.msra.mxu0 %v3869_v55  ;;  %3627 = vmatpush3.bf16.msra.mxu1 %v3869_v55 }
  0x75   : >> { %3584 = vmatprep.subr.bf16.mxu0 %v3878_v59  ;;  %3628 = vmatprep.subr.bf16.mxu1 %v3878_v59 }
  0x78   : >> { %3585 = vmatpush3.bf16.msra.mxu0 %v3878_v59  ;;  %3629 = vmatpush3.bf16.msra.mxu1 %v3878_v59 }
  0x79   : >> { %3586 = vmatprep.subr.bf16.mxu0 %v3883_v62  ;;  %3630 = vmatprep.subr.bf16.mxu1 %v3883_v62 }
  0x7a   : >> { %3467 = vmatmul.mubr.msk.bf16.gmra.mrb[8].mxu0 %vm535_vm0, %v3867_v60  ;;  %3555 = vmatmul.mubr.msk.bf16.gmra.mrb[8].mxu1 %vm535_vm0, %v3868_v61 }
  0x7b   : >> { %3470 = vmatprep.mubr.msk.bf16.mxu0 %vm535_vm0, %v3870_v63  ;;  %3558 = vmatprep.mubr.msk.bf16.mxu1 %vm535_vm0, %v3871_v2 }
  0x7c   : >> { %3587 = vmatpush3.bf16.msra.mxu0 %v3883_v62  ;;  %3631 = vmatpush3.bf16.msra.mxu1 %v3883_v62 }
  0x7d   : >> { %3588 = vmatprep.subr.bf16.mxu0 %v3888_v3  ;;  %3632 = vmatprep.subr.bf16.mxu1 %v3888_v3 }
  0x80   : >> { %3589 = vmatpush3.bf16.msra.mxu0 %v3888_v3  ;;  %3633 = vmatpush3.bf16.msra.mxu1 %v3888_v3 }
  0x82   : >> { %3471 = vmatmul.mubr.msk.bf16.gmra.mrb[12].mxu0 %vm535_vm0, %v3872_v4  ;;  %3559 = vmatmul.mubr.msk.bf16.gmra.mrb[12].mxu1 %vm535_vm0, %v3873_v5 }
  0x83   : >> { %3474 = vmatprep.mubr.msk.bf16.mxu0 %vm535_vm0, %v3874_v6  ;;  %3562 = vmatprep.mubr.msk.bf16.mxu1 %vm535_vm0, %v3875_v7 }
  0x8a   : >> { %3475 = vmatmul.mubr.msk.bf16.gmra.mrb[16].mxu0 %vm535_vm0, %v3876_v8  ;;  %3563 = vmatmul.mubr.msk.bf16.gmra.mrb[16].mxu1 %vm535_vm0, %v3877_v9 }
  0x8b   : >> { %3478 = vmatprep.mubr.msk.bf16.mxu0 %vm535_vm0, %v3879_v10  ;;  %3566 = vmatprep.mubr.msk.bf16.mxu1 %vm535_vm0, %v3880_v11 }
  0x92   : >> { %3479 = vmatmul.mubr.msk.bf16.gmra.mrb[20].mxu0 %vm535_vm0, %v3881_v12  ;;  %3567 = vmatmul.mubr.msk.bf16.gmra.mrb[20].mxu1 %vm535_vm0, %v3882_v13 }
  0x93   : >> { %3482 = vmatprep.mubr.msk.bf16.mxu0 %vm535_vm0, %v3884_v14  ;;  %3570 = vmatprep.mubr.msk.bf16.mxu1 %vm535_vm0, %v3885_v15 }
  0x9a   : >> { %3483 = vmatmul.mubr.msk.bf16.gmra.mrb[24].mxu0 %vm535_vm0, %v3886_v16  ;;  %3571 = vmatmul.mubr.msk.bf16.gmra.mrb[24].mxu1 %vm535_vm0, %v3887_v17 }
  0x9b   : >> { %3486 = vmatprep.mubr.msk.bf16.mxu0 %vm535_vm0, %v3889_v18  ;;  %3574 = vmatprep.mubr.msk.bf16.mxu1 %vm535_vm0, %v3890_v19 }
  0xa2   : >> { %3487 = vmatmul.mubr.msk.bf16.gmra.mrb[28].mxu0 %vm535_vm0, %v3891_v20  ;;  %3575 = vmatmul.mubr.msk.bf16.gmra.mrb[28].mxu1 %vm535_vm0, %v3892_v21 }
  0xa3   : >> { %3590 = vmatprep.mubr.msk.bf16.mxu0 %vm535_vm0, %v3893_v22  ;;  %3634 = vmatprep.mubr.msk.bf16.mxu1 %vm535_vm0, %v3894_v23 }
  0xaa   : >> { %3591 = vmatmul.mubr.msk.bf16.vlgmr.msra.gmra.mrb[0].mxu0 %vm535_vm0, %v3895_v24  ;;  %3635 = vmatmul.mubr.msk.bf16.vlgmr.msra.gmra.mrb[0].mxu1 %vm535_vm0, %v3896_v25 }
  0xab   : >> { %3594 = vmatprep.mubr.msk.bf16.mxu0 %vm535_vm0, %v3897_v26  ;;  %3638 = vmatprep.mubr.msk.bf16.mxu1 %vm535_vm0, %v3898_v27 }
  0xb2   : >> { %3595 = vmatmul.mubr.msk.bf16.gmra.mrb[4].mxu0 %vm535_vm0, %v3899_v28  ;;  %3639 = vmatmul.mubr.msk.bf16.gmra.mrb[4].mxu1 %vm535_vm0, %v3900_v29 }
  0xb3   : >> { %3598 = vmatprep.mubr.msk.bf16.mxu0 %vm535_vm0, %v3901_v30  ;;  %3642 = vmatprep.mubr.msk.bf16.mxu1 %vm535_vm0, %v3902_v31 }
  0xba   : >> { %3599 = vmatmul.mubr.msk.bf16.gmra.mrb[8].mxu0 %vm535_vm0, %v3903_v32  ;;  %3643 = vmatmul.mubr.msk.bf16.gmra.mrb[8].mxu1 %vm535_vm0, %v3904_v33 }
  0xbb   : >> { %3602 = vmatprep.mubr.msk.bf16.mxu0 %vm535_vm0, %v3905_v34  ;;  %3646 = vmatprep.mubr.msk.bf16.mxu1 %vm535_vm0, %v3906_v35 }
  0xc2   : >> { %3603 = vmatmul.mubr.msk.bf16.gmra.mrb[12].mxu0 %vm535_vm0, %v3907_v36  ;;  %3647 = vmatmul.mubr.msk.bf16.gmra.mrb[12].mxu1 %vm535_vm0, %v3908_v37 }
  0xc3   : >> { %3606 = vmatprep.mubr.msk.bf16.mxu0 %vm535_vm0, %v3909_v38  ;;  %3650 = vmatprep.mubr.msk.bf16.mxu1 %vm535_vm0, %v3910_v39 }
  0xca   : >> { %3607 = vmatmul.mubr.msk.bf16.gmra.mrb[16].mxu0 %vm535_vm0, %v3911_v40  ;;  %3651 = vmatmul.mubr.msk.bf16.gmra.mrb[16].mxu1 %vm535_vm0, %v3912_v41 }
  0xcb   : >> { %3610 = vmatprep.mubr.msk.bf16.mxu0 %vm535_vm0, %v3913_v42  ;;  %3654 = vmatprep.mubr.msk.bf16.mxu1 %vm535_vm0, %v3914_v43 }
  0xd2   : >> { %3611 = vmatmul.mubr.msk.bf16.gmra.mrb[20].mxu0 %vm535_vm0, %v3915_v44  ;;  %3655 = vmatmul.mubr.msk.bf16.gmra.mrb[20].mxu1 %vm535_vm0, %v3916_v45 }
  0xd3   : >> { %3614 = vmatprep.mubr.msk.bf16.mxu0 %vm535_vm0, %v3917_v46  ;;  %3658 = vmatprep.mubr.msk.bf16.mxu1 %vm535_vm0, %v3918_v47 }
  0xda   : >> { %3615 = vmatmul.mubr.msk.bf16.gmra.mrb[24].mxu0 %vm535_vm0, %v3919_v48  ;;  %3659 = vmatmul.mubr.msk.bf16.gmra.mrb[24].mxu1 %vm535_vm0, %v3920_v49 }
  0xdb   : >> { %3618 = vmatprep.mubr.msk.bf16.mxu0 %vm535_vm0, %v3921_v50  ;;  %3662 = vmatprep.mubr.msk.bf16.mxu1 %vm535_vm0, %v3922_v51 }
  0xe2   : >> { %3619 = vmatmul.mubr.msk.bf16.gmra.mrb[28].mxu0 %vm535_vm0, %v3923_v52  ;;  %3663 = vmatmul.mubr.msk.bf16.gmra.mrb[28].mxu1 %vm535_vm0, %v3924_v53 }
 0x17d   : >> { %v3592_v54 = vpop.f32.mrb[0].mxu0  ;;  %v3636_v55 = vpop.f32.mrb[0].mxu1 }
 0x17e   : >> { %v2417_v56 = vmul.f32 %v3592_v54, %v3982_v0  ;;  %v2519_v57 = vmul.f32 %v3636_v55, %v3982_v0  ;;  %v1929_v58 = vpop.f32.mrb[1].mxu0  ;;  %v2250_v59 = vpop.f32.mrb[1].mxu1 }
 0x17f   : >> { %v2415_v60 = vmul.f32 %v3982_v0, %v1929_v58  ;;  %v2517_v61 = vmul.f32 %v3982_v0, %v2250_v59  ;;  %v3593_v62 = vpop.f32.mrb[2].mxu0  ;;  %v3637_v63 = vpop.f32.mrb[2].mxu1 }
 0x180   : >> { %v2455_v2 = vadd.f32 %v3987_v1, %v2417_v56  ;;  %v2551_v3 = vadd.f32 %v3987_v1, %v2519_v57  ;;  %v2418_v4 = vmul.f32 %v3593_v62, %v3982_v0  ;;  %v2520_v5 = vmul.f32 %v3637_v63, %v3982_v0  ;;  %v1932_v6 = vpop.f32.mrb[3].mxu0  ;;  %v2253_v7 = vpop.f32.mrb[3].mxu1 }
 0x181   : >> { %v2453_v8 = vadd.f32 %v3987_v1, %v2415_v60  ;;  %v2549_v9 = vadd.f32 %v3987_v1, %v2517_v61  ;;  %v2416_v10 = vmul.f32 %v3982_v0, %v1932_v6  ;;  %v2518_v11 = vmul.f32 %v3982_v0, %v2253_v7 }
 0x182   : >> { %v2487_v12 = vmax.f32 %v2455_v2, 0.0  ;;  %v2583_v13 = vmax.f32 %v2551_v3, 0.0  ;;  %v2456_v14 = vadd.f32 %v3987_v1, %v2418_v4  ;;  %v2552_v15 = vadd.f32 %v3987_v1, %v2520_v5 }
 0x183   : >> { %v2485_v16 = vmax.f32 %v2453_v8, 0.0  ;;  %v2581_v17 = vmax.f32 %v2549_v9, 0.0  ;;  %v2454_v18 = vadd.f32 %v3987_v1, %v2416_v10  ;;  %v2550_v19 = vadd.f32 %v3987_v1, %v2518_v11 }
 0x184   : >> { %v4282_v20 = vmax.f32 %v2487_v12, %v2583_v13  ;;  %v2488_v21 = vmax.f32 %v2456_v14, 0.0  ;;  %v2584_v22 = vmax.f32 %v2552_v15, 0.0 }
 0x185   : >> { %v4284_v23 = vmax.f32 %v2485_v16, %v2581_v17  ;;  %v2486_v24 = vmax.f32 %v2454_v18, 0.0  ;;  %v2582_v25 = vmax.f32 %v2550_v19, 0.0  ;;  %v3596_v26 = vpop.f32.mrb[4].mxu0  ;;  %v3640_v27 = vpop.f32.mrb[4].mxu1 }
 0x186   : >> { %v4286_v28 = vmax.f32 %v2488_v21, %v2584_v22  ;;  %v2421_v29 = vmul.f32 %v3596_v26, %v3982_v0  ;;  %v2523_v30 = vmul.f32 %v3640_v27, %v3982_v0  ;;  %v1945_v31 = vpop.f32.mrb[5].mxu0  ;;  %v2266_v32 = vpop.f32.mrb[5].mxu1 }
 0x187   : >> { %v4290_v33 = vmax.f32 %v2486_v24, %v2582_v25  ;;  %v2419_v34 = vmul.f32 %v3982_v0, %v1945_v31  ;;  %v2521_v35 = vmul.f32 %v3982_v0, %v2266_v32  ;;  %v3597_v36 = vpop.f32.mrb[6].mxu0  ;;  %v3641_v37 = vpop.f32.mrb[6].mxu1 }
 0x188   : >> { %v2459_v38 = vadd.f32 %v3987_v1, %v2421_v29  ;;  %v2555_v39 = vadd.f32 %v3987_v1, %v2523_v30  ;;  %v2422_v40 = vmul.f32 %v3597_v36, %v3982_v0  ;;  %v2524_v41 = vmul.f32 %v3641_v37, %v3982_v0  ;;  %v1948_v42 = vpop.f32.mrb[7].mxu0  ;;  %v2269_v43 = vpop.f32.mrb[7].mxu1 }
 0x189   : >> { %v2457_v44 = vadd.f32 %v3987_v1, %v2419_v34  ;;  %v2553_v45 = vadd.f32 %v3987_v1, %v2521_v35  ;;  %v2420_v46 = vmul.f32 %v3982_v0, %v1948_v42  ;;  %v2522_v47 = vmul.f32 %v3982_v0, %v2269_v43 }
 0x18a   : >> { %v2491_v48 = vmax.f32 %v2459_v38, 0.0  ;;  %v2587_v49 = vmax.f32 %v2555_v39, 0.0  ;;  %v2460_v50 = vadd.f32 %v3987_v1, %v2422_v40  ;;  %v2556_v51 = vadd.f32 %v3987_v1, %v2524_v41 }
 0x18b   : >> { %v2489_v52 = vmax.f32 %v2457_v44, 0.0  ;;  %v2585_v53 = vmax.f32 %v2553_v45, 0.0  ;;  %v2458_v54 = vadd.f32 %v3987_v1, %v2420_v46  ;;  %v2554_v55 = vadd.f32 %v3987_v1, %v2522_v47 }
 0x18c   : >> { %v4306_v56 = vmax.f32 %v2491_v48, %v2587_v49  ;;  %v2492_v57 = vmax.f32 %v2460_v50, 0.0  ;;  %v2588_v58 = vmax.f32 %v2556_v51, 0.0 }
 0x18d   : >> { %v4308_v59 = vmax.f32 %v2489_v52, %v2585_v53  ;;  %v2490_v60 = vmax.f32 %v2458_v54, 0.0  ;;  %v2586_v61 = vmax.f32 %v2554_v55, 0.0  ;;  %v3600_v62 = vpop.f32.mrb[8].mxu0  ;;  %v3644_v63 = vpop.f32.mrb[8].mxu1 }
 0x18e   : >> { %v4310_v2 = vmax.f32 %v2492_v57, %v2588_v58  ;;  %v2425_v3 = vmul.f32 %v3600_v62, %v3982_v0  ;;  %v2527_v4 = vmul.f32 %v3644_v63, %v3982_v0  ;;  %v1961_v5 = vpop.f32.mrb[9].mxu0  ;;  %v2282_v6 = vpop.f32.mrb[9].mxu1 }
 0x18f   : >> { %v4314_v7 = vmax.f32 %v2490_v60, %v2586_v61  ;;  %v2423_v8 = vmul.f32 %v3982_v0, %v1961_v5  ;;  %v2525_v9 = vmul.f32 %v3982_v0, %v2282_v6  ;;  %v3601_v10 = vpop.f32.mrb[10].mxu0  ;;  %v3645_v11 = vpop.f32.mrb[10].mxu1 }
 0x190   : >> { %v2463_v12 = vadd.f32 %v3987_v1, %v2425_v3  ;;  %v2559_v13 = vadd.f32 %v3987_v1, %v2527_v4  ;;  %v2426_v14 = vmul.f32 %v3601_v10, %v3982_v0  ;;  %v2528_v15 = vmul.f32 %v3645_v11, %v3982_v0  ;;  %v1964_v16 = vpop.f32.mrb[11].mxu0  ;;  %v2285_v17 = vpop.f32.mrb[11].mxu1 }
 0x191   : >> { %v2461_v18 = vadd.f32 %v3987_v1, %v2423_v8  ;;  %v2557_v19 = vadd.f32 %v3987_v1, %v2525_v9  ;;  %v2424_v21 = vmul.f32 %v3982_v0, %v1964_v16  ;;  %v2526_v22 = vmul.f32 %v3982_v0, %v2285_v17 }
 0x192   : >> { %v2495_v24 = vmax.f32 %v2463_v12, 0.0  ;;  %v2591_v25 = vmax.f32 %v2559_v13, 0.0  ;;  %v2464_v26 = vadd.f32 %v3987_v1, %v2426_v14  ;;  %v2560_v27 = vadd.f32 %v3987_v1, %v2528_v15 }
 0x193   : >> { %v2493_v29 = vmax.f32 %v2461_v18, 0.0  ;;  %v2589_v30 = vmax.f32 %v2557_v19, 0.0  ;;  %v2462_v31 = vadd.f32 %v3987_v1, %v2424_v21  ;;  %v2558_v32 = vadd.f32 %v3987_v1, %v2526_v22 }
 0x194   : >> { %v2623_v34 = vmax.f32 %v2495_v24, %v2591_v25  ;;  %v2496_v35 = vmax.f32 %v2464_v26, 0.0  ;;  %v2592_v36 = vmax.f32 %v2560_v27, 0.0 }
 0x195   : >> { %v2621_v37 = vmax.f32 %v2493_v29, %v2589_v30  ;;  %v2494_v38 = vmax.f32 %v2462_v31, 0.0  ;;  %v2590_v39 = vmax.f32 %v2558_v32, 0.0  ;;  %v3604_v40 = vpop.f32.mrb[12].mxu0  ;;  %v3648_v41 = vpop.f32.mrb[12].mxu1 }
 0x196   : >> { %v2647_v42 = vmax.f32 %v4282_v20, %v2623_v34  ;;  %v2624_v43 = vmax.f32 %v2496_v35, %v2592_v36  ;;  %v2429_v44 = vmul.f32 %v3604_v40, %v3982_v0  ;;  %v2531_v45 = vmul.f32 %v3648_v41, %v3982_v0  ;;  %v1977_v46 = vpop.f32.mrb[13].mxu0  ;;  %v2298_v47 = vpop.f32.mrb[13].mxu1 }
 0x197   : >> { %v2645_v48 = vmax.f32 %v4284_v23, %v2621_v37  ;;  %v2622_v49 = vmax.f32 %v2494_v38, %v2590_v39  ;;  %v2427_v50 = vmul.f32 %v3982_v0, %v1977_v46  ;;  %v2529_v51 = vmul.f32 %v3982_v0, %v2298_v47  ;;  %v3605_v52 = vpop.f32.mrb[14].mxu0  ;;  %v3649_v53 = vpop.f32.mrb[14].mxu1 }
 0x198   : >> { %v3256_v20 = vpack.c.bf16 %v2647_v42, %v2647_v42  ;;  %v2648_v54 = vmax.f32 %v4286_v28, %v2624_v43  ;;  %v2467_v55 = vadd.f32 %v3987_v1, %v2429_v44  ;;  %v2563_v57 = vadd.f32 %v3987_v1, %v2531_v45  ;;  %v1980_v58 = vpop.f32.mrb[15].mxu0  ;;  %v2301_v60 = vpop.f32.mrb[15].mxu1 }
 0x199   : >> { %v3254_v23 = vpack.c.bf16 %v2645_v48, %v2645_v48  ;;  %v2646_v61 = vmax.f32 %v4290_v33, %v2622_v49  ;;  %v2465_v62 = vadd.f32 %v3987_v1, %v2427_v50  ;;  %v2561_v63 = vadd.f32 %v3987_v1, %v2529_v51 }
 0x19a   : >> { %2733 = vst.msk [vmem:[%s4335_s20 + $0x8] sm:$0xf] %vm2730_vm1, %v3256_v20  ;;  %v3257_v3 = vpack.c.bf16 %v2648_v54, %v2648_v54  ;;  %v2499_v4 = vmax.f32 %v2467_v55, 0.0  ;;  %v2595_v28 = vmax.f32 %v2563_v57, 0.0  ;;  %v2430_v5 = vmul.f32 %v3605_v52, %v3982_v0 }
 0x19b   : >> { %2731 = vst.msk [vmem:[%s4335_s20] sm:$0xf] %vm2730_vm1, %v3254_v23  ;;  %v3255_v6 = vpack.c.bf16 %v2646_v61, %v2646_v61  ;;  %v2497_v8 = vmax.f32 %v2465_v62, 0.0  ;;  %v2593_v9 = vmax.f32 %v2561_v63, 0.0  ;;  %v2532_v10 = vmul.f32 %v3649_v53, %v3982_v0 }
 0x19c   : >> { %2734 = vst.msk [vmem:[%s4335_s20 + $0xc] sm:$0xf] %vm2730_vm1, %v3257_v3  ;;  %v2627_v33 = vmax.f32 %v2499_v4, %v2595_v28  ;;  %v2468_v11 = vadd.f32 %v3987_v1, %v2430_v5  ;;  %v2428_v12 = vmul.f32 %v3982_v0, %v1980_v58  ;;  %v2530_v13 = vmul.f32 %v3982_v0, %v2301_v60 }
 0x19d   : >> { %2732 = vst.msk [vmem:[%s4335_s20 + $0x4] sm:$0xf] %vm2730_vm1, %v3255_v6  ;;  %v2625_v14 = vmax.f32 %v2497_v8, %v2593_v9  ;;  %v2564_v15 = vadd.f32 %v3987_v1, %v2532_v10  ;;  %v3608_v16 = vpop.f32.mrb[16].mxu0  ;;  %v3652_v17 = vpop.f32.mrb[16].mxu1 }
 0x19e   : >> { %v2651_v18 = vmax.f32 %v4306_v56, %v2627_v33  ;;  %v2500_v19 = vmax.f32 %v2468_v11, 0.0  ;;  %v2466_v21 = vadd.f32 %v3987_v1, %v2428_v12  ;;  %v2562_v22 = vadd.f32 %v3987_v1, %v2530_v13  ;;  %v1993_v24 = vpop.f32.mrb[17].mxu0  ;;  %v2314_v25 = vpop.f32.mrb[17].mxu1 }
 0x19f   : >> { %v2649_v26 = vmax.f32 %v4308_v59, %v2625_v14  ;;  %v2596_v27 = vmax.f32 %v2564_v15, 0.0  ;;  %v2433_v29 = vmul.f32 %v3608_v16, %v3982_v0  ;;  %v2535_v30 = vmul.f32 %v3652_v17, %v3982_v0  ;;  %v3609_v31 = vpop.f32.mrb[18].mxu0  ;;  %v3653_v32 = vpop.f32.mrb[18].mxu1 }
 0x1a0   : >> { %v3260_v34 = vpack.c.bf16 %v2651_v18, %v2651_v18  ;;  %v2498_v56 = vmax.f32 %v2466_v21, 0.0  ;;  %v2594_v35 = vmax.f32 %v2562_v22, 0.0  ;;  %v2431_v36 = vmul.f32 %v3982_v0, %v1993_v24  ;;  %v1996_v37 = vpop.f32.mrb[19].mxu0  ;;  %v2317_v38 = vpop.f32.mrb[19].mxu1 }
 0x1a1   : >> { %v3258_v39 = vpack.c.bf16 %v2649_v26, %v2649_v26  ;;  %v2628_v40 = vmax.f32 %v2500_v19, %v2596_v27  ;;  %v2471_v59 = vadd.f32 %v3987_v1, %v2433_v29  ;;  %v2567_v41 = vadd.f32 %v3987_v1, %v2535_v30 }
 0x1a2   : >> { %2737 = vst.msk [vmem:[%s4335_s20 + $0x18] sm:$0xf] %vm2730_vm1, %v3260_v34  ;;  %v2626_v42 = vmax.f32 %v2498_v56, %v2594_v35  ;;  %v2469_v43 = vadd.f32 %v3987_v1, %v2431_v36  ;;  %v2533_v44 = vmul.f32 %v3982_v0, %v2314_v25  ;;  %v2434_v45 = vmul.f32 %v3609_v31, %v3982_v0 }
 0x1a3   : >> { %2735 = vst.msk [vmem:[%s4335_s20 + $0x10] sm:$0xf] %vm2730_vm1, %v3258_v39  ;;  %v2652_v46 = vmax.f32 %v4310_v2, %v2628_v40  ;;  %v2503_v47 = vmax.f32 %v2471_v59, 0.0  ;;  %v2599_v48 = vmax.f32 %v2567_v41, 0.0  ;;  %v2536_v49 = vmul.f32 %v3653_v32, %v3982_v0 }
 0x1a4   : >> { %v2650_v50 = vmax.f32 %v4314_v7, %v2626_v42  ;;  %v2501_v51 = vmax.f32 %v2469_v43, 0.0  ;;  %v2565_v52 = vadd.f32 %v3987_v1, %v2533_v44  ;;  %v2472_v53 = vadd.f32 %v3987_v1, %v2434_v45 }
 0x1a5   : >> { %v3261_v20 = vpack.c.bf16 %v2652_v46, %v2652_v46  ;;  %v4381_v54 = vmax.f32 %v2503_v47, %v2599_v48  ;;  %v2568_v55 = vadd.f32 %v3987_v1, %v2536_v49  ;;  %v2432_v57 = vmul.f32 %v3982_v0, %v1996_v37  ;;  %v3612_v2 = vpop.f32.mrb[20].mxu0  ;;  %v3656_v58 = vpop.f32.mrb[20].mxu1 }
 0x1a6   : >> { %v3259_v60 = vpack.c.bf16 %v2650_v50, %v2650_v50  ;;  %v2597_v23 = vmax.f32 %v2565_v52, 0.0  ;;  %v2504_v61 = vmax.f32 %v2472_v53, 0.0  ;;  %v2534_v7 = vmul.f32 %v3982_v0, %v2317_v38  ;;  %v2009_v62 = vpop.f32.mrb[21].mxu0  ;;  %v2330_v63 = vpop.f32.mrb[21].mxu1 }
 0x1a7   : >> { %2738 = vst.msk [vmem:[%s4335_s20 + $0x1c] sm:$0xf] %vm2730_vm1, %v3261_v20  ;;  %v2600_v3 = vmax.f32 %v2568_v55, 0.0  ;;  %v2470_v4 = vadd.f32 %v3987_v1, %v2432_v57  ;;  %v2437_v28 = vmul.f32 %v3612_v2, %v3982_v0  ;;  %v2539_v5 = vmul.f32 %v3656_v58, %v3982_v0  ;;  %v3613_v6 = vpop.f32.mrb[22].mxu0  ;;  %v3657_v8 = vpop.f32.mrb[22].mxu1 }
 0x1a8   : >> { %2736 = vst.msk [vmem:[%s4335_s20 + $0x14] sm:$0xf] %vm2730_vm1, %v3259_v60  ;;  %v4393_v9 = vmax.f32 %v2501_v51, %v2597_v23  ;;  %v2566_v10 = vadd.f32 %v3987_v1, %v2534_v7  ;;  %v2435_v33 = vmul.f32 %v3982_v0, %v2009_v62  ;;  %v2537_v11 = vmul.f32 %v3982_v0, %v2330_v63  ;;  %v2012_v12 = vpop.f32.mrb[23].mxu0  ;;  %v2333_v13 = vpop.f32.mrb[23].mxu1 }
 0x1a9   : >> { %v4398_v14 = vmax.f32 %v2504_v61, %v2600_v3  ;;  %v2502_v15 = vmax.f32 %v2470_v4, 0.0  ;;  %v2475_v16 = vadd.f32 %v3987_v1, %v2437_v28  ;;  %v2571_v17 = vadd.f32 %v3987_v1, %v2539_v5 }
 0x1aa   : >> { %v2598_v18 = vmax.f32 %v2566_v10, 0.0  ;;  %v2473_v19 = vadd.f32 %v3987_v1, %v2435_v33  ;;  %v2569_v21 = vadd.f32 %v3987_v1, %v2537_v11  ;;  %v2438_v22 = vmul.f32 %v3613_v6, %v3982_v0 }
 0x1ab   : >> { %v2507_v24 = vmax.f32 %v2475_v16, 0.0  ;;  %v2603_v25 = vmax.f32 %v2571_v17, 0.0  ;;  %v2540_v26 = vmul.f32 %v3657_v8, %v3982_v0  ;;  %v2436_v27 = vmul.f32 %v3982_v0, %v2012_v12 }
 0x1ac   : >> { %v4407_v29 = vmax.f32 %v2502_v15, %v2598_v18  ;;  %v2505_v30 = vmax.f32 %v2473_v19, 0.0  ;;  %v2601_v31 = vmax.f32 %v2569_v21, 0.0  ;;  %v2476_v32 = vadd.f32 %v3987_v1, %v2438_v22 }
 0x1ad   : >> { %v4410_v34 = vmax.f32 %v2507_v24, %v2603_v25  ;;  %v2572_v56 = vadd.f32 %v3987_v1, %v2540_v26  ;;  %v2474_v35 = vadd.f32 %v3987_v1, %v2436_v27  ;;  %v2538_v36 = vmul.f32 %v3982_v0, %v2333_v13  ;;  %v3616_v37 = vpop.f32.mrb[24].mxu0  ;;  %v3660_v38 = vpop.f32.mrb[24].mxu1 }
 0x1ae   : >> { %v4415_v39 = vmax.f32 %v2505_v30, %v2601_v31  ;;  %v2508_v40 = vmax.f32 %v2476_v32, 0.0  ;;  %v2441_v59 = vmul.f32 %v3616_v37, %v3982_v0  ;;  %v2543_v41 = vmul.f32 %v3660_v38, %v3982_v0  ;;  %v2025_v42 = vpop.f32.mrb[25].mxu0  ;;  %v2346_v43 = vpop.f32.mrb[25].mxu1 }
 0x1af   : >> { %v2604_v44 = vmax.f32 %v2572_v56, 0.0  ;;  %v2506_v45 = vmax.f32 %v2474_v35, 0.0  ;;  %v2570_v46 = vadd.f32 %v3987_v1, %v2538_v36  ;;  %v2439_v47 = vmul.f32 %v3982_v0, %v2025_v42  ;;  %v3617_v48 = vpop.f32.mrb[26].mxu0  ;;  %v3661_v49 = vpop.f32.mrb[26].mxu1 }
 0x1b0   : >> { %v2479_v50 = vadd.f32 %v3987_v1, %v2441_v59  ;;  %v2575_v51 = vadd.f32 %v3987_v1, %v2543_v41  ;;  %v2541_v52 = vmul.f32 %v3982_v0, %v2346_v43  ;;  %v2442_v53 = vmul.f32 %v3617_v48, %v3982_v0  ;;  %v2028_v20 = vpop.f32.mrb[27].mxu0  ;;  %v2349_v55 = vpop.f32.mrb[27].mxu1 }
 0x1b1   : >> { %v4425_v57 = vmax.f32 %v2508_v40, %v2604_v44  ;;  %v2602_v2 = vmax.f32 %v2570_v46, 0.0  ;;  %v2477_v58 = vadd.f32 %v3987_v1, %v2439_v47  ;;  %v2544_v60 = vmul.f32 %v3661_v49, %v3982_v0 }
 0x1b2   : >> { %v2511_v23 = vmax.f32 %v2479_v50, 0.0  ;;  %v2607_v61 = vmax.f32 %v2575_v51, 0.0  ;;  %v2573_v7 = vadd.f32 %v3987_v1, %v2541_v52  ;;  %v2480_v62 = vadd.f32 %v3987_v1, %v2442_v53 }
 0x1b3   : >> { %v4431_v63 = vmax.f32 %v2506_v45, %v2602_v2  ;;  %v2509_v3 = vmax.f32 %v2477_v58, 0.0  ;;  %v2576_v4 = vadd.f32 %v3987_v1, %v2544_v60  ;;  %v2440_v28 = vmul.f32 %v3982_v0, %v2028_v20 }
 0x1b4   : >> { %v2639_v5 = vmax.f32 %v2511_v23, %v2607_v61  ;;  %v2605_v6 = vmax.f32 %v2573_v7, 0.0  ;;  %v2512_v8 = vmax.f32 %v2480_v62, 0.0  ;;  %v2542_v10 = vmul.f32 %v3982_v0, %v2349_v55 }
 0x1b5   : >> { %v2608_v33 = vmax.f32 %v2576_v4, 0.0  ;;  %v2478_v11 = vadd.f32 %v3987_v1, %v2440_v28  ;;  %v3620_v12 = vpop.f32.mrb[28].mxu0  ;;  %v3664_v13 = vpop.f32.mrb[28].mxu1 }
 0x1b6   : >> { %v2655_v15 = vmax.f32 %v4381_v54, %v2639_v5  ;;  %v2637_v16 = vmax.f32 %v2509_v3, %v2605_v6  ;;  %v2574_v17 = vadd.f32 %v3987_v1, %v2542_v10  ;;  %v2445_v18 = vmul.f32 %v3620_v12, %v3982_v0  ;;  %v2041_v19 = vpop.f32.mrb[29].mxu0  ;;  %v2362_v21 = vpop.f32.mrb[29].mxu1 }
 0x1b7   : >> { %v2640_v22 = vmax.f32 %v2512_v8, %v2608_v33  ;;  %v2510_v24 = vmax.f32 %v2478_v11, 0.0  ;;  %v2547_v25 = vmul.f32 %v3664_v13, %v3982_v0  ;;  %v2443_v26 = vmul.f32 %v3982_v0, %v2041_v19  ;;  %v3621_v27 = vpop.f32.mrb[30].mxu0  ;;  %v3665_v30 = vpop.f32.mrb[30].mxu1 }
 0x1b8   : >> { %v3264_v31 = vpack.c.bf16 %v2655_v15, %v2655_v15  ;;  %v2653_v32 = vmax.f32 %v4393_v9, %v2637_v16  ;;  %v2606_v54 = vmax.f32 %v2574_v17, 0.0  ;;  %v2483_v56 = vadd.f32 %v3987_v1, %v2445_v18  ;;  %v2044_v35 = vpop.f32.mrb[31].mxu0  ;;  %v2365_v36 = vpop.f32.mrb[31].mxu1 }
 0x1b9   : >> { %v2656_v37 = vmax.f32 %v4398_v14, %v2640_v22  ;;  %v2579_v38 = vadd.f32 %v3987_v1, %v2547_v25  ;;  %v2481_v40 = vadd.f32 %v3987_v1, %v2443_v26  ;;  %v2545_v59 = vmul.f32 %v3982_v0, %v2362_v21 }
 0x1ba   : >> { %2741 = vst.msk [vmem:[%s4335_s20 + $0x28] sm:$0xf] %vm2730_vm1, %v3264_v31  ;;  %v3262_v41 = vpack.c.bf16 %v2653_v32, %v2653_v32  ;;  %v2638_v42 = vmax.f32 %v2510_v24, %v2606_v54  ;;  %v2515_v9 = vmax.f32 %v2483_v56, 0.0  ;;  %v2446_v43 = vmul.f32 %v3621_v27, %v3982_v0 }
 0x1bb   : >> { %v3265_v44 = vpack.c.bf16 %v2656_v37, %v2656_v37  ;;  %v2611_v45 = vmax.f32 %v2579_v38, 0.0  ;;  %v2513_v46 = vmax.f32 %v2481_v40, 0.0  ;;  %v2577_v47 = vadd.f32 %v3987_v1, %v2545_v59 }
 0x1bc   : >> { %2739 = vst.msk [vmem:[%s4335_s20 + $0x20] sm:$0xf] %vm2730_vm1, %v3262_v41  ;;  %v2654_v14 = vmax.f32 %v4407_v29, %v2638_v42  ;;  %v2484_v48 = vadd.f32 %v3987_v1, %v2446_v43  ;;  %v2548_v49 = vmul.f32 %v3665_v30, %v3982_v0  ;;  %v2444_v50 = vmul.f32 %v3982_v0, %v2044_v35 }
 0x1bd   : >> { %2742 = vst.msk [vmem:[%s4335_s20 + $0x2c] sm:$0xf] %vm2730_vm1, %v3265_v44  ;;  %v2643_v51 = vmax.f32 %v2515_v9, %v2611_v45  ;;  %v2609_v52 = vmax.f32 %v2577_v47, 0.0  ;;  %v2546_v53 = vmul.f32 %v3982_v0, %v2365_v36 }
 0x1be   : >> { %v3263_v20 = vpack.c.bf16 %v2654_v14, %v2654_v14  ;;  %v2516_v55 = vmax.f32 %v2484_v48, 0.0  ;;  %v2580_v2 = vadd.f32 %v3987_v1, %v2548_v49  ;;  %v2482_v29 = vadd.f32 %v3987_v1, %v2444_v50 }
 0x1bf   : >> { %v2659_v58 = vmax.f32 %v4410_v34, %v2643_v51  ;;  %v2641_v60 = vmax.f32 %v2513_v46, %v2609_v52  ;;  %v2578_v23 = vadd.f32 %v3987_v1, %v2546_v53 }
 0x1c0   : >> { %2740 = vst.msk [vmem:[%s4335_s20 + $0x24] sm:$0xf] %vm2730_vm1, %v3263_v20  ;;  %v2612_v61 = vmax.f32 %v2580_v2, 0.0  ;;  %v2514_v7 = vmax.f32 %v2482_v29, 0.0 }
 0x1c1   : >> { %v3268_v62 = vpack.c.bf16 %v2659_v58, %v2659_v58  ;;  %v2657_v3 = vmax.f32 %v4415_v39, %v2641_v60  ;;  %v2610_v4 = vmax.f32 %v2578_v23, 0.0 }
 0x1c2   : >> { %v2644_v28 = vmax.f32 %v2516_v55, %v2612_v61 }
 0x1c3   : >> { %2745 = vst.msk [vmem:[%s4335_s20 + $0x38] sm:$0xf] %vm2730_vm1, %v3268_v62  ;;  %v3266_v5 = vpack.c.bf16 %v2657_v3, %v2657_v3  ;;  %v2642_v6 = vmax.f32 %v2514_v7, %v2610_v4  ;;  %252 = sbr.rel (!%p250_p4) target bundleno = 17 (0x11), region = 89 }
 0x1c4   : >> { %v2660_v34 = vmax.f32 %v4425_v57, %v2644_v28 }
 0x1c5   : >> { %2743 = vst.msk [vmem:[%s4335_s20 + $0x30] sm:$0xf] %vm2730_vm1, %v3266_v5  ;;  %v2658_v8 = vmax.f32 %v4431_v63, %v2642_v6 }
 0x1c6   : >> { %v3269_v10 = vpack.c.bf16 %v2660_v34, %v2660_v34 }
 0x1c7   : >> { %v3267_v33 = vpack.c.bf16 %v2658_v8, %v2658_v8 }
 0x1c8   : >> { %2746 = vst.msk [vmem:[%s4335_s20 + $0x3c] sm:$0xf] %vm2730_vm1, %v3269_v10 }
 0x1c9   : >> { %2744 = vst.msk [vmem:[%s4335_s20 + $0x34] sm:$0xf] %vm2730_vm1, %v3267_v33 }
 0x1ca PF: > { %s15_s18 = sadd.s32 1, %s3935_s18  }
 0x1cb   : > { %p12_p5 = scmp.ge.s32.totalorder %s15_s18, 4  }
 0x1cd   :  { %14 = sbr.rel (!%p12_p5) target bundleno = 1 (0x1), region = 100 }

// kernel: lpr_corner_net.7
= control target key start
LH: loop header
LB: loop body
LE: loop exit
PB: predicated region body
PF: predicated region fallthrough
CT: control target
= control target key end

     0   :  { %s2787_s18 = smov 0   ;;  %s3345_s0 = inlined_call_operand.vmem [shape: bf16[2,18,32,192], index: 0, kind: input, shape index: {}]   ;;  %s3346_s1 = inlined_call_operand.vmem [shape: bf16[2,18,32,192], index: 1, kind: input, shape index: {}]   ;;  %s3347_s2 = inlined_call_operand.vmem [shape: bf16[3,192,128], index: 2, kind: input, shape index: {}]   ;;  %s3348_s3 = inlined_call_operand.vmem [shape: f32[1,128], index: 3, kind: input, shape index: {}]   ;;  %s3349_s4 = inlined_call_operand.vmem [shape: f32[1,128], index: 4, kind: input, shape index: {}]   ;;  %s3350_s5 = inlined_call_operand.vmem [shape: bf16[2,256,128], index: 5, kind: output, shape index: {}]  }
   0x1 LB: > { %s2120_s19 = sadd.s32 4294967295, %s2750_s18   ;;  %p2124_p0 = scmp.ge.s32.totalorder %s2750_s18, 1  ;;  %s2750_s18 = sphi %s2787_s18, %s15_s18  }
   0x2   : > { %p197_p1 = scmp.lt.s32.totalorder %s2750_s18, 3 }
   0x4   : > { %p198_p2 = pnand %p2124_p0, %p197_p1 }
   0x5   : > { %p230_p3 = scmp.lt.s32.totalorder (!%p198_p2), %s2120_s19, 1  ;;  %v2798_v0 = vld [vmem:[%s3348_s3] ss:$0 sm:$0xff] (!%p198_p2)  ;;  %s2820_s10 = smov (!%p198_p2), 0  }
   0x6   : > { %201 = sbr.rel (%p198_p2) target bundleno = 478 (0x1de), region = 40  ;;  %v2803_v1 = vld [vmem:[%s3349_s4] ss:$0 sm:$0xff] (!%p198_p2) }
   0xd   : > { %s3352_s19 = smov (!%p230_p3, %s2120_s19), 1 }
   0xe   : > { %s2614_s24 = smul.u32 576, %s3352_s19  ;;  %s2447_s25 = sshll.u32 %s3352_s19, 7 }
   0xf   : > { %s2808_s28 = scalar_lea.vmem %s3350_s5, %s2447_s25 }
  0x10   : > { %s2813_s6 = scalar_lea.vmem %s3345_s0, %s2614_s24  ;;  %s2818_s9 = scalar_lea.vmem %s3346_s1, %s2614_s24 }
  0x11 LB: >> { %v2632_v2 = vld [vmem:[%s3347_s2 + $0x60] sm:$0xff]   ;;  %v2756_v3 = vmov 0   ;;  %v2633_v4 = vld [vmem:[%s3347_s2 + $0x68] sm:$0xff]   ;;  %v2634_v5 = vld [vmem:[%s3347_s2 + $0x70] sm:$0xff]   ;;  %s2449_s17 = sshll.u32 %s2754_s10, 7  ;;  %vm523_vm0 = vcmask 523264   ;;  %s2754_s10 = sphi %s2820_s10, %s253_s10  }
  0x12   : >> { %548 = vmatprep.subr.bf16.mxu0 %v2756_v3  ;;  %1006 = vmatprep.subr.bf16.mxu1 %v2756_v3  ;;  %v2635_v6 = vld [vmem:[%s3347_s2 + $0x78] sm:$0xff]   ;;  %s2845_s21 = scalar_lea.vmem %s2813_s6, %s2449_s17  ;;  %s2850_s22 = scalar_lea.vmem %s2818_s9, %s2449_s17  ;;  %v2636_v8 = vld [vmem:[%s3347_s2 + $0x80] sm:$0xff]   ;;  %v2637_v10 = vld [vmem:[%s3347_s2 + $0x88] sm:$0xff]  }
  0x13   : >> { %549 = vmatpush1.bf16.msra.mxu0 %v2632_v2  ;;  %1007 = vmatpush1.bf16.msra.mxu1 %v2632_v2  ;;  %v2853_v7 = vld [vmem:[%s2845_s21 + $0x24] ss:$8 sps:$4 sm:$0xff]   ;;  %v2638_v11 = vld [vmem:[%s3347_s2 + $0x90] sm:$0xff]   ;;  %v2639_v12 = vld [vmem:[%s3347_s2 + $0x98] sm:$0xff]  }
  0x14   : >> { %550 = vmatprep.subr.bf16.mxu0 %v2756_v3  ;;  %1008 = vmatprep.subr.bf16.mxu1 %v2756_v3  ;;  %v2859_v9 = vld [vmem:[%s2850_s22 + $0x24] ss:$8 sps:$4 sm:$0xff]   ;;  %v2642_v15 = vld [vmem:[%s3347_s2 + $0xb0] sm:$0xff]   ;;  %v2643_v16 = vld [vmem:[%s3347_s2 + $0xb8] sm:$0xff]  }
  0x15   : >> { %2221 = vmatprep.mubr.msk.bf16.mxu0 %vm523_vm0, %v2853_v7  ;;  %2281 = vmatprep.mubr.msk.bf16.mxu1 %vm523_vm0, %v2859_v9  ;;  %v2640_v13 = vld [vmem:[%s3347_s2 + $0xa0] sm:$0xff]   ;;  %v2641_v14 = vld [vmem:[%s3347_s2 + $0xa8] sm:$0xff]   ;;  %v2914_v20 = vld [vmem:[%s2845_s21 + $0x34] ss:$8 sps:$4 sm:$0xff]  }
  0x16   : >> { %v2903_v17 = vld [vmem:[%s2845_s21 + $0x20] ss:$8 sps:$4 sm:$0xff]   ;;  %v2917_v21 = vld [vmem:[%s2850_s22 + $0x34] ss:$8 sps:$4 sm:$0xff]   ;;  %v2931_v23 = vld [vmem:[%s2845_s21 + $0x30] ss:$8 sps:$4 sm:$0xff]  }
  0x17   : >> { %551 = vmatpush1.bf16.msra.mxu0 %v2633_v4  ;;  %1009 = vmatpush1.bf16.msra.mxu1 %v2633_v4  ;;  %v2906_v18 = vld [vmem:[%s2850_s22 + $0x20] ss:$8 sps:$4 sm:$0xff]   ;;  %v2934_v24 = vld [vmem:[%s2850_s22 + $0x30] ss:$8 sps:$4 sm:$0xff]   ;;  %v2940_v26 = vld [vmem:[%s2845_s21 + $0x44] ss:$8 sps:$4 sm:$0xff]  }
  0x18   : >> { %552 = vmatprep.subr.bf16.mxu0 %v2756_v3  ;;  %1010 = vmatprep.subr.bf16.mxu1 %v2756_v3  ;;  %v2650_v19 = vld [vmem:[%s3347_s2] sm:$0xff]   ;;  %v2653_v22 = vld [vmem:[%s3347_s2 + $0x8] sm:$0xff]   ;;  %v2658_v25 = vld [vmem:[%s3347_s2 + $0x10] sm:$0xff]  }
  0x19   : >> { %v2945_v27 = vld [vmem:[%s2850_s22 + $0x44] ss:$8 sps:$4 sm:$0xff]   ;;  %v2665_v28 = vld [vmem:[%s3347_s2 + $0x18] sm:$0xff]   ;;  %v2957_v29 = vld [vmem:[%s2845_s21 + $0x40] ss:$8 sps:$4 sm:$0xff]  }
  0x1a   : >> { %v2960_v30 = vld [vmem:[%s2850_s22 + $0x40] ss:$8 sps:$4 sm:$0xff]   ;;  %v2965_v31 = vld [vmem:[%s2845_s21 + $0x54] ss:$8 sps:$4 sm:$0xff]   ;;  %v2987_v35 = vld [vmem:[%s2845_s21 + $0x50] ss:$8 sps:$4 sm:$0xff]  }
  0x1b   : >> { %553 = vmatpush1.bf16.msra.mxu0 %v2634_v5  ;;  %1011 = vmatpush1.bf16.msra.mxu1 %v2634_v5  ;;  %v2668_v32 = vld [vmem:[%s3347_s2 + $0x20] sm:$0xff]   ;;  %v2971_v33 = vld [vmem:[%s2850_s22 + $0x54] ss:$8 sps:$4 sm:$0xff]   ;;  %v2673_v34 = vld [vmem:[%s3347_s2 + $0x28] sm:$0xff]  }
  0x1c   : >> { %554 = vmatprep.subr.bf16.mxu0 %v2756_v3  ;;  %1012 = vmatprep.subr.bf16.mxu1 %v2756_v3  ;;  %v2990_v36 = vld [vmem:[%s2850_s22 + $0x50] ss:$8 sps:$4 sm:$0xff]   ;;  %v2993_v37 = vld [vmem:[%s2845_s21 + $0x64] ss:$8 sps:$4 sm:$0xff]   ;;  %v3015_v41 = vld [vmem:[%s2845_s21 + $0x60] ss:$8 sps:$4 sm:$0xff]  }
  0x1d   : >> { %v2996_v38 = vld [vmem:[%s2850_s22 + $0x64] ss:$8 sps:$4 sm:$0xff]   ;;  %v2680_v39 = vld [vmem:[%s3347_s2 + $0x30] sm:$0xff]   ;;  %v2683_v40 = vld [vmem:[%s3347_s2 + $0x38] sm:$0xff]  }
  0x1e   : >> { %v3018_v42 = vld [vmem:[%s2850_s22 + $0x60] ss:$8 sps:$4 sm:$0xff]   ;;  %v3021_v43 = vld [vmem:[%s2845_s21 + $0x74] ss:$8 sps:$4 sm:$0xff]   ;;  %v3043_v47 = vld [vmem:[%s2845_s21 + $0x70] ss:$8 sps:$4 sm:$0xff]  }
  0x1f   : >> { %555 = vmatpush1.bf16.msra.mxu0 %v2635_v6  ;;  %1013 = vmatpush1.bf16.msra.mxu1 %v2635_v6  ;;  %v3024_v44 = vld [vmem:[%s2850_s22 + $0x74] ss:$8 sps:$4 sm:$0xff]   ;;  %v2688_v45 = vld [vmem:[%s3347_s2 + $0x40] sm:$0xff]   ;;  %v2695_v46 = vld [vmem:[%s3347_s2 + $0x48] sm:$0xff]  }
  0x20   : >> { %556 = vmatprep.subr.bf16.mxu0 %v2756_v3  ;;  %1014 = vmatprep.subr.bf16.mxu1 %v2756_v3  ;;  %v3046_v48 = vld [vmem:[%s2850_s22 + $0x70] ss:$8 sps:$4 sm:$0xff]   ;;  %v3049_v49 = vld [vmem:[%s2845_s21 + $0x84] ss:$8 sps:$4 sm:$0xff]   ;;  %v3071_v53 = vld [vmem:[%s2845_s21 + $0x80] ss:$8 sps:$4 sm:$0xff]  }
  0x21   : >> { %v3052_v50 = vld [vmem:[%s2850_s22 + $0x84] ss:$8 sps:$4 sm:$0xff]   ;;  %v2698_v51 = vld [vmem:[%s3347_s2 + $0x50] sm:$0xff]   ;;  %v2703_v52 = vld [vmem:[%s3347_s2 + $0x58] sm:$0xff]  }
  0x22   : >> { %v3074_v54 = vld [vmem:[%s2850_s22 + $0x80] ss:$8 sps:$4 sm:$0xff]   ;;  %v3077_v55 = vld [vmem:[%s2845_s21 + $0x94] ss:$8 sps:$4 sm:$0xff]   ;;  %v3091_v57 = vld [vmem:[%s2845_s21 + $0x90] ss:$8 sps:$4 sm:$0xff]  }
  0x23   : >> { %557 = vmatpush1.bf16.msra.mxu0 %v2636_v8  ;;  %1015 = vmatpush1.bf16.msra.mxu1 %v2636_v8  ;;  %v3080_v56 = vld [vmem:[%s2850_s22 + $0x94] ss:$8 sps:$4 sm:$0xff]   ;;  %v3094_v58 = vld [vmem:[%s2850_s22 + $0x90] ss:$8 sps:$4 sm:$0xff]   ;;  %v2706_v59 = vld [vmem:[%s2845_s21 + $0x4] ss:$8 sps:$4 sm:$0xff]  }
  0x24   : >> { %558 = vmatprep.subr.bf16.mxu0 %v2756_v3  ;;  %1016 = vmatprep.subr.bf16.mxu1 %v2756_v3  ;;  %v2709_v60 = vld [vmem:[%s2850_s22 + $0x4] ss:$8 sps:$4 sm:$0xff]   ;;  %v2704_v61 = vld [vmem:[%s2845_s21] ss:$8 sps:$4 sm:$0xff]   ;;  %v2711_v2 = vld [vmem:[%s2845_s21 + $0x14] ss:$8 sps:$4 sm:$0xff]  }
  0x25   : >> { %v2707_v62 = vld [vmem:[%s2850_s22] ss:$8 sps:$4 sm:$0xff]   ;;  %v2713_v4 = vld [vmem:[%s2850_s22 + $0x14] ss:$8 sps:$4 sm:$0xff]   ;;  %v2716_v6 = vld [vmem:[%s2845_s21 + $0x10] ss:$8 sps:$4 sm:$0xff]  }
  0x26   : >> { %v2710_v63 = vld [vmem:[%s3347_s2 + $0xc0] sm:$0xff]   ;;  %v2715_v5 = vld [vmem:[%s3347_s2 + $0xc8] sm:$0xff]   ;;  %v2717_v8 = vld [vmem:[%s2850_s22 + $0x10] ss:$8 sps:$4 sm:$0xff]  }
  0x27   : >> { %559 = vmatpush1.bf16.msra.mxu0 %v2637_v10  ;;  %1017 = vmatpush1.bf16.msra.mxu1 %v2637_v10  ;;  %v2718_v10 = vld [vmem:[%s3347_s2 + $0xd0] sm:$0xff]  }
  0x28   : >> { %560 = vmatprep.subr.bf16.mxu0 %v2756_v3  ;;  %1018 = vmatprep.subr.bf16.mxu1 %v2756_v3 }
  0x2b   : >> { %561 = vmatpush1.bf16.msra.mxu0 %v2638_v11  ;;  %1019 = vmatpush1.bf16.msra.mxu1 %v2638_v11  ;;  %v2719_v11 = vld [vmem:[%s3347_s2 + $0xd8] sm:$0xff]  }
  0x2c   : >> { %562 = vmatprep.subr.bf16.mxu0 %v2756_v3  ;;  %1020 = vmatprep.subr.bf16.mxu1 %v2756_v3 }
  0x2f   : >> { %563 = vmatpush1.bf16.msra.mxu0 %v2639_v12  ;;  %1021 = vmatpush1.bf16.msra.mxu1 %v2639_v12  ;;  %v2720_v12 = vld [vmem:[%s3347_s2 + $0xe0] sm:$0xff]  }
  0x30   : >> { %564 = vmatprep.subr.bf16.mxu0 %v2756_v3  ;;  %1022 = vmatprep.subr.bf16.mxu1 %v2756_v3 }
  0x33   : >> { %565 = vmatpush1.bf16.msra.mxu0 %v2640_v13  ;;  %1023 = vmatpush1.bf16.msra.mxu1 %v2640_v13  ;;  %v2723_v13 = vld [vmem:[%s3347_s2 + $0xf8] sm:$0xff]  }
  0x34   : >> { %566 = vmatprep.subr.bf16.mxu0 %v2756_v3  ;;  %1024 = vmatprep.subr.bf16.mxu1 %v2756_v3 }
  0x37   : >> { %567 = vmatpush1.bf16.msra.mxu0 %v2641_v14  ;;  %1025 = vmatpush1.bf16.msra.mxu1 %v2641_v14  ;;  %v2724_v14 = vld [vmem:[%s3347_s2 + $0x100] sm:$0xff]  }
  0x38   : >> { %568 = vmatprep.subr.bf16.mxu0 %v2756_v3  ;;  %1026 = vmatprep.subr.bf16.mxu1 %v2756_v3 }
  0x3b   : >> { %569 = vmatpush1.bf16.msra.mxu0 %v2642_v15  ;;  %1027 = vmatpush1.bf16.msra.mxu1 %v2642_v15  ;;  %v2725_v15 = vld [vmem:[%s3347_s2 + $0x108] sm:$0xff]  }
  0x3c   : >> { %570 = vmatprep.subr.bf16.mxu0 %v2756_v3  ;;  %1028 = vmatprep.subr.bf16.mxu1 %v2756_v3 }
  0x3f   : >> { %571 = vmatpush1.bf16.msra.mxu0 %v2643_v16  ;;  %1029 = vmatpush1.bf16.msra.mxu1 %v2643_v16  ;;  %v2726_v16 = vld [vmem:[%s3347_s2 + $0x110] sm:$0xff]  }
  0x40   : >> { %813 = vmatprep.subr.bf16.mxu0 %v2756_v3  ;;  %1199 = vmatprep.subr.bf16.mxu1 %v2756_v3 }
  0x42   : >> { %581 = vmatmul.mubr.bf16.vlgmr.msra.gmra.mrb[0].mxu0 %v2903_v17  ;;  %1039 = vmatmul.mubr.bf16.vlgmr.msra.gmra.mrb[0].mxu1 %v2906_v18 }
  0x43   : >> { %814 = vmatpush1.bf16.msra.mxu0 %v2650_v19  ;;  %1200 = vmatpush1.bf16.msra.mxu1 %v2650_v19  ;;  %v2732_v19 = vld [vmem:[%s2845_s21 + $0xa0] ss:$8 sps:$4 sm:$0xff]  }
  0x44   : >> { %815 = vmatprep.subr.bf16.mxu0 %v2756_v3  ;;  %1201 = vmatprep.subr.bf16.mxu1 %v2756_v3 }
  0x45   : >> { %2222 = vmatprep.mubr.msk.bf16.mxu0 %vm523_vm0, %v2914_v20  ;;  %2282 = vmatprep.mubr.msk.bf16.mxu1 %vm523_vm0, %v2917_v21 }
  0x47   : >> { %816 = vmatpush1.bf16.msra.mxu0 %v2653_v22  ;;  %1202 = vmatpush1.bf16.msra.mxu1 %v2653_v22  ;;  %v2736_v22 = vld [vmem:[%s2850_s22 + $0xb4] ss:$8 sps:$4 sm:$0xff]  }
  0x48   : >> { %817 = vmatprep.subr.bf16.mxu0 %v2756_v3  ;;  %1203 = vmatprep.subr.bf16.mxu1 %v2756_v3 }
  0x4a   : >> { %589 = vmatmul.mubr.bf16.gmra.mrb[4].mxu0 %v2931_v23  ;;  %1047 = vmatmul.mubr.bf16.gmra.mrb[4].mxu1 %v2934_v24 }
  0x4b   : >> { %818 = vmatpush1.bf16.msra.mxu0 %v2658_v25  ;;  %1204 = vmatpush1.bf16.msra.mxu1 %v2658_v25 }
  0x4c   : >> { %2223 = vmatprep.mubr.msk.bf16.mxu0 %vm523_vm0, %v2940_v26  ;;  %2283 = vmatprep.mubr.msk.bf16.mxu1 %vm523_vm0, %v2945_v27 }
  0x4d   : >> { %819 = vmatprep.subr.bf16.mxu0 %v2756_v3  ;;  %1205 = vmatprep.subr.bf16.mxu1 %v2756_v3 }
  0x4f   : >> { %820 = vmatpush1.bf16.msra.mxu0 %v2665_v28  ;;  %1206 = vmatpush1.bf16.msra.mxu1 %v2665_v28 }
  0x50   : >> { %821 = vmatprep.subr.bf16.mxu0 %v2756_v3  ;;  %1207 = vmatprep.subr.bf16.mxu1 %v2756_v3 }
  0x52   : >> { %597 = vmatmul.mubr.bf16.gmra.mrb[8].mxu0 %v2957_v29  ;;  %1055 = vmatmul.mubr.bf16.gmra.mrb[8].mxu1 %v2960_v30 }
  0x53   : >> { %2224 = vmatprep.mubr.msk.bf16.mxu0 %vm523_vm0, %v2965_v31  ;;  %822 = vmatpush1.bf16.msra.mxu0 %v2668_v32 }
  0x54   : >> { %2284 = vmatprep.mubr.msk.bf16.mxu1 %vm523_vm0, %v2971_v33  ;;  %1208 = vmatpush1.bf16.msra.mxu1 %v2668_v32 }
  0x55   : >> { %823 = vmatprep.subr.bf16.mxu0 %v2756_v3  ;;  %1209 = vmatprep.subr.bf16.mxu1 %v2756_v3 }
  0x57   : >> { %824 = vmatpush1.bf16.msra.mxu0 %v2673_v34 }
  0x58   : >> { %1210 = vmatpush1.bf16.msra.mxu1 %v2673_v34  ;;  %825 = vmatprep.subr.bf16.mxu0 %v2756_v3 }
  0x59   : >> { %1211 = vmatprep.subr.bf16.mxu1 %v2756_v3 }
  0x5a   : >> { %605 = vmatmul.mubr.bf16.gmra.mrb[12].mxu0 %v2987_v35  ;;  %1063 = vmatmul.mubr.bf16.gmra.mrb[12].mxu1 %v2990_v36 }
  0x5b   : >> { %2225 = vmatprep.mubr.msk.bf16.mxu0 %vm523_vm0, %v2993_v37  ;;  %2285 = vmatprep.mubr.msk.bf16.mxu1 %vm523_vm0, %v2996_v38 }
  0x5c   : >> { %826 = vmatpush1.bf16.msra.mxu0 %v2680_v39  ;;  %1212 = vmatpush1.bf16.msra.mxu1 %v2680_v39 }
  0x5d   : >> { %827 = vmatprep.subr.bf16.mxu0 %v2756_v3  ;;  %1213 = vmatprep.subr.bf16.mxu1 %v2756_v3 }
  0x60   : >> { %828 = vmatpush1.bf16.msra.mxu0 %v2683_v40  ;;  %1214 = vmatpush1.bf16.msra.mxu1 %v2683_v40 }
  0x61   : >> { %829 = vmatprep.subr.bf16.mxu0 %v2756_v3  ;;  %1215 = vmatprep.subr.bf16.mxu1 %v2756_v3 }
  0x62   : >> { %613 = vmatmul.mubr.bf16.gmra.mrb[16].mxu0 %v3015_v41  ;;  %1071 = vmatmul.mubr.bf16.gmra.mrb[16].mxu1 %v3018_v42 }
  0x63   : >> { %2226 = vmatprep.mubr.msk.bf16.mxu0 %vm523_vm0, %v3021_v43  ;;  %2286 = vmatprep.mubr.msk.bf16.mxu1 %vm523_vm0, %v3024_v44 }
  0x64   : >> { %830 = vmatpush1.bf16.msra.mxu0 %v2688_v45  ;;  %1216 = vmatpush1.bf16.msra.mxu1 %v2688_v45 }
  0x65   : >> { %831 = vmatprep.subr.bf16.mxu0 %v2756_v3  ;;  %1217 = vmatprep.subr.bf16.mxu1 %v2756_v3 }
  0x68   : >> { %832 = vmatpush1.bf16.msra.mxu0 %v2695_v46  ;;  %1218 = vmatpush1.bf16.msra.mxu1 %v2695_v46 }
  0x69   : >> { %833 = vmatprep.subr.bf16.mxu0 %v2756_v3  ;;  %1219 = vmatprep.subr.bf16.mxu1 %v2756_v3 }
  0x6a   : >> { %621 = vmatmul.mubr.bf16.gmra.mrb[20].mxu0 %v3043_v47  ;;  %1079 = vmatmul.mubr.bf16.gmra.mrb[20].mxu1 %v3046_v48 }
  0x6b   : >> { %2227 = vmatprep.mubr.msk.bf16.mxu0 %vm523_vm0, %v3049_v49  ;;  %2287 = vmatprep.mubr.msk.bf16.mxu1 %vm523_vm0, %v3052_v50 }
  0x6c   : >> { %834 = vmatpush1.bf16.msra.mxu0 %v2698_v51  ;;  %1220 = vmatpush1.bf16.msra.mxu1 %v2698_v51 }
  0x6d   : >> { %835 = vmatprep.subr.bf16.mxu0 %v2756_v3  ;;  %1221 = vmatprep.subr.bf16.mxu1 %v2756_v3 }
  0x70   : >> { %836 = vmatpush1.bf16.msra.mxu0 %v2703_v52  ;;  %1222 = vmatpush1.bf16.msra.mxu1 %v2703_v52 }
  0x71   : >> { %1527 = vmatprep.subr.bf16.mxu0 %v2756_v3  ;;  %1736 = vmatprep.subr.bf16.mxu1 %v2756_v3 }
  0x72   : >> { %629 = vmatmul.mubr.bf16.gmra.mrb[24].mxu0 %v3071_v53  ;;  %1087 = vmatmul.mubr.bf16.gmra.mrb[24].mxu1 %v3074_v54 }
  0x73   : >> { %2228 = vmatprep.mubr.msk.bf16.mxu0 %vm523_vm0, %v3077_v55  ;;  %2288 = vmatprep.mubr.msk.bf16.mxu1 %vm523_vm0, %v3080_v56 }
  0x7a   : >> { %637 = vmatmul.mubr.bf16.gmra.mrb[28].mxu0 %v3091_v57  ;;  %1095 = vmatmul.mubr.bf16.gmra.mrb[28].mxu1 %v3094_v58 }
  0x7b   : >> { %2257 = vmatprep.mubr.msk.bf16.mxu0 %vm523_vm0, %v2706_v59  ;;  %2305 = vmatprep.mubr.msk.bf16.mxu1 %vm523_vm0, %v2709_v60 }
  0x82   : >> { %846 = vmatmul.mubr.bf16.vlgmr.msra.gmra.mrb[0].mxu0 %v2704_v61  ;;  %1232 = vmatmul.mubr.bf16.vlgmr.msra.gmra.mrb[0].mxu1 %v2707_v62 }
  0x83   : >> { %1528 = vmatpush1.bf16.msra.mxu0 %v2710_v63  ;;  %1737 = vmatpush1.bf16.msra.mxu1 %v2710_v63 }
  0x84   : >> { %1529 = vmatprep.subr.bf16.mxu0 %v2756_v3  ;;  %1738 = vmatprep.subr.bf16.mxu1 %v2756_v3 }
  0x85   : >> { %2258 = vmatprep.mubr.msk.bf16.mxu0 %vm523_vm0, %v2711_v2  ;;  %2306 = vmatprep.mubr.msk.bf16.mxu1 %vm523_vm0, %v2713_v4 }
  0x87   : >> { %1530 = vmatpush1.bf16.msra.mxu0 %v2715_v5  ;;  %1739 = vmatpush1.bf16.msra.mxu1 %v2715_v5 }
  0x88   : >> { %1531 = vmatprep.subr.bf16.mxu0 %v2756_v3  ;;  %1740 = vmatprep.subr.bf16.mxu1 %v2756_v3 }
  0x8a   : >> { %854 = vmatmul.mubr.bf16.gmra.mrb[4].mxu0 %v2716_v6  ;;  %1240 = vmatmul.mubr.bf16.gmra.mrb[4].mxu1 %v2717_v8 }
  0x8b   : >> { %1532 = vmatpush1.bf16.msra.mxu0 %v2718_v10  ;;  %1741 = vmatpush1.bf16.msra.mxu1 %v2718_v10 }
  0x8c   : >> { %2259 = vmatprep.mubr.msk.bf16.mxu0 %vm523_vm0, %v2853_v7  ;;  %2307 = vmatprep.mubr.msk.bf16.mxu1 %vm523_vm0, %v2859_v9  ;;  %v2721_v7 = vld [vmem:[%s3347_s2 + $0xe8] sm:$0xff]   ;;  %v2722_v9 = vld [vmem:[%s3347_s2 + $0xf0] sm:$0xff]  }
  0x8d   : >> { %1533 = vmatprep.subr.bf16.mxu0 %v2756_v3  ;;  %1742 = vmatprep.subr.bf16.mxu1 %v2756_v3 }
  0x8f   : >> { %1534 = vmatpush1.bf16.msra.mxu0 %v2719_v11  ;;  %1743 = vmatpush1.bf16.msra.mxu1 %v2719_v11 }
  0x90   : >> { %1535 = vmatprep.subr.bf16.mxu0 %v2756_v3  ;;  %1744 = vmatprep.subr.bf16.mxu1 %v2756_v3 }
  0x92   : >> { %862 = vmatmul.mubr.bf16.gmra.mrb[8].mxu0 %v2903_v17  ;;  %1248 = vmatmul.mubr.bf16.gmra.mrb[8].mxu1 %v2906_v18  ;;  %v2727_v17 = vld [vmem:[%s3347_s2 + $0x118] sm:$0xff]   ;;  %v2730_v18 = vld [vmem:[%s2850_s22 + $0xa4] ss:$8 sps:$4 sm:$0xff]  }
  0x93   : >> { %2260 = vmatprep.mubr.msk.bf16.mxu0 %vm523_vm0, %v2914_v20  ;;  %2308 = vmatprep.mubr.msk.bf16.mxu1 %vm523_vm0, %v2917_v21  ;;  %v2733_v20 = vld [vmem:[%s2850_s22 + $0xa0] ss:$8 sps:$4 sm:$0xff]   ;;  %v2734_v21 = vld [vmem:[%s2845_s21 + $0xb4] ss:$8 sps:$4 sm:$0xff]  }
  0x94   : >> { %1536 = vmatpush1.bf16.msra.mxu0 %v2720_v12  ;;  %1745 = vmatpush1.bf16.msra.mxu1 %v2720_v12 }
  0x95   : >> { %1537 = vmatprep.subr.bf16.mxu0 %v2756_v3  ;;  %1746 = vmatprep.subr.bf16.mxu1 %v2756_v3 }
  0x98   : >> { %1538 = vmatpush1.bf16.msra.mxu0 %v2721_v7  ;;  %1747 = vmatpush1.bf16.msra.mxu1 %v2721_v7 }
  0x99   : >> { %1539 = vmatprep.subr.bf16.mxu0 %v2756_v3  ;;  %1748 = vmatprep.subr.bf16.mxu1 %v2756_v3 }
  0x9a   : >> { %870 = vmatmul.mubr.bf16.gmra.mrb[12].mxu0 %v2931_v23  ;;  %1256 = vmatmul.mubr.bf16.gmra.mrb[12].mxu1 %v2934_v24  ;;  %v2738_v23 = vld [vmem:[%s2845_s21 + $0xb0] ss:$8 sps:$4 sm:$0xff]  }
  0x9b   : >> { %2261 = vmatprep.mubr.msk.bf16.mxu0 %vm523_vm0, %v2940_v26  ;;  %2309 = vmatprep.mubr.msk.bf16.mxu1 %vm523_vm0, %v2945_v27  ;;  %v2739_v24 = vld [vmem:[%s2850_s22 + $0xb0] ss:$8 sps:$4 sm:$0xff]  }
  0x9c   : >> { %1540 = vmatpush1.bf16.msra.mxu0 %v2722_v9  ;;  %1749 = vmatpush1.bf16.msra.mxu1 %v2722_v9 }
  0x9d   : >> { %1541 = vmatprep.subr.bf16.mxu0 %v2756_v3  ;;  %1750 = vmatprep.subr.bf16.mxu1 %v2756_v3 }
  0xa0   : >> { %1542 = vmatpush1.bf16.msra.mxu0 %v2723_v13  ;;  %1751 = vmatpush1.bf16.msra.mxu1 %v2723_v13 }
  0xa1   : >> { %1543 = vmatprep.subr.bf16.mxu0 %v2756_v3  ;;  %1752 = vmatprep.subr.bf16.mxu1 %v2756_v3 }
  0xa2   : >> { %878 = vmatmul.mubr.bf16.gmra.mrb[16].mxu0 %v2957_v29  ;;  %1264 = vmatmul.mubr.bf16.gmra.mrb[16].mxu1 %v2960_v30 }
  0xa3   : >> { %2262 = vmatprep.mubr.msk.bf16.mxu0 %vm523_vm0, %v2965_v31  ;;  %2310 = vmatprep.mubr.msk.bf16.mxu1 %vm523_vm0, %v2971_v33 }
  0xa4   : >> { %1544 = vmatpush1.bf16.msra.mxu0 %v2724_v14  ;;  %1753 = vmatpush1.bf16.msra.mxu1 %v2724_v14 }
  0xa5   : >> { %1545 = vmatprep.subr.bf16.mxu0 %v2756_v3  ;;  %1754 = vmatprep.subr.bf16.mxu1 %v2756_v3 }
  0xa8   : >> { %1546 = vmatpush1.bf16.msra.mxu0 %v2725_v15  ;;  %1755 = vmatpush1.bf16.msra.mxu1 %v2725_v15 }
  0xa9   : >> { %1547 = vmatprep.subr.bf16.mxu0 %v2756_v3  ;;  %1756 = vmatprep.subr.bf16.mxu1 %v2756_v3 }
  0xaa   : >> { %886 = vmatmul.mubr.bf16.gmra.mrb[20].mxu0 %v2987_v35  ;;  %1272 = vmatmul.mubr.bf16.gmra.mrb[20].mxu1 %v2990_v36 }
  0xab   : >> { %2263 = vmatprep.mubr.msk.bf16.mxu0 %vm523_vm0, %v2993_v37  ;;  %2311 = vmatprep.mubr.msk.bf16.mxu1 %vm523_vm0, %v2996_v38 }
  0xac   : >> { %1548 = vmatpush1.bf16.msra.mxu0 %v2726_v16  ;;  %1757 = vmatpush1.bf16.msra.mxu1 %v2726_v16 }
  0xad   : >> { %1549 = vmatprep.subr.bf16.mxu0 %v2756_v3  ;;  %1758 = vmatprep.subr.bf16.mxu1 %v2756_v3  ;;  %v2728_v3 = vld [vmem:[%s2845_s21 + $0xa4] ss:$8 sps:$4 sm:$0xff]   ;;  %s2435_s21 = sshll.u32 %s2754_s10, 6  ;;  %s253_s10 = sadd.s32 1, %s2754_s10  }
  0xae   : >> { %s2014_s22 = sshra.s32 %s2435_s21, 3  ;;  %p250_p4 = scmp.ge.s32.totalorder %s253_s10, 4  }
  0xaf   : >> { %s2444_s12 = sshll.u32 %s2014_s22, 2 }
  0xb0   : >> { %1550 = vmatpush1.bf16.msra.mxu0 %v2727_v17  ;;  %1759 = vmatpush1.bf16.msra.mxu1 %v2727_v17  ;;  %s3293_s13 = scalar_lea.vmem %s2808_s28, %s2444_s12 }
  0xb2   : >> { %894 = vmatmul.mubr.bf16.gmra.mrb[24].mxu0 %v3015_v41  ;;  %1280 = vmatmul.mubr.bf16.gmra.mrb[24].mxu1 %v3018_v42 }
  0xb3   : >> { %2264 = vmatprep.mubr.msk.bf16.mxu0 %vm523_vm0, %v3021_v43  ;;  %2312 = vmatprep.mubr.msk.bf16.mxu1 %vm523_vm0, %v3024_v44 }
  0xba   : >> { %902 = vmatmul.mubr.bf16.gmra.mrb[28].mxu0 %v3043_v47  ;;  %1288 = vmatmul.mubr.bf16.gmra.mrb[28].mxu1 %v3046_v48 }
  0xbb   : >> { %2401 = vmatprep.mubr.msk.bf16.mxu0 %vm523_vm0, %v2940_v26  ;;  %2425 = vmatprep.mubr.msk.bf16.mxu1 %vm523_vm0, %v2945_v27 }
  0xc2   : >> { %1560 = vmatmul.mubr.bf16.vlgmr.msra.gmra.mrb[0].mxu0 %v2957_v29  ;;  %1769 = vmatmul.mubr.bf16.vlgmr.msra.gmra.mrb[0].mxu1 %v2960_v30 }
  0xc3   : >> { %2402 = vmatprep.mubr.msk.bf16.mxu0 %vm523_vm0, %v2965_v31  ;;  %2426 = vmatprep.mubr.msk.bf16.mxu1 %vm523_vm0, %v2971_v33 }
  0xca   : >> { %1568 = vmatmul.mubr.bf16.gmra.mrb[4].mxu0 %v2987_v35  ;;  %1777 = vmatmul.mubr.bf16.gmra.mrb[4].mxu1 %v2990_v36 }
  0xcb   : >> { %2403 = vmatprep.mubr.msk.bf16.mxu0 %vm523_vm0, %v2993_v37  ;;  %2427 = vmatprep.mubr.msk.bf16.mxu1 %vm523_vm0, %v2996_v38 }
  0xd2   : >> { %1576 = vmatmul.mubr.bf16.gmra.mrb[8].mxu0 %v3015_v41  ;;  %1785 = vmatmul.mubr.bf16.gmra.mrb[8].mxu1 %v3018_v42 }
  0xd3   : >> { %2404 = vmatprep.mubr.msk.bf16.mxu0 %vm523_vm0, %v3021_v43  ;;  %2428 = vmatprep.mubr.msk.bf16.mxu1 %vm523_vm0, %v3024_v44 }
  0xda   : >> { %1584 = vmatmul.mubr.bf16.gmra.mrb[12].mxu0 %v3043_v47  ;;  %1793 = vmatmul.mubr.bf16.gmra.mrb[12].mxu1 %v3046_v48 }
  0xdb   : >> { %2405 = vmatprep.mubr.msk.bf16.mxu0 %vm523_vm0, %v3049_v49  ;;  %2429 = vmatprep.mubr.msk.bf16.mxu1 %vm523_vm0, %v3052_v50 }
  0xe2   : >> { %1592 = vmatmul.mubr.bf16.gmra.mrb[16].mxu0 %v3071_v53  ;;  %1801 = vmatmul.mubr.bf16.gmra.mrb[16].mxu1 %v3074_v54 }
  0xe3   : >> { %2406 = vmatprep.mubr.msk.bf16.mxu0 %vm523_vm0, %v3077_v55  ;;  %2430 = vmatprep.mubr.msk.bf16.mxu1 %vm523_vm0, %v3080_v56 }
  0xea   : >> { %1600 = vmatmul.mubr.bf16.gmra.mrb[20].mxu0 %v3091_v57  ;;  %1809 = vmatmul.mubr.bf16.gmra.mrb[20].mxu1 %v3094_v58 }
  0xeb   : >> { %2407 = vmatprep.mubr.msk.bf16.mxu0 %vm523_vm0, %v2728_v3  ;;  %2431 = vmatprep.mubr.msk.bf16.mxu1 %vm523_vm0, %v2730_v18 }
  0xf2   : >> { %1608 = vmatmul.mubr.bf16.gmra.mrb[24].mxu0 %v2732_v19  ;;  %1817 = vmatmul.mubr.bf16.gmra.mrb[24].mxu1 %v2733_v20 }
  0xf3   : >> { %2408 = vmatprep.mubr.msk.bf16.mxu0 %vm523_vm0, %v2734_v21  ;;  %2432 = vmatprep.mubr.msk.bf16.mxu1 %vm523_vm0, %v2736_v22 }
  0xfa   : >> { %1616 = vmatmul.mubr.bf16.gmra.mrb[28].mxu0 %v2738_v23  ;;  %1825 = vmatmul.mubr.bf16.gmra.mrb[28].mxu1 %v2739_v24 }
 0x195   : >> { %v1561_v25 = vpop.f32.mrb[0].mxu0  ;;  %v1770_v26 = vpop.f32.mrb[0].mxu1 }
 0x196   : >> { %v1855_v27 = vmul.f32 %v2798_v0, %v1561_v25  ;;  %v1909_v28 = vmul.f32 %v2798_v0, %v1770_v26  ;;  %v1563_v29 = vpop.f32.mrb[1].mxu0  ;;  %v1772_v30 = vpop.f32.mrb[1].mxu1 }
 0x197   : >> { %v1564_v31 = vpop.f32.mrb[2].mxu0  ;;  %v1773_v32 = vpop.f32.mrb[2].mxu1 }
 0x198   : >> { %v1877_v33 = vadd.f32 %v2803_v1, %v1855_v27  ;;  %v1925_v34 = vadd.f32 %v2803_v1, %v1909_v28  ;;  %v1856_v35 = vmul.f32 %v2798_v0, %v1564_v31  ;;  %v1910_v36 = vmul.f32 %v2798_v0, %v1773_v32  ;;  %v1566_v37 = vpop.f32.mrb[3].mxu0  ;;  %v1775_v38 = vpop.f32.mrb[3].mxu1 }
 0x19a   : >> { %v1893_v39 = vmax.f32 %v1877_v33, 0.0  ;;  %v1941_v40 = vmax.f32 %v1925_v34, 0.0  ;;  %v1878_v41 = vadd.f32 %v2803_v1, %v1856_v35  ;;  %v1926_v42 = vadd.f32 %v2803_v1, %v1910_v36 }
 0x19c   : >> { %v3260_v43 = vmax.f32 %v1893_v39, %v1941_v40  ;;  %v1894_v44 = vmax.f32 %v1878_v41, 0.0  ;;  %v1942_v45 = vmax.f32 %v1926_v42, 0.0 }
 0x19d   : >> { %v1569_v46 = vpop.f32.mrb[4].mxu0  ;;  %v1778_v47 = vpop.f32.mrb[4].mxu1 }
 0x19e   : >> { %v3262_v48 = vmax.f32 %v1894_v44, %v1942_v45  ;;  %v1857_v49 = vmul.f32 %v2798_v0, %v1569_v46  ;;  %v1911_v50 = vmul.f32 %v2798_v0, %v1778_v47  ;;  %v1571_v51 = vpop.f32.mrb[5].mxu0  ;;  %v1780_v52 = vpop.f32.mrb[5].mxu1 }
 0x19f   : >> { %v1572_v53 = vpop.f32.mrb[6].mxu0  ;;  %v1781_v54 = vpop.f32.mrb[6].mxu1 }
 0x1a0   : >> { %v1879_v55 = vadd.f32 %v2803_v1, %v1857_v49  ;;  %v1927_v56 = vadd.f32 %v2803_v1, %v1911_v50  ;;  %v1858_v57 = vmul.f32 %v2798_v0, %v1572_v53  ;;  %v1912_v58 = vmul.f32 %v2798_v0, %v1781_v54  ;;  %v1574_v59 = vpop.f32.mrb[7].mxu0  ;;  %v1783_v60 = vpop.f32.mrb[7].mxu1 }
 0x1a2   : >> { %v1895_v61 = vmax.f32 %v1879_v55, 0.0  ;;  %v1943_v62 = vmax.f32 %v1927_v56, 0.0  ;;  %v1880_v63 = vadd.f32 %v2803_v1, %v1858_v57  ;;  %v1928_v2 = vadd.f32 %v2803_v1, %v1912_v58 }
 0x1a4   : >> { %v3272_v4 = vmax.f32 %v1895_v61, %v1943_v62  ;;  %v1896_v5 = vmax.f32 %v1880_v63, 0.0  ;;  %v1944_v6 = vmax.f32 %v1928_v2, 0.0 }
 0x1a5   : >> { %v1577_v8 = vpop.f32.mrb[8].mxu0  ;;  %v1786_v10 = vpop.f32.mrb[8].mxu1 }
 0x1a6   : >> { %v3274_v11 = vmax.f32 %v1896_v5, %v1944_v6  ;;  %v1859_v12 = vmul.f32 %v2798_v0, %v1577_v8  ;;  %v1913_v7 = vmul.f32 %v2798_v0, %v1786_v10  ;;  %v1579_v9 = vpop.f32.mrb[9].mxu0  ;;  %v1788_v13 = vpop.f32.mrb[9].mxu1 }
 0x1a7   : >> { %v1580_v14 = vpop.f32.mrb[10].mxu0  ;;  %v1789_v15 = vpop.f32.mrb[10].mxu1 }
 0x1a8   : >> { %v1881_v16 = vadd.f32 %v2803_v1, %v1859_v12  ;;  %v1929_v17 = vadd.f32 %v2803_v1, %v1913_v7  ;;  %v1860_v3 = vmul.f32 %v2798_v0, %v1580_v14  ;;  %v1914_v18 = vmul.f32 %v2798_v0, %v1789_v15  ;;  %v1582_v19 = vpop.f32.mrb[11].mxu0  ;;  %v1791_v20 = vpop.f32.mrb[11].mxu1 }
 0x1aa   : >> { %v1897_v21 = vmax.f32 %v1881_v16, 0.0  ;;  %v1945_v22 = vmax.f32 %v1929_v17, 0.0  ;;  %v1882_v23 = vadd.f32 %v2803_v1, %v1860_v3  ;;  %v1930_v24 = vadd.f32 %v2803_v1, %v1914_v18 }
 0x1ac   : >> { %v1961_v25 = vmax.f32 %v1897_v21, %v1945_v22  ;;  %v1898_v26 = vmax.f32 %v1882_v23, 0.0  ;;  %v1946_v27 = vmax.f32 %v1930_v24, 0.0 }
 0x1ad   : >> { %v1585_v28 = vpop.f32.mrb[12].mxu0  ;;  %v1794_v29 = vpop.f32.mrb[12].mxu1 }
 0x1ae   : >> { %v1973_v30 = vmax.f32 %v3260_v43, %v1961_v25  ;;  %v1962_v31 = vmax.f32 %v1898_v26, %v1946_v27  ;;  %v1861_v32 = vmul.f32 %v2798_v0, %v1585_v28  ;;  %v1915_v33 = vmul.f32 %v2798_v0, %v1794_v29  ;;  %v1587_v34 = vpop.f32.mrb[13].mxu0  ;;  %v1796_v35 = vpop.f32.mrb[13].mxu1 }
 0x1af   : >> { %v1588_v36 = vpop.f32.mrb[14].mxu0  ;;  %v1797_v37 = vpop.f32.mrb[14].mxu1 }
 0x1b0   : >> { %v1974_v38 = vmax.f32 %v3262_v48, %v1962_v31  ;;  %v1883_v39 = vadd.f32 %v2803_v1, %v1861_v32  ;;  %v1931_v40 = vadd.f32 %v2803_v1, %v1915_v33  ;;  %v1862_v41 = vmul.f32 %v2798_v0, %v1588_v36  ;;  %v1590_v42 = vpop.f32.mrb[15].mxu0  ;;  %v1799_v43 = vpop.f32.mrb[15].mxu1 }
 0x1b1   : >> { %v1916_v44 = vmul.f32 %v2798_v0, %v1797_v37 }
 0x1b2   : >> { %v2466_v45 = vpack.c.bf16 %v1974_v38, %v1973_v30  ;;  %v1899_v46 = vmax.f32 %v1883_v39, 0.0  ;;  %v1947_v47 = vmax.f32 %v1931_v40, 0.0  ;;  %v1884_v49 = vadd.f32 %v2803_v1, %v1862_v41 }
 0x1b3   : >> { %v1932_v48 = vadd.f32 %v2803_v1, %v1916_v44 }
 0x1b4   : >> { %2467 = vst [vmem:[%s3293_s13] sm:$0xff] %v2466_v45   ;;  %v1963_v50 = vmax.f32 %v1899_v46, %v1947_v47  ;;  %v1900_v51 = vmax.f32 %v1884_v49, 0.0 }
 0x1b5   : >> { %v1948_v52 = vmax.f32 %v1932_v48, 0.0  ;;  %v1593_v53 = vpop.f32.mrb[16].mxu0  ;;  %v1802_v54 = vpop.f32.mrb[16].mxu1 }
 0x1b6   : >> { %v1975_v55 = vmax.f32 %v3272_v4, %v1963_v50  ;;  %v1863_v56 = vmul.f32 %v2798_v0, %v1593_v53  ;;  %v1917_v57 = vmul.f32 %v2798_v0, %v1802_v54  ;;  %v1595_v58 = vpop.f32.mrb[17].mxu0  ;;  %v1804_v59 = vpop.f32.mrb[17].mxu1 }
 0x1b7   : >> { %v1964_v60 = vmax.f32 %v1900_v51, %v1948_v52  ;;  %v1596_v61 = vpop.f32.mrb[18].mxu0  ;;  %v1805_v62 = vpop.f32.mrb[18].mxu1 }
 0x1b8   : >> { %v1885_v63 = vadd.f32 %v2803_v1, %v1863_v56  ;;  %v1933_v2 = vadd.f32 %v2803_v1, %v1917_v57  ;;  %v1864_v5 = vmul.f32 %v2798_v0, %v1596_v61  ;;  %v1918_v6 = vmul.f32 %v2798_v0, %v1805_v62  ;;  %v1598_v8 = vpop.f32.mrb[19].mxu0  ;;  %v1807_v4 = vpop.f32.mrb[19].mxu1 }
 0x1b9   : >> { %v1976_v10 = vmax.f32 %v3274_v11, %v1964_v60 }
 0x1ba   : >> { %v1901_v12 = vmax.f32 %v1885_v63, 0.0  ;;  %v1949_v7 = vmax.f32 %v1933_v2, 0.0  ;;  %v1886_v9 = vadd.f32 %v2803_v1, %v1864_v5  ;;  %v1934_v13 = vadd.f32 %v2803_v1, %v1918_v6 }
 0x1bb   : >> { %v2471_v14 = vpack.c.bf16 %v1976_v10, %v1975_v55 }
 0x1bc   : >> { %v3309_v15 = vmax.f32 %v1901_v12, %v1949_v7  ;;  %v1902_v16 = vmax.f32 %v1886_v9, 0.0  ;;  %v1950_v17 = vmax.f32 %v1934_v13, 0.0 }
 0x1bd   : >> { %2483 = vst [vmem:[%s3293_s13 + $0x8] sm:$0xff] %v2471_v14   ;;  %v1601_v3 = vpop.f32.mrb[20].mxu0  ;;  %v1810_v18 = vpop.f32.mrb[20].mxu1 }
 0x1be   : >> { %v1966_v19 = vmax.f32 %v1902_v16, %v1950_v17  ;;  %v1865_v20 = vmul.f32 %v2798_v0, %v1601_v3  ;;  %v1919_v21 = vmul.f32 %v2798_v0, %v1810_v18  ;;  %v1603_v11 = vpop.f32.mrb[21].mxu0  ;;  %v1812_v22 = vpop.f32.mrb[21].mxu1 }
 0x1bf   : >> { %v1604_v23 = vpop.f32.mrb[22].mxu0  ;;  %v1813_v24 = vpop.f32.mrb[22].mxu1 }
 0x1c0   : >> { %v1887_v25 = vadd.f32 %v2803_v1, %v1865_v20  ;;  %v1935_v26 = vadd.f32 %v2803_v1, %v1919_v21  ;;  %v1866_v27 = vmul.f32 %v2798_v0, %v1604_v23  ;;  %v1920_v28 = vmul.f32 %v2798_v0, %v1813_v24  ;;  %v1606_v29 = vpop.f32.mrb[23].mxu0  ;;  %v1815_v30 = vpop.f32.mrb[23].mxu1 }
 0x1c2   : >> { %v1903_v31 = vmax.f32 %v1887_v25, 0.0  ;;  %v1951_v32 = vmax.f32 %v1935_v26, 0.0  ;;  %v1888_v33 = vadd.f32 %v2803_v1, %v1866_v27  ;;  %v1936_v34 = vadd.f32 %v2803_v1, %v1920_v28 }
 0x1c4   : >> { %v1967_v35 = vmax.f32 %v1903_v31, %v1951_v32  ;;  %v1904_v36 = vmax.f32 %v1888_v33, 0.0  ;;  %v1952_v37 = vmax.f32 %v1936_v34, 0.0 }
 0x1c5   : >> { %v1609_v38 = vpop.f32.mrb[24].mxu0  ;;  %v1818_v39 = vpop.f32.mrb[24].mxu1 }
 0x1c6   : >> { %v1968_v40 = vmax.f32 %v1904_v36, %v1952_v37  ;;  %v1867_v41 = vmul.f32 %v2798_v0, %v1609_v38  ;;  %v1921_v42 = vmul.f32 %v2798_v0, %v1818_v39  ;;  %v1611_v43 = vpop.f32.mrb[25].mxu0  ;;  %v1820_v44 = vpop.f32.mrb[25].mxu1 }
 0x1c7   : >> { %v1612_v45 = vpop.f32.mrb[26].mxu0  ;;  %v1821_v46 = vpop.f32.mrb[26].mxu1 }
 0x1c8   : >> { %v1889_v47 = vadd.f32 %v2803_v1, %v1867_v41  ;;  %v1937_v49 = vadd.f32 %v2803_v1, %v1921_v42  ;;  %v1868_v48 = vmul.f32 %v2798_v0, %v1612_v45  ;;  %v1922_v50 = vmul.f32 %v2798_v0, %v1821_v46  ;;  %v1614_v51 = vpop.f32.mrb[27].mxu0  ;;  %v1823_v52 = vpop.f32.mrb[27].mxu1 }
 0x1ca   : >> { %v1905_v53 = vmax.f32 %v1889_v47, 0.0  ;;  %v1953_v54 = vmax.f32 %v1937_v49, 0.0  ;;  %v1890_v55 = vadd.f32 %v2803_v1, %v1868_v48  ;;  %v1938_v56 = vadd.f32 %v2803_v1, %v1922_v50 }
 0x1cc   : >> { %v1969_v57 = vmax.f32 %v1905_v53, %v1953_v54  ;;  %v1906_v58 = vmax.f32 %v1890_v55, 0.0  ;;  %v1954_v59 = vmax.f32 %v1938_v56, 0.0 }
 0x1cd   : >> { %v1617_v60 = vpop.f32.mrb[28].mxu0  ;;  %v1826_v61 = vpop.f32.mrb[28].mxu1 }
 0x1ce   : >> { %v1977_v62 = vmax.f32 %v3309_v15, %v1969_v57  ;;  %v1970_v63 = vmax.f32 %v1906_v58, %v1954_v59  ;;  %v1869_v2 = vmul.f32 %v2798_v0, %v1617_v60  ;;  %v1923_v5 = vmul.f32 %v2798_v0, %v1826_v61  ;;  %v1619_v6 = vpop.f32.mrb[29].mxu0  ;;  %v1828_v8 = vpop.f32.mrb[29].mxu1 }
 0x1cf   : >> { %v1620_v4 = vpop.f32.mrb[30].mxu0  ;;  %v1829_v10 = vpop.f32.mrb[30].mxu1 }
 0x1d0   : >> { %v1978_v12 = vmax.f32 %v1966_v19, %v1970_v63  ;;  %v1891_v7 = vadd.f32 %v2803_v1, %v1869_v2  ;;  %v1939_v9 = vadd.f32 %v2803_v1, %v1923_v5  ;;  %v1870_v13 = vmul.f32 %v2798_v0, %v1620_v4  ;;  %v1622_v14 = vpop.f32.mrb[31].mxu0  ;;  %v1831_v15 = vpop.f32.mrb[31].mxu1 }
 0x1d1   : >> { %v1924_v16 = vmul.f32 %v2798_v0, %v1829_v10 }
 0x1d2   : >> { %v2476_v17 = vpack.c.bf16 %v1978_v12, %v1977_v62  ;;  %v1907_v3 = vmax.f32 %v1891_v7, 0.0  ;;  %v1955_v18 = vmax.f32 %v1939_v9, 0.0  ;;  %v1892_v20 = vadd.f32 %v2803_v1, %v1870_v13 }
 0x1d3   : >> { %v1940_v21 = vadd.f32 %v2803_v1, %v1924_v16 }
 0x1d4   : >> { %2484 = vst [vmem:[%s3293_s13 + $0x10] sm:$0xff] %v2476_v17   ;;  %v1971_v19 = vmax.f32 %v1907_v3, %v1955_v18  ;;  %v1908_v11 = vmax.f32 %v1892_v20, 0.0 }
 0x1d5   : >> { %v1956_v22 = vmax.f32 %v1940_v21, 0.0 }
 0x1d6   : >> { %v1979_v23 = vmax.f32 %v1967_v35, %v1971_v19 }
 0x1d7   : >> { %v1972_v24 = vmax.f32 %v1908_v11, %v1956_v22  ;;  %252 = sbr.rel (!%p250_p4) target bundleno = 17 (0x11), region = 89 }
 0x1d9   : >> { %v1980_v25 = vmax.f32 %v1968_v40, %v1972_v24 }
 0x1db   : >> { %v2481_v26 = vpack.c.bf16 %v1980_v25, %v1979_v23 }
 0x1dd   : >> { %2485 = vst [vmem:[%s3293_s13 + $0x18] sm:$0xff] %v2481_v26  }
 0x1de PF: > { %s15_s18 = sadd.s32 1, %s2750_s18  }
 0x1df   : > { %p12_p5 = scmp.ge.s32.totalorder %s15_s18, 4  }
 0x1e1   :  { %14 = sbr.rel (!%p12_p5) target bundleno = 1 (0x1), region = 100 }

// kernel: lpr_corner_net.9
= control target key start
LH: loop header
LB: loop body
LE: loop exit
PB: predicated region body
PF: predicated region fallthrough
CT: control target
= control target key end

     0   :  { %v442_v47 = vmov 1983009808   ;;  %v92_v49 = vlaneseq  ;;  %s678_s0 = inlined_call_operand.vmem [shape: f32[2,512], index: 0, kind: input, shape index: {}]   ;;  %s679_s1 = inlined_call_operand.vmem [shape: f32[512,8], index: 1, kind: input, shape index: {}]   ;;  %s680_s2 = inlined_call_operand.vmem [shape: f32[1,8], index: 2, kind: input, shape index: {}]   ;;  %s681_s3 = inlined_call_operand.hbm [shape: f32[2,8], index: 3, kind: output, shape index: {}]  }
   0x1   :  { %v39_v0 = vld [vmem:[%s679_s1 + $0x80] sm:$0xff]  ;;  %v40_v1 = vld [vmem:[%s679_s1 + $0x88] sm:$0xff]  ;;  %v41_v11 = vld [vmem:[%s679_s1 + $0x90] sm:$0xff]  ;;  %v90_v48 = vunpack.c.l.s4 %v442_v47 }
   0x2   :  { %v71_v2 = vld [vmem:[%s679_s1 + $0x180] sm:$0xff]  ;;  %v350_v3 = vpack.c.bf16 %v40_v1, %v39_v0  ;;  %v72_v4 = vld [vmem:[%s679_s1 + $0x188] sm:$0xff]  ;;  %v42_v13 = vld [vmem:[%s679_s1 + $0x98] sm:$0xff]  ;;  %v93_v0 = vshrl.u32 %v92_v49, 7 }
   0x3   :  { %v23_v5 = vld [vmem:[%s679_s1] sm:$0xff]  ;;  %v24_v6 = vld [vmem:[%s679_s1 + $0x8] sm:$0xff]  ;;  %v382_v7 = vpack.c.bf16 %v72_v4, %v71_v2  ;;  %v73_v14 = vld [vmem:[%s679_s1 + $0x190] sm:$0xff]  ;;  %v354_v16 = vpack.c.bf16 %v42_v13, %v41_v11  ;;  %v91_v63 = vunpack.c.0.s8 %v90_v48 }
   0x4   :  { %v352_v8 = vpack.c.bf16 %v24_v6, %v23_v5  ;;  %v55_v9 = vld [vmem:[%s679_s1 + $0x100] sm:$0xff]  ;;  %v56_v10 = vld [vmem:[%s679_s1 + $0x108] sm:$0xff]  ;;  %351 = vmatprep.subr.bf16.mxu0 %v350_v3  ;;  %v74_v15 = vld [vmem:[%s679_s1 + $0x198] sm:$0xff] }
   0x5   :  { %v384_v12 = vpack.c.bf16 %v56_v10, %v55_v9  ;;  %383 = vmatprep.subr.bf16.mxu1 %v382_v7  ;;  %v386_v17 = vpack.c.bf16 %v74_v15, %v73_v14  ;;  %v25_v18 = vld [vmem:[%s679_s1 + $0x10] sm:$0xff]  ;;  %v26_v19 = vld [vmem:[%s679_s1 + $0x18] sm:$0xff]  ;;  %v43_v23 = vld [vmem:[%s679_s1 + $0xa0] sm:$0xff]  ;;  %v94_v13 = vsub.s32 %v91_v63, %v93_v0 }
   0x6   :  { %353 = vmatpush3.bf16.msra.mxu0 %v352_v8  ;;  %v57_v20 = vld [vmem:[%s679_s1 + $0x110] sm:$0xff]  ;;  %v356_v21 = vpack.c.bf16 %v26_v19, %v25_v18  ;;  %v58_v22 = vld [vmem:[%s679_s1 + $0x118] sm:$0xff]  ;;  %v44_v24 = vld [vmem:[%s679_s1 + $0xa8] sm:$0xff] }
   0x7   :  { %385 = vmatpush3.bf16.msra.mxu1 %v384_v12  ;;  %355 = vmatprep.subr.bf16.mxu0 %v354_v16  ;;  %v388_v25 = vpack.c.bf16 %v58_v22, %v57_v20  ;;  %v358_v26 = vpack.c.bf16 %v44_v24, %v43_v23  ;;  %v75_v27 = vld [vmem:[%s679_s1 + $0x1a0] sm:$0xff]  ;;  %v76_v28 = vld [vmem:[%s679_s1 + $0x1a8] sm:$0xff]  ;;  %v45_v35 = vld [vmem:[%s679_s1 + $0xb0] sm:$0xff] }
   0x8   :  { %387 = vmatprep.subr.bf16.mxu1 %v386_v17  ;;  %v27_v29 = vld [vmem:[%s679_s1 + $0x20] sm:$0xff]  ;;  %v390_v30 = vpack.c.bf16 %v76_v28, %v75_v27  ;;  %v28_v31 = vld [vmem:[%s679_s1 + $0x28] sm:$0xff]  ;;  %v46_v36 = vld [vmem:[%s679_s1 + $0xb8] sm:$0xff] }
   0x9   :  { %v59_v32 = vld [vmem:[%s679_s1 + $0x120] sm:$0xff]  ;;  %v60_v33 = vld [vmem:[%s679_s1 + $0x128] sm:$0xff]  ;;  %v360_v34 = vpack.c.bf16 %v28_v31, %v27_v29  ;;  %v77_v37 = vld [vmem:[%s679_s1 + $0x1b0] sm:$0xff]  ;;  %v362_v39 = vpack.c.bf16 %v46_v36, %v45_v35 }
   0xa   :  { %357 = vmatpush3.bf16.msra.mxu0 %v356_v21  ;;  %v392_v38 = vpack.c.bf16 %v60_v33, %v59_v32  ;;  %v78_v40 = vld [vmem:[%s679_s1 + $0x1b8] sm:$0xff]  ;;  %v29_v41 = vld [vmem:[%s679_s1 + $0x30] sm:$0xff]  ;;  %v47_v46 = vld [vmem:[%s679_s1 + $0xc0] sm:$0xff] }
   0xb   :  { %389 = vmatpush3.bf16.msra.mxu1 %v388_v25  ;;  %359 = vmatprep.subr.bf16.mxu0 %v358_v26  ;;  %v30_v42 = vld [vmem:[%s679_s1 + $0x38] sm:$0xff]  ;;  %v394_v43 = vpack.c.bf16 %v78_v40, %v77_v37  ;;  %v61_v44 = vld [vmem:[%s679_s1 + $0x130] sm:$0xff]  ;;  %v48_v50 = vld [vmem:[%s679_s1 + $0xc8] sm:$0xff] }
   0xc   :  { %391 = vmatprep.subr.bf16.mxu1 %v390_v30  ;;  %v62_v45 = vld [vmem:[%s679_s1 + $0x138] sm:$0xff]  ;;  %v79_v51 = vld [vmem:[%s679_s1 + $0x1c0] sm:$0xff]  ;;  %v80_v52 = vld [vmem:[%s679_s1 + $0x1c8] sm:$0xff]  ;;  %v364_v53 = vpack.c.bf16 %v30_v42, %v29_v41  ;;  %v366_v55 = vpack.c.bf16 %v48_v50, %v47_v46 }
   0xd   :  { %v396_v54 = vpack.c.bf16 %v62_v45, %v61_v44  ;;  %v31_v56 = vld [vmem:[%s679_s1 + $0x40] sm:$0xff]  ;;  %v32_v57 = vld [vmem:[%s679_s1 + $0x48] sm:$0xff]  ;;  %v398_v59 = vpack.c.bf16 %v80_v52, %v79_v51  ;;  %v49_v61 = vld [vmem:[%s679_s1 + $0xd0] sm:$0xff] }
   0xe   :  { %361 = vmatpush3.bf16.msra.mxu0 %v360_v34  ;;  %v63_v58 = vld [vmem:[%s679_s1 + $0x140] sm:$0xff]  ;;  %v64_v60 = vld [vmem:[%s679_s1 + $0x148] sm:$0xff]  ;;  %v50_v62 = vld [vmem:[%s679_s1 + $0xd8] sm:$0xff]  ;;  %v368_v3 = vpack.c.bf16 %v32_v57, %v31_v56 }
   0xf   :  { %393 = vmatpush3.bf16.msra.mxu1 %v392_v38  ;;  %363 = vmatprep.subr.bf16.mxu0 %v362_v39  ;;  %v81_v1 = vld [vmem:[%s679_s1 + $0x1d0] sm:$0xff]  ;;  %v82_v2 = vld [vmem:[%s679_s1 + $0x1d8] sm:$0xff]  ;;  %v400_v4 = vpack.c.bf16 %v64_v60, %v63_v58  ;;  %v370_v5 = vpack.c.bf16 %v50_v62, %v49_v61  ;;  %v51_v11 = vld [vmem:[%s679_s1 + $0xe0] sm:$0xff] }
  0x10   :  { %395 = vmatprep.subr.bf16.mxu1 %v394_v43  ;;  %v33_v6 = vld [vmem:[%s679_s1 + $0x50] sm:$0xff]  ;;  %v34_v7 = vld [vmem:[%s679_s1 + $0x58] sm:$0xff]  ;;  %v402_v9 = vpack.c.bf16 %v82_v2, %v81_v1  ;;  %v52_v12 = vld [vmem:[%s679_s1 + $0xe8] sm:$0xff] }
  0x11   :  { %v65_v8 = vld [vmem:[%s679_s1 + $0x150] sm:$0xff]  ;;  %v66_v10 = vld [vmem:[%s679_s1 + $0x158] sm:$0xff]  ;;  %v83_v14 = vld [vmem:[%s679_s1 + $0x1e0] sm:$0xff]  ;;  %v372_v16 = vpack.c.bf16 %v34_v7, %v33_v6  ;;  %v374_v20 = vpack.c.bf16 %v52_v12, %v51_v11 }
  0x12   :  { %365 = vmatpush3.bf16.msra.mxu0 %v364_v53  ;;  %v84_v15 = vld [vmem:[%s679_s1 + $0x1e8] sm:$0xff]  ;;  %v35_v17 = vld [vmem:[%s679_s1 + $0x60] sm:$0xff]  ;;  %v404_v19 = vpack.c.bf16 %v66_v10, %v65_v8 }
  0x13   :  { %397 = vmatpush3.bf16.msra.mxu1 %v396_v54  ;;  %367 = vmatprep.subr.bf16.mxu0 %v366_v55  ;;  %v36_v18 = vld [vmem:[%s679_s1 + $0x68] sm:$0xff]  ;;  %v67_v21 = vld [vmem:[%s679_s1 + $0x160] sm:$0xff] }
  0x14   :  { %399 = vmatprep.subr.bf16.mxu1 %v398_v59  ;;  %v22_v22 = vld [vmem:[%s678_s0] sm:$0xff] }
  0x16   :  { %369 = vmatpush3.bf16.msra.mxu0 %v368_v3 }
  0x17   :  { %401 = vmatpush3.bf16.msra.mxu1 %v400_v4  ;;  %371 = vmatprep.subr.bf16.mxu0 %v370_v5 }
  0x18   :  { %8 = vsyncpa [#allocation3], 0  ;;  %403 = vmatprep.subr.bf16.mxu1 %v402_v9  ;;  %v406_v23 = vpack.c.bf16 %v84_v15, %v83_v14  ;;  %v68_v24 = vld [vmem:[%s679_s1 + $0x168] sm:$0xff]  ;;  %v53_v25 = vld [vmem:[%s679_s1 + $0xf0] sm:$0xff]  ;;  %v95_v27 = vrot.slane %v22_v22, %v94_v13  ;;  %v88_v28 = vcombine.high %v22_v22, %v22_v22  ;;  %v376_v31 = vpack.c.bf16 %v36_v18, %v35_v17  ;;  %s444_s7 = smov [#allocation2]  }
  0x19   :  { %v54_v26 = vld [vmem:[%s679_s1 + $0xf8] sm:$0xff]  ;;  %v85_v29 = vld [vmem:[%s679_s1 + $0x1f0] sm:$0xff]  ;;  %v408_v34 = vpack.c.bf16 %v68_v24, %v67_v21  ;;  %vm19_vm0 = vcmask 58368   ;;  %v443_v44 = vmov 0.0   ;;  %v279_v54 = vld [vmem:[%s680_s2] ss:$0 sm:$0xff] }
  0x1a   :  { %v86_v30 = vld [vmem:[%s679_s1 + $0x1f8] sm:$0xff]  ;;  %373 = vmatpush3.bf16.msra.mxu0 %v372_v16  ;;  %v103_v32 = vcombine.high %v95_v27, %v95_v27  ;;  %v102_v33 = vrot.slane %v88_v28, %v94_v13  ;;  %v378_v35 = vpack.c.bf16 %v54_v26, %v53_v25  ;;  %v37_v36 = vld [vmem:[%s679_s1 + $0x70] sm:$0xff]  ;;  %20 = vst.msk [vmem:[#allocation2] sm:$0x3] %vm19_vm0, %v443_v44  ;;  %s271_s8 = sshll.u32 %s444_s7, 4  ;;  %s272_s8 = int_to_ptr.vmem [resolvable:$true] %s271_s8 }
  0x1b   :  { %405 = vmatpush3.bf16.msra.mxu1 %v404_v19  ;;  %375 = vmatprep.subr.bf16.mxu0 %v374_v20  ;;  %v38_v37 = vld [vmem:[%s679_s1 + $0x78] sm:$0xff]  ;;  %v410_v38 = vpack.c.bf16 %v86_v30, %v85_v29  ;;  %v69_v39 = vld [vmem:[%s679_s1 + $0x170] sm:$0xff]  ;;  %s418_s9 = scalar_lea.vmem %s272_s8, 32  ;;  %p423_p1 = scmp.lt.s32.totalorder %s272_s8, %s272_s8 }
  0x1c   :  { %407 = vmatprep.subr.bf16.mxu1 %v406_v23  ;;  %v70_v40 = vld [vmem:[%s679_s1 + $0x178] sm:$0xff]  ;;  %173 = vmatprep.mubr.f32.mxu0 %v103_v32  ;;  %v104_v41 = vcombine.high %v102_v33, %v102_v33  ;;  %v380_v42 = vpack.c.bf16 %v38_v37, %v37_v36  ;;  %p419_p0 = scmp.ne.s32.totalorder %s272_s8, %s418_s9  ;;  %p424_p2 = scmp.lt.s32.totalorder %s418_s9, %s418_s9 }
  0x1d   :  { %v412_v43 = vpack.c.bf16 %v70_v40, %v69_v39 }
  0x1e   :  { %377 = vmatpush3.bf16.msra.mxu0 %v376_v31  ;;  %243 = vmatprep.mubr.f32.mxu1 %v104_v41  ;;  %p425_p3 = por %p424_p2, %p423_p1 }
  0x1f   :  { %409 = vmatpush3.bf16.msra.mxu1 %v408_v34  ;;  %379 = vmatprep.subr.bf16.mxu0 %v378_v35 }
  0x20   :  { %411 = vmatprep.subr.bf16.mxu1 %v410_v38  ;;  %p426_p4 = pnand %p425_p3, %p419_p0 }
  0x21   :  { %v21_v51 = vld [vmem:[#allocation2] sm:$0x3] }
  0x22   :  { %381 = vmatpush3.bf16.msra.mxu0 %v380_v42 }
  0x23   :  { %413 = vmatpush3.bf16.msra.mxu1 %v412_v43 }
  0x25   :  { %174 = vmatmul.mubr.f32.vlgmr.msra.gmra.mrb[0].mxu0 %v95_v27 }
  0x26   :  { %244 = vmatmul.mubr.f32.vlgmr.msra.gmra.mrb[0].mxu1 %v102_v33 }
  0xf8   :  { %v312_v45 = vpop.f32.mrb[0].mxu0 }
  0xf9   :  { %v347_v46 = vpop.f32.mrb[0].mxu1  ;;  %v313_v47 = vpop.f32.mrb[1].mxu0 }
  0xfa   :  { %v314_v48 = vadd.f32 %v313_v47, %v312_v45  ;;  %v348_v49 = vpop.f32.mrb[1].mxu1 }
  0xfb   :  { %v349_v50 = vadd.f32 %v348_v49, %v347_v46 }
  0xfd   :  { %v246_v52 = vadd.f32 %v349_v50, %v314_v48 }
  0xff   :  { %v249_v53 = vadd.f32 %v246_v52, %v21_v51 }
 0x101   :  { %251 = vst.msk [vmem:[#allocation2] sm:$0x3] %vm19_vm0, %v249_v53 }
 0x108   :  { %v255_v55 = vld [vmem:[#allocation2] sm:$0x3] }
 0x109   :  { %v263_v56 = vadd.f32 %v279_v54, %v255_v55 }
 0x10b   :  { %264 = vst.msk [vmem:[#allocation2] sm:$0x3] %vm19_vm0, %v263_v56 }
 0x10c   :  { %429 = shalt.err (!%p426_p4)
}
 0x10d   :  { %s430_s12 = scalar_lea.hbm %s681_s3, 32 }
 0x10e   :  { %p431_p5 = scmp.ne.s32.totalorder %s681_s3, %s430_s12  ;;  %p434_p6 = scmp.lt.u32.totalorder %s430_s12, %s681_s3 }
 0x110   :  { %p436_p7 = pnand %p434_p6, %p431_p5 }
 0x112   :  { %439 = shalt.err (!%p436_p7)
}
 0x113   :  { %274 = dma.vmem_to_hbm [thread:$0]  %s272_s8, 32, %s681_s3, [#allocation3]  }
 0x114   :  { %440 = dma.done.wait [#allocation3], 32  }
 0x115   :  { %441 = vsyncadd [#allocation3], 4294967264 }
 0x116   :  { %278 = vsyncpa [#allocation3], 1 }

// kernel: lpr_corner_net.8
= control target key start
LH: loop header
LB: loop body
LE: loop exit
PB: predicated region body
PF: predicated region fallthrough
CT: control target
= control target key end

     0   :  { %8 = vsyncpa [#allocation3], 0  ;;  %s12810_s0 = inlined_call_operand.vmem [shape: bf16[2,32768], index: 0, kind: input, shape index: {}]   ;;  %s12811_s1 = inlined_call_operand.hbm [shape: bf16[32768,512], index: 1, kind: input, shape index: {}]   ;;  %s12812_s2 = inlined_call_operand.vmem [shape: f32[1,512], index: 2, kind: input, shape index: {}]   ;;  %s12813_s3 = inlined_call_operand.vmem [shape: f32[2,512], index: 3, kind: output, shape index: {}]  }
   0x1   :  { %10 = vsyncpa [#allocation3 + $0x1], 0  ;;  %s11295_s12 = smov 0   ;;  %s11297_s13 = smov 0  }
   0x2   :  { %s11299_s14 = smov 0   ;;  %s11301_s15 = smov 0  }
   0x3   :  { %s11303_s16 = smov 0   ;;  %s11305_s17 = smov 0  }
   0x4   :  { %s11307_s18 = smov 0   ;;  %s11309_s19 = smov 0  }
   0x5 LB: > { %s8379_s20 = sadd.s32 4294967295, %s11266_s19   ;;  %s28_s21 = sadd.s32 1, %s11258_s17  ;;  %s11266_s19 = sphi %s11309_s19, %s16_s19   ;;  %s11262_s18 = sphi %s11307_s18, %s12823_s18   ;;  %s11258_s17 = sphi %s11305_s17, %s12822_s17   ;;  %s11254_s16 = sphi %s11303_s16, %s12821_s16   ;;  %s11250_s15 = sphi %s11301_s15, %s12820_s15   ;;  %s11246_s14 = sphi %s11299_s14, %s12819_s14   ;;  %s11242_s13 = sphi %s11297_s13, %s12818_s13   ;;  %s11238_s12 = sphi %s11295_s12, %s12817_s12  }
   0x6   : > { %p29_p0 = scmp.ge.s32.totalorder %s28_s21, 4  ;;  %s31_s22 = sadd.s32 1, %s11262_s18 }
   0x7   : > { %s72_s23 = sadd.s32 1, %s11246_s14  ;;  %p79_p1 = scmp.ne.s32.totalorder %s11246_s14, %s11242_s13 }
   0x8   : > { %s12825_s21 = smov (%p29_p0, %s28_s21), 0  ;;  %s12827_s22 = smov (!%p29_p0, %s31_s22), %s11262_s18 }
   0x9   : > { %s67_s24 = ssub.s32 %s11258_s17, %s12825_s21  ;;  %p80_p2 = scmp.eq.s32.totalorder %s11266_s19, 0 }
   0xa   : > { %p33_p3 = scmp.ge.s32.totalorder %s12827_s22, 2  ;;  %p85_p4 = scmp.ne.s32.totalorder %s11242_s13, %s11238_s12 }
   0xb   : > { %p11346_p5 = por %p80_p2, %p79_p1  ;;  %p86_p6 = scmp.eq.s32.totalorder %s8379_s20, 0 }
   0xc   : > { %s12829_s22 = smov (%p33_p3, %s12827_s22), 0  ;;  %p9551_p8 = scmp.lt.s32.totalorder %s11266_s19, 8 }
   0xd   : > { %p11352_p7 = por %p86_p6, %p85_p4  ;;  %s68_s27 = ssub.s32 %s11262_s18, %s12829_s22 }
   0xe   : > { %s69_s28 = sor.u32 %s68_s27, %s67_s24  ;;  %s175_s29 = sand.u32 1, %s11246_s14  }
   0xf   : > { %p70_p9 = scmp.eq.s32.totalorder %s69_s28, 0  ;;  %s8383_s30 = sshll.u32 %s175_s29, 13 }
  0x10   : > { %s8385_s4 = sshll.u32 %s11262_s18, 1  ;;  %s9422_s6 = sshll.u32 %s11258_s17, 12 }
  0x11   : > { %s11362_s5 = scalar_select %p70_p9, %s11246_s14, %s72_s23  }
  0x12   : > { %s186_s7 = sadd.s32 %s9422_s6, %s8385_s4  ;;  %s179_s8 = scalar_lea.vmem [#allocation2], %s8383_s30 }
  0x13   : > { %s189_s9 = sshll.u32 %s179_s8, 4  ;;  %s8387_s10 = sshll.u32 %s186_s7, 6  ;;  %s11365_s9 = int_to_ptr.vmem [resolvable:$true] %s189_s9 }
  0x14   : > { %s11370_s20 = scalar_lea.hbm %s12811_s1, %s8387_s10  ;;  %p11376_p10 = pnand %p9551_p8, %p11346_p5 }
  0x15   : > { %s11380_s24 = scalar_lea.sflag [#allocation3], %s175_s29  ;;  %s11170_s27 = scalar_lea.hbm %s11370_s20, 131072 }
  0x16   : > { %p11171_p11 = scmp.ne.s32.totalorder %s11370_s20, %s11170_s27  ;;  %p11172_p12 = pneg %p11376_p10 }
  0x17   : > { %s11175_s30 = scalar_lea.hbm %s12811_s1, 1048576  ;;  %p11176_p1 = scmp.lt.u32.totalorder %s11370_s20, %s12811_s1 }
  0x18   : > { %p11173_p13 = pnand %p11172_p12, %p11171_p11  ;;  %p11177_p2 = scmp.lt.u32.totalorder %s11175_s30, %s11170_s27 }
  0x19   : > { %p11179_p4 = scmp.lt.u32.totalorder %s11170_s27, %s11370_s20 }
  0x1a   : > { %p11174_p0 = pneg %p11173_p13  ;;  %p11178_p3 = por %p11177_p2, %p11176_p1 }
  0x1c   : > { %p11180_p5 = por %p11179_p4, %p11178_p3 }
  0x1e   : > { %p11181_p6 = pnand %p11180_p5, %p11174_p0 }
  0x20   : > { %11184 = shalt.err (!%p11181_p6)
}
  0x21   : > { %s11185_s29 = scalar_lea.vmem %s11365_s9, 131072  ;;  %s11268_s7 = smov [#allocation2]  }
  0x22   : > { %p11186_p8 = scmp.ne.s32.totalorder %s11365_s9, %s11185_s29  ;;  %s11190_s8 = sshll.u32 %s11268_s7, 4  ;;  %s11191_s8 = int_to_ptr.vmem [resolvable:$false] %s11190_s8 }
  0x23   : > { %s11192_s10 = scalar_lea.vmem %s11191_s8, 262144  ;;  %p11193_p13 = scmp.lt.s32.totalorder %s11365_s9, %s11191_s8 }
  0x24   : > { %p11188_p9 = pnand %p11186_p8, %p11172_p12  ;;  %p11194_p1 = scmp.lt.s32.totalorder %s11192_s10, %s11185_s29 }
  0x26   : > { %p11189_p11 = pneg %p11188_p9  ;;  %p11195_p2 = por %p11194_p1, %p11193_p13 }
  0x28   : > { %p11196_p3 = pnand %p11195_p2, %p11189_p11 }
  0x2a   : > { %11199 = shalt.err (!%p11196_p3)
}
  0x2b   : > { %s11269_s11 = smov 256   ;;  %s11270_s12 = smov 128  }
  0x2c   : > { %s11271_s27 = smov 8   ;;  %p8388_p12 = scmp.ge.s32.totalorder %s11266_s19, 1 }
  0x2d   : > { %9550 = dma.hbm_to_vmem [thread:$0]  (!%p11376_p10), %s11370_s20, 131072, %s11365_s9, %s11380_s24, %s11269_s11, %s11270_s12, %s11271_s27  }
  0x2e   : > { %p205_p0 = scmp.lt.s32.totalorder %s11266_s19, 9 }
  0x30   : > { %p206_p4 = pnand %p8388_p12, %p205_p0 }
  0x31   : > { %s211_s25 = sand.u32 (!%p206_p4), 1, %s11242_s13  }
  0x32   : > { %209 = sbr.rel (%p206_p4) target bundleno = 1330 (0x532), region = 32  ;;  %s8389_s28 = sshll.u32 (!%p206_p4), %s211_s25, 13 }
  0x33   : > { %s212_s30 = scalar_lea.sflag (!%p206_p4), [#allocation3], %s211_s25  ;;  %s11411_s4 = scalar_lea.vmem (!%p206_p4), [#allocation2], %s8389_s28 }
  0x39   : > { %11233 = dma.done.wait (%p11352_p7), %s212_s30, 131072  }
  0x3a   : > { %11235 = vsyncadd (%p11352_p7), %s212_s30, 4294836224  ;;  %s8390_s23 = sshll.u32 %s11250_s15, 6  ;;  %s8391_s9 = sshll.u32 %s11254_s16, 1 }
  0x3b   : > { %p257_p10 = scmp.lt.s32.totalorder %s8390_s23, 255  ;;  %p266_p5 = scmp.lt.s32.totalorder %s8391_s9, 3 }
  0x3c   : > { %p8394_p7 = scmp.ne.s32.totalorder %s11250_s15, 0 }
  0x3d   : > { %s12831_s23 = smov (!%p257_p10, %s8390_s23), 255  ;;  %s12833_s9 = smov (!%p266_p5, %s8391_s9), 3 }
  0x3e   : > { %s11424_s6 = scalar_lea.vmem %s12810_s0, %s12831_s23  ;;  %s268_s26 = scalar_lea.vmem %s12812_s2, %s12833_s9  ;;  %v11272_v0 = vmov (!%p8394_p7), 0.0  }
  0x3f   : > { %s8393_s8 = sshll.u32 %s12833_s9, 1  ;;  %283 = sbr.rel (%p8394_p7) target bundleno = 70 (0x46), region = 40 }
  0x40   : > { %s11434_s16 = scalar_lea.vmem %s12813_s3, %s8393_s8 }
  0x41   : > { %284 = vst [vmem:[%s11434_s16] sm:$0xf] (!%p8394_p7), %v11272_v0 }
  0x46 PF: > { %v9622_v1 = vld [vmem:[%s11411_s4 + $0x4] ss:$8 sps:$4 sm:$0xff]   ;;  %v9626_v3 = vld [vmem:[%s11411_s4] ss:$8 sps:$4 sm:$0xff]   ;;  %v9628_v5 = vld [vmem:[%s11411_s4 + $0x14] ss:$8 sps:$4 sm:$0xff]   ;;  %v1330_v39 = vlaneseq }
  0x47   : > { %v9624_v2 = vld [vmem:[%s11411_s4 + $0x1004] ss:$8 sps:$4 sm:$0xff]   ;;  %6902 = vmatprep.subr.bf16.mxu1 %v9622_v1  ;;  %v9627_v4 = vld [vmem:[%s11411_s4 + $0x1000] ss:$8 sps:$4 sm:$0xff]   ;;  %v9630_v6 = vld [vmem:[%s11411_s4 + $0x1014] ss:$8 sps:$4 sm:$0xff]  }
  0x48   : > { %7558 = vmatprep.subr.bf16.mxu0 %v9624_v2  ;;  %6903 = vmatpush1.bf16.msra.mxu1 %v9626_v3  ;;  %v9632_v7 = vld [vmem:[%s11411_s4 + $0x10] ss:$8 sps:$4 sm:$0xff]   ;;  %v9634_v9 = vld [vmem:[%s11411_s4 + $0x24] ss:$8 sps:$4 sm:$0xff]   ;;  %v9638_v11 = vld [vmem:[%s11411_s4 + $0x20] ss:$8 sps:$4 sm:$0xff]  }
  0x49   : > { %7559 = vmatpush1.bf16.msra.mxu0 %v9627_v4  ;;  %6904 = vmatprep.subr.bf16.mxu1 %v9628_v5  ;;  %v9633_v8 = vld [vmem:[%s11411_s4 + $0x1010] ss:$8 sps:$4 sm:$0xff]   ;;  %v9636_v10 = vld [vmem:[%s11411_s4 + $0x1024] ss:$8 sps:$4 sm:$0xff]   ;;  %v9639_v12 = vld [vmem:[%s11411_s4 + $0x1020] ss:$8 sps:$4 sm:$0xff]  }
  0x4a   : > { %7560 = vmatprep.subr.bf16.mxu0 %v9630_v6  ;;  %v9640_v13 = vld [vmem:[%s11411_s4 + $0x34] ss:$8 sps:$4 sm:$0xff]   ;;  %v9644_v15 = vld [vmem:[%s11411_s4 + $0x30] ss:$8 sps:$4 sm:$0xff]   ;;  %v9646_v17 = vld [vmem:[%s11411_s4 + $0x44] ss:$8 sps:$4 sm:$0xff]  }
  0x4b   : > { %v9642_v14 = vld [vmem:[%s11411_s4 + $0x1034] ss:$8 sps:$4 sm:$0xff]   ;;  %v9645_v16 = vld [vmem:[%s11411_s4 + $0x1030] ss:$8 sps:$4 sm:$0xff]   ;;  %v9648_v18 = vld [vmem:[%s11411_s4 + $0x1044] ss:$8 sps:$4 sm:$0xff]  }
  0x4c   : > { %6905 = vmatpush1.bf16.msra.mxu1 %v9632_v7  ;;  %v9650_v19 = vld [vmem:[%s11411_s4 + $0x40] ss:$8 sps:$4 sm:$0xff]   ;;  %v9652_v21 = vld [vmem:[%s11411_s4 + $0x54] ss:$8 sps:$4 sm:$0xff]   ;;  %v9656_v23 = vld [vmem:[%s11411_s4 + $0x50] ss:$8 sps:$4 sm:$0xff]  }
  0x4d   : > { %7561 = vmatpush1.bf16.msra.mxu0 %v9633_v8  ;;  %6906 = vmatprep.subr.bf16.mxu1 %v9634_v9  ;;  %v9651_v20 = vld [vmem:[%s11411_s4 + $0x1040] ss:$8 sps:$4 sm:$0xff]   ;;  %v9654_v22 = vld [vmem:[%s11411_s4 + $0x1054] ss:$8 sps:$4 sm:$0xff]   ;;  %v9657_v24 = vld [vmem:[%s11411_s4 + $0x1050] ss:$8 sps:$4 sm:$0xff]  }
  0x4e   : > { %7562 = vmatprep.subr.bf16.mxu0 %v9636_v10  ;;  %v9658_v25 = vld [vmem:[%s11411_s4 + $0x64] ss:$8 sps:$4 sm:$0xff]   ;;  %v9662_v27 = vld [vmem:[%s11411_s4 + $0x60] ss:$8 sps:$4 sm:$0xff]   ;;  %v9664_v29 = vld [vmem:[%s11411_s4 + $0x74] ss:$8 sps:$4 sm:$0xff]  }
  0x4f   : > { %v9660_v26 = vld [vmem:[%s11411_s4 + $0x1064] ss:$8 sps:$4 sm:$0xff]   ;;  %v9663_v28 = vld [vmem:[%s11411_s4 + $0x1060] ss:$8 sps:$4 sm:$0xff]   ;;  %v9666_v30 = vld [vmem:[%s11411_s4 + $0x1074] ss:$8 sps:$4 sm:$0xff]  }
  0x50   : > { %6907 = vmatpush1.bf16.msra.mxu1 %v9638_v11  ;;  %v9668_v31 = vld [vmem:[%s11411_s4 + $0x70] ss:$8 sps:$4 sm:$0xff]   ;;  %v9670_v33 = vld [vmem:[%s11411_s4 + $0x84] ss:$8 sps:$4 sm:$0xff]   ;;  %v9674_v35 = vld [vmem:[%s11411_s4 + $0x80] ss:$8 sps:$4 sm:$0xff]  }
  0x51   : > { %7563 = vmatpush1.bf16.msra.mxu0 %v9639_v12  ;;  %6908 = vmatprep.subr.bf16.mxu1 %v9640_v13  ;;  %v9669_v32 = vld [vmem:[%s11411_s4 + $0x1070] ss:$8 sps:$4 sm:$0xff]   ;;  %v9672_v34 = vld [vmem:[%s11411_s4 + $0x1084] ss:$8 sps:$4 sm:$0xff]   ;;  %v9675_v36 = vld [vmem:[%s11411_s4 + $0x1080] ss:$8 sps:$4 sm:$0xff]  }
  0x52   : > { %7564 = vmatprep.subr.bf16.mxu0 %v9642_v14  ;;  %v11273_v37 = vmov 1966171168   ;;  %v9676_v40 = vld [vmem:[%s11411_s4 + $0x94] ss:$8 sps:$4 sm:$0xff]   ;;  %v9680_v42 = vld [vmem:[%s11411_s4 + $0x90] ss:$8 sps:$4 sm:$0xff]  }
  0x53   : > { %v1328_v38 = vunpack.c.l.s4 %v11273_v37  ;;  %v9678_v41 = vld [vmem:[%s11411_s4 + $0x1094] ss:$8 sps:$4 sm:$0xff]   ;;  %v11477_v44 = vshrl.u32 %v1330_v39, 7  ;;  %v9681_v45 = vld [vmem:[%s11411_s4 + $0x1090] ss:$8 sps:$4 sm:$0xff]   ;;  %v11490_v53 = vld [vmem:[%s11424_s6] sm:$0xff] }
  0x54   : > { %6909 = vmatpush1.bf16.msra.mxu1 %v9644_v15  ;;  %v9682_v46 = vld [vmem:[%s11411_s4 + $0xa4] ss:$8 sps:$4 sm:$0xff]   ;;  %v9686_v48 = vld [vmem:[%s11411_s4 + $0xa0] ss:$8 sps:$4 sm:$0xff]   ;;  %v9688_v51 = vld [vmem:[%s11411_s4 + $0xb4] ss:$8 sps:$4 sm:$0xff]  }
  0x55   : > { %7565 = vmatpush1.bf16.msra.mxu0 %v9645_v16  ;;  %6910 = vmatprep.subr.bf16.mxu1 %v9646_v17  ;;  %v1329_v43 = vunpack.c.0.s8 %v1328_v38  ;;  %v9684_v47 = vld [vmem:[%s11411_s4 + $0x10a4] ss:$8 sps:$4 sm:$0xff]   ;;  %v9687_v49 = vld [vmem:[%s11411_s4 + $0x10a0] ss:$8 sps:$4 sm:$0xff]   ;;  %v9690_v52 = vld [vmem:[%s11411_s4 + $0x10b4] ss:$8 sps:$4 sm:$0xff]  }
  0x56   : > { %7566 = vmatprep.subr.bf16.mxu0 %v9648_v18  ;;  %v9692_v54 = vld [vmem:[%s11411_s4 + $0xb0] ss:$8 sps:$4 sm:$0xff]   ;;  %v11497_v57 = vld [vmem:[%s11424_s6 + $0x20] sm:$0xff]  ;;  %v9700_v2 = vld [vmem:[%s11411_s4 + $0xd4] ss:$8 sps:$4 sm:$0xff]   ;;  %p9419_p6 = scmp.ne.s32.totalorder %s11250_s15, 3 }
  0x57   : > { %v11485_v50 = vsub.s32 %v1329_v43, %v11477_v44  ;;  %v9693_v56 = vld [vmem:[%s11411_s4 + $0x10b0] ss:$8 sps:$4 sm:$0xff]   ;;  %v9694_v58 = vld [vmem:[%s11411_s4 + $0xc4] ss:$8 sps:$4 sm:$0xff]   ;;  %v9698_v0 = vld [vmem:[%s11411_s4 + $0xc0] ss:$8 sps:$4 sm:$0xff]  }
  0x58   : > { %6911 = vmatpush1.bf16.msra.mxu1 %v9650_v19  ;;  %v9696_v59 = vld [vmem:[%s11411_s4 + $0x10c4] ss:$8 sps:$4 sm:$0xff]   ;;  %v9699_v1 = vld [vmem:[%s11411_s4 + $0x10c0] ss:$8 sps:$4 sm:$0xff]   ;;  %v9702_v3 = vld [vmem:[%s11411_s4 + $0x10d4] ss:$8 sps:$4 sm:$0xff]  }
  0x59   : > { %7567 = vmatpush1.bf16.msra.mxu0 %v9651_v20  ;;  %6912 = vmatprep.subr.bf16.mxu1 %v9652_v21  ;;  %v1333_v55 = vrot.slane %v11490_v53, %v11485_v50  ;;  %v1529_v61 = vrot.slane %v11497_v57, %v11485_v50  ;;  %v9704_v5 = vld [vmem:[%s11411_s4 + $0xd0] ss:$8 sps:$4 sm:$0xff]   ;;  %v9706_v7 = vld [vmem:[%s11411_s4 + $0xe4] ss:$8 sps:$4 sm:$0xff]   ;;  %v9710_v9 = vld [vmem:[%s11411_s4 + $0xe0] ss:$8 sps:$4 sm:$0xff]  }
  0x5a   : > { %7568 = vmatprep.subr.bf16.mxu0 %v9654_v22  ;;  %v9705_v6 = vld [vmem:[%s11411_s4 + $0x10d0] ss:$8 sps:$4 sm:$0xff]   ;;  %v9708_v8 = vld [vmem:[%s11411_s4 + $0x10e4] ss:$8 sps:$4 sm:$0xff]   ;;  %v9711_v10 = vld [vmem:[%s11411_s4 + $0x10e0] ss:$8 sps:$4 sm:$0xff]  }
  0x5b   : > { %v1341_v60 = vcombine.high %v1333_v55, %v1333_v55  ;;  %v1537_v63 = vcombine.high %v1529_v61, %v1529_v61  ;;  %v9712_v11 = vld [vmem:[%s11411_s4 + $0xf4] ss:$8 sps:$4 sm:$0xff]   ;;  %v9716_v13 = vld [vmem:[%s11411_s4 + $0xf0] ss:$8 sps:$4 sm:$0xff]   ;;  %v9721_v15 = vld [vmem:[%s11411_s4 + $0x104] ss:$8 sps:$4 sm:$0xff]   ;;  %v11522_v17 = vrot.slane %v1333_v55, %v11485_v50  ;;  %v11525_v18 = vrot.slane %v1529_v61, %v11485_v50 }
  0x5c   : > { %6913 = vmatpush1.bf16.msra.mxu1 %v9656_v23  ;;  %v9714_v12 = vld [vmem:[%s11411_s4 + $0x10f4] ss:$8 sps:$4 sm:$0xff]   ;;  %v9717_v14 = vld [vmem:[%s11411_s4 + $0x10f0] ss:$8 sps:$4 sm:$0xff]   ;;  %v9725_v16 = vld [vmem:[%s11411_s4 + $0x1104] ss:$8 sps:$4 sm:$0xff]  }
  0x5d   : > { %7569 = vmatpush1.bf16.msra.mxu0 %v9657_v24  ;;  %6914 = vmatprep.subr.bf16.mxu1 %v9658_v25  ;;  %v1363_v62 = vrot.slane %v1341_v60, %v11485_v50  ;;  %v1559_v4 = vrot.slane %v1537_v63, %v11485_v50  ;;  %v9719_v19 = vld [vmem:[%s11411_s4 + $0x100] ss:$8 sps:$4 sm:$0xff]   ;;  %v9728_v21 = vld [vmem:[%s11411_s4 + $0x114] ss:$8 sps:$4 sm:$0xff]   ;;  %v9726_v25 = vld [vmem:[%s11411_s4 + $0x110] ss:$8 sps:$4 sm:$0xff]  }
  0x5e   : > { %7570 = vmatprep.subr.bf16.mxu0 %v9660_v26  ;;  %v9723_v20 = vld [vmem:[%s11411_s4 + $0x1100] ss:$8 sps:$4 sm:$0xff]   ;;  %v9731_v22 = vld [vmem:[%s11411_s4 + $0x1114] ss:$8 sps:$4 sm:$0xff]   ;;  %v9729_v26 = vld [vmem:[%s11411_s4 + $0x1110] ss:$8 sps:$4 sm:$0xff]  }
  0x5f   : > { %6934 = vmatprep.mubr.bf16.mxu1 %v1363_v62  ;;  %7590 = vmatprep.mubr.bf16.mxu0 %v1559_v4  ;;  %v1373_v23 = vcombine.high %v1363_v62, %v1363_v62  ;;  %v1569_v24 = vcombine.high %v1559_v4, %v1559_v4  ;;  %v9744_v37 = vld [vmem:[%s11411_s4 + $0x140] ss:$8 sps:$4 sm:$0xff]   ;;  %v9752_v39 = vld [vmem:[%s11411_s4 + $0x154] ss:$8 sps:$4 sm:$0xff]   ;;  %v9758_v43 = vld [vmem:[%s11411_s4 + $0x164] ss:$8 sps:$4 sm:$0xff]  }
  0x60   : > { %6915 = vmatpush1.bf16.msra.mxu1 %v9662_v27  ;;  %v9734_v27 = vld [vmem:[%s11411_s4 + $0x124] ss:$8 sps:$4 sm:$0xff]   ;;  %v9747_v38 = vld [vmem:[%s11411_s4 + $0x1140] ss:$8 sps:$4 sm:$0xff]   ;;  %v9779_v60 = vld [vmem:[%s11411_s4 + $0x1194] ss:$8 sps:$4 sm:$0xff]  }
  0x61   : > { %7571 = vmatpush1.bf16.msra.mxu0 %v9663_v28  ;;  %6916 = vmatprep.subr.bf16.mxu1 %v9664_v29  ;;  %v9737_v28 = vld [vmem:[%s11411_s4 + $0x1124] ss:$8 sps:$4 sm:$0xff]   ;;  %v9732_v29 = vld [vmem:[%s11411_s4 + $0x120] ss:$8 sps:$4 sm:$0xff]   ;;  %v9774_v61 = vld [vmem:[%s11411_s4 + $0x190] ss:$8 sps:$4 sm:$0xff]  }
  0x62   : > { %7572 = vmatprep.subr.bf16.mxu0 %v9666_v30  ;;  %v9735_v30 = vld [vmem:[%s11411_s4 + $0x1120] ss:$8 sps:$4 sm:$0xff]   ;;  %v9773_v55 = vld [vmem:[%s11411_s4 + $0x1184] ss:$8 sps:$4 sm:$0xff]   ;;  %v9777_v62 = vld [vmem:[%s11411_s4 + $0x1190] ss:$8 sps:$4 sm:$0xff]  }
  0x63   : > { %v9782_v63 = vld [vmem:[%s11411_s4 + $0x1a4] ss:$8 sps:$4 sm:$0xff]   ;;  %v9791_v4 = vld [vmem:[%s11411_s4 + $0x11b4] ss:$8 sps:$4 sm:$0xff]  }
  0x64   : > { %6917 = vmatpush1.bf16.msra.mxu1 %v9668_v31  ;;  %v9740_v31 = vld [vmem:[%s11411_s4 + $0x134] ss:$8 sps:$4 sm:$0xff]  }
  0x65   : > { %7573 = vmatpush1.bf16.msra.mxu0 %v9669_v32  ;;  %6918 = vmatprep.subr.bf16.mxu1 %v9670_v33  ;;  %v9743_v32 = vld [vmem:[%s11411_s4 + $0x1134] ss:$8 sps:$4 sm:$0xff]   ;;  %v9738_v33 = vld [vmem:[%s11411_s4 + $0x130] ss:$8 sps:$4 sm:$0xff]  }
  0x66   : > { %7574 = vmatprep.subr.bf16.mxu0 %v9672_v34  ;;  %v9741_v34 = vld [vmem:[%s11411_s4 + $0x1130] ss:$8 sps:$4 sm:$0xff]  }
  0x68   : > { %6919 = vmatpush1.bf16.msra.mxu1 %v9674_v35  ;;  %v9746_v35 = vld [vmem:[%s11411_s4 + $0x144] ss:$8 sps:$4 sm:$0xff]  }
  0x69   : > { %7575 = vmatpush1.bf16.msra.mxu0 %v9675_v36  ;;  %6920 = vmatprep.subr.bf16.mxu1 %v9676_v40  ;;  %v9749_v36 = vld [vmem:[%s11411_s4 + $0x1144] ss:$8 sps:$4 sm:$0xff]   ;;  %v9755_v40 = vld [vmem:[%s11411_s4 + $0x1154] ss:$8 sps:$4 sm:$0xff]  }
  0x6a   : > { %7576 = vmatprep.subr.bf16.mxu0 %v9678_v41  ;;  %v9750_v41 = vld [vmem:[%s11411_s4 + $0x150] ss:$8 sps:$4 sm:$0xff]  }
  0x6c   : > { %6921 = vmatpush1.bf16.msra.mxu1 %v9680_v42  ;;  %v9753_v42 = vld [vmem:[%s11411_s4 + $0x1150] ss:$8 sps:$4 sm:$0xff]  }
  0x6d   : > { %7577 = vmatpush1.bf16.msra.mxu0 %v9681_v45  ;;  %6922 = vmatprep.subr.bf16.mxu1 %v9682_v46  ;;  %v9761_v45 = vld [vmem:[%s11411_s4 + $0x1164] ss:$8 sps:$4 sm:$0xff]   ;;  %v9756_v46 = vld [vmem:[%s11411_s4 + $0x160] ss:$8 sps:$4 sm:$0xff]  }
  0x6e   : > { %7578 = vmatprep.subr.bf16.mxu0 %v9684_v47  ;;  %v9759_v47 = vld [vmem:[%s11411_s4 + $0x1160] ss:$8 sps:$4 sm:$0xff]  }
  0x70   : > { %6923 = vmatpush1.bf16.msra.mxu1 %v9686_v48  ;;  %v9764_v48 = vld [vmem:[%s11411_s4 + $0x174] ss:$8 sps:$4 sm:$0xff]  }
  0x71   : > { %7579 = vmatpush1.bf16.msra.mxu0 %v9687_v49  ;;  %6924 = vmatprep.subr.bf16.mxu1 %v9688_v51  ;;  %v9767_v49 = vld [vmem:[%s11411_s4 + $0x1174] ss:$8 sps:$4 sm:$0xff]   ;;  %v9762_v51 = vld [vmem:[%s11411_s4 + $0x170] ss:$8 sps:$4 sm:$0xff]  }
  0x72   : > { %7580 = vmatprep.subr.bf16.mxu0 %v9690_v52  ;;  %v9765_v52 = vld [vmem:[%s11411_s4 + $0x1170] ss:$8 sps:$4 sm:$0xff]  }
  0x74   : > { %6925 = vmatpush1.bf16.msra.mxu1 %v9692_v54  ;;  %v9770_v54 = vld [vmem:[%s11411_s4 + $0x184] ss:$8 sps:$4 sm:$0xff]  }
  0x75   : > { %7581 = vmatpush1.bf16.msra.mxu0 %v9693_v56  ;;  %6926 = vmatprep.subr.bf16.mxu1 %v9694_v58  ;;  %v9768_v56 = vld [vmem:[%s11411_s4 + $0x180] ss:$8 sps:$4 sm:$0xff]  }
  0x76   : > { %7582 = vmatprep.subr.bf16.mxu0 %v9696_v59  ;;  %v9771_v58 = vld [vmem:[%s11411_s4 + $0x1180] ss:$8 sps:$4 sm:$0xff]   ;;  %v9776_v59 = vld [vmem:[%s11411_s4 + $0x194] ss:$8 sps:$4 sm:$0xff]  }
  0x78   : > { %6927 = vmatpush1.bf16.msra.mxu1 %v9698_v0  ;;  %v9785_v0 = vld [vmem:[%s11411_s4 + $0x11a4] ss:$8 sps:$4 sm:$0xff]  }
  0x79   : > { %7583 = vmatpush1.bf16.msra.mxu0 %v9699_v1  ;;  %6928 = vmatprep.subr.bf16.mxu1 %v9700_v2  ;;  %v9780_v1 = vld [vmem:[%s11411_s4 + $0x1a0] ss:$8 sps:$4 sm:$0xff]  }
  0x7a   : > { %7584 = vmatprep.subr.bf16.mxu0 %v9702_v3  ;;  %v9783_v2 = vld [vmem:[%s11411_s4 + $0x11a0] ss:$8 sps:$4 sm:$0xff]   ;;  %v9788_v3 = vld [vmem:[%s11411_s4 + $0x1b4] ss:$8 sps:$4 sm:$0xff]  }
  0x7c   : > { %6929 = vmatpush1.bf16.msra.mxu1 %v9704_v5  ;;  %v9786_v5 = vld [vmem:[%s11411_s4 + $0x1b0] ss:$8 sps:$4 sm:$0xff]  }
  0x7d   : > { %7585 = vmatpush1.bf16.msra.mxu0 %v9705_v6  ;;  %6930 = vmatprep.subr.bf16.mxu1 %v9706_v7  ;;  %v9789_v6 = vld [vmem:[%s11411_s4 + $0x11b0] ss:$8 sps:$4 sm:$0xff]   ;;  %v9794_v7 = vld [vmem:[%s11411_s4 + $0x1c4] ss:$8 sps:$4 sm:$0xff]  }
  0x7e   : > { %7586 = vmatprep.subr.bf16.mxu0 %v9708_v8  ;;  %v9797_v8 = vld [vmem:[%s11411_s4 + $0x11c4] ss:$8 sps:$4 sm:$0xff]  }
  0x80   : > { %6931 = vmatpush1.bf16.msra.mxu1 %v9710_v9  ;;  %v9792_v9 = vld [vmem:[%s11411_s4 + $0x1c0] ss:$8 sps:$4 sm:$0xff]  }
  0x81   : > { %7587 = vmatpush1.bf16.msra.mxu0 %v9711_v10  ;;  %6932 = vmatprep.subr.bf16.mxu1 %v9712_v11  ;;  %v9795_v10 = vld [vmem:[%s11411_s4 + $0x11c0] ss:$8 sps:$4 sm:$0xff]   ;;  %v9800_v11 = vld [vmem:[%s11411_s4 + $0x1d4] ss:$8 sps:$4 sm:$0xff]  }
  0x82   : > { %7588 = vmatprep.subr.bf16.mxu0 %v9714_v12  ;;  %v9803_v12 = vld [vmem:[%s11411_s4 + $0x11d4] ss:$8 sps:$4 sm:$0xff]  }
  0x84   : > { %6933 = vmatpush1.bf16.msra.mxu1 %v9716_v13  ;;  %v9798_v13 = vld [vmem:[%s11411_s4 + $0x1d0] ss:$8 sps:$4 sm:$0xff]  }
  0x85   : > { %7589 = vmatpush1.bf16.msra.mxu0 %v9717_v14  ;;  %6943 = vmatprep.subr.bf16.mxu1 %v9721_v15  ;;  %v9801_v14 = vld [vmem:[%s11411_s4 + $0x11d0] ss:$8 sps:$4 sm:$0xff]   ;;  %v9806_v15 = vld [vmem:[%s11411_s4 + $0x1e4] ss:$8 sps:$4 sm:$0xff]  }
  0x86   : > { %7599 = vmatprep.subr.bf16.mxu0 %v9725_v16  ;;  %v9809_v16 = vld [vmem:[%s11411_s4 + $0x11e4] ss:$8 sps:$4 sm:$0xff]  }
  0x87   : > { %6935 = vmatmul.mubr.bf16.vlgmr.msra.gmra.mrb[0].mxu1 %v11522_v17 }
  0x88   : > { %7591 = vmatmul.mubr.bf16.vlgmr.msra.gmra.mrb[0].mxu0 %v11525_v18  ;;  %6944 = vmatpush1.bf16.msra.mxu1 %v9719_v19  ;;  %v1326_v19 = vcombine.high %v11490_v53, %v11490_v53  ;;  %v9810_v53 = vld [vmem:[%s11411_s4 + $0x1f0] ss:$8 sps:$4 sm:$0xff]  }
  0x89   : > { %7600 = vmatpush1.bf16.msra.mxu0 %v9723_v20  ;;  %6945 = vmatprep.subr.bf16.mxu1 %v9728_v21  ;;  %v1522_v20 = vcombine.high %v11497_v57, %v11497_v57  ;;  %v9804_v21 = vld [vmem:[%s11411_s4 + $0x1e0] ss:$8 sps:$4 sm:$0xff]   ;;  %v9813_v57 = vld [vmem:[%s11411_s4 + $0x11f0] ss:$8 sps:$4 sm:$0xff]  }
  0x8a   : > { %7601 = vmatprep.subr.bf16.mxu0 %v9731_v22  ;;  %6975 = vmatprep.mubr.bf16.mxu1 %v1373_v23  ;;  %v9807_v22 = vld [vmem:[%s11411_s4 + $0x11e0] ss:$8 sps:$4 sm:$0xff]   ;;  %v9812_v23 = vld [vmem:[%s11411_s4 + $0x1f4] ss:$8 sps:$4 sm:$0xff]  }
  0x8b   : > { %7631 = vmatprep.mubr.bf16.mxu0 %v1569_v24  ;;  %v9815_v24 = vld [vmem:[%s11411_s4 + $0x11f4] ss:$8 sps:$4 sm:$0xff]  }
  0x8c   : > { %6946 = vmatpush1.bf16.msra.mxu1 %v9726_v25  ;;  %v11594_v25 = vrot.slane %v1326_v19, %v11485_v50  ;;  %v9882_v19 = vld [vmem:[%s11411_s4 + $0x2b0] ss:$8 sps:$4 sm:$0xff]  }
  0x8d   : > { %7602 = vmatpush1.bf16.msra.mxu0 %v9729_v26  ;;  %6947 = vmatprep.subr.bf16.mxu1 %v9734_v27  ;;  %v11597_v26 = vrot.slane %v1522_v20, %v11485_v50  ;;  %v9818_v27 = vld [vmem:[%s11411_s4 + $0x204] ss:$8 sps:$4 sm:$0xff]   ;;  %v9885_v20 = vld [vmem:[%s11411_s4 + $0x12b0] ss:$8 sps:$4 sm:$0xff]  }
  0x8e   : > { %7603 = vmatprep.subr.bf16.mxu0 %v9737_v28  ;;  %v9821_v28 = vld [vmem:[%s11411_s4 + $0x1204] ss:$8 sps:$4 sm:$0xff]  }
  0x90   : > { %6948 = vmatpush1.bf16.msra.mxu1 %v9732_v29  ;;  %v1342_v29 = vcombine.high %v11594_v25, %v11594_v25 }
  0x91   : > { %7604 = vmatpush1.bf16.msra.mxu0 %v9735_v30  ;;  %6949 = vmatprep.subr.bf16.mxu1 %v9740_v31  ;;  %v1538_v30 = vcombine.high %v11597_v26, %v11597_v26  ;;  %v1371_v31 = vcombine.high %v11522_v17, %v11522_v17 }
  0x92   : > { %7605 = vmatprep.subr.bf16.mxu0 %v9743_v32  ;;  %v1567_v32 = vcombine.high %v11525_v18, %v11525_v18  ;;  %v9822_v18 = vld [vmem:[%s11411_s4 + $0x210] ss:$8 sps:$4 sm:$0xff]  }
  0x93   : > { %v11619_v17 = vrot.slane %v1538_v30, %v11485_v50  ;;  %v9905_v30 = vld [vmem:[%s11411_s4 + $0x12e4] ss:$8 sps:$4 sm:$0xff]  }
  0x94   : > { %6950 = vmatpush1.bf16.msra.mxu1 %v9738_v33  ;;  %v9816_v33 = vld [vmem:[%s11411_s4 + $0x200] ss:$8 sps:$4 sm:$0xff]  }
  0x95   : > { %7606 = vmatpush1.bf16.msra.mxu0 %v9741_v34  ;;  %6951 = vmatprep.subr.bf16.mxu1 %v9746_v35  ;;  %v9819_v34 = vld [vmem:[%s11411_s4 + $0x1200] ss:$8 sps:$4 sm:$0xff]   ;;  %v9824_v35 = vld [vmem:[%s11411_s4 + $0x214] ss:$8 sps:$4 sm:$0xff]  }
  0x96   : > { %7607 = vmatprep.subr.bf16.mxu0 %v9749_v36  ;;  %v9827_v36 = vld [vmem:[%s11411_s4 + $0x1214] ss:$8 sps:$4 sm:$0xff]  }
  0x98   : > { %6952 = vmatpush1.bf16.msra.mxu1 %v9744_v37  ;;  %v11616_v37 = vrot.slane %v1342_v29, %v11485_v50  ;;  %v9902_v29 = vld [vmem:[%s11411_s4 + $0x2e4] ss:$8 sps:$4 sm:$0xff]  }
  0x99   : > { %7608 = vmatpush1.bf16.msra.mxu0 %v9747_v38  ;;  %6953 = vmatprep.subr.bf16.mxu1 %v9752_v39  ;;  %v9825_v38 = vld [vmem:[%s11411_s4 + $0x1210] ss:$8 sps:$4 sm:$0xff]   ;;  %v9830_v39 = vld [vmem:[%s11411_s4 + $0x224] ss:$8 sps:$4 sm:$0xff]  }
  0x9a   : > { %7609 = vmatprep.subr.bf16.mxu0 %v9755_v40  ;;  %v9833_v40 = vld [vmem:[%s11411_s4 + $0x1224] ss:$8 sps:$4 sm:$0xff]  }
  0x9c   : > { %6954 = vmatpush1.bf16.msra.mxu1 %v9750_v41  ;;  %v9828_v41 = vld [vmem:[%s11411_s4 + $0x220] ss:$8 sps:$4 sm:$0xff]  }
  0x9d   : > { %7610 = vmatpush1.bf16.msra.mxu0 %v9753_v42  ;;  %6955 = vmatprep.subr.bf16.mxu1 %v9758_v43  ;;  %v9831_v42 = vld [vmem:[%s11411_s4 + $0x1220] ss:$8 sps:$4 sm:$0xff]   ;;  %v9836_v43 = vld [vmem:[%s11411_s4 + $0x234] ss:$8 sps:$4 sm:$0xff]  }
  0x9e   : > { %7611 = vmatprep.subr.bf16.mxu0 %v9761_v45  ;;  %v9839_v45 = vld [vmem:[%s11411_s4 + $0x1234] ss:$8 sps:$4 sm:$0xff]  }
  0xa0   : > { %6956 = vmatpush1.bf16.msra.mxu1 %v9756_v46  ;;  %v9834_v46 = vld [vmem:[%s11411_s4 + $0x230] ss:$8 sps:$4 sm:$0xff]  }
  0xa1   : > { %7612 = vmatpush1.bf16.msra.mxu0 %v9759_v47  ;;  %6957 = vmatprep.subr.bf16.mxu1 %v9764_v48  ;;  %v9837_v47 = vld [vmem:[%s11411_s4 + $0x1230] ss:$8 sps:$4 sm:$0xff]   ;;  %v9842_v48 = vld [vmem:[%s11411_s4 + $0x244] ss:$8 sps:$4 sm:$0xff]  }
  0xa2   : > { %7613 = vmatprep.subr.bf16.mxu0 %v9767_v49  ;;  %v9845_v49 = vld [vmem:[%s11411_s4 + $0x1244] ss:$8 sps:$4 sm:$0xff]  }
  0xa4   : > { %6958 = vmatpush1.bf16.msra.mxu1 %v9762_v51  ;;  %v9840_v51 = vld [vmem:[%s11411_s4 + $0x240] ss:$8 sps:$4 sm:$0xff]  }
  0xa5   : > { %7614 = vmatpush1.bf16.msra.mxu0 %v9765_v52  ;;  %6959 = vmatprep.subr.bf16.mxu1 %v9770_v54  ;;  %v9843_v52 = vld [vmem:[%s11411_s4 + $0x1240] ss:$8 sps:$4 sm:$0xff]   ;;  %v9848_v54 = vld [vmem:[%s11411_s4 + $0x254] ss:$8 sps:$4 sm:$0xff]  }
  0xa6   : > { %7615 = vmatprep.subr.bf16.mxu0 %v9773_v55  ;;  %v9851_v55 = vld [vmem:[%s11411_s4 + $0x1254] ss:$8 sps:$4 sm:$0xff]  }
  0xa8   : > { %6960 = vmatpush1.bf16.msra.mxu1 %v9768_v56  ;;  %v9846_v56 = vld [vmem:[%s11411_s4 + $0x250] ss:$8 sps:$4 sm:$0xff]  }
  0xa9   : > { %7616 = vmatpush1.bf16.msra.mxu0 %v9771_v58  ;;  %6961 = vmatprep.subr.bf16.mxu1 %v9776_v59  ;;  %v9849_v58 = vld [vmem:[%s11411_s4 + $0x1250] ss:$8 sps:$4 sm:$0xff]   ;;  %v9854_v59 = vld [vmem:[%s11411_s4 + $0x264] ss:$8 sps:$4 sm:$0xff]  }
  0xaa   : > { %7617 = vmatprep.subr.bf16.mxu0 %v9779_v60  ;;  %v9857_v60 = vld [vmem:[%s11411_s4 + $0x1264] ss:$8 sps:$4 sm:$0xff]  }
  0xac   : > { %6962 = vmatpush1.bf16.msra.mxu1 %v9774_v61  ;;  %v9852_v61 = vld [vmem:[%s11411_s4 + $0x260] ss:$8 sps:$4 sm:$0xff]  }
  0xad   : > { %7618 = vmatpush1.bf16.msra.mxu0 %v9777_v62  ;;  %6963 = vmatprep.subr.bf16.mxu1 %v9782_v63  ;;  %v9855_v62 = vld [vmem:[%s11411_s4 + $0x1260] ss:$8 sps:$4 sm:$0xff]   ;;  %v9860_v63 = vld [vmem:[%s11411_s4 + $0x274] ss:$8 sps:$4 sm:$0xff]  }
  0xae   : > { %7619 = vmatprep.subr.bf16.mxu0 %v9785_v0  ;;  %v9863_v0 = vld [vmem:[%s11411_s4 + $0x1274] ss:$8 sps:$4 sm:$0xff]  }
  0xb0   : > { %6964 = vmatpush1.bf16.msra.mxu1 %v9780_v1  ;;  %v9858_v1 = vld [vmem:[%s11411_s4 + $0x270] ss:$8 sps:$4 sm:$0xff]  }
  0xb1   : > { %7620 = vmatpush1.bf16.msra.mxu0 %v9783_v2  ;;  %6965 = vmatprep.subr.bf16.mxu1 %v9788_v3  ;;  %v9861_v2 = vld [vmem:[%s11411_s4 + $0x1270] ss:$8 sps:$4 sm:$0xff]   ;;  %v9866_v3 = vld [vmem:[%s11411_s4 + $0x284] ss:$8 sps:$4 sm:$0xff]  }
  0xb2   : > { %7621 = vmatprep.subr.bf16.mxu0 %v9791_v4  ;;  %v9869_v4 = vld [vmem:[%s11411_s4 + $0x1284] ss:$8 sps:$4 sm:$0xff]  }
  0xb4   : > { %6966 = vmatpush1.bf16.msra.mxu1 %v9786_v5  ;;  %v9864_v5 = vld [vmem:[%s11411_s4 + $0x280] ss:$8 sps:$4 sm:$0xff]  }
  0xb5   : > { %7622 = vmatpush1.bf16.msra.mxu0 %v9789_v6  ;;  %6967 = vmatprep.subr.bf16.mxu1 %v9794_v7  ;;  %v9867_v6 = vld [vmem:[%s11411_s4 + $0x1280] ss:$8 sps:$4 sm:$0xff]   ;;  %v9872_v7 = vld [vmem:[%s11411_s4 + $0x294] ss:$8 sps:$4 sm:$0xff]  }
  0xb6   : > { %7623 = vmatprep.subr.bf16.mxu0 %v9797_v8  ;;  %v9875_v8 = vld [vmem:[%s11411_s4 + $0x1294] ss:$8 sps:$4 sm:$0xff]  }
  0xb8   : > { %6968 = vmatpush1.bf16.msra.mxu1 %v9792_v9  ;;  %v9870_v9 = vld [vmem:[%s11411_s4 + $0x290] ss:$8 sps:$4 sm:$0xff]  }
  0xb9   : > { %7624 = vmatpush1.bf16.msra.mxu0 %v9795_v10  ;;  %6969 = vmatprep.subr.bf16.mxu1 %v9800_v11  ;;  %v9873_v10 = vld [vmem:[%s11411_s4 + $0x1290] ss:$8 sps:$4 sm:$0xff]   ;;  %v9878_v11 = vld [vmem:[%s11411_s4 + $0x2a4] ss:$8 sps:$4 sm:$0xff]  }
  0xba   : > { %7625 = vmatprep.subr.bf16.mxu0 %v9803_v12  ;;  %v9881_v12 = vld [vmem:[%s11411_s4 + $0x12a4] ss:$8 sps:$4 sm:$0xff]  }
  0xbc   : > { %6970 = vmatpush1.bf16.msra.mxu1 %v9798_v13  ;;  %v9876_v13 = vld [vmem:[%s11411_s4 + $0x2a0] ss:$8 sps:$4 sm:$0xff]  }
  0xbd   : > { %7626 = vmatpush1.bf16.msra.mxu0 %v9801_v14  ;;  %6971 = vmatprep.subr.bf16.mxu1 %v9806_v15  ;;  %v9879_v14 = vld [vmem:[%s11411_s4 + $0x12a0] ss:$8 sps:$4 sm:$0xff]   ;;  %v9884_v15 = vld [vmem:[%s11411_s4 + $0x2b4] ss:$8 sps:$4 sm:$0xff]  }
  0xbe   : > { %7627 = vmatprep.subr.bf16.mxu0 %v9809_v16  ;;  %v9887_v16 = vld [vmem:[%s11411_s4 + $0x12b4] ss:$8 sps:$4 sm:$0xff]  }
  0xc0   : > { %6972 = vmatpush1.bf16.msra.mxu1 %v9804_v21  ;;  %v9890_v21 = vld [vmem:[%s11411_s4 + $0x2c4] ss:$8 sps:$4 sm:$0xff]  }
  0xc1   : > { %7628 = vmatpush1.bf16.msra.mxu0 %v9807_v22  ;;  %6973 = vmatprep.subr.bf16.mxu1 %v9812_v23  ;;  %v9893_v22 = vld [vmem:[%s11411_s4 + $0x12c4] ss:$8 sps:$4 sm:$0xff]   ;;  %v9888_v23 = vld [vmem:[%s11411_s4 + $0x2c0] ss:$8 sps:$4 sm:$0xff]  }
  0xc2   : > { %7629 = vmatprep.subr.bf16.mxu0 %v9815_v24  ;;  %v9891_v24 = vld [vmem:[%s11411_s4 + $0x12c0] ss:$8 sps:$4 sm:$0xff]  }
  0xc4   : > { %6974 = vmatpush1.bf16.msra.mxu1 %v9810_v53  ;;  %v9896_v53 = vld [vmem:[%s11411_s4 + $0x2d4] ss:$8 sps:$4 sm:$0xff]  }
  0xc5   : > { %7630 = vmatpush1.bf16.msra.mxu0 %v9813_v57  ;;  %6984 = vmatprep.subr.bf16.mxu1 %v9818_v27  ;;  %v9899_v57 = vld [vmem:[%s11411_s4 + $0x12d4] ss:$8 sps:$4 sm:$0xff]   ;;  %v9894_v27 = vld [vmem:[%s11411_s4 + $0x2d0] ss:$8 sps:$4 sm:$0xff]  }
  0xc6   : > { %7640 = vmatprep.subr.bf16.mxu0 %v9821_v28  ;;  %v9897_v28 = vld [vmem:[%s11411_s4 + $0x12d0] ss:$8 sps:$4 sm:$0xff]  }
  0xc7   : > { %6976 = vmatmul.mubr.bf16.vlgmr.msra.gmra.mrb[0].mxu1 %v1371_v31  ;;  %v9900_v31 = vld [vmem:[%s11411_s4 + $0x2e0] ss:$8 sps:$4 sm:$0xff]  }
  0xc8   : > { %7632 = vmatmul.mubr.bf16.vlgmr.msra.gmra.mrb[0].mxu0 %v1567_v32  ;;  %6985 = vmatpush1.bf16.msra.mxu1 %v9816_v33  ;;  %v9903_v32 = vld [vmem:[%s11411_s4 + $0x12e0] ss:$8 sps:$4 sm:$0xff]   ;;  %v9908_v33 = vld [vmem:[%s11411_s4 + $0x2f4] ss:$8 sps:$4 sm:$0xff]  }
  0xc9   : > { %7641 = vmatpush1.bf16.msra.mxu0 %v9819_v34  ;;  %6986 = vmatprep.subr.bf16.mxu1 %v9824_v35  ;;  %v9911_v34 = vld [vmem:[%s11411_s4 + $0x12f4] ss:$8 sps:$4 sm:$0xff]   ;;  %v9906_v35 = vld [vmem:[%s11411_s4 + $0x2f0] ss:$8 sps:$4 sm:$0xff]  }
  0xca   : > { %7642 = vmatprep.subr.bf16.mxu0 %v9827_v36  ;;  %7016 = vmatprep.mubr.bf16.mxu1 %v11616_v37  ;;  %v9909_v36 = vld [vmem:[%s11411_s4 + $0x12f0] ss:$8 sps:$4 sm:$0xff]  }
  0xcb   : > { %7672 = vmatprep.mubr.bf16.mxu0 %v11619_v17 }
  0xcc   : > { %6987 = vmatpush1.bf16.msra.mxu1 %v9822_v18  ;;  %v9914_v18 = vld [vmem:[%s11411_s4 + $0x304] ss:$8 sps:$4 sm:$0xff]  }
  0xcd   : > { %7643 = vmatpush1.bf16.msra.mxu0 %v9825_v38  ;;  %6988 = vmatprep.subr.bf16.mxu1 %v9830_v39  ;;  %v9917_v38 = vld [vmem:[%s11411_s4 + $0x1304] ss:$8 sps:$4 sm:$0xff]   ;;  %v11685_v39 = vrot.slane %v11594_v25, %v11485_v50  ;;  %v1374_v25 = vcombine.high %v11616_v37, %v11616_v37 }
  0xce   : > { %7644 = vmatprep.subr.bf16.mxu0 %v9833_v40  ;;  %v11689_v40 = vrot.slane %v11597_v26, %v11485_v50  ;;  %v9918_v26 = vld [vmem:[%s11411_s4 + $0x310] ss:$8 sps:$4 sm:$0xff]   ;;  %v9926_v37 = vld [vmem:[%s11411_s4 + $0x324] ss:$8 sps:$4 sm:$0xff]  }
  0xd0   : > { %6989 = vmatpush1.bf16.msra.mxu1 %v9828_v41  ;;  %v9912_v41 = vld [vmem:[%s11411_s4 + $0x300] ss:$8 sps:$4 sm:$0xff]  }
  0xd1   : > { %7645 = vmatpush1.bf16.msra.mxu0 %v9831_v42  ;;  %6990 = vmatprep.subr.bf16.mxu1 %v9836_v43  ;;  %v9915_v42 = vld [vmem:[%s11411_s4 + $0x1300] ss:$8 sps:$4 sm:$0xff]   ;;  %v9920_v43 = vld [vmem:[%s11411_s4 + $0x314] ss:$8 sps:$4 sm:$0xff]  }
  0xd2   : > { %7646 = vmatprep.subr.bf16.mxu0 %v9839_v45  ;;  %v9923_v45 = vld [vmem:[%s11411_s4 + $0x1314] ss:$8 sps:$4 sm:$0xff]  }
  0xd4   : > { %6991 = vmatpush1.bf16.msra.mxu1 %v9834_v46  ;;  %v1570_v46 = vcombine.high %v11619_v17, %v11619_v17  ;;  %v9924_v17 = vld [vmem:[%s11411_s4 + $0x320] ss:$8 sps:$4 sm:$0xff]  }
  0xd5   : > { %7647 = vmatpush1.bf16.msra.mxu0 %v9837_v47  ;;  %6992 = vmatprep.subr.bf16.mxu1 %v9842_v48  ;;  %v9921_v47 = vld [vmem:[%s11411_s4 + $0x1310] ss:$8 sps:$4 sm:$0xff]   ;;  %v9929_v48 = vld [vmem:[%s11411_s4 + $0x1324] ss:$8 sps:$4 sm:$0xff]  }
  0xd6   : > { %7648 = vmatprep.subr.bf16.mxu0 %v9845_v49  ;;  %v9927_v49 = vld [vmem:[%s11411_s4 + $0x1320] ss:$8 sps:$4 sm:$0xff]  }
  0xd8   : > { %6993 = vmatpush1.bf16.msra.mxu1 %v9840_v51  ;;  %v9932_v51 = vld [vmem:[%s11411_s4 + $0x334] ss:$8 sps:$4 sm:$0xff]  }
  0xd9   : > { %7649 = vmatpush1.bf16.msra.mxu0 %v9843_v52  ;;  %6994 = vmatprep.subr.bf16.mxu1 %v9848_v54  ;;  %v9935_v52 = vld [vmem:[%s11411_s4 + $0x1334] ss:$8 sps:$4 sm:$0xff]   ;;  %v9930_v54 = vld [vmem:[%s11411_s4 + $0x330] ss:$8 sps:$4 sm:$0xff]  }
  0xda   : > { %7650 = vmatprep.subr.bf16.mxu0 %v9851_v55  ;;  %v9933_v55 = vld [vmem:[%s11411_s4 + $0x1330] ss:$8 sps:$4 sm:$0xff]  }
  0xdc   : > { %6995 = vmatpush1.bf16.msra.mxu1 %v9846_v56  ;;  %v9938_v56 = vld [vmem:[%s11411_s4 + $0x344] ss:$8 sps:$4 sm:$0xff]  }
  0xdd   : > { %7651 = vmatpush1.bf16.msra.mxu0 %v9849_v58  ;;  %6996 = vmatprep.subr.bf16.mxu1 %v9854_v59  ;;  %v9941_v58 = vld [vmem:[%s11411_s4 + $0x1344] ss:$8 sps:$4 sm:$0xff]   ;;  %v9936_v59 = vld [vmem:[%s11411_s4 + $0x340] ss:$8 sps:$4 sm:$0xff]  }
  0xde   : > { %7652 = vmatprep.subr.bf16.mxu0 %v9857_v60  ;;  %v9939_v60 = vld [vmem:[%s11411_s4 + $0x1340] ss:$8 sps:$4 sm:$0xff]  }
  0xe0   : > { %6997 = vmatpush1.bf16.msra.mxu1 %v9852_v61  ;;  %v9944_v61 = vld [vmem:[%s11411_s4 + $0x354] ss:$8 sps:$4 sm:$0xff]  }
  0xe1   : > { %7653 = vmatpush1.bf16.msra.mxu0 %v9855_v62  ;;  %6998 = vmatprep.subr.bf16.mxu1 %v9860_v63  ;;  %v9947_v62 = vld [vmem:[%s11411_s4 + $0x1354] ss:$8 sps:$4 sm:$0xff]   ;;  %v9942_v63 = vld [vmem:[%s11411_s4 + $0x350] ss:$8 sps:$4 sm:$0xff]  }
  0xe2   : > { %7654 = vmatprep.subr.bf16.mxu0 %v9863_v0  ;;  %v9945_v0 = vld [vmem:[%s11411_s4 + $0x1350] ss:$8 sps:$4 sm:$0xff]  }
  0xe4   : > { %6999 = vmatpush1.bf16.msra.mxu1 %v9858_v1  ;;  %v9950_v1 = vld [vmem:[%s11411_s4 + $0x364] ss:$8 sps:$4 sm:$0xff]  }
  0xe5   : > { %7655 = vmatpush1.bf16.msra.mxu0 %v9861_v2  ;;  %7000 = vmatprep.subr.bf16.mxu1 %v9866_v3  ;;  %v9953_v2 = vld [vmem:[%s11411_s4 + $0x1364] ss:$8 sps:$4 sm:$0xff]   ;;  %v9948_v3 = vld [vmem:[%s11411_s4 + $0x360] ss:$8 sps:$4 sm:$0xff]  }
  0xe6   : > { %7656 = vmatprep.subr.bf16.mxu0 %v9869_v4  ;;  %v9951_v4 = vld [vmem:[%s11411_s4 + $0x1360] ss:$8 sps:$4 sm:$0xff]  }
  0xe8   : > { %7001 = vmatpush1.bf16.msra.mxu1 %v9864_v5  ;;  %v9956_v5 = vld [vmem:[%s11411_s4 + $0x374] ss:$8 sps:$4 sm:$0xff]  }
  0xe9   : > { %7657 = vmatpush1.bf16.msra.mxu0 %v9867_v6  ;;  %7002 = vmatprep.subr.bf16.mxu1 %v9872_v7  ;;  %v9959_v6 = vld [vmem:[%s11411_s4 + $0x1374] ss:$8 sps:$4 sm:$0xff]   ;;  %v9954_v7 = vld [vmem:[%s11411_s4 + $0x370] ss:$8 sps:$4 sm:$0xff]  }
  0xea   : > { %7658 = vmatprep.subr.bf16.mxu0 %v9875_v8  ;;  %v9957_v8 = vld [vmem:[%s11411_s4 + $0x1370] ss:$8 sps:$4 sm:$0xff]  }
  0xec   : > { %7003 = vmatpush1.bf16.msra.mxu1 %v9870_v9  ;;  %v9962_v9 = vld [vmem:[%s11411_s4 + $0x384] ss:$8 sps:$4 sm:$0xff]  }
  0xed   : > { %7659 = vmatpush1.bf16.msra.mxu0 %v9873_v10  ;;  %7004 = vmatprep.subr.bf16.mxu1 %v9878_v11  ;;  %v9965_v10 = vld [vmem:[%s11411_s4 + $0x1384] ss:$8 sps:$4 sm:$0xff]   ;;  %v9960_v11 = vld [vmem:[%s11411_s4 + $0x380] ss:$8 sps:$4 sm:$0xff]  }
  0xee   : > { %7660 = vmatprep.subr.bf16.mxu0 %v9881_v12  ;;  %v9963_v12 = vld [vmem:[%s11411_s4 + $0x1380] ss:$8 sps:$4 sm:$0xff]  }
  0xf0   : > { %7005 = vmatpush1.bf16.msra.mxu1 %v9876_v13  ;;  %v9968_v13 = vld [vmem:[%s11411_s4 + $0x394] ss:$8 sps:$4 sm:$0xff]  }
  0xf1   : > { %7661 = vmatpush1.bf16.msra.mxu0 %v9879_v14  ;;  %7006 = vmatprep.subr.bf16.mxu1 %v9884_v15  ;;  %v9971_v14 = vld [vmem:[%s11411_s4 + $0x1394] ss:$8 sps:$4 sm:$0xff]   ;;  %v9966_v15 = vld [vmem:[%s11411_s4 + $0x390] ss:$8 sps:$4 sm:$0xff]  }
  0xf2   : > { %7662 = vmatprep.subr.bf16.mxu0 %v9887_v16  ;;  %v9969_v16 = vld [vmem:[%s11411_s4 + $0x1390] ss:$8 sps:$4 sm:$0xff]  }
  0xf4   : > { %7007 = vmatpush1.bf16.msra.mxu1 %v9882_v19  ;;  %v9974_v19 = vld [vmem:[%s11411_s4 + $0x3a4] ss:$8 sps:$4 sm:$0xff]  }
  0xf5   : > { %7663 = vmatpush1.bf16.msra.mxu0 %v9885_v20  ;;  %7008 = vmatprep.subr.bf16.mxu1 %v9890_v21  ;;  %v9977_v20 = vld [vmem:[%s11411_s4 + $0x13a4] ss:$8 sps:$4 sm:$0xff]   ;;  %v9972_v21 = vld [vmem:[%s11411_s4 + $0x3a0] ss:$8 sps:$4 sm:$0xff]  }
  0xf6   : > { %7664 = vmatprep.subr.bf16.mxu0 %v9893_v22  ;;  %v9975_v22 = vld [vmem:[%s11411_s4 + $0x13a0] ss:$8 sps:$4 sm:$0xff]  }
  0xf8   : > { %7009 = vmatpush1.bf16.msra.mxu1 %v9888_v23  ;;  %v9980_v23 = vld [vmem:[%s11411_s4 + $0x3b4] ss:$8 sps:$4 sm:$0xff]  }
  0xf9   : > { %7665 = vmatpush1.bf16.msra.mxu0 %v9891_v24  ;;  %7010 = vmatprep.subr.bf16.mxu1 %v9896_v53  ;;  %v9983_v24 = vld [vmem:[%s11411_s4 + $0x13b4] ss:$8 sps:$4 sm:$0xff]   ;;  %v9978_v53 = vld [vmem:[%s11411_s4 + $0x3b0] ss:$8 sps:$4 sm:$0xff]  }
  0xfa   : > { %7666 = vmatprep.subr.bf16.mxu0 %v9899_v57  ;;  %v9981_v57 = vld [vmem:[%s11411_s4 + $0x13b0] ss:$8 sps:$4 sm:$0xff]  }
  0xfc   : > { %7011 = vmatpush1.bf16.msra.mxu1 %v9894_v27  ;;  %v9986_v27 = vld [vmem:[%s11411_s4 + $0x3c4] ss:$8 sps:$4 sm:$0xff]  }
  0xfd   : > { %7667 = vmatpush1.bf16.msra.mxu0 %v9897_v28  ;;  %7012 = vmatprep.subr.bf16.mxu1 %v9902_v29  ;;  %v9989_v28 = vld [vmem:[%s11411_s4 + $0x13c4] ss:$8 sps:$4 sm:$0xff]   ;;  %v9984_v29 = vld [vmem:[%s11411_s4 + $0x3c0] ss:$8 sps:$4 sm:$0xff]  }
  0xfe   : > { %7668 = vmatprep.subr.bf16.mxu0 %v9905_v30  ;;  %v9987_v30 = vld [vmem:[%s11411_s4 + $0x13c0] ss:$8 sps:$4 sm:$0xff]  }
 0x100   : > { %7013 = vmatpush1.bf16.msra.mxu1 %v9900_v31  ;;  %v9992_v31 = vld [vmem:[%s11411_s4 + $0x3d4] ss:$8 sps:$4 sm:$0xff]  }
 0x101   : > { %7669 = vmatpush1.bf16.msra.mxu0 %v9903_v32  ;;  %7014 = vmatprep.subr.bf16.mxu1 %v9908_v33  ;;  %v9995_v32 = vld [vmem:[%s11411_s4 + $0x13d4] ss:$8 sps:$4 sm:$0xff]   ;;  %v9990_v33 = vld [vmem:[%s11411_s4 + $0x3d0] ss:$8 sps:$4 sm:$0xff]  }
 0x102   : > { %7670 = vmatprep.subr.bf16.mxu0 %v9911_v34  ;;  %v9993_v34 = vld [vmem:[%s11411_s4 + $0x13d0] ss:$8 sps:$4 sm:$0xff]  }
 0x104   : > { %7015 = vmatpush1.bf16.msra.mxu1 %v9906_v35  ;;  %v9998_v35 = vld [vmem:[%s11411_s4 + $0x3e4] ss:$8 sps:$4 sm:$0xff]  }
 0x105   : > { %7671 = vmatpush1.bf16.msra.mxu0 %v9909_v36  ;;  %7025 = vmatprep.subr.bf16.mxu1 %v9914_v18  ;;  %v10001_v36 = vld [vmem:[%s11411_s4 + $0x13e4] ss:$8 sps:$4 sm:$0xff]   ;;  %v9996_v18 = vld [vmem:[%s11411_s4 + $0x3e0] ss:$8 sps:$4 sm:$0xff]  }
 0x106   : > { %7681 = vmatprep.subr.bf16.mxu0 %v9917_v38  ;;  %v9999_v38 = vld [vmem:[%s11411_s4 + $0x13e0] ss:$8 sps:$4 sm:$0xff]  }
 0x107   : > { %7017 = vmatmul.mubr.bf16.vlgmr.msra.gmra.mrb[0].mxu1 %v11685_v39 }
 0x108   : > { %7673 = vmatmul.mubr.bf16.vlgmr.msra.gmra.mrb[0].mxu0 %v11689_v40  ;;  %7026 = vmatpush1.bf16.msra.mxu1 %v9912_v41  ;;  %v11756_v41 = vld.sshfl [vmem:[%s11424_s6 + $0x8] sm:$0xff pattern:$0x75316420] }
 0x109   : > { %7682 = vmatpush1.bf16.msra.mxu0 %v9915_v42  ;;  %7027 = vmatprep.subr.bf16.mxu1 %v9920_v43  ;;  %v11759_v42 = vld.sshfl [vmem:[%s11424_s6 + $0x28] sm:$0xff pattern:$0x75316420]  ;;  %v10004_v43 = vld [vmem:[%s11411_s4 + $0x3f4] ss:$8 sps:$4 sm:$0xff]  }
 0x10a   : > { %7683 = vmatprep.subr.bf16.mxu0 %v9923_v45  ;;  %7057 = vmatprep.mubr.bf16.mxu1 %v1374_v25  ;;  %v10007_v45 = vld [vmem:[%s11411_s4 + $0x13f4] ss:$8 sps:$4 sm:$0xff]   ;;  %v10002_v25 = vld [vmem:[%s11411_s4 + $0x3f0] ss:$8 sps:$4 sm:$0xff]  }
 0x10b   : > { %7713 = vmatprep.mubr.bf16.mxu0 %v1570_v46  ;;  %v10005_v46 = vld [vmem:[%s11411_s4 + $0x13f0] ss:$8 sps:$4 sm:$0xff]  }
 0x10c   : > { %7028 = vmatpush1.bf16.msra.mxu1 %v9918_v26  ;;  %v10010_v26 = vld [vmem:[%s11411_s4 + $0x404] ss:$8 sps:$4 sm:$0xff]  }
 0x10d   : > { %7684 = vmatpush1.bf16.msra.mxu0 %v9921_v47  ;;  %7029 = vmatprep.subr.bf16.mxu1 %v9926_v37  ;;  %v10013_v47 = vld [vmem:[%s11411_s4 + $0x1404] ss:$8 sps:$4 sm:$0xff]   ;;  %v1390_v37 = vcombine.high %v11756_v41, %v11756_v41 }
 0x10e   : > { %7685 = vmatprep.subr.bf16.mxu0 %v9929_v48  ;;  %v1586_v48 = vcombine.high %v11759_v42, %v11759_v42 }
 0x110   : > { %7030 = vmatpush1.bf16.msra.mxu1 %v9924_v17  ;;  %v10008_v17 = vld [vmem:[%s11411_s4 + $0x400] ss:$8 sps:$4 sm:$0xff]  }
 0x111   : > { %7686 = vmatpush1.bf16.msra.mxu0 %v9927_v49  ;;  %7031 = vmatprep.subr.bf16.mxu1 %v9932_v51  ;;  %v10011_v49 = vld [vmem:[%s11411_s4 + $0x1400] ss:$8 sps:$4 sm:$0xff]   ;;  %v1372_v51 = vcombine.high %v11685_v39, %v11685_v39  ;;  %v10014_v39 = vld [vmem:[%s11411_s4 + $0x410] ss:$8 sps:$4 sm:$0xff]  }
 0x112   : > { %7687 = vmatprep.subr.bf16.mxu0 %v9935_v52  ;;  %v1568_v52 = vcombine.high %v11689_v40, %v11689_v40  ;;  %v10017_v40 = vld [vmem:[%s11411_s4 + $0x1410] ss:$8 sps:$4 sm:$0xff]  }
 0x114   : > { %7032 = vmatpush1.bf16.msra.mxu1 %v9930_v54  ;;  %v10016_v54 = vld [vmem:[%s11411_s4 + $0x414] ss:$8 sps:$4 sm:$0xff]  }
 0x115   : > { %7688 = vmatpush1.bf16.msra.mxu0 %v9933_v55  ;;  %7033 = vmatprep.subr.bf16.mxu1 %v9938_v56  ;;  %v10019_v55 = vld [vmem:[%s11411_s4 + $0x1414] ss:$8 sps:$4 sm:$0xff]   ;;  %v11780_v56 = vrot.slane %v1390_v37, %v11485_v50  ;;  %v10094_v37 = vld [vmem:[%s11411_s4 + $0x4e4] ss:$8 sps:$4 sm:$0xff]  }
 0x116   : > { %7689 = vmatprep.subr.bf16.mxu0 %v9941_v58  ;;  %v11783_v58 = vrot.slane %v1586_v48, %v11485_v50  ;;  %v10097_v48 = vld [vmem:[%s11411_s4 + $0x14e4] ss:$8 sps:$4 sm:$0xff]  }
 0x118   : > { %7034 = vmatpush1.bf16.msra.mxu1 %v9936_v59  ;;  %v10022_v59 = vld [vmem:[%s11411_s4 + $0x424] ss:$8 sps:$4 sm:$0xff]  }
 0x119   : > { %7690 = vmatpush1.bf16.msra.mxu0 %v9939_v60  ;;  %7035 = vmatprep.subr.bf16.mxu1 %v9944_v61  ;;  %v10025_v60 = vld [vmem:[%s11411_s4 + $0x1424] ss:$8 sps:$4 sm:$0xff]   ;;  %v10020_v61 = vld [vmem:[%s11411_s4 + $0x420] ss:$8 sps:$4 sm:$0xff]  }
 0x11a   : > { %7691 = vmatprep.subr.bf16.mxu0 %v9947_v62  ;;  %v10023_v62 = vld [vmem:[%s11411_s4 + $0x1420] ss:$8 sps:$4 sm:$0xff]  }
 0x11c   : > { %7036 = vmatpush1.bf16.msra.mxu1 %v9942_v63  ;;  %v10028_v63 = vld [vmem:[%s11411_s4 + $0x434] ss:$8 sps:$4 sm:$0xff]  }
 0x11d   : > { %7692 = vmatpush1.bf16.msra.mxu0 %v9945_v0  ;;  %7037 = vmatprep.subr.bf16.mxu1 %v9950_v1  ;;  %v10031_v0 = vld [vmem:[%s11411_s4 + $0x1434] ss:$8 sps:$4 sm:$0xff]   ;;  %v10026_v1 = vld [vmem:[%s11411_s4 + $0x430] ss:$8 sps:$4 sm:$0xff]  }
 0x11e   : > { %7693 = vmatprep.subr.bf16.mxu0 %v9953_v2  ;;  %v10029_v2 = vld [vmem:[%s11411_s4 + $0x1430] ss:$8 sps:$4 sm:$0xff]  }
 0x120   : > { %7038 = vmatpush1.bf16.msra.mxu1 %v9948_v3  ;;  %v10034_v3 = vld [vmem:[%s11411_s4 + $0x444] ss:$8 sps:$4 sm:$0xff]  }
 0x121   : > { %7694 = vmatpush1.bf16.msra.mxu0 %v9951_v4  ;;  %7039 = vmatprep.subr.bf16.mxu1 %v9956_v5  ;;  %v10037_v4 = vld [vmem:[%s11411_s4 + $0x1444] ss:$8 sps:$4 sm:$0xff]   ;;  %v10032_v5 = vld [vmem:[%s11411_s4 + $0x440] ss:$8 sps:$4 sm:$0xff]  }
 0x122   : > { %7695 = vmatprep.subr.bf16.mxu0 %v9959_v6  ;;  %v10035_v6 = vld [vmem:[%s11411_s4 + $0x1440] ss:$8 sps:$4 sm:$0xff]  }
 0x124   : > { %7040 = vmatpush1.bf16.msra.mxu1 %v9954_v7  ;;  %v10040_v7 = vld [vmem:[%s11411_s4 + $0x454] ss:$8 sps:$4 sm:$0xff]  }
 0x125   : > { %7696 = vmatpush1.bf16.msra.mxu0 %v9957_v8  ;;  %7041 = vmatprep.subr.bf16.mxu1 %v9962_v9  ;;  %v10043_v8 = vld [vmem:[%s11411_s4 + $0x1454] ss:$8 sps:$4 sm:$0xff]   ;;  %v10038_v9 = vld [vmem:[%s11411_s4 + $0x450] ss:$8 sps:$4 sm:$0xff]  }
 0x126   : > { %7697 = vmatprep.subr.bf16.mxu0 %v9965_v10  ;;  %v10041_v10 = vld [vmem:[%s11411_s4 + $0x1450] ss:$8 sps:$4 sm:$0xff]  }
 0x128   : > { %7042 = vmatpush1.bf16.msra.mxu1 %v9960_v11  ;;  %v10046_v11 = vld [vmem:[%s11411_s4 + $0x464] ss:$8 sps:$4 sm:$0xff]  }
 0x129   : > { %7698 = vmatpush1.bf16.msra.mxu0 %v9963_v12  ;;  %7043 = vmatprep.subr.bf16.mxu1 %v9968_v13  ;;  %v10049_v12 = vld [vmem:[%s11411_s4 + $0x1464] ss:$8 sps:$4 sm:$0xff]   ;;  %v10044_v13 = vld [vmem:[%s11411_s4 + $0x460] ss:$8 sps:$4 sm:$0xff]  }
 0x12a   : > { %7699 = vmatprep.subr.bf16.mxu0 %v9971_v14  ;;  %v10047_v14 = vld [vmem:[%s11411_s4 + $0x1460] ss:$8 sps:$4 sm:$0xff]  }
 0x12c   : > { %7044 = vmatpush1.bf16.msra.mxu1 %v9966_v15  ;;  %v10052_v15 = vld [vmem:[%s11411_s4 + $0x474] ss:$8 sps:$4 sm:$0xff]  }
 0x12d   : > { %7700 = vmatpush1.bf16.msra.mxu0 %v9969_v16  ;;  %7045 = vmatprep.subr.bf16.mxu1 %v9974_v19  ;;  %v10055_v16 = vld [vmem:[%s11411_s4 + $0x1474] ss:$8 sps:$4 sm:$0xff]   ;;  %v10050_v19 = vld [vmem:[%s11411_s4 + $0x470] ss:$8 sps:$4 sm:$0xff]  }
 0x12e   : > { %7701 = vmatprep.subr.bf16.mxu0 %v9977_v20  ;;  %v10053_v20 = vld [vmem:[%s11411_s4 + $0x1470] ss:$8 sps:$4 sm:$0xff]  }
 0x130   : > { %7046 = vmatpush1.bf16.msra.mxu1 %v9972_v21  ;;  %v10058_v21 = vld [vmem:[%s11411_s4 + $0x484] ss:$8 sps:$4 sm:$0xff]  }
 0x131   : > { %7702 = vmatpush1.bf16.msra.mxu0 %v9975_v22  ;;  %7047 = vmatprep.subr.bf16.mxu1 %v9980_v23  ;;  %v10061_v22 = vld [vmem:[%s11411_s4 + $0x1484] ss:$8 sps:$4 sm:$0xff]   ;;  %v10056_v23 = vld [vmem:[%s11411_s4 + $0x480] ss:$8 sps:$4 sm:$0xff]  }
 0x132   : > { %7703 = vmatprep.subr.bf16.mxu0 %v9983_v24  ;;  %v10059_v24 = vld [vmem:[%s11411_s4 + $0x1480] ss:$8 sps:$4 sm:$0xff]  }
 0x134   : > { %7048 = vmatpush1.bf16.msra.mxu1 %v9978_v53  ;;  %v10064_v53 = vld [vmem:[%s11411_s4 + $0x494] ss:$8 sps:$4 sm:$0xff]  }
 0x135   : > { %7704 = vmatpush1.bf16.msra.mxu0 %v9981_v57  ;;  %7049 = vmatprep.subr.bf16.mxu1 %v9986_v27  ;;  %v10067_v57 = vld [vmem:[%s11411_s4 + $0x1494] ss:$8 sps:$4 sm:$0xff]   ;;  %v10062_v27 = vld [vmem:[%s11411_s4 + $0x490] ss:$8 sps:$4 sm:$0xff]  }
 0x136   : > { %7705 = vmatprep.subr.bf16.mxu0 %v9989_v28  ;;  %v10065_v28 = vld [vmem:[%s11411_s4 + $0x1490] ss:$8 sps:$4 sm:$0xff]  }
 0x138   : > { %7050 = vmatpush1.bf16.msra.mxu1 %v9984_v29  ;;  %v10070_v29 = vld [vmem:[%s11411_s4 + $0x4a4] ss:$8 sps:$4 sm:$0xff]  }
 0x139   : > { %7706 = vmatpush1.bf16.msra.mxu0 %v9987_v30  ;;  %7051 = vmatprep.subr.bf16.mxu1 %v9992_v31  ;;  %v10073_v30 = vld [vmem:[%s11411_s4 + $0x14a4] ss:$8 sps:$4 sm:$0xff]   ;;  %v10068_v31 = vld [vmem:[%s11411_s4 + $0x4a0] ss:$8 sps:$4 sm:$0xff]  }
 0x13a   : > { %7707 = vmatprep.subr.bf16.mxu0 %v9995_v32  ;;  %v10071_v32 = vld [vmem:[%s11411_s4 + $0x14a0] ss:$8 sps:$4 sm:$0xff]  }
 0x13c   : > { %7052 = vmatpush1.bf16.msra.mxu1 %v9990_v33  ;;  %v10076_v33 = vld [vmem:[%s11411_s4 + $0x4b4] ss:$8 sps:$4 sm:$0xff]  }
 0x13d   : > { %7708 = vmatpush1.bf16.msra.mxu0 %v9993_v34  ;;  %7053 = vmatprep.subr.bf16.mxu1 %v9998_v35  ;;  %v10079_v34 = vld [vmem:[%s11411_s4 + $0x14b4] ss:$8 sps:$4 sm:$0xff]   ;;  %v10074_v35 = vld [vmem:[%s11411_s4 + $0x4b0] ss:$8 sps:$4 sm:$0xff]  }
 0x13e   : > { %7709 = vmatprep.subr.bf16.mxu0 %v10001_v36  ;;  %v10077_v36 = vld [vmem:[%s11411_s4 + $0x14b0] ss:$8 sps:$4 sm:$0xff]  }
 0x140   : > { %7054 = vmatpush1.bf16.msra.mxu1 %v9996_v18  ;;  %v10082_v18 = vld [vmem:[%s11411_s4 + $0x4c4] ss:$8 sps:$4 sm:$0xff]  }
 0x141   : > { %7710 = vmatpush1.bf16.msra.mxu0 %v9999_v38  ;;  %7055 = vmatprep.subr.bf16.mxu1 %v10004_v43  ;;  %v10085_v38 = vld [vmem:[%s11411_s4 + $0x14c4] ss:$8 sps:$4 sm:$0xff]   ;;  %v10080_v43 = vld [vmem:[%s11411_s4 + $0x4c0] ss:$8 sps:$4 sm:$0xff]  }
 0x142   : > { %7711 = vmatprep.subr.bf16.mxu0 %v10007_v45  ;;  %v10083_v45 = vld [vmem:[%s11411_s4 + $0x14c0] ss:$8 sps:$4 sm:$0xff]  }
 0x144   : > { %7056 = vmatpush1.bf16.msra.mxu1 %v10002_v25  ;;  %v10088_v25 = vld [vmem:[%s11411_s4 + $0x4d4] ss:$8 sps:$4 sm:$0xff]  }
 0x145   : > { %7712 = vmatpush1.bf16.msra.mxu0 %v10005_v46  ;;  %7066 = vmatprep.subr.bf16.mxu1 %v10010_v26  ;;  %v10091_v46 = vld [vmem:[%s11411_s4 + $0x14d4] ss:$8 sps:$4 sm:$0xff]   ;;  %v10086_v26 = vld [vmem:[%s11411_s4 + $0x4d0] ss:$8 sps:$4 sm:$0xff]  }
 0x146   : > { %7722 = vmatprep.subr.bf16.mxu0 %v10013_v47  ;;  %v10089_v47 = vld [vmem:[%s11411_s4 + $0x14d0] ss:$8 sps:$4 sm:$0xff]  }
 0x147   : > { %7058 = vmatmul.mubr.bf16.vlgmr.msra.gmra.mrb[0].mxu1 %v1372_v51  ;;  %v10100_v51 = vld [vmem:[%s11411_s4 + $0x4f4] ss:$8 sps:$4 sm:$0xff]  }
 0x148   : > { %7714 = vmatmul.mubr.bf16.vlgmr.msra.gmra.mrb[0].mxu0 %v1568_v52  ;;  %7067 = vmatpush1.bf16.msra.mxu1 %v10008_v17  ;;  %v10092_v17 = vld [vmem:[%s11411_s4 + $0x4e0] ss:$8 sps:$4 sm:$0xff]   ;;  %v10103_v52 = vld [vmem:[%s11411_s4 + $0x14f4] ss:$8 sps:$4 sm:$0xff]  }
 0x149   : > { %7723 = vmatpush1.bf16.msra.mxu0 %v10011_v49  ;;  %7068 = vmatprep.subr.bf16.mxu1 %v10016_v54  ;;  %v10095_v49 = vld [vmem:[%s11411_s4 + $0x14e0] ss:$8 sps:$4 sm:$0xff]   ;;  %v10098_v54 = vld [vmem:[%s11411_s4 + $0x4f0] ss:$8 sps:$4 sm:$0xff]  }
 0x14a   : > { %7724 = vmatprep.subr.bf16.mxu0 %v10019_v55  ;;  %7098 = vmatprep.mubr.bf16.mxu1 %v11780_v56  ;;  %v10101_v55 = vld [vmem:[%s11411_s4 + $0x14f0] ss:$8 sps:$4 sm:$0xff]  }
 0x14b   : > { %7754 = vmatprep.mubr.bf16.mxu0 %v11783_v58 }
 0x14c   : > { %7069 = vmatpush1.bf16.msra.mxu1 %v10014_v39  ;;  %v10106_v39 = vld [vmem:[%s11411_s4 + $0x504] ss:$8 sps:$4 sm:$0xff]  }
 0x14d   : > { %7725 = vmatpush1.bf16.msra.mxu0 %v10017_v40  ;;  %7070 = vmatprep.subr.bf16.mxu1 %v10022_v59  ;;  %v10109_v40 = vld [vmem:[%s11411_s4 + $0x1504] ss:$8 sps:$4 sm:$0xff]   ;;  %v11849_v59 = vrot.slane %v11756_v41, %v11485_v50  ;;  %v1422_v41 = vcombine.high %v11780_v56, %v11780_v56 }
 0x14e   : > { %7726 = vmatprep.subr.bf16.mxu0 %v10025_v60  ;;  %v11853_v60 = vrot.slane %v11759_v42, %v11485_v50  ;;  %v10110_v42 = vld [vmem:[%s11411_s4 + $0x510] ss:$8 sps:$4 sm:$0xff]   ;;  %v10118_v56 = vld [vmem:[%s11411_s4 + $0x524] ss:$8 sps:$4 sm:$0xff]  }
 0x150   : > { %7071 = vmatpush1.bf16.msra.mxu1 %v10020_v61  ;;  %v10104_v61 = vld [vmem:[%s11411_s4 + $0x500] ss:$8 sps:$4 sm:$0xff]  }
 0x151   : > { %7727 = vmatpush1.bf16.msra.mxu0 %v10023_v62  ;;  %7072 = vmatprep.subr.bf16.mxu1 %v10028_v63  ;;  %v10107_v62 = vld [vmem:[%s11411_s4 + $0x1500] ss:$8 sps:$4 sm:$0xff]   ;;  %v10112_v63 = vld [vmem:[%s11411_s4 + $0x514] ss:$8 sps:$4 sm:$0xff]  }
 0x152   : > { %7728 = vmatprep.subr.bf16.mxu0 %v10031_v0  ;;  %v10115_v0 = vld [vmem:[%s11411_s4 + $0x1514] ss:$8 sps:$4 sm:$0xff]  }
 0x154   : > { %7073 = vmatpush1.bf16.msra.mxu1 %v10026_v1  ;;  %v1618_v1 = vcombine.high %v11783_v58, %v11783_v58  ;;  %v10116_v58 = vld [vmem:[%s11411_s4 + $0x520] ss:$8 sps:$4 sm:$0xff]  }
 0x155   : > { %7729 = vmatpush1.bf16.msra.mxu0 %v10029_v2  ;;  %7074 = vmatprep.subr.bf16.mxu1 %v10034_v3  ;;  %v10113_v2 = vld [vmem:[%s11411_s4 + $0x1510] ss:$8 sps:$4 sm:$0xff]   ;;  %v10121_v3 = vld [vmem:[%s11411_s4 + $0x1524] ss:$8 sps:$4 sm:$0xff]  }
 0x156   : > { %7730 = vmatprep.subr.bf16.mxu0 %v10037_v4  ;;  %v10119_v4 = vld [vmem:[%s11411_s4 + $0x1520] ss:$8 sps:$4 sm:$0xff]  }
 0x158   : > { %7075 = vmatpush1.bf16.msra.mxu1 %v10032_v5  ;;  %v10124_v5 = vld [vmem:[%s11411_s4 + $0x534] ss:$8 sps:$4 sm:$0xff]  }
 0x159   : > { %7731 = vmatpush1.bf16.msra.mxu0 %v10035_v6  ;;  %7076 = vmatprep.subr.bf16.mxu1 %v10040_v7  ;;  %v10127_v6 = vld [vmem:[%s11411_s4 + $0x1534] ss:$8 sps:$4 sm:$0xff]   ;;  %v10122_v7 = vld [vmem:[%s11411_s4 + $0x530] ss:$8 sps:$4 sm:$0xff]  }
 0x15a   : > { %7732 = vmatprep.subr.bf16.mxu0 %v10043_v8  ;;  %v10125_v8 = vld [vmem:[%s11411_s4 + $0x1530] ss:$8 sps:$4 sm:$0xff]  }
 0x15c   : > { %7077 = vmatpush1.bf16.msra.mxu1 %v10038_v9  ;;  %v10130_v9 = vld [vmem:[%s11411_s4 + $0x544] ss:$8 sps:$4 sm:$0xff]  }
 0x15d   : > { %7733 = vmatpush1.bf16.msra.mxu0 %v10041_v10  ;;  %7078 = vmatprep.subr.bf16.mxu1 %v10046_v11  ;;  %v10133_v10 = vld [vmem:[%s11411_s4 + $0x1544] ss:$8 sps:$4 sm:$0xff]   ;;  %v10128_v11 = vld [vmem:[%s11411_s4 + $0x540] ss:$8 sps:$4 sm:$0xff]  }
 0x15e   : > { %7734 = vmatprep.subr.bf16.mxu0 %v10049_v12  ;;  %v10131_v12 = vld [vmem:[%s11411_s4 + $0x1540] ss:$8 sps:$4 sm:$0xff]  }
 0x160   : > { %7079 = vmatpush1.bf16.msra.mxu1 %v10044_v13  ;;  %v10136_v13 = vld [vmem:[%s11411_s4 + $0x554] ss:$8 sps:$4 sm:$0xff]  }
 0x161   : > { %7735 = vmatpush1.bf16.msra.mxu0 %v10047_v14  ;;  %7080 = vmatprep.subr.bf16.mxu1 %v10052_v15  ;;  %v10139_v14 = vld [vmem:[%s11411_s4 + $0x1554] ss:$8 sps:$4 sm:$0xff]   ;;  %v10134_v15 = vld [vmem:[%s11411_s4 + $0x550] ss:$8 sps:$4 sm:$0xff]  }
 0x162   : > { %7736 = vmatprep.subr.bf16.mxu0 %v10055_v16  ;;  %v10137_v16 = vld [vmem:[%s11411_s4 + $0x1550] ss:$8 sps:$4 sm:$0xff]  }
 0x164   : > { %7081 = vmatpush1.bf16.msra.mxu1 %v10050_v19  ;;  %v10142_v19 = vld [vmem:[%s11411_s4 + $0x564] ss:$8 sps:$4 sm:$0xff]  }
 0x165   : > { %7737 = vmatpush1.bf16.msra.mxu0 %v10053_v20  ;;  %7082 = vmatprep.subr.bf16.mxu1 %v10058_v21  ;;  %v10145_v20 = vld [vmem:[%s11411_s4 + $0x1564] ss:$8 sps:$4 sm:$0xff]   ;;  %v10140_v21 = vld [vmem:[%s11411_s4 + $0x560] ss:$8 sps:$4 sm:$0xff]  }
 0x166   : > { %7738 = vmatprep.subr.bf16.mxu0 %v10061_v22  ;;  %v10143_v22 = vld [vmem:[%s11411_s4 + $0x1560] ss:$8 sps:$4 sm:$0xff]  }
 0x168   : > { %7083 = vmatpush1.bf16.msra.mxu1 %v10056_v23  ;;  %v10148_v23 = vld [vmem:[%s11411_s4 + $0x574] ss:$8 sps:$4 sm:$0xff]  }
 0x169   : > { %7739 = vmatpush1.bf16.msra.mxu0 %v10059_v24  ;;  %7084 = vmatprep.subr.bf16.mxu1 %v10064_v53  ;;  %v10151_v24 = vld [vmem:[%s11411_s4 + $0x1574] ss:$8 sps:$4 sm:$0xff]   ;;  %v10146_v53 = vld [vmem:[%s11411_s4 + $0x570] ss:$8 sps:$4 sm:$0xff]  }
 0x16a   : > { %7740 = vmatprep.subr.bf16.mxu0 %v10067_v57  ;;  %v10149_v57 = vld [vmem:[%s11411_s4 + $0x1570] ss:$8 sps:$4 sm:$0xff]  }
 0x16c   : > { %7085 = vmatpush1.bf16.msra.mxu1 %v10062_v27  ;;  %v10154_v27 = vld [vmem:[%s11411_s4 + $0x584] ss:$8 sps:$4 sm:$0xff]  }
 0x16d   : > { %7741 = vmatpush1.bf16.msra.mxu0 %v10065_v28  ;;  %7086 = vmatprep.subr.bf16.mxu1 %v10070_v29  ;;  %v10157_v28 = vld [vmem:[%s11411_s4 + $0x1584] ss:$8 sps:$4 sm:$0xff]   ;;  %v10152_v29 = vld [vmem:[%s11411_s4 + $0x580] ss:$8 sps:$4 sm:$0xff]  }
 0x16e   : > { %7742 = vmatprep.subr.bf16.mxu0 %v10073_v30  ;;  %v10155_v30 = vld [vmem:[%s11411_s4 + $0x1580] ss:$8 sps:$4 sm:$0xff]  }
 0x170   : > { %7087 = vmatpush1.bf16.msra.mxu1 %v10068_v31  ;;  %v10160_v31 = vld [vmem:[%s11411_s4 + $0x594] ss:$8 sps:$4 sm:$0xff]  }
 0x171   : > { %7743 = vmatpush1.bf16.msra.mxu0 %v10071_v32  ;;  %7088 = vmatprep.subr.bf16.mxu1 %v10076_v33  ;;  %v10163_v32 = vld [vmem:[%s11411_s4 + $0x1594] ss:$8 sps:$4 sm:$0xff]   ;;  %v10158_v33 = vld [vmem:[%s11411_s4 + $0x590] ss:$8 sps:$4 sm:$0xff]  }
 0x172   : > { %7744 = vmatprep.subr.bf16.mxu0 %v10079_v34  ;;  %v10161_v34 = vld [vmem:[%s11411_s4 + $0x1590] ss:$8 sps:$4 sm:$0xff]  }
 0x174   : > { %7089 = vmatpush1.bf16.msra.mxu1 %v10074_v35  ;;  %v10166_v35 = vld [vmem:[%s11411_s4 + $0x5a4] ss:$8 sps:$4 sm:$0xff]  }
 0x175   : > { %7745 = vmatpush1.bf16.msra.mxu0 %v10077_v36  ;;  %7090 = vmatprep.subr.bf16.mxu1 %v10082_v18  ;;  %v10169_v36 = vld [vmem:[%s11411_s4 + $0x15a4] ss:$8 sps:$4 sm:$0xff]   ;;  %v10164_v18 = vld [vmem:[%s11411_s4 + $0x5a0] ss:$8 sps:$4 sm:$0xff]  }
 0x176   : > { %7746 = vmatprep.subr.bf16.mxu0 %v10085_v38  ;;  %v10167_v38 = vld [vmem:[%s11411_s4 + $0x15a0] ss:$8 sps:$4 sm:$0xff]  }
 0x178   : > { %7091 = vmatpush1.bf16.msra.mxu1 %v10080_v43  ;;  %v10172_v43 = vld [vmem:[%s11411_s4 + $0x5b4] ss:$8 sps:$4 sm:$0xff]  }
 0x179   : > { %7747 = vmatpush1.bf16.msra.mxu0 %v10083_v45  ;;  %7092 = vmatprep.subr.bf16.mxu1 %v10088_v25  ;;  %v10175_v45 = vld [vmem:[%s11411_s4 + $0x15b4] ss:$8 sps:$4 sm:$0xff]   ;;  %v10170_v25 = vld [vmem:[%s11411_s4 + $0x5b0] ss:$8 sps:$4 sm:$0xff]  }
 0x17a   : > { %7748 = vmatprep.subr.bf16.mxu0 %v10091_v46  ;;  %v10173_v46 = vld [vmem:[%s11411_s4 + $0x15b0] ss:$8 sps:$4 sm:$0xff]  }
 0x17c   : > { %7093 = vmatpush1.bf16.msra.mxu1 %v10086_v26  ;;  %v10178_v26 = vld [vmem:[%s11411_s4 + $0x5c4] ss:$8 sps:$4 sm:$0xff]  }
 0x17d   : > { %7749 = vmatpush1.bf16.msra.mxu0 %v10089_v47  ;;  %7094 = vmatprep.subr.bf16.mxu1 %v10094_v37  ;;  %v10181_v47 = vld [vmem:[%s11411_s4 + $0x15c4] ss:$8 sps:$4 sm:$0xff]   ;;  %v10176_v37 = vld [vmem:[%s11411_s4 + $0x5c0] ss:$8 sps:$4 sm:$0xff]  }
 0x17e   : > { %7750 = vmatprep.subr.bf16.mxu0 %v10097_v48  ;;  %v10179_v48 = vld [vmem:[%s11411_s4 + $0x15c0] ss:$8 sps:$4 sm:$0xff]  }
 0x180   : > { %7095 = vmatpush1.bf16.msra.mxu1 %v10092_v17  ;;  %v10184_v17 = vld [vmem:[%s11411_s4 + $0x5d4] ss:$8 sps:$4 sm:$0xff]  }
 0x181   : > { %7751 = vmatpush1.bf16.msra.mxu0 %v10095_v49  ;;  %7096 = vmatprep.subr.bf16.mxu1 %v10100_v51  ;;  %v10187_v49 = vld [vmem:[%s11411_s4 + $0x15d4] ss:$8 sps:$4 sm:$0xff]   ;;  %v10182_v51 = vld [vmem:[%s11411_s4 + $0x5d0] ss:$8 sps:$4 sm:$0xff]  }
 0x182   : > { %7752 = vmatprep.subr.bf16.mxu0 %v10103_v52  ;;  %v10185_v52 = vld [vmem:[%s11411_s4 + $0x15d0] ss:$8 sps:$4 sm:$0xff]  }
 0x184   : > { %7097 = vmatpush1.bf16.msra.mxu1 %v10098_v54  ;;  %v10190_v54 = vld [vmem:[%s11411_s4 + $0x5e4] ss:$8 sps:$4 sm:$0xff]  }
 0x185   : > { %7753 = vmatpush1.bf16.msra.mxu0 %v10101_v55  ;;  %7107 = vmatprep.subr.bf16.mxu1 %v10106_v39  ;;  %v10193_v55 = vld [vmem:[%s11411_s4 + $0x15e4] ss:$8 sps:$4 sm:$0xff]  }
 0x186   : > { %7763 = vmatprep.subr.bf16.mxu0 %v10109_v40  ;;  %v11166_v39 = vld [vmem:[%s11424_s6 + $0x8] sm:$0xff] }
 0x187   : > { %7099 = vmatmul.mubr.bf16.vlgmr.msra.gmra.mrb[0].mxu1 %v11849_v59  ;;  %v1375_v40 = vcombine.high %v11166_v39, %v11166_v39  ;;  %v10268_v39 = vld [vmem:[%s11411_s4 + $0x6b4] ss:$8 sps:$4 sm:$0xff]  }
 0x188   : > { %7755 = vmatmul.mubr.bf16.vlgmr.msra.gmra.mrb[0].mxu0 %v11853_v60  ;;  %7108 = vmatpush1.bf16.msra.mxu1 %v10104_v61  ;;  %v11167_v61 = vld [vmem:[%s11424_s6 + $0x28] sm:$0xff] }
 0x189   : > { %7764 = vmatpush1.bf16.msra.mxu0 %v10107_v62  ;;  %7109 = vmatprep.subr.bf16.mxu1 %v10112_v63  ;;  %v1571_v62 = vcombine.high %v11167_v61, %v11167_v61  ;;  %v10188_v63 = vld [vmem:[%s11411_s4 + $0x5e0] ss:$8 sps:$4 sm:$0xff]   ;;  %v10266_v61 = vld [vmem:[%s11411_s4 + $0x6b0] ss:$8 sps:$4 sm:$0xff]  }
 0x18a   : > { %7765 = vmatprep.subr.bf16.mxu0 %v10115_v0  ;;  %7139 = vmatprep.mubr.bf16.mxu1 %v1422_v41  ;;  %v10191_v0 = vld [vmem:[%s11411_s4 + $0x15e0] ss:$8 sps:$4 sm:$0xff]   ;;  %v10196_v41 = vld [vmem:[%s11411_s4 + $0x5f4] ss:$8 sps:$4 sm:$0xff]  }
 0x18b   : > { %7795 = vmatprep.mubr.bf16.mxu0 %v1618_v1  ;;  %v10199_v1 = vld [vmem:[%s11411_s4 + $0x15f4] ss:$8 sps:$4 sm:$0xff]  }
 0x18c   : > { %7110 = vmatpush1.bf16.msra.mxu1 %v10110_v42  ;;  %v11924_v42 = vrot.slane %v1375_v40, %v11485_v50  ;;  %v10271_v40 = vld [vmem:[%s11411_s4 + $0x16b4] ss:$8 sps:$4 sm:$0xff]  }
 0x18d   : > { %7766 = vmatpush1.bf16.msra.mxu0 %v10113_v2  ;;  %7111 = vmatprep.subr.bf16.mxu1 %v10118_v56  ;;  %v11927_v2 = vrot.slane %v1571_v62, %v11485_v50  ;;  %v10194_v56 = vld [vmem:[%s11411_s4 + $0x5f0] ss:$8 sps:$4 sm:$0xff]  }
 0x18e   : > { %7767 = vmatprep.subr.bf16.mxu0 %v10121_v3  ;;  %v10197_v3 = vld [vmem:[%s11411_s4 + $0x15f0] ss:$8 sps:$4 sm:$0xff]  }
 0x18f   : > { %v10269_v62 = vld [vmem:[%s11411_s4 + $0x16b0] ss:$8 sps:$4 sm:$0xff]  }
 0x190   : > { %7112 = vmatpush1.bf16.msra.mxu1 %v10116_v58  ;;  %v10202_v58 = vld [vmem:[%s11411_s4 + $0x604] ss:$8 sps:$4 sm:$0xff]  }
 0x191   : > { %7768 = vmatpush1.bf16.msra.mxu0 %v10119_v4  ;;  %7113 = vmatprep.subr.bf16.mxu1 %v10124_v5  ;;  %v10205_v4 = vld [vmem:[%s11411_s4 + $0x1604] ss:$8 sps:$4 sm:$0xff]   ;;  %v1391_v5 = vcombine.high %v11924_v42, %v11924_v42 }
 0x192   : > { %7769 = vmatprep.subr.bf16.mxu0 %v10127_v6  ;;  %v1587_v6 = vcombine.high %v11927_v2, %v11927_v2 }
 0x194   : > { %7114 = vmatpush1.bf16.msra.mxu1 %v10122_v7  ;;  %v1420_v7 = vcombine.high %v11849_v59, %v11849_v59  ;;  %v11949_v59 = vrot.slane %v1587_v6, %v11485_v50  ;;  %v10289_v6 = vld [vmem:[%s11411_s4 + $0x16e4] ss:$8 sps:$4 sm:$0xff]  }
 0x195   : > { %7770 = vmatpush1.bf16.msra.mxu0 %v10125_v8  ;;  %7115 = vmatprep.subr.bf16.mxu1 %v10130_v9  ;;  %v1616_v8 = vcombine.high %v11853_v60, %v11853_v60  ;;  %v10200_v9 = vld [vmem:[%s11411_s4 + $0x600] ss:$8 sps:$4 sm:$0xff]   ;;  %v10206_v60 = vld [vmem:[%s11411_s4 + $0x610] ss:$8 sps:$4 sm:$0xff]  }
 0x196   : > { %7771 = vmatprep.subr.bf16.mxu0 %v10133_v10  ;;  %v10203_v10 = vld [vmem:[%s11411_s4 + $0x1600] ss:$8 sps:$4 sm:$0xff]  }
 0x198   : > { %7116 = vmatpush1.bf16.msra.mxu1 %v10128_v11  ;;  %v10208_v11 = vld [vmem:[%s11411_s4 + $0x614] ss:$8 sps:$4 sm:$0xff]  }
 0x199   : > { %7772 = vmatpush1.bf16.msra.mxu0 %v10131_v12  ;;  %7117 = vmatprep.subr.bf16.mxu1 %v10136_v13  ;;  %v10211_v12 = vld [vmem:[%s11411_s4 + $0x1614] ss:$8 sps:$4 sm:$0xff]   ;;  %v11946_v13 = vrot.slane %v1391_v5, %v11485_v50  ;;  %v10286_v5 = vld [vmem:[%s11411_s4 + $0x6e4] ss:$8 sps:$4 sm:$0xff]  }
 0x19a   : > { %7773 = vmatprep.subr.bf16.mxu0 %v10139_v14  ;;  %v10209_v14 = vld [vmem:[%s11411_s4 + $0x1610] ss:$8 sps:$4 sm:$0xff]  }
 0x19c   : > { %7118 = vmatpush1.bf16.msra.mxu1 %v10134_v15  ;;  %v10214_v15 = vld [vmem:[%s11411_s4 + $0x624] ss:$8 sps:$4 sm:$0xff]  }
 0x19d   : > { %7774 = vmatpush1.bf16.msra.mxu0 %v10137_v16  ;;  %7119 = vmatprep.subr.bf16.mxu1 %v10142_v19  ;;  %v10217_v16 = vld [vmem:[%s11411_s4 + $0x1624] ss:$8 sps:$4 sm:$0xff]   ;;  %v10212_v19 = vld [vmem:[%s11411_s4 + $0x620] ss:$8 sps:$4 sm:$0xff]  }
 0x19e   : > { %7775 = vmatprep.subr.bf16.mxu0 %v10145_v20  ;;  %v10215_v20 = vld [vmem:[%s11411_s4 + $0x1620] ss:$8 sps:$4 sm:$0xff]  }
 0x1a0   : > { %7120 = vmatpush1.bf16.msra.mxu1 %v10140_v21  ;;  %v10220_v21 = vld [vmem:[%s11411_s4 + $0x634] ss:$8 sps:$4 sm:$0xff]  }
 0x1a1   : > { %7776 = vmatpush1.bf16.msra.mxu0 %v10143_v22  ;;  %7121 = vmatprep.subr.bf16.mxu1 %v10148_v23  ;;  %v10223_v22 = vld [vmem:[%s11411_s4 + $0x1634] ss:$8 sps:$4 sm:$0xff]   ;;  %v10218_v23 = vld [vmem:[%s11411_s4 + $0x630] ss:$8 sps:$4 sm:$0xff]  }
 0x1a2   : > { %7777 = vmatprep.subr.bf16.mxu0 %v10151_v24  ;;  %v10221_v24 = vld [vmem:[%s11411_s4 + $0x1630] ss:$8 sps:$4 sm:$0xff]  }
 0x1a4   : > { %7122 = vmatpush1.bf16.msra.mxu1 %v10146_v53  ;;  %v10226_v53 = vld [vmem:[%s11411_s4 + $0x644] ss:$8 sps:$4 sm:$0xff]  }
 0x1a5   : > { %7778 = vmatpush1.bf16.msra.mxu0 %v10149_v57  ;;  %7123 = vmatprep.subr.bf16.mxu1 %v10154_v27  ;;  %v10229_v57 = vld [vmem:[%s11411_s4 + $0x1644] ss:$8 sps:$4 sm:$0xff]   ;;  %v10224_v27 = vld [vmem:[%s11411_s4 + $0x640] ss:$8 sps:$4 sm:$0xff]  }
 0x1a6   : > { %7779 = vmatprep.subr.bf16.mxu0 %v10157_v28  ;;  %v10227_v28 = vld [vmem:[%s11411_s4 + $0x1640] ss:$8 sps:$4 sm:$0xff]  }
 0x1a8   : > { %7124 = vmatpush1.bf16.msra.mxu1 %v10152_v29  ;;  %v10232_v29 = vld [vmem:[%s11411_s4 + $0x654] ss:$8 sps:$4 sm:$0xff]  }
 0x1a9   : > { %7780 = vmatpush1.bf16.msra.mxu0 %v10155_v30  ;;  %7125 = vmatprep.subr.bf16.mxu1 %v10160_v31  ;;  %v10235_v30 = vld [vmem:[%s11411_s4 + $0x1654] ss:$8 sps:$4 sm:$0xff]   ;;  %v10230_v31 = vld [vmem:[%s11411_s4 + $0x650] ss:$8 sps:$4 sm:$0xff]  }
 0x1aa   : > { %7781 = vmatprep.subr.bf16.mxu0 %v10163_v32  ;;  %v10233_v32 = vld [vmem:[%s11411_s4 + $0x1650] ss:$8 sps:$4 sm:$0xff]  }
 0x1ac   : > { %7126 = vmatpush1.bf16.msra.mxu1 %v10158_v33  ;;  %v10238_v33 = vld [vmem:[%s11411_s4 + $0x664] ss:$8 sps:$4 sm:$0xff]  }
 0x1ad   : > { %7782 = vmatpush1.bf16.msra.mxu0 %v10161_v34  ;;  %7127 = vmatprep.subr.bf16.mxu1 %v10166_v35  ;;  %v10241_v34 = vld [vmem:[%s11411_s4 + $0x1664] ss:$8 sps:$4 sm:$0xff]   ;;  %v10236_v35 = vld [vmem:[%s11411_s4 + $0x660] ss:$8 sps:$4 sm:$0xff]  }
 0x1ae   : > { %7783 = vmatprep.subr.bf16.mxu0 %v10169_v36  ;;  %v10239_v36 = vld [vmem:[%s11411_s4 + $0x1660] ss:$8 sps:$4 sm:$0xff]  }
 0x1b0   : > { %7128 = vmatpush1.bf16.msra.mxu1 %v10164_v18  ;;  %v10244_v18 = vld [vmem:[%s11411_s4 + $0x674] ss:$8 sps:$4 sm:$0xff]  }
 0x1b1   : > { %7784 = vmatpush1.bf16.msra.mxu0 %v10167_v38  ;;  %7129 = vmatprep.subr.bf16.mxu1 %v10172_v43  ;;  %v10247_v38 = vld [vmem:[%s11411_s4 + $0x1674] ss:$8 sps:$4 sm:$0xff]   ;;  %v10242_v43 = vld [vmem:[%s11411_s4 + $0x670] ss:$8 sps:$4 sm:$0xff]  }
 0x1b2   : > { %7785 = vmatprep.subr.bf16.mxu0 %v10175_v45  ;;  %v10245_v45 = vld [vmem:[%s11411_s4 + $0x1670] ss:$8 sps:$4 sm:$0xff]  }
 0x1b4   : > { %7130 = vmatpush1.bf16.msra.mxu1 %v10170_v25  ;;  %v10250_v25 = vld [vmem:[%s11411_s4 + $0x684] ss:$8 sps:$4 sm:$0xff]  }
 0x1b5   : > { %7786 = vmatpush1.bf16.msra.mxu0 %v10173_v46  ;;  %7131 = vmatprep.subr.bf16.mxu1 %v10178_v26  ;;  %v10253_v46 = vld [vmem:[%s11411_s4 + $0x1684] ss:$8 sps:$4 sm:$0xff]   ;;  %v10248_v26 = vld [vmem:[%s11411_s4 + $0x680] ss:$8 sps:$4 sm:$0xff]  }
 0x1b6   : > { %7787 = vmatprep.subr.bf16.mxu0 %v10181_v47  ;;  %v10251_v47 = vld [vmem:[%s11411_s4 + $0x1680] ss:$8 sps:$4 sm:$0xff]  }
 0x1b8   : > { %7132 = vmatpush1.bf16.msra.mxu1 %v10176_v37  ;;  %v10256_v37 = vld [vmem:[%s11411_s4 + $0x694] ss:$8 sps:$4 sm:$0xff]  }
 0x1b9   : > { %7788 = vmatpush1.bf16.msra.mxu0 %v10179_v48  ;;  %7133 = vmatprep.subr.bf16.mxu1 %v10184_v17  ;;  %v10259_v48 = vld [vmem:[%s11411_s4 + $0x1694] ss:$8 sps:$4 sm:$0xff]   ;;  %v10254_v17 = vld [vmem:[%s11411_s4 + $0x690] ss:$8 sps:$4 sm:$0xff]  }
 0x1ba   : > { %7789 = vmatprep.subr.bf16.mxu0 %v10187_v49  ;;  %v10257_v49 = vld [vmem:[%s11411_s4 + $0x1690] ss:$8 sps:$4 sm:$0xff]  }
 0x1bc   : > { %7134 = vmatpush1.bf16.msra.mxu1 %v10182_v51  ;;  %v10262_v51 = vld [vmem:[%s11411_s4 + $0x6a4] ss:$8 sps:$4 sm:$0xff]  }
 0x1bd   : > { %7790 = vmatpush1.bf16.msra.mxu0 %v10185_v52  ;;  %7135 = vmatprep.subr.bf16.mxu1 %v10190_v54  ;;  %v10265_v52 = vld [vmem:[%s11411_s4 + $0x16a4] ss:$8 sps:$4 sm:$0xff]   ;;  %v10260_v54 = vld [vmem:[%s11411_s4 + $0x6a0] ss:$8 sps:$4 sm:$0xff]  }
 0x1be   : > { %7791 = vmatprep.subr.bf16.mxu0 %v10193_v55  ;;  %v10263_v55 = vld [vmem:[%s11411_s4 + $0x16a0] ss:$8 sps:$4 sm:$0xff]  }
 0x1c0   : > { %7136 = vmatpush1.bf16.msra.mxu1 %v10188_v63  ;;  %v10274_v63 = vld [vmem:[%s11411_s4 + $0x6c4] ss:$8 sps:$4 sm:$0xff]  }
 0x1c1   : > { %7792 = vmatpush1.bf16.msra.mxu0 %v10191_v0  ;;  %7137 = vmatprep.subr.bf16.mxu1 %v10196_v41  ;;  %v10277_v0 = vld [vmem:[%s11411_s4 + $0x16c4] ss:$8 sps:$4 sm:$0xff]   ;;  %v10272_v41 = vld [vmem:[%s11411_s4 + $0x6c0] ss:$8 sps:$4 sm:$0xff]  }
 0x1c2   : > { %7793 = vmatprep.subr.bf16.mxu0 %v10199_v1  ;;  %v10275_v1 = vld [vmem:[%s11411_s4 + $0x16c0] ss:$8 sps:$4 sm:$0xff]  }
 0x1c4   : > { %7138 = vmatpush1.bf16.msra.mxu1 %v10194_v56  ;;  %v10280_v56 = vld [vmem:[%s11411_s4 + $0x6d4] ss:$8 sps:$4 sm:$0xff]  }
 0x1c5   : > { %7794 = vmatpush1.bf16.msra.mxu0 %v10197_v3  ;;  %7148 = vmatprep.subr.bf16.mxu1 %v10202_v58  ;;  %v10283_v3 = vld [vmem:[%s11411_s4 + $0x16d4] ss:$8 sps:$4 sm:$0xff]   ;;  %v10278_v58 = vld [vmem:[%s11411_s4 + $0x6d0] ss:$8 sps:$4 sm:$0xff]  }
 0x1c6   : > { %7804 = vmatprep.subr.bf16.mxu0 %v10205_v4  ;;  %v10281_v4 = vld [vmem:[%s11411_s4 + $0x16d0] ss:$8 sps:$4 sm:$0xff]  }
 0x1c7   : > { %7140 = vmatmul.mubr.bf16.vlgmr.msra.gmra.mrb[0].mxu1 %v1420_v7  ;;  %v10284_v7 = vld [vmem:[%s11411_s4 + $0x6e0] ss:$8 sps:$4 sm:$0xff]  }
 0x1c8   : > { %7796 = vmatmul.mubr.bf16.vlgmr.msra.gmra.mrb[0].mxu0 %v1616_v8  ;;  %7149 = vmatpush1.bf16.msra.mxu1 %v10200_v9  ;;  %v10287_v8 = vld [vmem:[%s11411_s4 + $0x16e0] ss:$8 sps:$4 sm:$0xff]   ;;  %v10292_v9 = vld [vmem:[%s11411_s4 + $0x6f4] ss:$8 sps:$4 sm:$0xff]  }
 0x1c9   : > { %7805 = vmatpush1.bf16.msra.mxu0 %v10203_v10  ;;  %7150 = vmatprep.subr.bf16.mxu1 %v10208_v11  ;;  %v10295_v10 = vld [vmem:[%s11411_s4 + $0x16f4] ss:$8 sps:$4 sm:$0xff]   ;;  %v10290_v11 = vld [vmem:[%s11411_s4 + $0x6f0] ss:$8 sps:$4 sm:$0xff]  }
 0x1ca   : > { %7806 = vmatprep.subr.bf16.mxu0 %v10211_v12  ;;  %7180 = vmatprep.mubr.bf16.mxu1 %v11946_v13  ;;  %v10293_v12 = vld [vmem:[%s11411_s4 + $0x16f0] ss:$8 sps:$4 sm:$0xff]  }
 0x1cb   : > { %7836 = vmatprep.mubr.bf16.mxu0 %v11949_v59 }
 0x1cc   : > { %7151 = vmatpush1.bf16.msra.mxu1 %v10206_v60  ;;  %v10299_v60 = vld [vmem:[%s11411_s4 + $0x704] ss:$8 sps:$4 sm:$0xff]  }
 0x1cd   : > { %7807 = vmatpush1.bf16.msra.mxu0 %v10209_v14  ;;  %7152 = vmatprep.subr.bf16.mxu1 %v10214_v15  ;;  %v10303_v14 = vld [vmem:[%s11411_s4 + $0x1704] ss:$8 sps:$4 sm:$0xff]   ;;  %v12015_v15 = vrot.slane %v11924_v42, %v11485_v50  ;;  %v1423_v42 = vcombine.high %v11946_v13, %v11946_v13 }
 0x1ce   : > { %7808 = vmatprep.subr.bf16.mxu0 %v10217_v16  ;;  %v12019_v16 = vrot.slane %v11927_v2, %v11485_v50  ;;  %v10304_v2 = vld [vmem:[%s11411_s4 + $0x710] ss:$8 sps:$4 sm:$0xff]   ;;  %v10312_v13 = vld [vmem:[%s11411_s4 + $0x724] ss:$8 sps:$4 sm:$0xff]  }
 0x1d0   : > { %7153 = vmatpush1.bf16.msra.mxu1 %v10212_v19  ;;  %v10297_v19 = vld [vmem:[%s11411_s4 + $0x700] ss:$8 sps:$4 sm:$0xff]  }
 0x1d1   : > { %7809 = vmatpush1.bf16.msra.mxu0 %v10215_v20  ;;  %7154 = vmatprep.subr.bf16.mxu1 %v10220_v21  ;;  %v10301_v20 = vld [vmem:[%s11411_s4 + $0x1700] ss:$8 sps:$4 sm:$0xff]   ;;  %v10306_v21 = vld [vmem:[%s11411_s4 + $0x714] ss:$8 sps:$4 sm:$0xff]  }
 0x1d2   : > { %7810 = vmatprep.subr.bf16.mxu0 %v10223_v22  ;;  %v10309_v22 = vld [vmem:[%s11411_s4 + $0x1714] ss:$8 sps:$4 sm:$0xff]  }
 0x1d4   : > { %7155 = vmatpush1.bf16.msra.mxu1 %v10218_v23  ;;  %v1619_v23 = vcombine.high %v11949_v59, %v11949_v59  ;;  %v10310_v59 = vld [vmem:[%s11411_s4 + $0x720] ss:$8 sps:$4 sm:$0xff]  }
 0x1d5   : > { %7811 = vmatpush1.bf16.msra.mxu0 %v10221_v24  ;;  %7156 = vmatprep.subr.bf16.mxu1 %v10226_v53  ;;  %v10307_v24 = vld [vmem:[%s11411_s4 + $0x1710] ss:$8 sps:$4 sm:$0xff]   ;;  %v10315_v53 = vld [vmem:[%s11411_s4 + $0x1724] ss:$8 sps:$4 sm:$0xff]  }
 0x1d6   : > { %7812 = vmatprep.subr.bf16.mxu0 %v10229_v57  ;;  %v10313_v57 = vld [vmem:[%s11411_s4 + $0x1720] ss:$8 sps:$4 sm:$0xff]  }
 0x1d8   : > { %7157 = vmatpush1.bf16.msra.mxu1 %v10224_v27  ;;  %v10318_v27 = vld [vmem:[%s11411_s4 + $0x734] ss:$8 sps:$4 sm:$0xff]  }
 0x1d9   : > { %7813 = vmatpush1.bf16.msra.mxu0 %v10227_v28  ;;  %7158 = vmatprep.subr.bf16.mxu1 %v10232_v29  ;;  %v10321_v28 = vld [vmem:[%s11411_s4 + $0x1734] ss:$8 sps:$4 sm:$0xff]   ;;  %v10316_v29 = vld [vmem:[%s11411_s4 + $0x730] ss:$8 sps:$4 sm:$0xff]  }
 0x1da   : > { %7814 = vmatprep.subr.bf16.mxu0 %v10235_v30  ;;  %v10319_v30 = vld [vmem:[%s11411_s4 + $0x1730] ss:$8 sps:$4 sm:$0xff]  }
 0x1dc   : > { %7159 = vmatpush1.bf16.msra.mxu1 %v10230_v31  ;;  %v10324_v31 = vld [vmem:[%s11411_s4 + $0x744] ss:$8 sps:$4 sm:$0xff]  }
 0x1dd   : > { %7815 = vmatpush1.bf16.msra.mxu0 %v10233_v32  ;;  %7160 = vmatprep.subr.bf16.mxu1 %v10238_v33  ;;  %v10327_v32 = vld [vmem:[%s11411_s4 + $0x1744] ss:$8 sps:$4 sm:$0xff]   ;;  %v10322_v33 = vld [vmem:[%s11411_s4 + $0x740] ss:$8 sps:$4 sm:$0xff]  }
 0x1de   : > { %7816 = vmatprep.subr.bf16.mxu0 %v10241_v34  ;;  %v10325_v34 = vld [vmem:[%s11411_s4 + $0x1740] ss:$8 sps:$4 sm:$0xff]  }
 0x1e0   : > { %7161 = vmatpush1.bf16.msra.mxu1 %v10236_v35  ;;  %v10330_v35 = vld [vmem:[%s11411_s4 + $0x754] ss:$8 sps:$4 sm:$0xff]  }
 0x1e1   : > { %7817 = vmatpush1.bf16.msra.mxu0 %v10239_v36  ;;  %7162 = vmatprep.subr.bf16.mxu1 %v10244_v18  ;;  %v10333_v36 = vld [vmem:[%s11411_s4 + $0x1754] ss:$8 sps:$4 sm:$0xff]   ;;  %v10328_v18 = vld [vmem:[%s11411_s4 + $0x750] ss:$8 sps:$4 sm:$0xff]  }
 0x1e2   : > { %7818 = vmatprep.subr.bf16.mxu0 %v10247_v38  ;;  %v10331_v38 = vld [vmem:[%s11411_s4 + $0x1750] ss:$8 sps:$4 sm:$0xff]  }
 0x1e4   : > { %7163 = vmatpush1.bf16.msra.mxu1 %v10242_v43  ;;  %v10336_v43 = vld [vmem:[%s11411_s4 + $0x764] ss:$8 sps:$4 sm:$0xff]  }
 0x1e5   : > { %7819 = vmatpush1.bf16.msra.mxu0 %v10245_v45  ;;  %7164 = vmatprep.subr.bf16.mxu1 %v10250_v25  ;;  %v10339_v45 = vld [vmem:[%s11411_s4 + $0x1764] ss:$8 sps:$4 sm:$0xff]   ;;  %v10334_v25 = vld [vmem:[%s11411_s4 + $0x760] ss:$8 sps:$4 sm:$0xff]  }
 0x1e6   : > { %7820 = vmatprep.subr.bf16.mxu0 %v10253_v46  ;;  %v10337_v46 = vld [vmem:[%s11411_s4 + $0x1760] ss:$8 sps:$4 sm:$0xff]  }
 0x1e8   : > { %7165 = vmatpush1.bf16.msra.mxu1 %v10248_v26  ;;  %v10342_v26 = vld [vmem:[%s11411_s4 + $0x774] ss:$8 sps:$4 sm:$0xff]  }
 0x1e9   : > { %7821 = vmatpush1.bf16.msra.mxu0 %v10251_v47  ;;  %7166 = vmatprep.subr.bf16.mxu1 %v10256_v37  ;;  %v10345_v47 = vld [vmem:[%s11411_s4 + $0x1774] ss:$8 sps:$4 sm:$0xff]   ;;  %v10340_v37 = vld [vmem:[%s11411_s4 + $0x770] ss:$8 sps:$4 sm:$0xff]  }
 0x1ea   : > { %7822 = vmatprep.subr.bf16.mxu0 %v10259_v48  ;;  %v10343_v48 = vld [vmem:[%s11411_s4 + $0x1770] ss:$8 sps:$4 sm:$0xff]  }
 0x1ec   : > { %7167 = vmatpush1.bf16.msra.mxu1 %v10254_v17  ;;  %v10348_v17 = vld [vmem:[%s11411_s4 + $0x784] ss:$8 sps:$4 sm:$0xff]  }
 0x1ed   : > { %7823 = vmatpush1.bf16.msra.mxu0 %v10257_v49  ;;  %7168 = vmatprep.subr.bf16.mxu1 %v10262_v51  ;;  %v10351_v49 = vld [vmem:[%s11411_s4 + $0x1784] ss:$8 sps:$4 sm:$0xff]   ;;  %v10346_v51 = vld [vmem:[%s11411_s4 + $0x780] ss:$8 sps:$4 sm:$0xff]  }
 0x1ee   : > { %7824 = vmatprep.subr.bf16.mxu0 %v10265_v52  ;;  %v10349_v52 = vld [vmem:[%s11411_s4 + $0x1780] ss:$8 sps:$4 sm:$0xff]  }
 0x1f0   : > { %7169 = vmatpush1.bf16.msra.mxu1 %v10260_v54  ;;  %v10354_v54 = vld [vmem:[%s11411_s4 + $0x794] ss:$8 sps:$4 sm:$0xff]  }
 0x1f1   : > { %7825 = vmatpush1.bf16.msra.mxu0 %v10263_v55  ;;  %7170 = vmatprep.subr.bf16.mxu1 %v10268_v39  ;;  %v10357_v55 = vld [vmem:[%s11411_s4 + $0x1794] ss:$8 sps:$4 sm:$0xff]   ;;  %v10352_v39 = vld [vmem:[%s11411_s4 + $0x790] ss:$8 sps:$4 sm:$0xff]  }
 0x1f2   : > { %7826 = vmatprep.subr.bf16.mxu0 %v10271_v40  ;;  %v10355_v40 = vld [vmem:[%s11411_s4 + $0x1790] ss:$8 sps:$4 sm:$0xff]  }
 0x1f4   : > { %7171 = vmatpush1.bf16.msra.mxu1 %v10266_v61  ;;  %v10360_v61 = vld [vmem:[%s11411_s4 + $0x7a4] ss:$8 sps:$4 sm:$0xff]  }
 0x1f5   : > { %7827 = vmatpush1.bf16.msra.mxu0 %v10269_v62  ;;  %7172 = vmatprep.subr.bf16.mxu1 %v10274_v63  ;;  %v10363_v62 = vld [vmem:[%s11411_s4 + $0x17a4] ss:$8 sps:$4 sm:$0xff]   ;;  %v10358_v63 = vld [vmem:[%s11411_s4 + $0x7a0] ss:$8 sps:$4 sm:$0xff]  }
 0x1f6   : > { %7828 = vmatprep.subr.bf16.mxu0 %v10277_v0  ;;  %v10361_v0 = vld [vmem:[%s11411_s4 + $0x17a0] ss:$8 sps:$4 sm:$0xff]  }
 0x1f8   : > { %7173 = vmatpush1.bf16.msra.mxu1 %v10272_v41  ;;  %v10366_v41 = vld [vmem:[%s11411_s4 + $0x7b4] ss:$8 sps:$4 sm:$0xff]  }
 0x1f9   : > { %7829 = vmatpush1.bf16.msra.mxu0 %v10275_v1  ;;  %7174 = vmatprep.subr.bf16.mxu1 %v10280_v56  ;;  %v10369_v1 = vld [vmem:[%s11411_s4 + $0x17b4] ss:$8 sps:$4 sm:$0xff]   ;;  %v10364_v56 = vld [vmem:[%s11411_s4 + $0x7b0] ss:$8 sps:$4 sm:$0xff]  }
 0x1fa   : > { %7830 = vmatprep.subr.bf16.mxu0 %v10283_v3  ;;  %v10367_v3 = vld [vmem:[%s11411_s4 + $0x17b0] ss:$8 sps:$4 sm:$0xff]  }
 0x1fc   : > { %7175 = vmatpush1.bf16.msra.mxu1 %v10278_v58  ;;  %v10372_v58 = vld [vmem:[%s11411_s4 + $0x7c4] ss:$8 sps:$4 sm:$0xff]  }
 0x1fd   : > { %7831 = vmatpush1.bf16.msra.mxu0 %v10281_v4  ;;  %7176 = vmatprep.subr.bf16.mxu1 %v10286_v5  ;;  %v10375_v4 = vld [vmem:[%s11411_s4 + $0x17c4] ss:$8 sps:$4 sm:$0xff]   ;;  %v10370_v5 = vld [vmem:[%s11411_s4 + $0x7c0] ss:$8 sps:$4 sm:$0xff]  }
 0x1fe   : > { %7832 = vmatprep.subr.bf16.mxu0 %v10289_v6  ;;  %v10373_v6 = vld [vmem:[%s11411_s4 + $0x17c0] ss:$8 sps:$4 sm:$0xff]  }
 0x200   : > { %7177 = vmatpush1.bf16.msra.mxu1 %v10284_v7  ;;  %v10378_v7 = vld [vmem:[%s11411_s4 + $0x7d4] ss:$8 sps:$4 sm:$0xff]  }
 0x201   : > { %7833 = vmatpush1.bf16.msra.mxu0 %v10287_v8  ;;  %7178 = vmatprep.subr.bf16.mxu1 %v10292_v9  ;;  %v10381_v8 = vld [vmem:[%s11411_s4 + $0x17d4] ss:$8 sps:$4 sm:$0xff]   ;;  %v10376_v9 = vld [vmem:[%s11411_s4 + $0x7d0] ss:$8 sps:$4 sm:$0xff]  }
 0x202   : > { %7834 = vmatprep.subr.bf16.mxu0 %v10295_v10  ;;  %v10379_v10 = vld [vmem:[%s11411_s4 + $0x17d0] ss:$8 sps:$4 sm:$0xff]  }
 0x204   : > { %7179 = vmatpush1.bf16.msra.mxu1 %v10290_v11  ;;  %v10384_v11 = vld [vmem:[%s11411_s4 + $0x7e4] ss:$8 sps:$4 sm:$0xff]  }
 0x205   : > { %7835 = vmatpush1.bf16.msra.mxu0 %v10293_v12  ;;  %7189 = vmatprep.subr.bf16.mxu1 %v10299_v60  ;;  %v10387_v12 = vld [vmem:[%s11411_s4 + $0x17e4] ss:$8 sps:$4 sm:$0xff]   ;;  %v12084_v60 = vld [vmem:[%s11424_s6 + $0x10] sm:$0xff] }
 0x206   : > { %7845 = vmatprep.subr.bf16.mxu0 %v10303_v14  ;;  %v12087_v14 = vld [vmem:[%s11424_s6 + $0x30] sm:$0xff] }
 0x207   : > { %7181 = vmatmul.mubr.bf16.vlgmr.msra.gmra.mrb[0].mxu1 %v12015_v15 }
 0x208   : > { %7837 = vmatmul.mubr.bf16.vlgmr.msra.gmra.mrb[0].mxu0 %v12019_v16  ;;  %7190 = vmatpush1.bf16.msra.mxu1 %v10297_v19  ;;  %v10382_v19 = vld [vmem:[%s11411_s4 + $0x7e0] ss:$8 sps:$4 sm:$0xff]  }
 0x209   : > { %7846 = vmatpush1.bf16.msra.mxu0 %v10301_v20  ;;  %7191 = vmatprep.subr.bf16.mxu1 %v10306_v21  ;;  %v10385_v20 = vld [vmem:[%s11411_s4 + $0x17e0] ss:$8 sps:$4 sm:$0xff]   ;;  %v10390_v21 = vld [vmem:[%s11411_s4 + $0x7f4] ss:$8 sps:$4 sm:$0xff]  }
 0x20a   : > { %7847 = vmatprep.subr.bf16.mxu0 %v10309_v22  ;;  %7221 = vmatprep.mubr.bf16.mxu1 %v1423_v42  ;;  %v10393_v22 = vld [vmem:[%s11411_s4 + $0x17f4] ss:$8 sps:$4 sm:$0xff]   ;;  %v12095_v42 = vrot.slane %v12084_v60, %v11485_v50 }
 0x20b   : > { %7877 = vmatprep.mubr.bf16.mxu0 %v1619_v23  ;;  %v12099_v23 = vrot.slane %v12087_v14, %v11485_v50 }
 0x20c   : > { %7192 = vmatpush1.bf16.msra.mxu1 %v10304_v2  ;;  %v10388_v2 = vld [vmem:[%s11411_s4 + $0x7f0] ss:$8 sps:$4 sm:$0xff]  }
 0x20d   : > { %7848 = vmatpush1.bf16.msra.mxu0 %v10307_v24  ;;  %7193 = vmatprep.subr.bf16.mxu1 %v10312_v13  ;;  %v10391_v24 = vld [vmem:[%s11411_s4 + $0x17f0] ss:$8 sps:$4 sm:$0xff]   ;;  %v10396_v13 = vld [vmem:[%s11411_s4 + $0x804] ss:$8 sps:$4 sm:$0xff]  }
 0x20e   : > { %7849 = vmatprep.subr.bf16.mxu0 %v10315_v53  ;;  %v10399_v53 = vld [vmem:[%s11411_s4 + $0x1804] ss:$8 sps:$4 sm:$0xff]  }
 0x210   : > { %7194 = vmatpush1.bf16.msra.mxu1 %v10310_v59  ;;  %v1439_v59 = vcombine.high %v12095_v42, %v12095_v42 }
 0x211   : > { %7850 = vmatpush1.bf16.msra.mxu0 %v10313_v57  ;;  %7195 = vmatprep.subr.bf16.mxu1 %v10318_v27  ;;  %v1635_v57 = vcombine.high %v12099_v23, %v12099_v23  ;;  %v1421_v27 = vcombine.high %v12015_v15, %v12015_v15 }
 0x212   : > { %7851 = vmatprep.subr.bf16.mxu0 %v10321_v28  ;;  %v1617_v28 = vcombine.high %v12019_v16, %v12019_v16  ;;  %v10400_v16 = vld [vmem:[%s11411_s4 + $0x810] ss:$8 sps:$4 sm:$0xff]  }
 0x213   : > { %v12121_v15 = vrot.slane %v1635_v57, %v11485_v50  ;;  %v10475_v57 = vld [vmem:[%s11411_s4 + $0x18d0] ss:$8 sps:$4 sm:$0xff]  }
 0x214   : > { %7196 = vmatpush1.bf16.msra.mxu1 %v10316_v29  ;;  %v10394_v29 = vld [vmem:[%s11411_s4 + $0x800] ss:$8 sps:$4 sm:$0xff]  }
 0x215   : > { %7852 = vmatpush1.bf16.msra.mxu0 %v10319_v30  ;;  %7197 = vmatprep.subr.bf16.mxu1 %v10324_v31  ;;  %v10397_v30 = vld [vmem:[%s11411_s4 + $0x1800] ss:$8 sps:$4 sm:$0xff]   ;;  %v10402_v31 = vld [vmem:[%s11411_s4 + $0x814] ss:$8 sps:$4 sm:$0xff]  }
 0x216   : > { %7853 = vmatprep.subr.bf16.mxu0 %v10327_v32  ;;  %v10405_v32 = vld [vmem:[%s11411_s4 + $0x1814] ss:$8 sps:$4 sm:$0xff]  }
 0x218   : > { %7198 = vmatpush1.bf16.msra.mxu1 %v10322_v33  ;;  %v12118_v33 = vrot.slane %v1439_v59, %v11485_v50  ;;  %v10472_v59 = vld [vmem:[%s11411_s4 + $0x8d0] ss:$8 sps:$4 sm:$0xff]  }
 0x219   : > { %7854 = vmatpush1.bf16.msra.mxu0 %v10325_v34  ;;  %7199 = vmatprep.subr.bf16.mxu1 %v10330_v35  ;;  %v10403_v34 = vld [vmem:[%s11411_s4 + $0x1810] ss:$8 sps:$4 sm:$0xff]   ;;  %v10408_v35 = vld [vmem:[%s11411_s4 + $0x824] ss:$8 sps:$4 sm:$0xff]  }
 0x21a   : > { %7855 = vmatprep.subr.bf16.mxu0 %v10333_v36  ;;  %v10411_v36 = vld [vmem:[%s11411_s4 + $0x1824] ss:$8 sps:$4 sm:$0xff]  }
 0x21c   : > { %7200 = vmatpush1.bf16.msra.mxu1 %v10328_v18  ;;  %v10406_v18 = vld [vmem:[%s11411_s4 + $0x820] ss:$8 sps:$4 sm:$0xff]  }
 0x21d   : > { %7856 = vmatpush1.bf16.msra.mxu0 %v10331_v38  ;;  %7201 = vmatprep.subr.bf16.mxu1 %v10336_v43  ;;  %v10409_v38 = vld [vmem:[%s11411_s4 + $0x1820] ss:$8 sps:$4 sm:$0xff]   ;;  %v10414_v43 = vld [vmem:[%s11411_s4 + $0x834] ss:$8 sps:$4 sm:$0xff]  }
 0x21e   : > { %7857 = vmatprep.subr.bf16.mxu0 %v10339_v45  ;;  %v10417_v45 = vld [vmem:[%s11411_s4 + $0x1834] ss:$8 sps:$4 sm:$0xff]  }
 0x220   : > { %7202 = vmatpush1.bf16.msra.mxu1 %v10334_v25  ;;  %v10412_v25 = vld [vmem:[%s11411_s4 + $0x830] ss:$8 sps:$4 sm:$0xff]  }
 0x221   : > { %7858 = vmatpush1.bf16.msra.mxu0 %v10337_v46  ;;  %7203 = vmatprep.subr.bf16.mxu1 %v10342_v26  ;;  %v10415_v46 = vld [vmem:[%s11411_s4 + $0x1830] ss:$8 sps:$4 sm:$0xff]   ;;  %v10420_v26 = vld [vmem:[%s11411_s4 + $0x844] ss:$8 sps:$4 sm:$0xff]  }
 0x222   : > { %7859 = vmatprep.subr.bf16.mxu0 %v10345_v47  ;;  %v10423_v47 = vld [vmem:[%s11411_s4 + $0x1844] ss:$8 sps:$4 sm:$0xff]  }
 0x224   : > { %7204 = vmatpush1.bf16.msra.mxu1 %v10340_v37  ;;  %v10418_v37 = vld [vmem:[%s11411_s4 + $0x840] ss:$8 sps:$4 sm:$0xff]  }
 0x225   : > { %7860 = vmatpush1.bf16.msra.mxu0 %v10343_v48  ;;  %7205 = vmatprep.subr.bf16.mxu1 %v10348_v17  ;;  %v10421_v48 = vld [vmem:[%s11411_s4 + $0x1840] ss:$8 sps:$4 sm:$0xff]   ;;  %v10426_v17 = vld [vmem:[%s11411_s4 + $0x854] ss:$8 sps:$4 sm:$0xff]  }
 0x226   : > { %7861 = vmatprep.subr.bf16.mxu0 %v10351_v49  ;;  %v10429_v49 = vld [vmem:[%s11411_s4 + $0x1854] ss:$8 sps:$4 sm:$0xff]  }
 0x228   : > { %7206 = vmatpush1.bf16.msra.mxu1 %v10346_v51  ;;  %v10424_v51 = vld [vmem:[%s11411_s4 + $0x850] ss:$8 sps:$4 sm:$0xff]  }
 0x229   : > { %7862 = vmatpush1.bf16.msra.mxu0 %v10349_v52  ;;  %7207 = vmatprep.subr.bf16.mxu1 %v10354_v54  ;;  %v10427_v52 = vld [vmem:[%s11411_s4 + $0x1850] ss:$8 sps:$4 sm:$0xff]   ;;  %v10432_v54 = vld [vmem:[%s11411_s4 + $0x864] ss:$8 sps:$4 sm:$0xff]  }
 0x22a   : > { %7863 = vmatprep.subr.bf16.mxu0 %v10357_v55  ;;  %v10435_v55 = vld [vmem:[%s11411_s4 + $0x1864] ss:$8 sps:$4 sm:$0xff]  }
 0x22c   : > { %7208 = vmatpush1.bf16.msra.mxu1 %v10352_v39  ;;  %v10430_v39 = vld [vmem:[%s11411_s4 + $0x860] ss:$8 sps:$4 sm:$0xff]  }
 0x22d   : > { %7864 = vmatpush1.bf16.msra.mxu0 %v10355_v40  ;;  %7209 = vmatprep.subr.bf16.mxu1 %v10360_v61  ;;  %v10433_v40 = vld [vmem:[%s11411_s4 + $0x1860] ss:$8 sps:$4 sm:$0xff]   ;;  %v10438_v61 = vld [vmem:[%s11411_s4 + $0x874] ss:$8 sps:$4 sm:$0xff]  }
 0x22e   : > { %7865 = vmatprep.subr.bf16.mxu0 %v10363_v62  ;;  %v10441_v62 = vld [vmem:[%s11411_s4 + $0x1874] ss:$8 sps:$4 sm:$0xff]  }
 0x230   : > { %7210 = vmatpush1.bf16.msra.mxu1 %v10358_v63  ;;  %v10436_v63 = vld [vmem:[%s11411_s4 + $0x870] ss:$8 sps:$4 sm:$0xff]  }
 0x231   : > { %7866 = vmatpush1.bf16.msra.mxu0 %v10361_v0  ;;  %7211 = vmatprep.subr.bf16.mxu1 %v10366_v41  ;;  %v10439_v0 = vld [vmem:[%s11411_s4 + $0x1870] ss:$8 sps:$4 sm:$0xff]   ;;  %v10444_v41 = vld [vmem:[%s11411_s4 + $0x884] ss:$8 sps:$4 sm:$0xff]  }
 0x232   : > { %7867 = vmatprep.subr.bf16.mxu0 %v10369_v1  ;;  %v10447_v1 = vld [vmem:[%s11411_s4 + $0x1884] ss:$8 sps:$4 sm:$0xff]  }
 0x234   : > { %7212 = vmatpush1.bf16.msra.mxu1 %v10364_v56  ;;  %v10442_v56 = vld [vmem:[%s11411_s4 + $0x880] ss:$8 sps:$4 sm:$0xff]  }
 0x235   : > { %7868 = vmatpush1.bf16.msra.mxu0 %v10367_v3  ;;  %7213 = vmatprep.subr.bf16.mxu1 %v10372_v58  ;;  %v10445_v3 = vld [vmem:[%s11411_s4 + $0x1880] ss:$8 sps:$4 sm:$0xff]   ;;  %v10450_v58 = vld [vmem:[%s11411_s4 + $0x894] ss:$8 sps:$4 sm:$0xff]  }
 0x236   : > { %7869 = vmatprep.subr.bf16.mxu0 %v10375_v4  ;;  %v10453_v4 = vld [vmem:[%s11411_s4 + $0x1894] ss:$8 sps:$4 sm:$0xff]  }
 0x238   : > { %7214 = vmatpush1.bf16.msra.mxu1 %v10370_v5  ;;  %v10448_v5 = vld [vmem:[%s11411_s4 + $0x890] ss:$8 sps:$4 sm:$0xff]  }
 0x239   : > { %7870 = vmatpush1.bf16.msra.mxu0 %v10373_v6  ;;  %7215 = vmatprep.subr.bf16.mxu1 %v10378_v7  ;;  %v10451_v6 = vld [vmem:[%s11411_s4 + $0x1890] ss:$8 sps:$4 sm:$0xff]   ;;  %v10456_v7 = vld [vmem:[%s11411_s4 + $0x8a4] ss:$8 sps:$4 sm:$0xff]  }
 0x23a   : > { %7871 = vmatprep.subr.bf16.mxu0 %v10381_v8  ;;  %v10459_v8 = vld [vmem:[%s11411_s4 + $0x18a4] ss:$8 sps:$4 sm:$0xff]  }
 0x23c   : > { %7216 = vmatpush1.bf16.msra.mxu1 %v10376_v9  ;;  %v10454_v9 = vld [vmem:[%s11411_s4 + $0x8a0] ss:$8 sps:$4 sm:$0xff]  }
 0x23d   : > { %7872 = vmatpush1.bf16.msra.mxu0 %v10379_v10  ;;  %7217 = vmatprep.subr.bf16.mxu1 %v10384_v11  ;;  %v10457_v10 = vld [vmem:[%s11411_s4 + $0x18a0] ss:$8 sps:$4 sm:$0xff]   ;;  %v10462_v11 = vld [vmem:[%s11411_s4 + $0x8b4] ss:$8 sps:$4 sm:$0xff]  }
 0x23e   : > { %7873 = vmatprep.subr.bf16.mxu0 %v10387_v12  ;;  %v10465_v12 = vld [vmem:[%s11411_s4 + $0x18b4] ss:$8 sps:$4 sm:$0xff]  }
 0x240   : > { %7218 = vmatpush1.bf16.msra.mxu1 %v10382_v19  ;;  %v10460_v19 = vld [vmem:[%s11411_s4 + $0x8b0] ss:$8 sps:$4 sm:$0xff]  }
 0x241   : > { %7874 = vmatpush1.bf16.msra.mxu0 %v10385_v20  ;;  %7219 = vmatprep.subr.bf16.mxu1 %v10390_v21  ;;  %v10463_v20 = vld [vmem:[%s11411_s4 + $0x18b0] ss:$8 sps:$4 sm:$0xff]   ;;  %v10468_v21 = vld [vmem:[%s11411_s4 + $0x8c4] ss:$8 sps:$4 sm:$0xff]  }
 0x242   : > { %7875 = vmatprep.subr.bf16.mxu0 %v10393_v22  ;;  %v10471_v22 = vld [vmem:[%s11411_s4 + $0x18c4] ss:$8 sps:$4 sm:$0xff]  }
 0x244   : > { %7220 = vmatpush1.bf16.msra.mxu1 %v10388_v2  ;;  %v10466_v2 = vld [vmem:[%s11411_s4 + $0x8c0] ss:$8 sps:$4 sm:$0xff]  }
 0x245   : > { %7876 = vmatpush1.bf16.msra.mxu0 %v10391_v24  ;;  %7230 = vmatprep.subr.bf16.mxu1 %v10396_v13  ;;  %v10469_v24 = vld [vmem:[%s11411_s4 + $0x18c0] ss:$8 sps:$4 sm:$0xff]   ;;  %v10474_v13 = vld [vmem:[%s11411_s4 + $0x8d4] ss:$8 sps:$4 sm:$0xff]  }
 0x246   : > { %7886 = vmatprep.subr.bf16.mxu0 %v10399_v53  ;;  %v10477_v53 = vld [vmem:[%s11411_s4 + $0x18d4] ss:$8 sps:$4 sm:$0xff]  }
 0x247   : > { %7222 = vmatmul.mubr.bf16.vlgmr.msra.gmra.mrb[0].mxu1 %v1421_v27  ;;  %v10480_v27 = vld [vmem:[%s11411_s4 + $0x8e4] ss:$8 sps:$4 sm:$0xff]  }
 0x248   : > { %7878 = vmatmul.mubr.bf16.vlgmr.msra.gmra.mrb[0].mxu0 %v1617_v28  ;;  %7231 = vmatpush1.bf16.msra.mxu1 %v10394_v29  ;;  %v10483_v28 = vld [vmem:[%s11411_s4 + $0x18e4] ss:$8 sps:$4 sm:$0xff]   ;;  %v10478_v29 = vld [vmem:[%s11411_s4 + $0x8e0] ss:$8 sps:$4 sm:$0xff]  }
 0x249   : > { %7887 = vmatpush1.bf16.msra.mxu0 %v10397_v30  ;;  %7232 = vmatprep.subr.bf16.mxu1 %v10402_v31  ;;  %v10481_v30 = vld [vmem:[%s11411_s4 + $0x18e0] ss:$8 sps:$4 sm:$0xff]   ;;  %v10486_v31 = vld [vmem:[%s11411_s4 + $0x8f4] ss:$8 sps:$4 sm:$0xff]  }
 0x24a   : > { %7888 = vmatprep.subr.bf16.mxu0 %v10405_v32  ;;  %7262 = vmatprep.mubr.bf16.mxu1 %v12118_v33  ;;  %v10489_v32 = vld [vmem:[%s11411_s4 + $0x18f4] ss:$8 sps:$4 sm:$0xff]  }
 0x24b   : > { %7918 = vmatprep.mubr.bf16.mxu0 %v12121_v15 }
 0x24c   : > { %7233 = vmatpush1.bf16.msra.mxu1 %v10400_v16  ;;  %v10484_v16 = vld [vmem:[%s11411_s4 + $0x8f0] ss:$8 sps:$4 sm:$0xff]  }
 0x24d   : > { %7889 = vmatpush1.bf16.msra.mxu0 %v10403_v34  ;;  %7234 = vmatprep.subr.bf16.mxu1 %v10408_v35  ;;  %v10487_v34 = vld [vmem:[%s11411_s4 + $0x18f0] ss:$8 sps:$4 sm:$0xff]   ;;  %v10492_v35 = vld [vmem:[%s11411_s4 + $0x904] ss:$8 sps:$4 sm:$0xff]  }
 0x24e   : > { %7890 = vmatprep.subr.bf16.mxu0 %v10411_v36  ;;  %v10495_v36 = vld [vmem:[%s11411_s4 + $0x1904] ss:$8 sps:$4 sm:$0xff]  }
 0x250   : > { %7235 = vmatpush1.bf16.msra.mxu1 %v10406_v18  ;;  %v12187_v18 = vrot.slane %v12095_v42, %v11485_v50  ;;  %v1471_v42 = vcombine.high %v12118_v33, %v12118_v33  ;;  %v10504_v33 = vld [vmem:[%s11411_s4 + $0x924] ss:$8 sps:$4 sm:$0xff]  }
 0x251   : > { %7891 = vmatpush1.bf16.msra.mxu0 %v10409_v38  ;;  %7236 = vmatprep.subr.bf16.mxu1 %v10414_v43  ;;  %v12191_v38 = vrot.slane %v12099_v23, %v11485_v50  ;;  %v10490_v43 = vld [vmem:[%s11411_s4 + $0x900] ss:$8 sps:$4 sm:$0xff]   ;;  %v10496_v23 = vld [vmem:[%s11411_s4 + $0x910] ss:$8 sps:$4 sm:$0xff]  }
 0x252   : > { %7892 = vmatprep.subr.bf16.mxu0 %v10417_v45  ;;  %v10493_v45 = vld [vmem:[%s11411_s4 + $0x1900] ss:$8 sps:$4 sm:$0xff]  }
 0x254   : > { %7237 = vmatpush1.bf16.msra.mxu1 %v10412_v25  ;;  %v10498_v25 = vld [vmem:[%s11411_s4 + $0x914] ss:$8 sps:$4 sm:$0xff]  }
 0x255   : > { %7893 = vmatpush1.bf16.msra.mxu0 %v10415_v46  ;;  %7238 = vmatprep.subr.bf16.mxu1 %v10420_v26  ;;  %v10501_v46 = vld [vmem:[%s11411_s4 + $0x1914] ss:$8 sps:$4 sm:$0xff]   ;;  %v1667_v26 = vcombine.high %v12121_v15, %v12121_v15  ;;  %v10502_v15 = vld [vmem:[%s11411_s4 + $0x920] ss:$8 sps:$4 sm:$0xff]  }
 0x256   : > { %7894 = vmatprep.subr.bf16.mxu0 %v10423_v47  ;;  %v10499_v47 = vld [vmem:[%s11411_s4 + $0x1910] ss:$8 sps:$4 sm:$0xff]  }
 0x258   : > { %7239 = vmatpush1.bf16.msra.mxu1 %v10418_v37  ;;  %v10507_v37 = vld [vmem:[%s11411_s4 + $0x1924] ss:$8 sps:$4 sm:$0xff]  }
 0x259   : > { %7895 = vmatpush1.bf16.msra.mxu0 %v10421_v48  ;;  %7240 = vmatprep.subr.bf16.mxu1 %v10426_v17  ;;  %v10505_v48 = vld [vmem:[%s11411_s4 + $0x1920] ss:$8 sps:$4 sm:$0xff]   ;;  %v10510_v17 = vld [vmem:[%s11411_s4 + $0x934] ss:$8 sps:$4 sm:$0xff]  }
 0x25a   : > { %7896 = vmatprep.subr.bf16.mxu0 %v10429_v49  ;;  %v10513_v49 = vld [vmem:[%s11411_s4 + $0x1934] ss:$8 sps:$4 sm:$0xff]  }
 0x25c   : > { %7241 = vmatpush1.bf16.msra.mxu1 %v10424_v51  ;;  %v10508_v51 = vld [vmem:[%s11411_s4 + $0x930] ss:$8 sps:$4 sm:$0xff]  }
 0x25d   : > { %7897 = vmatpush1.bf16.msra.mxu0 %v10427_v52  ;;  %7242 = vmatprep.subr.bf16.mxu1 %v10432_v54  ;;  %v10511_v52 = vld [vmem:[%s11411_s4 + $0x1930] ss:$8 sps:$4 sm:$0xff]   ;;  %v10516_v54 = vld [vmem:[%s11411_s4 + $0x944] ss:$8 sps:$4 sm:$0xff]  }
 0x25e   : > { %7898 = vmatprep.subr.bf16.mxu0 %v10435_v55  ;;  %v10519_v55 = vld [vmem:[%s11411_s4 + $0x1944] ss:$8 sps:$4 sm:$0xff]  }
 0x260   : > { %7243 = vmatpush1.bf16.msra.mxu1 %v10430_v39  ;;  %v10514_v39 = vld [vmem:[%s11411_s4 + $0x940] ss:$8 sps:$4 sm:$0xff]  }
 0x261   : > { %7899 = vmatpush1.bf16.msra.mxu0 %v10433_v40  ;;  %7244 = vmatprep.subr.bf16.mxu1 %v10438_v61  ;;  %v10517_v40 = vld [vmem:[%s11411_s4 + $0x1940] ss:$8 sps:$4 sm:$0xff]   ;;  %v10522_v61 = vld [vmem:[%s11411_s4 + $0x954] ss:$8 sps:$4 sm:$0xff]  }
 0x262   : > { %7900 = vmatprep.subr.bf16.mxu0 %v10441_v62  ;;  %v10525_v62 = vld [vmem:[%s11411_s4 + $0x1954] ss:$8 sps:$4 sm:$0xff]  }
 0x264   : > { %7245 = vmatpush1.bf16.msra.mxu1 %v10436_v63  ;;  %v10520_v63 = vld [vmem:[%s11411_s4 + $0x950] ss:$8 sps:$4 sm:$0xff]  }
 0x265   : > { %7901 = vmatpush1.bf16.msra.mxu0 %v10439_v0  ;;  %7246 = vmatprep.subr.bf16.mxu1 %v10444_v41  ;;  %v10523_v0 = vld [vmem:[%s11411_s4 + $0x1950] ss:$8 sps:$4 sm:$0xff]   ;;  %v10528_v41 = vld [vmem:[%s11411_s4 + $0x964] ss:$8 sps:$4 sm:$0xff]  }
 0x266   : > { %7902 = vmatprep.subr.bf16.mxu0 %v10447_v1  ;;  %v10531_v1 = vld [vmem:[%s11411_s4 + $0x1964] ss:$8 sps:$4 sm:$0xff]  }
 0x268   : > { %7247 = vmatpush1.bf16.msra.mxu1 %v10442_v56  ;;  %v10526_v56 = vld [vmem:[%s11411_s4 + $0x960] ss:$8 sps:$4 sm:$0xff]  }
 0x269   : > { %7903 = vmatpush1.bf16.msra.mxu0 %v10445_v3  ;;  %7248 = vmatprep.subr.bf16.mxu1 %v10450_v58  ;;  %v10529_v3 = vld [vmem:[%s11411_s4 + $0x1960] ss:$8 sps:$4 sm:$0xff]   ;;  %v10534_v58 = vld [vmem:[%s11411_s4 + $0x974] ss:$8 sps:$4 sm:$0xff]  }
 0x26a   : > { %7904 = vmatprep.subr.bf16.mxu0 %v10453_v4  ;;  %v10537_v4 = vld [vmem:[%s11411_s4 + $0x1974] ss:$8 sps:$4 sm:$0xff]  }
 0x26c   : > { %7249 = vmatpush1.bf16.msra.mxu1 %v10448_v5  ;;  %v10532_v5 = vld [vmem:[%s11411_s4 + $0x970] ss:$8 sps:$4 sm:$0xff]  }
 0x26d   : > { %7905 = vmatpush1.bf16.msra.mxu0 %v10451_v6  ;;  %7250 = vmatprep.subr.bf16.mxu1 %v10456_v7  ;;  %v10535_v6 = vld [vmem:[%s11411_s4 + $0x1970] ss:$8 sps:$4 sm:$0xff]   ;;  %v10540_v7 = vld [vmem:[%s11411_s4 + $0x984] ss:$8 sps:$4 sm:$0xff]  }
 0x26e   : > { %7906 = vmatprep.subr.bf16.mxu0 %v10459_v8  ;;  %v10543_v8 = vld [vmem:[%s11411_s4 + $0x1984] ss:$8 sps:$4 sm:$0xff]  }
 0x270   : > { %7251 = vmatpush1.bf16.msra.mxu1 %v10454_v9  ;;  %v10538_v9 = vld [vmem:[%s11411_s4 + $0x980] ss:$8 sps:$4 sm:$0xff]  }
 0x271   : > { %7907 = vmatpush1.bf16.msra.mxu0 %v10457_v10  ;;  %7252 = vmatprep.subr.bf16.mxu1 %v10462_v11  ;;  %v10541_v10 = vld [vmem:[%s11411_s4 + $0x1980] ss:$8 sps:$4 sm:$0xff]   ;;  %v10546_v11 = vld [vmem:[%s11411_s4 + $0x994] ss:$8 sps:$4 sm:$0xff]  }
 0x272   : > { %7908 = vmatprep.subr.bf16.mxu0 %v10465_v12  ;;  %v10549_v12 = vld [vmem:[%s11411_s4 + $0x1994] ss:$8 sps:$4 sm:$0xff]  }
 0x274   : > { %7253 = vmatpush1.bf16.msra.mxu1 %v10460_v19  ;;  %v10544_v19 = vld [vmem:[%s11411_s4 + $0x990] ss:$8 sps:$4 sm:$0xff]  }
 0x275   : > { %7909 = vmatpush1.bf16.msra.mxu0 %v10463_v20  ;;  %7254 = vmatprep.subr.bf16.mxu1 %v10468_v21  ;;  %v10547_v20 = vld [vmem:[%s11411_s4 + $0x1990] ss:$8 sps:$4 sm:$0xff]   ;;  %v10552_v21 = vld [vmem:[%s11411_s4 + $0x9a4] ss:$8 sps:$4 sm:$0xff]  }
 0x276   : > { %7910 = vmatprep.subr.bf16.mxu0 %v10471_v22  ;;  %v10555_v22 = vld [vmem:[%s11411_s4 + $0x19a4] ss:$8 sps:$4 sm:$0xff]  }
 0x278   : > { %7255 = vmatpush1.bf16.msra.mxu1 %v10466_v2  ;;  %v10550_v2 = vld [vmem:[%s11411_s4 + $0x9a0] ss:$8 sps:$4 sm:$0xff]  }
 0x279   : > { %7911 = vmatpush1.bf16.msra.mxu0 %v10469_v24  ;;  %7256 = vmatprep.subr.bf16.mxu1 %v10474_v13  ;;  %v10553_v24 = vld [vmem:[%s11411_s4 + $0x19a0] ss:$8 sps:$4 sm:$0xff]   ;;  %v10558_v13 = vld [vmem:[%s11411_s4 + $0x9b4] ss:$8 sps:$4 sm:$0xff]  }
 0x27a   : > { %7912 = vmatprep.subr.bf16.mxu0 %v10477_v53  ;;  %v10561_v53 = vld [vmem:[%s11411_s4 + $0x19b4] ss:$8 sps:$4 sm:$0xff]  }
 0x27c   : > { %7257 = vmatpush1.bf16.msra.mxu1 %v10472_v59  ;;  %v10556_v59 = vld [vmem:[%s11411_s4 + $0x9b0] ss:$8 sps:$4 sm:$0xff]  }
 0x27d   : > { %7913 = vmatpush1.bf16.msra.mxu0 %v10475_v57  ;;  %7258 = vmatprep.subr.bf16.mxu1 %v10480_v27  ;;  %v10559_v57 = vld [vmem:[%s11411_s4 + $0x19b0] ss:$8 sps:$4 sm:$0xff]   ;;  %v10564_v27 = vld [vmem:[%s11411_s4 + $0x9c4] ss:$8 sps:$4 sm:$0xff]  }
 0x27e   : > { %7914 = vmatprep.subr.bf16.mxu0 %v10483_v28  ;;  %v10567_v28 = vld [vmem:[%s11411_s4 + $0x19c4] ss:$8 sps:$4 sm:$0xff]  }
 0x280   : > { %7259 = vmatpush1.bf16.msra.mxu1 %v10478_v29  ;;  %v10562_v29 = vld [vmem:[%s11411_s4 + $0x9c0] ss:$8 sps:$4 sm:$0xff]  }
 0x281   : > { %7915 = vmatpush1.bf16.msra.mxu0 %v10481_v30  ;;  %7260 = vmatprep.subr.bf16.mxu1 %v10486_v31  ;;  %v10565_v30 = vld [vmem:[%s11411_s4 + $0x19c0] ss:$8 sps:$4 sm:$0xff]   ;;  %v10570_v31 = vld [vmem:[%s11411_s4 + $0x9d4] ss:$8 sps:$4 sm:$0xff]  }
 0x282   : > { %7916 = vmatprep.subr.bf16.mxu0 %v10489_v32  ;;  %v10573_v32 = vld [vmem:[%s11411_s4 + $0x19d4] ss:$8 sps:$4 sm:$0xff]  }
 0x284   : > { %7261 = vmatpush1.bf16.msra.mxu1 %v10484_v16  ;;  %v10568_v16 = vld [vmem:[%s11411_s4 + $0x9d0] ss:$8 sps:$4 sm:$0xff]  }
 0x285   : > { %7917 = vmatpush1.bf16.msra.mxu0 %v10487_v34  ;;  %7271 = vmatprep.subr.bf16.mxu1 %v10492_v35  ;;  %v10571_v34 = vld [vmem:[%s11411_s4 + $0x19d0] ss:$8 sps:$4 sm:$0xff]   ;;  %v10576_v35 = vld [vmem:[%s11411_s4 + $0x9e4] ss:$8 sps:$4 sm:$0xff]  }
 0x286   : > { %7927 = vmatprep.subr.bf16.mxu0 %v10495_v36  ;;  %v10579_v36 = vld [vmem:[%s11411_s4 + $0x19e4] ss:$8 sps:$4 sm:$0xff]  }
 0x287   : > { %7263 = vmatmul.mubr.bf16.vlgmr.msra.gmra.mrb[0].mxu1 %v12187_v18 }
 0x288   : > { %7919 = vmatmul.mubr.bf16.vlgmr.msra.gmra.mrb[0].mxu0 %v12191_v38  ;;  %7272 = vmatpush1.bf16.msra.mxu1 %v10490_v43  ;;  %v1424_v43 = vcombine.high %v12084_v60, %v12084_v60  ;;  %v10580_v60 = vld [vmem:[%s11411_s4 + $0x9f0] ss:$8 sps:$4 sm:$0xff]  }
 0x289   : > { %7928 = vmatpush1.bf16.msra.mxu0 %v10493_v45  ;;  %7273 = vmatprep.subr.bf16.mxu1 %v10498_v25  ;;  %v1620_v45 = vcombine.high %v12087_v14, %v12087_v14  ;;  %v10574_v25 = vld [vmem:[%s11411_s4 + $0x9e0] ss:$8 sps:$4 sm:$0xff]   ;;  %v10583_v14 = vld [vmem:[%s11411_s4 + $0x19f0] ss:$8 sps:$4 sm:$0xff]  }
 0x28a   : > { %7929 = vmatprep.subr.bf16.mxu0 %v10501_v46  ;;  %7303 = vmatprep.mubr.bf16.mxu1 %v1471_v42  ;;  %v10577_v46 = vld [vmem:[%s11411_s4 + $0x19e0] ss:$8 sps:$4 sm:$0xff]   ;;  %v10582_v42 = vld [vmem:[%s11411_s4 + $0x9f4] ss:$8 sps:$4 sm:$0xff]  }
 0x28b   : > { %7959 = vmatprep.mubr.bf16.mxu0 %v1667_v26  ;;  %v10585_v26 = vld [vmem:[%s11411_s4 + $0x19f4] ss:$8 sps:$4 sm:$0xff]  }
 0x28c   : > { %7274 = vmatpush1.bf16.msra.mxu1 %v10496_v23  ;;  %v12264_v23 = vrot.slane %v1424_v43, %v11485_v50  ;;  %v10652_v43 = vld [vmem:[%s11411_s4 + $0xab0] ss:$8 sps:$4 sm:$0xff]  }
 0x28d   : > { %7930 = vmatpush1.bf16.msra.mxu0 %v10499_v47  ;;  %7275 = vmatprep.subr.bf16.mxu1 %v10504_v33  ;;  %v12267_v47 = vrot.slane %v1620_v45, %v11485_v50  ;;  %v10588_v33 = vld [vmem:[%s11411_s4 + $0xa04] ss:$8 sps:$4 sm:$0xff]   ;;  %v10655_v45 = vld [vmem:[%s11411_s4 + $0x1ab0] ss:$8 sps:$4 sm:$0xff]  }
 0x28e   : > { %7931 = vmatprep.subr.bf16.mxu0 %v10507_v37  ;;  %v10591_v37 = vld [vmem:[%s11411_s4 + $0x1a04] ss:$8 sps:$4 sm:$0xff]  }
 0x290   : > { %7276 = vmatpush1.bf16.msra.mxu1 %v10502_v15  ;;  %v1440_v15 = vcombine.high %v12264_v23, %v12264_v23 }
 0x291   : > { %7932 = vmatpush1.bf16.msra.mxu0 %v10505_v48  ;;  %7277 = vmatprep.subr.bf16.mxu1 %v10510_v17  ;;  %v1636_v48 = vcombine.high %v12267_v47, %v12267_v47  ;;  %v1469_v17 = vcombine.high %v12187_v18, %v12187_v18 }
 0x292   : > { %7933 = vmatprep.subr.bf16.mxu0 %v10513_v49  ;;  %v1665_v49 = vcombine.high %v12191_v38, %v12191_v38  ;;  %v10592_v38 = vld [vmem:[%s11411_s4 + $0xa10] ss:$8 sps:$4 sm:$0xff]  }
 0x293   : > { %v12289_v18 = vrot.slane %v1636_v48, %v11485_v50  ;;  %v10675_v48 = vld [vmem:[%s11411_s4 + $0x1ae4] ss:$8 sps:$4 sm:$0xff]  }
 0x294   : > { %7278 = vmatpush1.bf16.msra.mxu1 %v10508_v51  ;;  %v10586_v51 = vld [vmem:[%s11411_s4 + $0xa00] ss:$8 sps:$4 sm:$0xff]  }
 0x295   : > { %7934 = vmatpush1.bf16.msra.mxu0 %v10511_v52  ;;  %7279 = vmatprep.subr.bf16.mxu1 %v10516_v54  ;;  %v10589_v52 = vld [vmem:[%s11411_s4 + $0x1a00] ss:$8 sps:$4 sm:$0xff]   ;;  %v10594_v54 = vld [vmem:[%s11411_s4 + $0xa14] ss:$8 sps:$4 sm:$0xff]  }
 0x296   : > { %7935 = vmatprep.subr.bf16.mxu0 %v10519_v55  ;;  %v10597_v55 = vld [vmem:[%s11411_s4 + $0x1a14] ss:$8 sps:$4 sm:$0xff]  }
 0x298   : > { %7280 = vmatpush1.bf16.msra.mxu1 %v10514_v39  ;;  %v12286_v39 = vrot.slane %v1440_v15, %v11485_v50  ;;  %v10672_v15 = vld [vmem:[%s11411_s4 + $0xae4] ss:$8 sps:$4 sm:$0xff]  }
 0x299   : > { %7936 = vmatpush1.bf16.msra.mxu0 %v10517_v40  ;;  %7281 = vmatprep.subr.bf16.mxu1 %v10522_v61  ;;  %v10595_v40 = vld [vmem:[%s11411_s4 + $0x1a10] ss:$8 sps:$4 sm:$0xff]   ;;  %v10600_v61 = vld [vmem:[%s11411_s4 + $0xa24] ss:$8 sps:$4 sm:$0xff]  }
 0x29a   : > { %7937 = vmatprep.subr.bf16.mxu0 %v10525_v62  ;;  %v10603_v62 = vld [vmem:[%s11411_s4 + $0x1a24] ss:$8 sps:$4 sm:$0xff]  }
 0x29c   : > { %7282 = vmatpush1.bf16.msra.mxu1 %v10520_v63  ;;  %v10598_v63 = vld [vmem:[%s11411_s4 + $0xa20] ss:$8 sps:$4 sm:$0xff]  }
 0x29d   : > { %7938 = vmatpush1.bf16.msra.mxu0 %v10523_v0  ;;  %7283 = vmatprep.subr.bf16.mxu1 %v10528_v41  ;;  %v10601_v0 = vld [vmem:[%s11411_s4 + $0x1a20] ss:$8 sps:$4 sm:$0xff]   ;;  %v10606_v41 = vld [vmem:[%s11411_s4 + $0xa34] ss:$8 sps:$4 sm:$0xff]  }
 0x29e   : > { %7939 = vmatprep.subr.bf16.mxu0 %v10531_v1  ;;  %v10609_v1 = vld [vmem:[%s11411_s4 + $0x1a34] ss:$8 sps:$4 sm:$0xff]  }
 0x2a0   : > { %7284 = vmatpush1.bf16.msra.mxu1 %v10526_v56  ;;  %v10604_v56 = vld [vmem:[%s11411_s4 + $0xa30] ss:$8 sps:$4 sm:$0xff]  }
 0x2a1   : > { %7940 = vmatpush1.bf16.msra.mxu0 %v10529_v3  ;;  %7285 = vmatprep.subr.bf16.mxu1 %v10534_v58  ;;  %v10607_v3 = vld [vmem:[%s11411_s4 + $0x1a30] ss:$8 sps:$4 sm:$0xff]   ;;  %v10612_v58 = vld [vmem:[%s11411_s4 + $0xa44] ss:$8 sps:$4 sm:$0xff]  }
 0x2a2   : > { %7941 = vmatprep.subr.bf16.mxu0 %v10537_v4  ;;  %v10615_v4 = vld [vmem:[%s11411_s4 + $0x1a44] ss:$8 sps:$4 sm:$0xff]  }
 0x2a4   : > { %7286 = vmatpush1.bf16.msra.mxu1 %v10532_v5  ;;  %v10610_v5 = vld [vmem:[%s11411_s4 + $0xa40] ss:$8 sps:$4 sm:$0xff]  }
 0x2a5   : > { %7942 = vmatpush1.bf16.msra.mxu0 %v10535_v6  ;;  %7287 = vmatprep.subr.bf16.mxu1 %v10540_v7  ;;  %v10613_v6 = vld [vmem:[%s11411_s4 + $0x1a40] ss:$8 sps:$4 sm:$0xff]   ;;  %v10618_v7 = vld [vmem:[%s11411_s4 + $0xa54] ss:$8 sps:$4 sm:$0xff]  }
 0x2a6   : > { %7943 = vmatprep.subr.bf16.mxu0 %v10543_v8  ;;  %v10621_v8 = vld [vmem:[%s11411_s4 + $0x1a54] ss:$8 sps:$4 sm:$0xff]  }
 0x2a8   : > { %7288 = vmatpush1.bf16.msra.mxu1 %v10538_v9  ;;  %v10616_v9 = vld [vmem:[%s11411_s4 + $0xa50] ss:$8 sps:$4 sm:$0xff]  }
 0x2a9   : > { %7944 = vmatpush1.bf16.msra.mxu0 %v10541_v10  ;;  %7289 = vmatprep.subr.bf16.mxu1 %v10546_v11  ;;  %v10619_v10 = vld [vmem:[%s11411_s4 + $0x1a50] ss:$8 sps:$4 sm:$0xff]   ;;  %v10624_v11 = vld [vmem:[%s11411_s4 + $0xa64] ss:$8 sps:$4 sm:$0xff]  }
 0x2aa   : > { %7945 = vmatprep.subr.bf16.mxu0 %v10549_v12  ;;  %v10627_v12 = vld [vmem:[%s11411_s4 + $0x1a64] ss:$8 sps:$4 sm:$0xff]  }
 0x2ac   : > { %7290 = vmatpush1.bf16.msra.mxu1 %v10544_v19  ;;  %v10622_v19 = vld [vmem:[%s11411_s4 + $0xa60] ss:$8 sps:$4 sm:$0xff]  }
 0x2ad   : > { %7946 = vmatpush1.bf16.msra.mxu0 %v10547_v20  ;;  %7291 = vmatprep.subr.bf16.mxu1 %v10552_v21  ;;  %v10625_v20 = vld [vmem:[%s11411_s4 + $0x1a60] ss:$8 sps:$4 sm:$0xff]   ;;  %v10630_v21 = vld [vmem:[%s11411_s4 + $0xa74] ss:$8 sps:$4 sm:$0xff]  }
 0x2ae   : > { %7947 = vmatprep.subr.bf16.mxu0 %v10555_v22  ;;  %v10633_v22 = vld [vmem:[%s11411_s4 + $0x1a74] ss:$8 sps:$4 sm:$0xff]  }
 0x2b0   : > { %7292 = vmatpush1.bf16.msra.mxu1 %v10550_v2  ;;  %v10628_v2 = vld [vmem:[%s11411_s4 + $0xa70] ss:$8 sps:$4 sm:$0xff]  }
 0x2b1   : > { %7948 = vmatpush1.bf16.msra.mxu0 %v10553_v24  ;;  %7293 = vmatprep.subr.bf16.mxu1 %v10558_v13  ;;  %v10631_v24 = vld [vmem:[%s11411_s4 + $0x1a70] ss:$8 sps:$4 sm:$0xff]   ;;  %v10636_v13 = vld [vmem:[%s11411_s4 + $0xa84] ss:$8 sps:$4 sm:$0xff]  }
 0x2b2   : > { %7949 = vmatprep.subr.bf16.mxu0 %v10561_v53  ;;  %v10639_v53 = vld [vmem:[%s11411_s4 + $0x1a84] ss:$8 sps:$4 sm:$0xff]  }
 0x2b4   : > { %7294 = vmatpush1.bf16.msra.mxu1 %v10556_v59  ;;  %v10634_v59 = vld [vmem:[%s11411_s4 + $0xa80] ss:$8 sps:$4 sm:$0xff]  }
 0x2b5   : > { %7950 = vmatpush1.bf16.msra.mxu0 %v10559_v57  ;;  %7295 = vmatprep.subr.bf16.mxu1 %v10564_v27  ;;  %v10637_v57 = vld [vmem:[%s11411_s4 + $0x1a80] ss:$8 sps:$4 sm:$0xff]   ;;  %v10642_v27 = vld [vmem:[%s11411_s4 + $0xa94] ss:$8 sps:$4 sm:$0xff]  }
 0x2b6   : > { %7951 = vmatprep.subr.bf16.mxu0 %v10567_v28  ;;  %v10645_v28 = vld [vmem:[%s11411_s4 + $0x1a94] ss:$8 sps:$4 sm:$0xff]  }
 0x2b8   : > { %7296 = vmatpush1.bf16.msra.mxu1 %v10562_v29  ;;  %v10640_v29 = vld [vmem:[%s11411_s4 + $0xa90] ss:$8 sps:$4 sm:$0xff]  }
 0x2b9   : > { %7952 = vmatpush1.bf16.msra.mxu0 %v10565_v30  ;;  %7297 = vmatprep.subr.bf16.mxu1 %v10570_v31  ;;  %v10643_v30 = vld [vmem:[%s11411_s4 + $0x1a90] ss:$8 sps:$4 sm:$0xff]   ;;  %v10648_v31 = vld [vmem:[%s11411_s4 + $0xaa4] ss:$8 sps:$4 sm:$0xff]  }
 0x2ba   : > { %7953 = vmatprep.subr.bf16.mxu0 %v10573_v32  ;;  %v10651_v32 = vld [vmem:[%s11411_s4 + $0x1aa4] ss:$8 sps:$4 sm:$0xff]  }
 0x2bc   : > { %7298 = vmatpush1.bf16.msra.mxu1 %v10568_v16  ;;  %v10646_v16 = vld [vmem:[%s11411_s4 + $0xaa0] ss:$8 sps:$4 sm:$0xff]  }
 0x2bd   : > { %7954 = vmatpush1.bf16.msra.mxu0 %v10571_v34  ;;  %7299 = vmatprep.subr.bf16.mxu1 %v10576_v35  ;;  %v10649_v34 = vld [vmem:[%s11411_s4 + $0x1aa0] ss:$8 sps:$4 sm:$0xff]   ;;  %v10654_v35 = vld [vmem:[%s11411_s4 + $0xab4] ss:$8 sps:$4 sm:$0xff]  }
 0x2be   : > { %7955 = vmatprep.subr.bf16.mxu0 %v10579_v36  ;;  %v10657_v36 = vld [vmem:[%s11411_s4 + $0x1ab4] ss:$8 sps:$4 sm:$0xff]  }
 0x2c0   : > { %7300 = vmatpush1.bf16.msra.mxu1 %v10574_v25  ;;  %v10660_v25 = vld [vmem:[%s11411_s4 + $0xac4] ss:$8 sps:$4 sm:$0xff]  }
 0x2c1   : > { %7956 = vmatpush1.bf16.msra.mxu0 %v10577_v46  ;;  %7301 = vmatprep.subr.bf16.mxu1 %v10582_v42  ;;  %v10663_v46 = vld [vmem:[%s11411_s4 + $0x1ac4] ss:$8 sps:$4 sm:$0xff]   ;;  %v10658_v42 = vld [vmem:[%s11411_s4 + $0xac0] ss:$8 sps:$4 sm:$0xff]  }
 0x2c2   : > { %7957 = vmatprep.subr.bf16.mxu0 %v10585_v26  ;;  %v10661_v26 = vld [vmem:[%s11411_s4 + $0x1ac0] ss:$8 sps:$4 sm:$0xff]  }
 0x2c4   : > { %7302 = vmatpush1.bf16.msra.mxu1 %v10580_v60  ;;  %v10666_v60 = vld [vmem:[%s11411_s4 + $0xad4] ss:$8 sps:$4 sm:$0xff]  }
 0x2c5   : > { %7958 = vmatpush1.bf16.msra.mxu0 %v10583_v14  ;;  %7312 = vmatprep.subr.bf16.mxu1 %v10588_v33  ;;  %v10669_v14 = vld [vmem:[%s11411_s4 + $0x1ad4] ss:$8 sps:$4 sm:$0xff]   ;;  %v10664_v33 = vld [vmem:[%s11411_s4 + $0xad0] ss:$8 sps:$4 sm:$0xff]  }
 0x2c6   : > { %7968 = vmatprep.subr.bf16.mxu0 %v10591_v37  ;;  %v10667_v37 = vld [vmem:[%s11411_s4 + $0x1ad0] ss:$8 sps:$4 sm:$0xff]  }
 0x2c7   : > { %7304 = vmatmul.mubr.bf16.vlgmr.msra.gmra.mrb[0].mxu1 %v1469_v17  ;;  %v10670_v17 = vld [vmem:[%s11411_s4 + $0xae0] ss:$8 sps:$4 sm:$0xff]  }
 0x2c8   : > { %7960 = vmatmul.mubr.bf16.vlgmr.msra.gmra.mrb[0].mxu0 %v1665_v49  ;;  %7313 = vmatpush1.bf16.msra.mxu1 %v10586_v51  ;;  %v10673_v49 = vld [vmem:[%s11411_s4 + $0x1ae0] ss:$8 sps:$4 sm:$0xff]   ;;  %v10678_v51 = vld [vmem:[%s11411_s4 + $0xaf4] ss:$8 sps:$4 sm:$0xff]  }
 0x2c9   : > { %7969 = vmatpush1.bf16.msra.mxu0 %v10589_v52  ;;  %7314 = vmatprep.subr.bf16.mxu1 %v10594_v54  ;;  %v10681_v52 = vld [vmem:[%s11411_s4 + $0x1af4] ss:$8 sps:$4 sm:$0xff]   ;;  %v10676_v54 = vld [vmem:[%s11411_s4 + $0xaf0] ss:$8 sps:$4 sm:$0xff]  }
 0x2ca   : > { %7970 = vmatprep.subr.bf16.mxu0 %v10597_v55  ;;  %7344 = vmatprep.mubr.bf16.mxu1 %v12286_v39  ;;  %v10679_v55 = vld [vmem:[%s11411_s4 + $0x1af0] ss:$8 sps:$4 sm:$0xff]  }
 0x2cb   : > { %8000 = vmatprep.mubr.bf16.mxu0 %v12289_v18 }
 0x2cc   : > { %7315 = vmatpush1.bf16.msra.mxu1 %v10592_v38  ;;  %v10685_v38 = vld [vmem:[%s11411_s4 + $0xb04] ss:$8 sps:$4 sm:$0xff]  }
 0x2cd   : > { %7971 = vmatpush1.bf16.msra.mxu0 %v10595_v40  ;;  %7316 = vmatprep.subr.bf16.mxu1 %v10600_v61  ;;  %v10689_v40 = vld [vmem:[%s11411_s4 + $0x1b04] ss:$8 sps:$4 sm:$0xff]   ;;  %v12355_v61 = vrot.slane %v12264_v23, %v11485_v50  ;;  %v1472_v23 = vcombine.high %v12286_v39, %v12286_v39 }
 0x2ce   : > { %7972 = vmatprep.subr.bf16.mxu0 %v10603_v62  ;;  %v12359_v62 = vrot.slane %v12267_v47, %v11485_v50  ;;  %v10690_v47 = vld [vmem:[%s11411_s4 + $0xb10] ss:$8 sps:$4 sm:$0xff]   ;;  %v10698_v39 = vld [vmem:[%s11411_s4 + $0xb24] ss:$8 sps:$4 sm:$0xff]  }
 0x2d0   : > { %7317 = vmatpush1.bf16.msra.mxu1 %v10598_v63  ;;  %v10683_v63 = vld [vmem:[%s11411_s4 + $0xb00] ss:$8 sps:$4 sm:$0xff]  }
 0x2d1   : > { %7973 = vmatpush1.bf16.msra.mxu0 %v10601_v0  ;;  %7318 = vmatprep.subr.bf16.mxu1 %v10606_v41  ;;  %v10687_v0 = vld [vmem:[%s11411_s4 + $0x1b00] ss:$8 sps:$4 sm:$0xff]   ;;  %v10692_v41 = vld [vmem:[%s11411_s4 + $0xb14] ss:$8 sps:$4 sm:$0xff]  }
 0x2d2   : > { %7974 = vmatprep.subr.bf16.mxu0 %v10609_v1  ;;  %v10695_v1 = vld [vmem:[%s11411_s4 + $0x1b14] ss:$8 sps:$4 sm:$0xff]  }
 0x2d4   : > { %7319 = vmatpush1.bf16.msra.mxu1 %v10604_v56  ;;  %v1668_v56 = vcombine.high %v12289_v18, %v12289_v18  ;;  %v10696_v18 = vld [vmem:[%s11411_s4 + $0xb20] ss:$8 sps:$4 sm:$0xff]  }
 0x2d5   : > { %7975 = vmatpush1.bf16.msra.mxu0 %v10607_v3  ;;  %7320 = vmatprep.subr.bf16.mxu1 %v10612_v58  ;;  %v10693_v3 = vld [vmem:[%s11411_s4 + $0x1b10] ss:$8 sps:$4 sm:$0xff]   ;;  %v10701_v58 = vld [vmem:[%s11411_s4 + $0x1b24] ss:$8 sps:$4 sm:$0xff]  }
 0x2d6   : > { %7976 = vmatprep.subr.bf16.mxu0 %v10615_v4  ;;  %v10699_v4 = vld [vmem:[%s11411_s4 + $0x1b20] ss:$8 sps:$4 sm:$0xff]  }
 0x2d8   : > { %7321 = vmatpush1.bf16.msra.mxu1 %v10610_v5  ;;  %v10704_v5 = vld [vmem:[%s11411_s4 + $0xb34] ss:$8 sps:$4 sm:$0xff]  }
 0x2d9   : > { %7977 = vmatpush1.bf16.msra.mxu0 %v10613_v6  ;;  %7322 = vmatprep.subr.bf16.mxu1 %v10618_v7  ;;  %v10707_v6 = vld [vmem:[%s11411_s4 + $0x1b34] ss:$8 sps:$4 sm:$0xff]   ;;  %v10702_v7 = vld [vmem:[%s11411_s4 + $0xb30] ss:$8 sps:$4 sm:$0xff]  }
 0x2da   : > { %7978 = vmatprep.subr.bf16.mxu0 %v10621_v8  ;;  %v10705_v8 = vld [vmem:[%s11411_s4 + $0x1b30] ss:$8 sps:$4 sm:$0xff]  }
 0x2dc   : > { %7323 = vmatpush1.bf16.msra.mxu1 %v10616_v9  ;;  %v10710_v9 = vld [vmem:[%s11411_s4 + $0xb44] ss:$8 sps:$4 sm:$0xff]  }
 0x2dd   : > { %7979 = vmatpush1.bf16.msra.mxu0 %v10619_v10  ;;  %7324 = vmatprep.subr.bf16.mxu1 %v10624_v11  ;;  %v10713_v10 = vld [vmem:[%s11411_s4 + $0x1b44] ss:$8 sps:$4 sm:$0xff]   ;;  %v10708_v11 = vld [vmem:[%s11411_s4 + $0xb40] ss:$8 sps:$4 sm:$0xff]  }
 0x2de   : > { %7980 = vmatprep.subr.bf16.mxu0 %v10627_v12  ;;  %v10711_v12 = vld [vmem:[%s11411_s4 + $0x1b40] ss:$8 sps:$4 sm:$0xff]  }
 0x2e0   : > { %7325 = vmatpush1.bf16.msra.mxu1 %v10622_v19  ;;  %v10716_v19 = vld [vmem:[%s11411_s4 + $0xb54] ss:$8 sps:$4 sm:$0xff]  }
 0x2e1   : > { %7981 = vmatpush1.bf16.msra.mxu0 %v10625_v20  ;;  %7326 = vmatprep.subr.bf16.mxu1 %v10630_v21  ;;  %v10719_v20 = vld [vmem:[%s11411_s4 + $0x1b54] ss:$8 sps:$4 sm:$0xff]   ;;  %v10714_v21 = vld [vmem:[%s11411_s4 + $0xb50] ss:$8 sps:$4 sm:$0xff]  }
 0x2e2   : > { %7982 = vmatprep.subr.bf16.mxu0 %v10633_v22  ;;  %v10717_v22 = vld [vmem:[%s11411_s4 + $0x1b50] ss:$8 sps:$4 sm:$0xff]  }
 0x2e4   : > { %7327 = vmatpush1.bf16.msra.mxu1 %v10628_v2  ;;  %v10722_v2 = vld [vmem:[%s11411_s4 + $0xb64] ss:$8 sps:$4 sm:$0xff]  }
 0x2e5   : > { %7983 = vmatpush1.bf16.msra.mxu0 %v10631_v24  ;;  %7328 = vmatprep.subr.bf16.mxu1 %v10636_v13  ;;  %v10725_v24 = vld [vmem:[%s11411_s4 + $0x1b64] ss:$8 sps:$4 sm:$0xff]   ;;  %v10720_v13 = vld [vmem:[%s11411_s4 + $0xb60] ss:$8 sps:$4 sm:$0xff]  }
 0x2e6   : > { %7984 = vmatprep.subr.bf16.mxu0 %v10639_v53  ;;  %v10723_v53 = vld [vmem:[%s11411_s4 + $0x1b60] ss:$8 sps:$4 sm:$0xff]  }
 0x2e8   : > { %7329 = vmatpush1.bf16.msra.mxu1 %v10634_v59  ;;  %v10728_v59 = vld [vmem:[%s11411_s4 + $0xb74] ss:$8 sps:$4 sm:$0xff]  }
 0x2e9   : > { %7985 = vmatpush1.bf16.msra.mxu0 %v10637_v57  ;;  %7330 = vmatprep.subr.bf16.mxu1 %v10642_v27  ;;  %v10731_v57 = vld [vmem:[%s11411_s4 + $0x1b74] ss:$8 sps:$4 sm:$0xff]   ;;  %v10726_v27 = vld [vmem:[%s11411_s4 + $0xb70] ss:$8 sps:$4 sm:$0xff]  }
 0x2ea   : > { %7986 = vmatprep.subr.bf16.mxu0 %v10645_v28  ;;  %v10729_v28 = vld [vmem:[%s11411_s4 + $0x1b70] ss:$8 sps:$4 sm:$0xff]  }
 0x2ec   : > { %7331 = vmatpush1.bf16.msra.mxu1 %v10640_v29  ;;  %v10734_v29 = vld [vmem:[%s11411_s4 + $0xb84] ss:$8 sps:$4 sm:$0xff]  }
 0x2ed   : > { %7987 = vmatpush1.bf16.msra.mxu0 %v10643_v30  ;;  %7332 = vmatprep.subr.bf16.mxu1 %v10648_v31  ;;  %v10737_v30 = vld [vmem:[%s11411_s4 + $0x1b84] ss:$8 sps:$4 sm:$0xff]   ;;  %v10732_v31 = vld [vmem:[%s11411_s4 + $0xb80] ss:$8 sps:$4 sm:$0xff]  }
 0x2ee   : > { %7988 = vmatprep.subr.bf16.mxu0 %v10651_v32  ;;  %v10735_v32 = vld [vmem:[%s11411_s4 + $0x1b80] ss:$8 sps:$4 sm:$0xff]  }
 0x2f0   : > { %7333 = vmatpush1.bf16.msra.mxu1 %v10646_v16  ;;  %v10740_v16 = vld [vmem:[%s11411_s4 + $0xb94] ss:$8 sps:$4 sm:$0xff]  }
 0x2f1   : > { %7989 = vmatpush1.bf16.msra.mxu0 %v10649_v34  ;;  %7334 = vmatprep.subr.bf16.mxu1 %v10654_v35  ;;  %v10743_v34 = vld [vmem:[%s11411_s4 + $0x1b94] ss:$8 sps:$4 sm:$0xff]   ;;  %v10738_v35 = vld [vmem:[%s11411_s4 + $0xb90] ss:$8 sps:$4 sm:$0xff]  }
 0x2f2   : > { %7990 = vmatprep.subr.bf16.mxu0 %v10657_v36  ;;  %v10741_v36 = vld [vmem:[%s11411_s4 + $0x1b90] ss:$8 sps:$4 sm:$0xff]  }
 0x2f4   : > { %7335 = vmatpush1.bf16.msra.mxu1 %v10652_v43  ;;  %v10746_v43 = vld [vmem:[%s11411_s4 + $0xba4] ss:$8 sps:$4 sm:$0xff]  }
 0x2f5   : > { %7991 = vmatpush1.bf16.msra.mxu0 %v10655_v45  ;;  %7336 = vmatprep.subr.bf16.mxu1 %v10660_v25  ;;  %v10749_v45 = vld [vmem:[%s11411_s4 + $0x1ba4] ss:$8 sps:$4 sm:$0xff]   ;;  %v10744_v25 = vld [vmem:[%s11411_s4 + $0xba0] ss:$8 sps:$4 sm:$0xff]  }
 0x2f6   : > { %7992 = vmatprep.subr.bf16.mxu0 %v10663_v46  ;;  %v10747_v46 = vld [vmem:[%s11411_s4 + $0x1ba0] ss:$8 sps:$4 sm:$0xff]  }
 0x2f8   : > { %7337 = vmatpush1.bf16.msra.mxu1 %v10658_v42  ;;  %v10752_v42 = vld [vmem:[%s11411_s4 + $0xbb4] ss:$8 sps:$4 sm:$0xff]  }
 0x2f9   : > { %7993 = vmatpush1.bf16.msra.mxu0 %v10661_v26  ;;  %7338 = vmatprep.subr.bf16.mxu1 %v10666_v60  ;;  %v10755_v26 = vld [vmem:[%s11411_s4 + $0x1bb4] ss:$8 sps:$4 sm:$0xff]   ;;  %v10750_v60 = vld [vmem:[%s11411_s4 + $0xbb0] ss:$8 sps:$4 sm:$0xff]  }
 0x2fa   : > { %7994 = vmatprep.subr.bf16.mxu0 %v10669_v14  ;;  %v10753_v14 = vld [vmem:[%s11411_s4 + $0x1bb0] ss:$8 sps:$4 sm:$0xff]  }
 0x2fc   : > { %7339 = vmatpush1.bf16.msra.mxu1 %v10664_v33  ;;  %v10758_v33 = vld [vmem:[%s11411_s4 + $0xbc4] ss:$8 sps:$4 sm:$0xff]  }
 0x2fd   : > { %7995 = vmatpush1.bf16.msra.mxu0 %v10667_v37  ;;  %7340 = vmatprep.subr.bf16.mxu1 %v10672_v15  ;;  %v10761_v37 = vld [vmem:[%s11411_s4 + $0x1bc4] ss:$8 sps:$4 sm:$0xff]   ;;  %v10756_v15 = vld [vmem:[%s11411_s4 + $0xbc0] ss:$8 sps:$4 sm:$0xff]  }
 0x2fe   : > { %7996 = vmatprep.subr.bf16.mxu0 %v10675_v48  ;;  %v10759_v48 = vld [vmem:[%s11411_s4 + $0x1bc0] ss:$8 sps:$4 sm:$0xff]  }
 0x300   : > { %7341 = vmatpush1.bf16.msra.mxu1 %v10670_v17  ;;  %v10764_v17 = vld [vmem:[%s11411_s4 + $0xbd4] ss:$8 sps:$4 sm:$0xff]  }
 0x301   : > { %7997 = vmatpush1.bf16.msra.mxu0 %v10673_v49  ;;  %7342 = vmatprep.subr.bf16.mxu1 %v10678_v51  ;;  %v10767_v49 = vld [vmem:[%s11411_s4 + $0x1bd4] ss:$8 sps:$4 sm:$0xff]   ;;  %v10762_v51 = vld [vmem:[%s11411_s4 + $0xbd0] ss:$8 sps:$4 sm:$0xff]  }
 0x302   : > { %7998 = vmatprep.subr.bf16.mxu0 %v10681_v52  ;;  %v10765_v52 = vld [vmem:[%s11411_s4 + $0x1bd0] ss:$8 sps:$4 sm:$0xff]  }
 0x304   : > { %7343 = vmatpush1.bf16.msra.mxu1 %v10676_v54  ;;  %v10770_v54 = vld [vmem:[%s11411_s4 + $0xbe4] ss:$8 sps:$4 sm:$0xff]  }
 0x305   : > { %7999 = vmatpush1.bf16.msra.mxu0 %v10679_v55  ;;  %7353 = vmatprep.subr.bf16.mxu1 %v10685_v38  ;;  %v10773_v55 = vld [vmem:[%s11411_s4 + $0x1be4] ss:$8 sps:$4 sm:$0xff]   ;;  %v12424_v38 = vld [vmem:[%s11424_s6 + $0x18] sm:$0xff] }
 0x306   : > { %8009 = vmatprep.subr.bf16.mxu0 %v10689_v40  ;;  %v12427_v40 = vld [vmem:[%s11424_s6 + $0x38] sm:$0xff] }
 0x307   : > { %7345 = vmatmul.mubr.bf16.vlgmr.msra.gmra.mrb[0].mxu1 %v12355_v61 }
 0x308   : > { %8001 = vmatmul.mubr.bf16.vlgmr.msra.gmra.mrb[0].mxu0 %v12359_v62  ;;  %7354 = vmatpush1.bf16.msra.mxu1 %v10683_v63  ;;  %v10768_v63 = vld [vmem:[%s11411_s4 + $0xbe0] ss:$8 sps:$4 sm:$0xff]  }
 0x309   : > { %8010 = vmatpush1.bf16.msra.mxu0 %v10687_v0  ;;  %7355 = vmatprep.subr.bf16.mxu1 %v10692_v41  ;;  %v10771_v0 = vld [vmem:[%s11411_s4 + $0x1be0] ss:$8 sps:$4 sm:$0xff]   ;;  %v10776_v41 = vld [vmem:[%s11411_s4 + $0xbf4] ss:$8 sps:$4 sm:$0xff]  }
 0x30a   : > { %8011 = vmatprep.subr.bf16.mxu0 %v10695_v1  ;;  %7385 = vmatprep.mubr.bf16.mxu1 %v1472_v23  ;;  %v10779_v1 = vld [vmem:[%s11411_s4 + $0x1bf4] ss:$8 sps:$4 sm:$0xff]   ;;  %v12435_v23 = vrot.slane %v12424_v38, %v11485_v50 }
 0x30b   : > { %8041 = vmatprep.mubr.bf16.mxu0 %v1668_v56  ;;  %v12439_v56 = vrot.slane %v12427_v40, %v11485_v50 }
 0x30c   : > { %7356 = vmatpush1.bf16.msra.mxu1 %v10690_v47  ;;  %v10774_v47 = vld [vmem:[%s11411_s4 + $0xbf0] ss:$8 sps:$4 sm:$0xff]  }
 0x30d   : > { %8012 = vmatpush1.bf16.msra.mxu0 %v10693_v3  ;;  %7357 = vmatprep.subr.bf16.mxu1 %v10698_v39  ;;  %v10777_v3 = vld [vmem:[%s11411_s4 + $0x1bf0] ss:$8 sps:$4 sm:$0xff]   ;;  %v10782_v39 = vld [vmem:[%s11411_s4 + $0xc04] ss:$8 sps:$4 sm:$0xff]  }
 0x30e   : > { %8013 = vmatprep.subr.bf16.mxu0 %v10701_v58  ;;  %v10785_v58 = vld [vmem:[%s11411_s4 + $0x1c04] ss:$8 sps:$4 sm:$0xff]  }
 0x310   : > { %7358 = vmatpush1.bf16.msra.mxu1 %v10696_v18  ;;  %v1488_v18 = vcombine.high %v12435_v23, %v12435_v23 }
 0x311   : > { %8014 = vmatpush1.bf16.msra.mxu0 %v10699_v4  ;;  %7359 = vmatprep.subr.bf16.mxu1 %v10704_v5  ;;  %v1684_v4 = vcombine.high %v12439_v56, %v12439_v56  ;;  %v1470_v5 = vcombine.high %v12355_v61, %v12355_v61 }
 0x312   : > { %8015 = vmatprep.subr.bf16.mxu0 %v10707_v6  ;;  %v1666_v6 = vcombine.high %v12359_v62, %v12359_v62  ;;  %v10786_v62 = vld [vmem:[%s11411_s4 + $0xc10] ss:$8 sps:$4 sm:$0xff]  }
 0x313   : > { %v12461_v61 = vrot.slane %v1684_v4, %v11485_v50  ;;  %v10861_v4 = vld [vmem:[%s11411_s4 + $0x1cd0] ss:$8 sps:$4 sm:$0xff]  }
 0x314   : > { %7360 = vmatpush1.bf16.msra.mxu1 %v10702_v7  ;;  %v10780_v7 = vld [vmem:[%s11411_s4 + $0xc00] ss:$8 sps:$4 sm:$0xff]  }
 0x315   : > { %8016 = vmatpush1.bf16.msra.mxu0 %v10705_v8  ;;  %7361 = vmatprep.subr.bf16.mxu1 %v10710_v9  ;;  %v10783_v8 = vld [vmem:[%s11411_s4 + $0x1c00] ss:$8 sps:$4 sm:$0xff]   ;;  %v10788_v9 = vld [vmem:[%s11411_s4 + $0xc14] ss:$8 sps:$4 sm:$0xff]  }
 0x316   : > { %8017 = vmatprep.subr.bf16.mxu0 %v10713_v10  ;;  %v10791_v10 = vld [vmem:[%s11411_s4 + $0x1c14] ss:$8 sps:$4 sm:$0xff]  }
 0x318   : > { %7362 = vmatpush1.bf16.msra.mxu1 %v10708_v11  ;;  %v12458_v11 = vrot.slane %v1488_v18, %v11485_v50  ;;  %v10858_v18 = vld [vmem:[%s11411_s4 + $0xcd0] ss:$8 sps:$4 sm:$0xff]  }
 0x319   : > { %8018 = vmatpush1.bf16.msra.mxu0 %v10711_v12  ;;  %7363 = vmatprep.subr.bf16.mxu1 %v10716_v19  ;;  %v10789_v12 = vld [vmem:[%s11411_s4 + $0x1c10] ss:$8 sps:$4 sm:$0xff]   ;;  %v10794_v19 = vld [vmem:[%s11411_s4 + $0xc24] ss:$8 sps:$4 sm:$0xff]  }
 0x31a   : > { %8019 = vmatprep.subr.bf16.mxu0 %v10719_v20  ;;  %v10797_v20 = vld [vmem:[%s11411_s4 + $0x1c24] ss:$8 sps:$4 sm:$0xff]  }
 0x31c   : > { %7364 = vmatpush1.bf16.msra.mxu1 %v10714_v21  ;;  %v10792_v21 = vld [vmem:[%s11411_s4 + $0xc20] ss:$8 sps:$4 sm:$0xff]  }
 0x31d   : > { %8020 = vmatpush1.bf16.msra.mxu0 %v10717_v22  ;;  %7365 = vmatprep.subr.bf16.mxu1 %v10722_v2  ;;  %v10795_v22 = vld [vmem:[%s11411_s4 + $0x1c20] ss:$8 sps:$4 sm:$0xff]   ;;  %v10800_v2 = vld [vmem:[%s11411_s4 + $0xc34] ss:$8 sps:$4 sm:$0xff]  }
 0x31e   : > { %8021 = vmatprep.subr.bf16.mxu0 %v10725_v24  ;;  %v10803_v24 = vld [vmem:[%s11411_s4 + $0x1c34] ss:$8 sps:$4 sm:$0xff]  }
 0x320   : > { %7366 = vmatpush1.bf16.msra.mxu1 %v10720_v13  ;;  %v10798_v13 = vld [vmem:[%s11411_s4 + $0xc30] ss:$8 sps:$4 sm:$0xff]  }
 0x321   : > { %8022 = vmatpush1.bf16.msra.mxu0 %v10723_v53  ;;  %7367 = vmatprep.subr.bf16.mxu1 %v10728_v59  ;;  %v10801_v53 = vld [vmem:[%s11411_s4 + $0x1c30] ss:$8 sps:$4 sm:$0xff]   ;;  %v10806_v59 = vld [vmem:[%s11411_s4 + $0xc44] ss:$8 sps:$4 sm:$0xff]  }
 0x322   : > { %8023 = vmatprep.subr.bf16.mxu0 %v10731_v57  ;;  %v10809_v57 = vld [vmem:[%s11411_s4 + $0x1c44] ss:$8 sps:$4 sm:$0xff]  }
 0x324   : > { %7368 = vmatpush1.bf16.msra.mxu1 %v10726_v27  ;;  %v10804_v27 = vld [vmem:[%s11411_s4 + $0xc40] ss:$8 sps:$4 sm:$0xff]  }
 0x325   : > { %8024 = vmatpush1.bf16.msra.mxu0 %v10729_v28  ;;  %7369 = vmatprep.subr.bf16.mxu1 %v10734_v29  ;;  %v10807_v28 = vld [vmem:[%s11411_s4 + $0x1c40] ss:$8 sps:$4 sm:$0xff]   ;;  %v10812_v29 = vld [vmem:[%s11411_s4 + $0xc54] ss:$8 sps:$4 sm:$0xff]  }
 0x326   : > { %8025 = vmatprep.subr.bf16.mxu0 %v10737_v30  ;;  %v10815_v30 = vld [vmem:[%s11411_s4 + $0x1c54] ss:$8 sps:$4 sm:$0xff]  }
 0x328   : > { %7370 = vmatpush1.bf16.msra.mxu1 %v10732_v31  ;;  %v10810_v31 = vld [vmem:[%s11411_s4 + $0xc50] ss:$8 sps:$4 sm:$0xff]  }
 0x329   : > { %8026 = vmatpush1.bf16.msra.mxu0 %v10735_v32  ;;  %7371 = vmatprep.subr.bf16.mxu1 %v10740_v16  ;;  %v10813_v32 = vld [vmem:[%s11411_s4 + $0x1c50] ss:$8 sps:$4 sm:$0xff]   ;;  %v10818_v16 = vld [vmem:[%s11411_s4 + $0xc64] ss:$8 sps:$4 sm:$0xff]  }
 0x32a   : > { %8027 = vmatprep.subr.bf16.mxu0 %v10743_v34  ;;  %v10821_v34 = vld [vmem:[%s11411_s4 + $0x1c64] ss:$8 sps:$4 sm:$0xff]  }
 0x32c   : > { %7372 = vmatpush1.bf16.msra.mxu1 %v10738_v35  ;;  %v10816_v35 = vld [vmem:[%s11411_s4 + $0xc60] ss:$8 sps:$4 sm:$0xff]  }
 0x32d   : > { %8028 = vmatpush1.bf16.msra.mxu0 %v10741_v36  ;;  %7373 = vmatprep.subr.bf16.mxu1 %v10746_v43  ;;  %v10819_v36 = vld [vmem:[%s11411_s4 + $0x1c60] ss:$8 sps:$4 sm:$0xff]   ;;  %v10824_v43 = vld [vmem:[%s11411_s4 + $0xc74] ss:$8 sps:$4 sm:$0xff]  }
 0x32e   : > { %8029 = vmatprep.subr.bf16.mxu0 %v10749_v45  ;;  %v10827_v45 = vld [vmem:[%s11411_s4 + $0x1c74] ss:$8 sps:$4 sm:$0xff]  }
 0x330   : > { %7374 = vmatpush1.bf16.msra.mxu1 %v10744_v25  ;;  %v10822_v25 = vld [vmem:[%s11411_s4 + $0xc70] ss:$8 sps:$4 sm:$0xff]  }
 0x331   : > { %8030 = vmatpush1.bf16.msra.mxu0 %v10747_v46  ;;  %7375 = vmatprep.subr.bf16.mxu1 %v10752_v42  ;;  %v10825_v46 = vld [vmem:[%s11411_s4 + $0x1c70] ss:$8 sps:$4 sm:$0xff]   ;;  %v10830_v42 = vld [vmem:[%s11411_s4 + $0xc84] ss:$8 sps:$4 sm:$0xff]  }
 0x332   : > { %8031 = vmatprep.subr.bf16.mxu0 %v10755_v26  ;;  %v10833_v26 = vld [vmem:[%s11411_s4 + $0x1c84] ss:$8 sps:$4 sm:$0xff]  }
 0x334   : > { %7376 = vmatpush1.bf16.msra.mxu1 %v10750_v60  ;;  %v10828_v60 = vld [vmem:[%s11411_s4 + $0xc80] ss:$8 sps:$4 sm:$0xff]  }
 0x335   : > { %8032 = vmatpush1.bf16.msra.mxu0 %v10753_v14  ;;  %7377 = vmatprep.subr.bf16.mxu1 %v10758_v33  ;;  %v10831_v14 = vld [vmem:[%s11411_s4 + $0x1c80] ss:$8 sps:$4 sm:$0xff]   ;;  %v10836_v33 = vld [vmem:[%s11411_s4 + $0xc94] ss:$8 sps:$4 sm:$0xff]  }
 0x336   : > { %8033 = vmatprep.subr.bf16.mxu0 %v10761_v37  ;;  %v10839_v37 = vld [vmem:[%s11411_s4 + $0x1c94] ss:$8 sps:$4 sm:$0xff]  }
 0x338   : > { %7378 = vmatpush1.bf16.msra.mxu1 %v10756_v15  ;;  %v10834_v15 = vld [vmem:[%s11411_s4 + $0xc90] ss:$8 sps:$4 sm:$0xff]  }
 0x339   : > { %8034 = vmatpush1.bf16.msra.mxu0 %v10759_v48  ;;  %7379 = vmatprep.subr.bf16.mxu1 %v10764_v17  ;;  %v10837_v48 = vld [vmem:[%s11411_s4 + $0x1c90] ss:$8 sps:$4 sm:$0xff]   ;;  %v10842_v17 = vld [vmem:[%s11411_s4 + $0xca4] ss:$8 sps:$4 sm:$0xff]  }
 0x33a   : > { %8035 = vmatprep.subr.bf16.mxu0 %v10767_v49  ;;  %v10845_v49 = vld [vmem:[%s11411_s4 + $0x1ca4] ss:$8 sps:$4 sm:$0xff]  }
 0x33c   : > { %7380 = vmatpush1.bf16.msra.mxu1 %v10762_v51  ;;  %v10840_v51 = vld [vmem:[%s11411_s4 + $0xca0] ss:$8 sps:$4 sm:$0xff]  }
 0x33d   : > { %8036 = vmatpush1.bf16.msra.mxu0 %v10765_v52  ;;  %7381 = vmatprep.subr.bf16.mxu1 %v10770_v54  ;;  %v10843_v52 = vld [vmem:[%s11411_s4 + $0x1ca0] ss:$8 sps:$4 sm:$0xff]   ;;  %v10848_v54 = vld [vmem:[%s11411_s4 + $0xcb4] ss:$8 sps:$4 sm:$0xff]  }
 0x33e   : > { %8037 = vmatprep.subr.bf16.mxu0 %v10773_v55  ;;  %v10851_v55 = vld [vmem:[%s11411_s4 + $0x1cb4] ss:$8 sps:$4 sm:$0xff]  }
 0x340   : > { %7382 = vmatpush1.bf16.msra.mxu1 %v10768_v63  ;;  %v10846_v63 = vld [vmem:[%s11411_s4 + $0xcb0] ss:$8 sps:$4 sm:$0xff]  }
 0x341   : > { %8038 = vmatpush1.bf16.msra.mxu0 %v10771_v0  ;;  %7383 = vmatprep.subr.bf16.mxu1 %v10776_v41  ;;  %v10849_v0 = vld [vmem:[%s11411_s4 + $0x1cb0] ss:$8 sps:$4 sm:$0xff]   ;;  %v10854_v41 = vld [vmem:[%s11411_s4 + $0xcc4] ss:$8 sps:$4 sm:$0xff]  }
 0x342   : > { %8039 = vmatprep.subr.bf16.mxu0 %v10779_v1  ;;  %v10857_v1 = vld [vmem:[%s11411_s4 + $0x1cc4] ss:$8 sps:$4 sm:$0xff]  }
 0x344   : > { %7384 = vmatpush1.bf16.msra.mxu1 %v10774_v47  ;;  %v10852_v47 = vld [vmem:[%s11411_s4 + $0xcc0] ss:$8 sps:$4 sm:$0xff]  }
 0x345   : > { %8040 = vmatpush1.bf16.msra.mxu0 %v10777_v3  ;;  %7394 = vmatprep.subr.bf16.mxu1 %v10782_v39  ;;  %v10855_v3 = vld [vmem:[%s11411_s4 + $0x1cc0] ss:$8 sps:$4 sm:$0xff]   ;;  %v10860_v39 = vld [vmem:[%s11411_s4 + $0xcd4] ss:$8 sps:$4 sm:$0xff]  }
 0x346   : > { %8050 = vmatprep.subr.bf16.mxu0 %v10785_v58  ;;  %v10863_v58 = vld [vmem:[%s11411_s4 + $0x1cd4] ss:$8 sps:$4 sm:$0xff]  }
 0x347   : > { %7386 = vmatmul.mubr.bf16.vlgmr.msra.gmra.mrb[0].mxu1 %v1470_v5  ;;  %v10866_v5 = vld [vmem:[%s11411_s4 + $0xce4] ss:$8 sps:$4 sm:$0xff]  }
 0x348   : > { %8042 = vmatmul.mubr.bf16.vlgmr.msra.gmra.mrb[0].mxu0 %v1666_v6  ;;  %7395 = vmatpush1.bf16.msra.mxu1 %v10780_v7  ;;  %v10869_v6 = vld [vmem:[%s11411_s4 + $0x1ce4] ss:$8 sps:$4 sm:$0xff]   ;;  %v10864_v7 = vld [vmem:[%s11411_s4 + $0xce0] ss:$8 sps:$4 sm:$0xff]  }
 0x349   : > { %8051 = vmatpush1.bf16.msra.mxu0 %v10783_v8  ;;  %7396 = vmatprep.subr.bf16.mxu1 %v10788_v9  ;;  %v10867_v8 = vld [vmem:[%s11411_s4 + $0x1ce0] ss:$8 sps:$4 sm:$0xff]   ;;  %v10872_v9 = vld [vmem:[%s11411_s4 + $0xcf4] ss:$8 sps:$4 sm:$0xff]  }
 0x34a   : > { %8052 = vmatprep.subr.bf16.mxu0 %v10791_v10  ;;  %7426 = vmatprep.mubr.bf16.mxu1 %v12458_v11  ;;  %v10875_v10 = vld [vmem:[%s11411_s4 + $0x1cf4] ss:$8 sps:$4 sm:$0xff]  }
 0x34b   : > { %8082 = vmatprep.mubr.bf16.mxu0 %v12461_v61 }
 0x34c   : > { %7397 = vmatpush1.bf16.msra.mxu1 %v10786_v62  ;;  %v10870_v62 = vld [vmem:[%s11411_s4 + $0xcf0] ss:$8 sps:$4 sm:$0xff]  }
 0x34d   : > { %8053 = vmatpush1.bf16.msra.mxu0 %v10789_v12  ;;  %7398 = vmatprep.subr.bf16.mxu1 %v10794_v19  ;;  %v10873_v12 = vld [vmem:[%s11411_s4 + $0x1cf0] ss:$8 sps:$4 sm:$0xff]   ;;  %v10878_v19 = vld [vmem:[%s11411_s4 + $0xd04] ss:$8 sps:$4 sm:$0xff]  }
 0x34e   : > { %8054 = vmatprep.subr.bf16.mxu0 %v10797_v20  ;;  %v10881_v20 = vld [vmem:[%s11411_s4 + $0x1d04] ss:$8 sps:$4 sm:$0xff]  }
 0x350   : > { %7399 = vmatpush1.bf16.msra.mxu1 %v10792_v21  ;;  %v12527_v21 = vrot.slane %v12435_v23, %v11485_v50  ;;  %v1520_v23 = vcombine.high %v12458_v11, %v12458_v11  ;;  %v10890_v11 = vld [vmem:[%s11411_s4 + $0xd24] ss:$8 sps:$4 sm:$0xff]  }
 0x351   : > { %8055 = vmatpush1.bf16.msra.mxu0 %v10795_v22  ;;  %7400 = vmatprep.subr.bf16.mxu1 %v10800_v2  ;;  %v12531_v22 = vrot.slane %v12439_v56, %v11485_v50  ;;  %v10876_v2 = vld [vmem:[%s11411_s4 + $0xd00] ss:$8 sps:$4 sm:$0xff]   ;;  %v10882_v56 = vld [vmem:[%s11411_s4 + $0xd10] ss:$8 sps:$4 sm:$0xff]  }
 0x352   : > { %8056 = vmatprep.subr.bf16.mxu0 %v10803_v24  ;;  %v10879_v24 = vld [vmem:[%s11411_s4 + $0x1d00] ss:$8 sps:$4 sm:$0xff]  }
 0x354   : > { %7401 = vmatpush1.bf16.msra.mxu1 %v10798_v13  ;;  %v10884_v13 = vld [vmem:[%s11411_s4 + $0xd14] ss:$8 sps:$4 sm:$0xff]  }
 0x355   : > { %8057 = vmatpush1.bf16.msra.mxu0 %v10801_v53  ;;  %7402 = vmatprep.subr.bf16.mxu1 %v10806_v59  ;;  %v10887_v53 = vld [vmem:[%s11411_s4 + $0x1d14] ss:$8 sps:$4 sm:$0xff]   ;;  %v1716_v59 = vcombine.high %v12461_v61, %v12461_v61  ;;  %v10888_v61 = vld [vmem:[%s11411_s4 + $0xd20] ss:$8 sps:$4 sm:$0xff]  }
 0x356   : > { %8058 = vmatprep.subr.bf16.mxu0 %v10809_v57  ;;  %v10885_v57 = vld [vmem:[%s11411_s4 + $0x1d10] ss:$8 sps:$4 sm:$0xff]  }
 0x358   : > { %7403 = vmatpush1.bf16.msra.mxu1 %v10804_v27  ;;  %v10893_v27 = vld [vmem:[%s11411_s4 + $0x1d24] ss:$8 sps:$4 sm:$0xff]  }
 0x359   : > { %8059 = vmatpush1.bf16.msra.mxu0 %v10807_v28  ;;  %7404 = vmatprep.subr.bf16.mxu1 %v10812_v29  ;;  %v10891_v28 = vld [vmem:[%s11411_s4 + $0x1d20] ss:$8 sps:$4 sm:$0xff]   ;;  %v10896_v29 = vld [vmem:[%s11411_s4 + $0xd34] ss:$8 sps:$4 sm:$0xff]  }
 0x35a   : > { %8060 = vmatprep.subr.bf16.mxu0 %v10815_v30  ;;  %v10899_v30 = vld [vmem:[%s11411_s4 + $0x1d34] ss:$8 sps:$4 sm:$0xff]  }
 0x35c   : > { %7405 = vmatpush1.bf16.msra.mxu1 %v10810_v31  ;;  %v10894_v31 = vld [vmem:[%s11411_s4 + $0xd30] ss:$8 sps:$4 sm:$0xff]  }
 0x35d   : > { %8061 = vmatpush1.bf16.msra.mxu0 %v10813_v32  ;;  %7406 = vmatprep.subr.bf16.mxu1 %v10818_v16  ;;  %v10897_v32 = vld [vmem:[%s11411_s4 + $0x1d30] ss:$8 sps:$4 sm:$0xff]   ;;  %v10902_v16 = vld [vmem:[%s11411_s4 + $0xd44] ss:$8 sps:$4 sm:$0xff]  }
 0x35e   : > { %8062 = vmatprep.subr.bf16.mxu0 %v10821_v34  ;;  %v10905_v34 = vld [vmem:[%s11411_s4 + $0x1d44] ss:$8 sps:$4 sm:$0xff]  }
 0x360   : > { %7407 = vmatpush1.bf16.msra.mxu1 %v10816_v35  ;;  %v10900_v35 = vld [vmem:[%s11411_s4 + $0xd40] ss:$8 sps:$4 sm:$0xff]  }
 0x361   : > { %8063 = vmatpush1.bf16.msra.mxu0 %v10819_v36  ;;  %7408 = vmatprep.subr.bf16.mxu1 %v10824_v43  ;;  %v10903_v36 = vld [vmem:[%s11411_s4 + $0x1d40] ss:$8 sps:$4 sm:$0xff]   ;;  %v10908_v43 = vld [vmem:[%s11411_s4 + $0xd54] ss:$8 sps:$4 sm:$0xff]  }
 0x362   : > { %8064 = vmatprep.subr.bf16.mxu0 %v10827_v45  ;;  %v10911_v45 = vld [vmem:[%s11411_s4 + $0x1d54] ss:$8 sps:$4 sm:$0xff]  }
 0x364   : > { %7409 = vmatpush1.bf16.msra.mxu1 %v10822_v25  ;;  %v10906_v25 = vld [vmem:[%s11411_s4 + $0xd50] ss:$8 sps:$4 sm:$0xff]  }
 0x365   : > { %8065 = vmatpush1.bf16.msra.mxu0 %v10825_v46  ;;  %7410 = vmatprep.subr.bf16.mxu1 %v10830_v42  ;;  %v10909_v46 = vld [vmem:[%s11411_s4 + $0x1d50] ss:$8 sps:$4 sm:$0xff]   ;;  %v10914_v42 = vld [vmem:[%s11411_s4 + $0xd64] ss:$8 sps:$4 sm:$0xff]  }
 0x366   : > { %8066 = vmatprep.subr.bf16.mxu0 %v10833_v26  ;;  %v10917_v26 = vld [vmem:[%s11411_s4 + $0x1d64] ss:$8 sps:$4 sm:$0xff]  }
 0x368   : > { %7411 = vmatpush1.bf16.msra.mxu1 %v10828_v60  ;;  %v10912_v60 = vld [vmem:[%s11411_s4 + $0xd60] ss:$8 sps:$4 sm:$0xff]  }
 0x369   : > { %8067 = vmatpush1.bf16.msra.mxu0 %v10831_v14  ;;  %7412 = vmatprep.subr.bf16.mxu1 %v10836_v33  ;;  %v10915_v14 = vld [vmem:[%s11411_s4 + $0x1d60] ss:$8 sps:$4 sm:$0xff]   ;;  %v10920_v33 = vld [vmem:[%s11411_s4 + $0xd74] ss:$8 sps:$4 sm:$0xff]  }
 0x36a   : > { %8068 = vmatprep.subr.bf16.mxu0 %v10839_v37  ;;  %v10923_v37 = vld [vmem:[%s11411_s4 + $0x1d74] ss:$8 sps:$4 sm:$0xff]  }
 0x36c   : > { %7413 = vmatpush1.bf16.msra.mxu1 %v10834_v15  ;;  %v10918_v15 = vld [vmem:[%s11411_s4 + $0xd70] ss:$8 sps:$4 sm:$0xff]  }
 0x36d   : > { %8069 = vmatpush1.bf16.msra.mxu0 %v10837_v48  ;;  %7414 = vmatprep.subr.bf16.mxu1 %v10842_v17  ;;  %v10921_v48 = vld [vmem:[%s11411_s4 + $0x1d70] ss:$8 sps:$4 sm:$0xff]   ;;  %v10926_v17 = vld [vmem:[%s11411_s4 + $0xd84] ss:$8 sps:$4 sm:$0xff]  }
 0x36e   : > { %8070 = vmatprep.subr.bf16.mxu0 %v10845_v49  ;;  %v10929_v49 = vld [vmem:[%s11411_s4 + $0x1d84] ss:$8 sps:$4 sm:$0xff]  }
 0x370   : > { %7415 = vmatpush1.bf16.msra.mxu1 %v10840_v51  ;;  %v10924_v51 = vld [vmem:[%s11411_s4 + $0xd80] ss:$8 sps:$4 sm:$0xff]  }
 0x371   : > { %8071 = vmatpush1.bf16.msra.mxu0 %v10843_v52  ;;  %7416 = vmatprep.subr.bf16.mxu1 %v10848_v54  ;;  %v10927_v52 = vld [vmem:[%s11411_s4 + $0x1d80] ss:$8 sps:$4 sm:$0xff]   ;;  %v10932_v54 = vld [vmem:[%s11411_s4 + $0xd94] ss:$8 sps:$4 sm:$0xff]  }
 0x372   : > { %8072 = vmatprep.subr.bf16.mxu0 %v10851_v55  ;;  %v10935_v55 = vld [vmem:[%s11411_s4 + $0x1d94] ss:$8 sps:$4 sm:$0xff]  }
 0x374   : > { %7417 = vmatpush1.bf16.msra.mxu1 %v10846_v63  ;;  %v10930_v63 = vld [vmem:[%s11411_s4 + $0xd90] ss:$8 sps:$4 sm:$0xff]  }
 0x375   : > { %8073 = vmatpush1.bf16.msra.mxu0 %v10849_v0  ;;  %7418 = vmatprep.subr.bf16.mxu1 %v10854_v41  ;;  %v10933_v0 = vld [vmem:[%s11411_s4 + $0x1d90] ss:$8 sps:$4 sm:$0xff]   ;;  %v10938_v41 = vld [vmem:[%s11411_s4 + $0xda4] ss:$8 sps:$4 sm:$0xff]  }
 0x376   : > { %8074 = vmatprep.subr.bf16.mxu0 %v10857_v1  ;;  %v10941_v1 = vld [vmem:[%s11411_s4 + $0x1da4] ss:$8 sps:$4 sm:$0xff]  }
 0x378   : > { %7419 = vmatpush1.bf16.msra.mxu1 %v10852_v47  ;;  %v10936_v47 = vld [vmem:[%s11411_s4 + $0xda0] ss:$8 sps:$4 sm:$0xff]  }
 0x379   : > { %8075 = vmatpush1.bf16.msra.mxu0 %v10855_v3  ;;  %7420 = vmatprep.subr.bf16.mxu1 %v10860_v39  ;;  %v10939_v3 = vld [vmem:[%s11411_s4 + $0x1da0] ss:$8 sps:$4 sm:$0xff]   ;;  %v10944_v39 = vld [vmem:[%s11411_s4 + $0xdb4] ss:$8 sps:$4 sm:$0xff]  }
 0x37a   : > { %8076 = vmatprep.subr.bf16.mxu0 %v10863_v58  ;;  %v10947_v58 = vld [vmem:[%s11411_s4 + $0x1db4] ss:$8 sps:$4 sm:$0xff]  }
 0x37c   : > { %7421 = vmatpush1.bf16.msra.mxu1 %v10858_v18  ;;  %v10942_v18 = vld [vmem:[%s11411_s4 + $0xdb0] ss:$8 sps:$4 sm:$0xff]  }
 0x37d   : > { %8077 = vmatpush1.bf16.msra.mxu0 %v10861_v4  ;;  %7422 = vmatprep.subr.bf16.mxu1 %v10866_v5  ;;  %v10945_v4 = vld [vmem:[%s11411_s4 + $0x1db0] ss:$8 sps:$4 sm:$0xff]   ;;  %v10950_v5 = vld [vmem:[%s11411_s4 + $0xdc4] ss:$8 sps:$4 sm:$0xff]  }
 0x37e   : > { %8078 = vmatprep.subr.bf16.mxu0 %v10869_v6  ;;  %v10953_v6 = vld [vmem:[%s11411_s4 + $0x1dc4] ss:$8 sps:$4 sm:$0xff]  }
 0x380   : > { %7423 = vmatpush1.bf16.msra.mxu1 %v10864_v7  ;;  %v10948_v7 = vld [vmem:[%s11411_s4 + $0xdc0] ss:$8 sps:$4 sm:$0xff]  }
 0x381   : > { %8079 = vmatpush1.bf16.msra.mxu0 %v10867_v8  ;;  %7424 = vmatprep.subr.bf16.mxu1 %v10872_v9  ;;  %v10951_v8 = vld [vmem:[%s11411_s4 + $0x1dc0] ss:$8 sps:$4 sm:$0xff]   ;;  %v10956_v9 = vld [vmem:[%s11411_s4 + $0xdd4] ss:$8 sps:$4 sm:$0xff]  }
 0x382   : > { %8080 = vmatprep.subr.bf16.mxu0 %v10875_v10  ;;  %v10959_v10 = vld [vmem:[%s11411_s4 + $0x1dd4] ss:$8 sps:$4 sm:$0xff]  }
 0x384   : > { %7425 = vmatpush1.bf16.msra.mxu1 %v10870_v62  ;;  %v10954_v62 = vld [vmem:[%s11411_s4 + $0xdd0] ss:$8 sps:$4 sm:$0xff]  }
 0x385   : > { %8081 = vmatpush1.bf16.msra.mxu0 %v10873_v12  ;;  %7435 = vmatprep.subr.bf16.mxu1 %v10878_v19  ;;  %v10957_v12 = vld [vmem:[%s11411_s4 + $0x1dd0] ss:$8 sps:$4 sm:$0xff]   ;;  %v10962_v19 = vld [vmem:[%s11411_s4 + $0xde4] ss:$8 sps:$4 sm:$0xff]  }
 0x386   : > { %8091 = vmatprep.subr.bf16.mxu0 %v10881_v20  ;;  %v10965_v20 = vld [vmem:[%s11411_s4 + $0x1de4] ss:$8 sps:$4 sm:$0xff]  }
 0x387   : > { %7427 = vmatmul.mubr.bf16.vlgmr.msra.gmra.mrb[0].mxu1 %v12527_v21 }
 0x388   : > { %8083 = vmatmul.mubr.bf16.vlgmr.msra.gmra.mrb[0].mxu0 %v12531_v22  ;;  %7436 = vmatpush1.bf16.msra.mxu1 %v10876_v2  ;;  %v1473_v2 = vcombine.high %v12424_v38, %v12424_v38  ;;  %v10966_v38 = vld [vmem:[%s11411_s4 + $0xdf0] ss:$8 sps:$4 sm:$0xff]  }
 0x389   : > { %8092 = vmatpush1.bf16.msra.mxu0 %v10879_v24  ;;  %7437 = vmatprep.subr.bf16.mxu1 %v10884_v13  ;;  %v1669_v24 = vcombine.high %v12427_v40, %v12427_v40  ;;  %v10960_v13 = vld [vmem:[%s11411_s4 + $0xde0] ss:$8 sps:$4 sm:$0xff]   ;;  %v10969_v40 = vld [vmem:[%s11411_s4 + $0x1df0] ss:$8 sps:$4 sm:$0xff]  }
 0x38a   : > { %8093 = vmatprep.subr.bf16.mxu0 %v10887_v53  ;;  %7467 = vmatprep.mubr.bf16.mxu1 %v1520_v23  ;;  %v10963_v53 = vld [vmem:[%s11411_s4 + $0x1de0] ss:$8 sps:$4 sm:$0xff]   ;;  %v10968_v23 = vld [vmem:[%s11411_s4 + $0xdf4] ss:$8 sps:$4 sm:$0xff]  }
 0x38b   : > { %8123 = vmatprep.mubr.bf16.mxu0 %v1716_v59  ;;  %v10971_v59 = vld [vmem:[%s11411_s4 + $0x1df4] ss:$8 sps:$4 sm:$0xff]  }
 0x38c   : > { %7438 = vmatpush1.bf16.msra.mxu1 %v10882_v56  ;;  %v12604_v56 = vrot.slane %v1473_v2, %v11485_v50  ;;  %v11038_v2 = vld [vmem:[%s11411_s4 + $0xeb0] ss:$8 sps:$4 sm:$0xff]  }
 0x38d   : > { %8094 = vmatpush1.bf16.msra.mxu0 %v10885_v57  ;;  %7439 = vmatprep.subr.bf16.mxu1 %v10890_v11  ;;  %v12607_v57 = vrot.slane %v1669_v24, %v11485_v50  ;;  %v10974_v11 = vld [vmem:[%s11411_s4 + $0xe04] ss:$8 sps:$4 sm:$0xff]   ;;  %v11041_v24 = vld [vmem:[%s11411_s4 + $0x1eb0] ss:$8 sps:$4 sm:$0xff]  }
 0x38e   : > { %8095 = vmatprep.subr.bf16.mxu0 %v10893_v27  ;;  %v10977_v27 = vld [vmem:[%s11411_s4 + $0x1e04] ss:$8 sps:$4 sm:$0xff]  }
 0x390   : > { %7440 = vmatpush1.bf16.msra.mxu1 %v10888_v61  ;;  %v1489_v61 = vcombine.high %v12604_v56, %v12604_v56 }
 0x391   : > { %8096 = vmatpush1.bf16.msra.mxu0 %v10891_v28  ;;  %7441 = vmatprep.subr.bf16.mxu1 %v10896_v29  ;;  %v1685_v28 = vcombine.high %v12607_v57, %v12607_v57  ;;  %v1518_v29 = vcombine.high %v12527_v21, %v12527_v21 }
 0x392   : > { %8097 = vmatprep.subr.bf16.mxu0 %v10899_v30  ;;  %v1714_v30 = vcombine.high %v12531_v22, %v12531_v22  ;;  %v10978_v22 = vld [vmem:[%s11411_s4 + $0xe10] ss:$8 sps:$4 sm:$0xff]  }
 0x393   : > { %v12629_v21 = vrot.slane %v1685_v28, %v11485_v50  ;;  %v11061_v28 = vld [vmem:[%s11411_s4 + $0x1ee4] ss:$8 sps:$4 sm:$0xff]  }
 0x394   : > { %7442 = vmatpush1.bf16.msra.mxu1 %v10894_v31  ;;  %v10972_v31 = vld [vmem:[%s11411_s4 + $0xe00] ss:$8 sps:$4 sm:$0xff]  }
 0x395   : > { %8098 = vmatpush1.bf16.msra.mxu0 %v10897_v32  ;;  %7443 = vmatprep.subr.bf16.mxu1 %v10902_v16  ;;  %v10975_v32 = vld [vmem:[%s11411_s4 + $0x1e00] ss:$8 sps:$4 sm:$0xff]   ;;  %v10980_v16 = vld [vmem:[%s11411_s4 + $0xe14] ss:$8 sps:$4 sm:$0xff]  }
 0x396   : > { %8099 = vmatprep.subr.bf16.mxu0 %v10905_v34  ;;  %v10983_v34 = vld [vmem:[%s11411_s4 + $0x1e14] ss:$8 sps:$4 sm:$0xff]  }
 0x398   : > { %7444 = vmatpush1.bf16.msra.mxu1 %v10900_v35  ;;  %v12626_v35 = vrot.slane %v1489_v61, %v11485_v50  ;;  %v11058_v61 = vld [vmem:[%s11411_s4 + $0xee4] ss:$8 sps:$4 sm:$0xff]  }
 0x399   : > { %8100 = vmatpush1.bf16.msra.mxu0 %v10903_v36  ;;  %7445 = vmatprep.subr.bf16.mxu1 %v10908_v43  ;;  %v10981_v36 = vld [vmem:[%s11411_s4 + $0x1e10] ss:$8 sps:$4 sm:$0xff]   ;;  %v10986_v43 = vld [vmem:[%s11411_s4 + $0xe24] ss:$8 sps:$4 sm:$0xff]  }
 0x39a   : > { %8101 = vmatprep.subr.bf16.mxu0 %v10911_v45  ;;  %v10989_v45 = vld [vmem:[%s11411_s4 + $0x1e24] ss:$8 sps:$4 sm:$0xff]  }
 0x39c   : > { %7446 = vmatpush1.bf16.msra.mxu1 %v10906_v25  ;;  %v10984_v25 = vld [vmem:[%s11411_s4 + $0xe20] ss:$8 sps:$4 sm:$0xff]  }
 0x39d   : > { %8102 = vmatpush1.bf16.msra.mxu0 %v10909_v46  ;;  %7447 = vmatprep.subr.bf16.mxu1 %v10914_v42  ;;  %v10987_v46 = vld [vmem:[%s11411_s4 + $0x1e20] ss:$8 sps:$4 sm:$0xff]   ;;  %v10992_v42 = vld [vmem:[%s11411_s4 + $0xe34] ss:$8 sps:$4 sm:$0xff]  }
 0x39e   : > { %8103 = vmatprep.subr.bf16.mxu0 %v10917_v26  ;;  %v10995_v26 = vld [vmem:[%s11411_s4 + $0x1e34] ss:$8 sps:$4 sm:$0xff]  }
 0x3a0   : > { %7448 = vmatpush1.bf16.msra.mxu1 %v10912_v60  ;;  %v10990_v60 = vld [vmem:[%s11411_s4 + $0xe30] ss:$8 sps:$4 sm:$0xff]  }
 0x3a1   : > { %8104 = vmatpush1.bf16.msra.mxu0 %v10915_v14  ;;  %7449 = vmatprep.subr.bf16.mxu1 %v10920_v33  ;;  %v10993_v14 = vld [vmem:[%s11411_s4 + $0x1e30] ss:$8 sps:$4 sm:$0xff]   ;;  %v10998_v33 = vld [vmem:[%s11411_s4 + $0xe44] ss:$8 sps:$4 sm:$0xff]  }
 0x3a2   : > { %8105 = vmatprep.subr.bf16.mxu0 %v10923_v37  ;;  %v11001_v37 = vld [vmem:[%s11411_s4 + $0x1e44] ss:$8 sps:$4 sm:$0xff]  }
 0x3a4   : > { %7450 = vmatpush1.bf16.msra.mxu1 %v10918_v15  ;;  %v10996_v15 = vld [vmem:[%s11411_s4 + $0xe40] ss:$8 sps:$4 sm:$0xff]  }
 0x3a5   : > { %8106 = vmatpush1.bf16.msra.mxu0 %v10921_v48  ;;  %7451 = vmatprep.subr.bf16.mxu1 %v10926_v17  ;;  %v10999_v48 = vld [vmem:[%s11411_s4 + $0x1e40] ss:$8 sps:$4 sm:$0xff]   ;;  %v11004_v17 = vld [vmem:[%s11411_s4 + $0xe54] ss:$8 sps:$4 sm:$0xff]  }
 0x3a6   : > { %8107 = vmatprep.subr.bf16.mxu0 %v10929_v49  ;;  %v11007_v49 = vld [vmem:[%s11411_s4 + $0x1e54] ss:$8 sps:$4 sm:$0xff]  }
 0x3a8   : > { %7452 = vmatpush1.bf16.msra.mxu1 %v10924_v51  ;;  %v11002_v51 = vld [vmem:[%s11411_s4 + $0xe50] ss:$8 sps:$4 sm:$0xff]  }
 0x3a9   : > { %8108 = vmatpush1.bf16.msra.mxu0 %v10927_v52  ;;  %7453 = vmatprep.subr.bf16.mxu1 %v10932_v54  ;;  %v11005_v52 = vld [vmem:[%s11411_s4 + $0x1e50] ss:$8 sps:$4 sm:$0xff]   ;;  %v11010_v54 = vld [vmem:[%s11411_s4 + $0xe64] ss:$8 sps:$4 sm:$0xff]  }
 0x3aa   : > { %8109 = vmatprep.subr.bf16.mxu0 %v10935_v55  ;;  %v11013_v55 = vld [vmem:[%s11411_s4 + $0x1e64] ss:$8 sps:$4 sm:$0xff]  }
 0x3ac   : > { %7454 = vmatpush1.bf16.msra.mxu1 %v10930_v63  ;;  %v11008_v63 = vld [vmem:[%s11411_s4 + $0xe60] ss:$8 sps:$4 sm:$0xff]  }
 0x3ad   : > { %8110 = vmatpush1.bf16.msra.mxu0 %v10933_v0  ;;  %7455 = vmatprep.subr.bf16.mxu1 %v10938_v41  ;;  %v11011_v0 = vld [vmem:[%s11411_s4 + $0x1e60] ss:$8 sps:$4 sm:$0xff]   ;;  %v11016_v41 = vld [vmem:[%s11411_s4 + $0xe74] ss:$8 sps:$4 sm:$0xff]  }
 0x3ae   : > { %8111 = vmatprep.subr.bf16.mxu0 %v10941_v1  ;;  %v11019_v1 = vld [vmem:[%s11411_s4 + $0x1e74] ss:$8 sps:$4 sm:$0xff]  }
 0x3b0   : > { %7456 = vmatpush1.bf16.msra.mxu1 %v10936_v47  ;;  %v11014_v47 = vld [vmem:[%s11411_s4 + $0xe70] ss:$8 sps:$4 sm:$0xff]  }
 0x3b1   : > { %8112 = vmatpush1.bf16.msra.mxu0 %v10939_v3  ;;  %7457 = vmatprep.subr.bf16.mxu1 %v10944_v39  ;;  %v11017_v3 = vld [vmem:[%s11411_s4 + $0x1e70] ss:$8 sps:$4 sm:$0xff]   ;;  %v11022_v39 = vld [vmem:[%s11411_s4 + $0xe84] ss:$8 sps:$4 sm:$0xff]  }
 0x3b2   : > { %8113 = vmatprep.subr.bf16.mxu0 %v10947_v58  ;;  %v11025_v58 = vld [vmem:[%s11411_s4 + $0x1e84] ss:$8 sps:$4 sm:$0xff]  }
 0x3b4   : > { %7458 = vmatpush1.bf16.msra.mxu1 %v10942_v18  ;;  %v11020_v18 = vld [vmem:[%s11411_s4 + $0xe80] ss:$8 sps:$4 sm:$0xff]  }
 0x3b5   : > { %8114 = vmatpush1.bf16.msra.mxu0 %v10945_v4  ;;  %7459 = vmatprep.subr.bf16.mxu1 %v10950_v5  ;;  %v11023_v4 = vld [vmem:[%s11411_s4 + $0x1e80] ss:$8 sps:$4 sm:$0xff]   ;;  %v11028_v5 = vld [vmem:[%s11411_s4 + $0xe94] ss:$8 sps:$4 sm:$0xff]  }
 0x3b6   : > { %8115 = vmatprep.subr.bf16.mxu0 %v10953_v6  ;;  %v11031_v6 = vld [vmem:[%s11411_s4 + $0x1e94] ss:$8 sps:$4 sm:$0xff]  }
 0x3b8   : > { %7460 = vmatpush1.bf16.msra.mxu1 %v10948_v7  ;;  %v11026_v7 = vld [vmem:[%s11411_s4 + $0xe90] ss:$8 sps:$4 sm:$0xff]  }
 0x3b9   : > { %8116 = vmatpush1.bf16.msra.mxu0 %v10951_v8  ;;  %7461 = vmatprep.subr.bf16.mxu1 %v10956_v9  ;;  %v11029_v8 = vld [vmem:[%s11411_s4 + $0x1e90] ss:$8 sps:$4 sm:$0xff]   ;;  %v11034_v9 = vld [vmem:[%s11411_s4 + $0xea4] ss:$8 sps:$4 sm:$0xff]  }
 0x3ba   : > { %8117 = vmatprep.subr.bf16.mxu0 %v10959_v10  ;;  %v11037_v10 = vld [vmem:[%s11411_s4 + $0x1ea4] ss:$8 sps:$4 sm:$0xff]  }
 0x3bc   : > { %7462 = vmatpush1.bf16.msra.mxu1 %v10954_v62  ;;  %v11032_v62 = vld [vmem:[%s11411_s4 + $0xea0] ss:$8 sps:$4 sm:$0xff]  }
 0x3bd   : > { %8118 = vmatpush1.bf16.msra.mxu0 %v10957_v12  ;;  %7463 = vmatprep.subr.bf16.mxu1 %v10962_v19  ;;  %v11035_v12 = vld [vmem:[%s11411_s4 + $0x1ea0] ss:$8 sps:$4 sm:$0xff]   ;;  %v11040_v19 = vld [vmem:[%s11411_s4 + $0xeb4] ss:$8 sps:$4 sm:$0xff]  }
 0x3be   : > { %8119 = vmatprep.subr.bf16.mxu0 %v10965_v20  ;;  %v11043_v20 = vld [vmem:[%s11411_s4 + $0x1eb4] ss:$8 sps:$4 sm:$0xff]  }
 0x3c0   : > { %7464 = vmatpush1.bf16.msra.mxu1 %v10960_v13  ;;  %v11046_v13 = vld [vmem:[%s11411_s4 + $0xec4] ss:$8 sps:$4 sm:$0xff]  }
 0x3c1   : > { %8120 = vmatpush1.bf16.msra.mxu0 %v10963_v53  ;;  %7465 = vmatprep.subr.bf16.mxu1 %v10968_v23  ;;  %v11049_v53 = vld [vmem:[%s11411_s4 + $0x1ec4] ss:$8 sps:$4 sm:$0xff]   ;;  %v11044_v23 = vld [vmem:[%s11411_s4 + $0xec0] ss:$8 sps:$4 sm:$0xff]  }
 0x3c2   : > { %8121 = vmatprep.subr.bf16.mxu0 %v10971_v59  ;;  %v11047_v59 = vld [vmem:[%s11411_s4 + $0x1ec0] ss:$8 sps:$4 sm:$0xff]  }
 0x3c4   : > { %7466 = vmatpush1.bf16.msra.mxu1 %v10966_v38  ;;  %v11052_v38 = vld [vmem:[%s11411_s4 + $0xed4] ss:$8 sps:$4 sm:$0xff]  }
 0x3c5   : > { %8122 = vmatpush1.bf16.msra.mxu0 %v10969_v40  ;;  %7476 = vmatprep.subr.bf16.mxu1 %v10974_v11  ;;  %v11055_v40 = vld [vmem:[%s11411_s4 + $0x1ed4] ss:$8 sps:$4 sm:$0xff]   ;;  %v11050_v11 = vld [vmem:[%s11411_s4 + $0xed0] ss:$8 sps:$4 sm:$0xff]  }
 0x3c6   : > { %8132 = vmatprep.subr.bf16.mxu0 %v10977_v27  ;;  %v11053_v27 = vld [vmem:[%s11411_s4 + $0x1ed0] ss:$8 sps:$4 sm:$0xff]  }
 0x3c7   : > { %7468 = vmatmul.mubr.bf16.vlgmr.msra.gmra.mrb[0].mxu1 %v1518_v29  ;;  %v11056_v29 = vld [vmem:[%s11411_s4 + $0xee0] ss:$8 sps:$4 sm:$0xff]  }
 0x3c8   : > { %8124 = vmatmul.mubr.bf16.vlgmr.msra.gmra.mrb[0].mxu0 %v1714_v30  ;;  %7477 = vmatpush1.bf16.msra.mxu1 %v10972_v31  ;;  %v11059_v30 = vld [vmem:[%s11411_s4 + $0x1ee0] ss:$8 sps:$4 sm:$0xff]   ;;  %v11064_v31 = vld [vmem:[%s11411_s4 + $0xef4] ss:$8 sps:$4 sm:$0xff]  }
 0x3c9   : > { %8133 = vmatpush1.bf16.msra.mxu0 %v10975_v32  ;;  %7478 = vmatprep.subr.bf16.mxu1 %v10980_v16  ;;  %v11067_v32 = vld [vmem:[%s11411_s4 + $0x1ef4] ss:$8 sps:$4 sm:$0xff]   ;;  %v11062_v16 = vld [vmem:[%s11411_s4 + $0xef0] ss:$8 sps:$4 sm:$0xff]  }
 0x3ca   : > { %8134 = vmatprep.subr.bf16.mxu0 %v10983_v34  ;;  %7508 = vmatprep.mubr.bf16.mxu1 %v12626_v35  ;;  %v11065_v34 = vld [vmem:[%s11411_s4 + $0x1ef0] ss:$8 sps:$4 sm:$0xff]  }
 0x3cb   : > { %8164 = vmatprep.mubr.bf16.mxu0 %v12629_v21 }
 0x3cc   : > { %7479 = vmatpush1.bf16.msra.mxu1 %v10978_v22  ;;  %v11071_v22 = vld [vmem:[%s11411_s4 + $0xf04] ss:$8 sps:$4 sm:$0xff]  }
 0x3cd   : > { %8135 = vmatpush1.bf16.msra.mxu0 %v10981_v36  ;;  %7480 = vmatprep.subr.bf16.mxu1 %v10986_v43  ;;  %v11075_v36 = vld [vmem:[%s11411_s4 + $0x1f04] ss:$8 sps:$4 sm:$0xff]   ;;  %v12695_v43 = vrot.slane %v12604_v56, %v11485_v50  ;;  %v1521_v56 = vcombine.high %v12626_v35, %v12626_v35 }
 0x3ce   : > { %8136 = vmatprep.subr.bf16.mxu0 %v10989_v45  ;;  %v12699_v45 = vrot.slane %v12607_v57, %v11485_v50  ;;  %v11076_v50 = vld [vmem:[%s11411_s4 + $0xf10] ss:$8 sps:$4 sm:$0xff]   ;;  %v11084_v35 = vld [vmem:[%s11411_s4 + $0xf24] ss:$8 sps:$4 sm:$0xff]  }
 0x3cf   : > { %v11079_v57 = vld [vmem:[%s11411_s4 + $0x1f10] ss:$8 sps:$4 sm:$0xff]  }
 0x3d0   : > { %7481 = vmatpush1.bf16.msra.mxu1 %v10984_v25  ;;  %v11069_v25 = vld [vmem:[%s11411_s4 + $0xf00] ss:$8 sps:$4 sm:$0xff]  }
 0x3d1   : > { %8137 = vmatpush1.bf16.msra.mxu0 %v10987_v46  ;;  %7482 = vmatprep.subr.bf16.mxu1 %v10992_v42  ;;  %v11073_v46 = vld [vmem:[%s11411_s4 + $0x1f00] ss:$8 sps:$4 sm:$0xff]   ;;  %v11078_v42 = vld [vmem:[%s11411_s4 + $0xf14] ss:$8 sps:$4 sm:$0xff]  }
 0x3d2   : > { %8138 = vmatprep.subr.bf16.mxu0 %v10995_v26  ;;  %v11081_v26 = vld [vmem:[%s11411_s4 + $0x1f14] ss:$8 sps:$4 sm:$0xff]  }
 0x3d4   : > { %7483 = vmatpush1.bf16.msra.mxu1 %v10990_v60  ;;  %v1717_v60 = vcombine.high %v12629_v21, %v12629_v21  ;;  %v11082_v21 = vld [vmem:[%s11411_s4 + $0xf20] ss:$8 sps:$4 sm:$0xff]  }
 0x3d5   : > { %8139 = vmatpush1.bf16.msra.mxu0 %v10993_v14  ;;  %7484 = vmatprep.subr.bf16.mxu1 %v10998_v33  ;;  %v11087_v14 = vld [vmem:[%s11411_s4 + $0x1f24] ss:$8 sps:$4 sm:$0xff]   ;;  %v11085_v33 = vld [vmem:[%s11411_s4 + $0x1f20] ss:$8 sps:$4 sm:$0xff]  }
 0x3d6   : > { %8140 = vmatprep.subr.bf16.mxu0 %v11001_v37  ;;  %v11090_v37 = vld [vmem:[%s11411_s4 + $0xf34] ss:$8 sps:$4 sm:$0xff]  }
 0x3d8   : > { %7485 = vmatpush1.bf16.msra.mxu1 %v10996_v15  ;;  %v11093_v15 = vld [vmem:[%s11411_s4 + $0x1f34] ss:$8 sps:$4 sm:$0xff]  }
 0x3d9   : > { %8141 = vmatpush1.bf16.msra.mxu0 %v10999_v48  ;;  %7486 = vmatprep.subr.bf16.mxu1 %v11004_v17  ;;  %v11088_v48 = vld [vmem:[%s11411_s4 + $0xf30] ss:$8 sps:$4 sm:$0xff]  }
 0x3da   : > { %8142 = vmatprep.subr.bf16.mxu0 %v11007_v49  ;;  %v11091_v17 = vld [vmem:[%s11411_s4 + $0x1f30] ss:$8 sps:$4 sm:$0xff]   ;;  %v11096_v49 = vld [vmem:[%s11411_s4 + $0xf44] ss:$8 sps:$4 sm:$0xff]  }
 0x3dc   : > { %7487 = vmatpush1.bf16.msra.mxu1 %v11002_v51  ;;  %v11099_v51 = vld [vmem:[%s11411_s4 + $0x1f44] ss:$8 sps:$4 sm:$0xff]  }
 0x3dd   : > { %8143 = vmatpush1.bf16.msra.mxu0 %v11005_v52  ;;  %7488 = vmatprep.subr.bf16.mxu1 %v11010_v54  ;;  %v11094_v52 = vld [vmem:[%s11411_s4 + $0xf40] ss:$8 sps:$4 sm:$0xff]  }
 0x3de   : > { %8144 = vmatprep.subr.bf16.mxu0 %v11013_v55  ;;  %v11097_v54 = vld [vmem:[%s11411_s4 + $0x1f40] ss:$8 sps:$4 sm:$0xff]   ;;  %v11102_v55 = vld [vmem:[%s11411_s4 + $0xf54] ss:$8 sps:$4 sm:$0xff]  }
 0x3e0   : > { %7489 = vmatpush1.bf16.msra.mxu1 %v11008_v63  ;;  %v11105_v63 = vld [vmem:[%s11411_s4 + $0x1f54] ss:$8 sps:$4 sm:$0xff]  }
 0x3e1   : > { %8145 = vmatpush1.bf16.msra.mxu0 %v11011_v0  ;;  %7490 = vmatprep.subr.bf16.mxu1 %v11016_v41  ;;  %v11100_v0 = vld [vmem:[%s11411_s4 + $0xf50] ss:$8 sps:$4 sm:$0xff]  }
 0x3e2   : > { %8146 = vmatprep.subr.bf16.mxu0 %v11019_v1  ;;  %v11103_v41 = vld [vmem:[%s11411_s4 + $0x1f50] ss:$8 sps:$4 sm:$0xff]   ;;  %v11108_v1 = vld [vmem:[%s11411_s4 + $0xf64] ss:$8 sps:$4 sm:$0xff]  }
 0x3e4   : > { %7491 = vmatpush1.bf16.msra.mxu1 %v11014_v47  ;;  %v11111_v47 = vld [vmem:[%s11411_s4 + $0x1f64] ss:$8 sps:$4 sm:$0xff]  }
 0x3e5   : > { %8147 = vmatpush1.bf16.msra.mxu0 %v11017_v3  ;;  %7492 = vmatprep.subr.bf16.mxu1 %v11022_v39  ;;  %v11106_v3 = vld [vmem:[%s11411_s4 + $0xf60] ss:$8 sps:$4 sm:$0xff]  }
 0x3e6   : > { %8148 = vmatprep.subr.bf16.mxu0 %v11025_v58  ;;  %v11109_v39 = vld [vmem:[%s11411_s4 + $0x1f60] ss:$8 sps:$4 sm:$0xff]   ;;  %v11114_v58 = vld [vmem:[%s11411_s4 + $0xf74] ss:$8 sps:$4 sm:$0xff]  }
 0x3e8   : > { %7493 = vmatpush1.bf16.msra.mxu1 %v11020_v18  ;;  %v11117_v18 = vld [vmem:[%s11411_s4 + $0x1f74] ss:$8 sps:$4 sm:$0xff]  }
 0x3e9   : > { %8149 = vmatpush1.bf16.msra.mxu0 %v11023_v4  ;;  %7494 = vmatprep.subr.bf16.mxu1 %v11028_v5  ;;  %v11112_v4 = vld [vmem:[%s11411_s4 + $0xf70] ss:$8 sps:$4 sm:$0xff]  }
 0x3ea   : > { %8150 = vmatprep.subr.bf16.mxu0 %v11031_v6  ;;  %v11115_v5 = vld [vmem:[%s11411_s4 + $0x1f70] ss:$8 sps:$4 sm:$0xff]   ;;  %v11120_v6 = vld [vmem:[%s11411_s4 + $0xf84] ss:$8 sps:$4 sm:$0xff]  }
 0x3ec   : > { %7495 = vmatpush1.bf16.msra.mxu1 %v11026_v7  ;;  %v11123_v7 = vld [vmem:[%s11411_s4 + $0x1f84] ss:$8 sps:$4 sm:$0xff]  }
 0x3ed   : > { %8151 = vmatpush1.bf16.msra.mxu0 %v11029_v8  ;;  %7496 = vmatprep.subr.bf16.mxu1 %v11034_v9  ;;  %v11118_v8 = vld [vmem:[%s11411_s4 + $0xf80] ss:$8 sps:$4 sm:$0xff]  }
 0x3ee   : > { %8152 = vmatprep.subr.bf16.mxu0 %v11037_v10  ;;  %v11121_v9 = vld [vmem:[%s11411_s4 + $0x1f80] ss:$8 sps:$4 sm:$0xff]   ;;  %v11126_v10 = vld [vmem:[%s11411_s4 + $0xf94] ss:$8 sps:$4 sm:$0xff]  }
 0x3f0   : > { %7497 = vmatpush1.bf16.msra.mxu1 %v11032_v62  ;;  %v11129_v62 = vld [vmem:[%s11411_s4 + $0x1f94] ss:$8 sps:$4 sm:$0xff]  }
 0x3f1   : > { %8153 = vmatpush1.bf16.msra.mxu0 %v11035_v12  ;;  %7498 = vmatprep.subr.bf16.mxu1 %v11040_v19  ;;  %v11124_v12 = vld [vmem:[%s11411_s4 + $0xf90] ss:$8 sps:$4 sm:$0xff]  }
 0x3f2   : > { %8154 = vmatprep.subr.bf16.mxu0 %v11043_v20  ;;  %v11127_v19 = vld [vmem:[%s11411_s4 + $0x1f90] ss:$8 sps:$4 sm:$0xff]   ;;  %v11132_v20 = vld [vmem:[%s11411_s4 + $0xfa4] ss:$8 sps:$4 sm:$0xff]  }
 0x3f4   : > { %7499 = vmatpush1.bf16.msra.mxu1 %v11038_v2  ;;  %v11135_v2 = vld [vmem:[%s11411_s4 + $0x1fa4] ss:$8 sps:$4 sm:$0xff]  }
 0x3f5   : > { %8155 = vmatpush1.bf16.msra.mxu0 %v11041_v24  ;;  %7500 = vmatprep.subr.bf16.mxu1 %v11046_v13  ;;  %v11130_v24 = vld [vmem:[%s11411_s4 + $0xfa0] ss:$8 sps:$4 sm:$0xff]  }
 0x3f6   : > { %8156 = vmatprep.subr.bf16.mxu0 %v11049_v53  ;;  %v11133_v13 = vld [vmem:[%s11411_s4 + $0x1fa0] ss:$8 sps:$4 sm:$0xff]   ;;  %v11138_v53 = vld [vmem:[%s11411_s4 + $0xfb4] ss:$8 sps:$4 sm:$0xff]  }
 0x3f8   : > { %7501 = vmatpush1.bf16.msra.mxu1 %v11044_v23  ;;  %v11141_v23 = vld [vmem:[%s11411_s4 + $0x1fb4] ss:$8 sps:$4 sm:$0xff]  }
 0x3f9   : > { %8157 = vmatpush1.bf16.msra.mxu0 %v11047_v59  ;;  %7502 = vmatprep.subr.bf16.mxu1 %v11052_v38  ;;  %v11136_v59 = vld [vmem:[%s11411_s4 + $0xfb0] ss:$8 sps:$4 sm:$0xff]  }
 0x3fa   : > { %8158 = vmatprep.subr.bf16.mxu0 %v11055_v40  ;;  %v11139_v38 = vld [vmem:[%s11411_s4 + $0x1fb0] ss:$8 sps:$4 sm:$0xff]   ;;  %v11144_v40 = vld [vmem:[%s11411_s4 + $0xfc4] ss:$8 sps:$4 sm:$0xff]  }
 0x3fc   : > { %7503 = vmatpush1.bf16.msra.mxu1 %v11050_v11  ;;  %v11147_v11 = vld [vmem:[%s11411_s4 + $0x1fc4] ss:$8 sps:$4 sm:$0xff]  }
 0x3fd   : > { %8159 = vmatpush1.bf16.msra.mxu0 %v11053_v27  ;;  %7504 = vmatprep.subr.bf16.mxu1 %v11058_v61  ;;  %v11142_v27 = vld [vmem:[%s11411_s4 + $0xfc0] ss:$8 sps:$4 sm:$0xff]  }
 0x3fe   : > { %8160 = vmatprep.subr.bf16.mxu0 %v11061_v28  ;;  %v11145_v61 = vld [vmem:[%s11411_s4 + $0x1fc0] ss:$8 sps:$4 sm:$0xff]   ;;  %v11150_v28 = vld [vmem:[%s11411_s4 + $0xfd4] ss:$8 sps:$4 sm:$0xff]  }
 0x400   : > { %7505 = vmatpush1.bf16.msra.mxu1 %v11056_v29  ;;  %v11153_v29 = vld [vmem:[%s11411_s4 + $0x1fd4] ss:$8 sps:$4 sm:$0xff]  }
 0x401   : > { %8161 = vmatpush1.bf16.msra.mxu0 %v11059_v30  ;;  %7506 = vmatprep.subr.bf16.mxu1 %v11064_v31  ;;  %v11148_v30 = vld [vmem:[%s11411_s4 + $0xfd0] ss:$8 sps:$4 sm:$0xff]  }
 0x402   : > { %8162 = vmatprep.subr.bf16.mxu0 %v11067_v32  ;;  %v11151_v31 = vld [vmem:[%s11411_s4 + $0x1fd0] ss:$8 sps:$4 sm:$0xff]   ;;  %v11156_v32 = vld [vmem:[%s11411_s4 + $0xfe4] ss:$8 sps:$4 sm:$0xff]  }
 0x404   : > { %7507 = vmatpush1.bf16.msra.mxu1 %v11062_v16  ;;  %v11159_v16 = vld [vmem:[%s11411_s4 + $0x1fe4] ss:$8 sps:$4 sm:$0xff]  }
 0x405   : > { %8163 = vmatpush1.bf16.msra.mxu0 %v11065_v34  ;;  %7517 = vmatprep.subr.bf16.mxu1 %v11071_v22  ;;  %v11154_v34 = vld [vmem:[%s11411_s4 + $0xfe0] ss:$8 sps:$4 sm:$0xff]  }
 0x406   : > { %8173 = vmatprep.subr.bf16.mxu0 %v11075_v36  ;;  %v11157_v22 = vld [vmem:[%s11411_s4 + $0x1fe0] ss:$8 sps:$4 sm:$0xff]   ;;  %v11162_v36 = vld [vmem:[%s11411_s4 + $0xff4] ss:$8 sps:$4 sm:$0xff]  }
 0x407   : > { %7509 = vmatmul.mubr.bf16.vlgmr.msra.gmra.mrb[0].mxu1 %v12695_v43 }
 0x408   : > { %8165 = vmatmul.mubr.bf16.vlgmr.msra.gmra.mrb[0].mxu0 %v12699_v45  ;;  %7518 = vmatpush1.bf16.msra.mxu1 %v11069_v25  ;;  %v11165_v25 = vld [vmem:[%s11411_s4 + $0x1ff4] ss:$8 sps:$4 sm:$0xff]  }
 0x409   : > { %8174 = vmatpush1.bf16.msra.mxu0 %v11073_v46  ;;  %7519 = vmatprep.subr.bf16.mxu1 %v11078_v42  ;;  %v11160_v46 = vld [vmem:[%s11411_s4 + $0xff0] ss:$8 sps:$4 sm:$0xff]  }
 0x40a   : > { %8175 = vmatprep.subr.bf16.mxu0 %v11081_v26  ;;  %7549 = vmatprep.mubr.bf16.mxu1 %v1521_v56  ;;  %v11163_v42 = vld [vmem:[%s11411_s4 + $0x1ff0] ss:$8 sps:$4 sm:$0xff]   ;;  %v1519_v26 = vcombine.high %v12695_v43, %v12695_v43  ;;  %v1715_v56 = vcombine.high %v12699_v45, %v12699_v45 }
 0x40b   : > { %8205 = vmatprep.mubr.bf16.mxu0 %v1717_v60  ;;  %v11274_v60 = vmov 1983009808  }
 0x40c   : > { %7520 = vmatpush1.bf16.msra.mxu1 %v11076_v50  ;;  %v8218_v50 = vunpack.c.l.s4 %v11274_v60 }
 0x40d   : > { %8176 = vmatpush1.bf16.msra.mxu0 %v11079_v57  ;;  %7521 = vmatprep.subr.bf16.mxu1 %v11084_v35 }
 0x40e   : > { %8177 = vmatprep.subr.bf16.mxu0 %v11087_v14  ;;  %v8219_v57 = vunpack.c.0.s8 %v8218_v50 }
 0x410   : > { %7522 = vmatpush1.bf16.msra.mxu1 %v11082_v21  ;;  %v8222_v43 = vsub.s32 %v8219_v57, %v11477_v44 }
 0x411   : > { %8178 = vmatpush1.bf16.msra.mxu0 %v11085_v33  ;;  %7523 = vmatprep.subr.bf16.mxu1 %v11090_v37 }
 0x412   : > { %8179 = vmatprep.subr.bf16.mxu0 %v11093_v15 }
 0x414   : > { %7524 = vmatpush1.bf16.msra.mxu1 %v11088_v48 }
 0x415   : > { %8180 = vmatpush1.bf16.msra.mxu0 %v11091_v17  ;;  %7525 = vmatprep.subr.bf16.mxu1 %v11096_v49 }
 0x416   : > { %8181 = vmatprep.subr.bf16.mxu0 %v11099_v51 }
 0x418   : > { %7526 = vmatpush1.bf16.msra.mxu1 %v11094_v52  ;;  %v285_v52 = vld [vmem:[%s11434_s16] sm:$0xf] }
 0x419   : > { %8182 = vmatpush1.bf16.msra.mxu0 %v11097_v54  ;;  %7527 = vmatprep.subr.bf16.mxu1 %v11102_v55 }
 0x41a   : > { %8183 = vmatprep.subr.bf16.mxu0 %v11105_v63  ;;  %v8232_v63 = vld [vmem:[%s268_s26] sm:$0x3] (!%p9419_p6) }
 0x41c   : > { %7528 = vmatpush1.bf16.msra.mxu1 %v11100_v0  ;;  %v8236_v0 = vsub.s32 (!%p9419_p6), 0, %v11477_v44 }
 0x41d   : > { %8184 = vmatpush1.bf16.msra.mxu0 %v11103_v41  ;;  %7529 = vmatprep.subr.bf16.mxu1 %v11108_v1  ;;  %v8240_v41 = vsub.s32 (!%p9419_p6), 1, %v11477_v44 }
 0x41e   : > { %8185 = vmatprep.subr.bf16.mxu0 %v11111_v47  ;;  %v8237_v1 = vrot.slane (!%p9419_p6), %v8232_v63, %v8236_v0 }
 0x41f   : > { %v8241_v47 = vrot.slane (!%p9419_p6), %v8232_v63, %v8240_v41 }
 0x420   : > { %7530 = vmatpush1.bf16.msra.mxu1 %v11106_v3 }
 0x421   : > { %8186 = vmatpush1.bf16.msra.mxu0 %v11109_v39  ;;  %7531 = vmatprep.subr.bf16.mxu1 %v11114_v58  ;;  %v8242_v3 = vcombine.low (!%p9419_p6), %v8237_v1, %v8241_v47 }
 0x422   : > { %8187 = vmatprep.subr.bf16.mxu0 %v11117_v18 }
 0x423   : > { %v8249_v58 = vrot.slane (!%p9419_p6), %v8242_v3, %v8222_v43 }
 0x424   : > { %7532 = vmatpush1.bf16.msra.mxu1 %v11112_v4 }
 0x425   : > { %8188 = vmatpush1.bf16.msra.mxu0 %v11115_v5  ;;  %7533 = vmatprep.subr.bf16.mxu1 %v11120_v6 }
 0x426   : > { %8189 = vmatprep.subr.bf16.mxu0 %v11123_v7 }
 0x428   : > { %7534 = vmatpush1.bf16.msra.mxu1 %v11118_v8 }
 0x429   : > { %8190 = vmatpush1.bf16.msra.mxu0 %v11121_v9  ;;  %7535 = vmatprep.subr.bf16.mxu1 %v11126_v10 }
 0x42a   : > { %8191 = vmatprep.subr.bf16.mxu0 %v11129_v62 }
 0x42c   : > { %7536 = vmatpush1.bf16.msra.mxu1 %v11124_v12 }
 0x42d   : > { %8192 = vmatpush1.bf16.msra.mxu0 %v11127_v19  ;;  %7537 = vmatprep.subr.bf16.mxu1 %v11132_v20 }
 0x42e   : > { %8193 = vmatprep.subr.bf16.mxu0 %v11135_v2 }
 0x430   : > { %7538 = vmatpush1.bf16.msra.mxu1 %v11130_v24 }
 0x431   : > { %8194 = vmatpush1.bf16.msra.mxu0 %v11133_v13  ;;  %7539 = vmatprep.subr.bf16.mxu1 %v11138_v53 }
 0x432   : > { %8195 = vmatprep.subr.bf16.mxu0 %v11141_v23 }
 0x434   : > { %7540 = vmatpush1.bf16.msra.mxu1 %v11136_v59 }
 0x435   : > { %8196 = vmatpush1.bf16.msra.mxu0 %v11139_v38  ;;  %7541 = vmatprep.subr.bf16.mxu1 %v11144_v40 }
 0x436   : > { %8197 = vmatprep.subr.bf16.mxu0 %v11147_v11 }
 0x438   : > { %7542 = vmatpush1.bf16.msra.mxu1 %v11142_v27 }
 0x439   : > { %8198 = vmatpush1.bf16.msra.mxu0 %v11145_v61  ;;  %7543 = vmatprep.subr.bf16.mxu1 %v11150_v28 }
 0x43a   : > { %8199 = vmatprep.subr.bf16.mxu0 %v11153_v29 }
 0x43c   : > { %7544 = vmatpush1.bf16.msra.mxu1 %v11148_v30 }
 0x43d   : > { %8200 = vmatpush1.bf16.msra.mxu0 %v11151_v31  ;;  %7545 = vmatprep.subr.bf16.mxu1 %v11156_v32 }
 0x43e   : > { %8201 = vmatprep.subr.bf16.mxu0 %v11159_v16 }
 0x440   : > { %7546 = vmatpush1.bf16.msra.mxu1 %v11154_v34 }
 0x441   : > { %8202 = vmatpush1.bf16.msra.mxu0 %v11157_v22  ;;  %7547 = vmatprep.subr.bf16.mxu1 %v11162_v36 }
 0x442   : > { %8203 = vmatprep.subr.bf16.mxu0 %v11165_v25 }
 0x444   : > { %7548 = vmatpush1.bf16.msra.mxu1 %v11160_v46 }
 0x445   : > { %8204 = vmatpush1.bf16.msra.mxu0 %v11163_v42 }
 0x447   : > { %7550 = vmatmul.mubr.bf16.vlgmr.msra.gmra.mrb[0].mxu1 %v1519_v26 }
 0x448   : > { %8206 = vmatmul.mubr.bf16.vlgmr.msra.gmra.mrb[0].mxu0 %v1715_v56 }
 0x51a   : > { %v7551_v35 = vpop.f32.mrb[0].mxu1 }
 0x51b   : > { %v8207_v14 = vpop.f32.mrb[0].mxu0  ;;  %v7553_v33 = vpop.f32.mrb[1].mxu1 }
 0x51c   : > { %v9423_v21 = vadd.f32 %v8207_v14, %v7551_v35  ;;  %v8209_v37 = vpop.f32.mrb[1].mxu0  ;;  %v7555_v48 = vpop.f32.mrb[2].mxu1 }
 0x51d   : > { %v9424_v15 = vadd.f32 %v8209_v37, %v7553_v33  ;;  %v8211_v17 = vpop.f32.mrb[2].mxu0  ;;  %v7556_v45 = vpop.f32.mrb[3].mxu1 }
 0x51e   : > { %v8212_v49 = vpop.f32.mrb[3].mxu0 }
 0x51f   : > { %v8216_v51 = vcombine.low %v9423_v21, %v9424_v15  ;;  %8230 = sbr.rel (%p9419_p6) target bundleno = 1330 (0x532), region = 44 }
 0x521   : > { %v8223_v54 = vrot.slane %v8216_v51, %v8222_v43 }
 0x523   : > { %v8225_v55 = vadd.f32 %v8223_v54, %v285_v52 }
 0x525   : > { %8226 = vst [vmem:[%s11434_s16] sm:$0xf] %v8225_v55 }
 0x52c   : > { %v8231_v39 = vld [vmem:[%s11434_s16] sm:$0xf] }
 0x52d   : > { %v8251_v18 = vadd.f32 %v8249_v58, %v8231_v39 }
 0x52f   : > { %v8252_v4 = vmax.f32 %v8251_v18, 0.0 }
 0x531   : > { %8253 = vst [vmem:[%s11434_s16] sm:$0xf] %v8252_v4 }
 0x532 PF: > { %s16_s19 = sadd.s32 1, %s11266_s19   ;;  %s12817_s12 = smov %s11242_s13 }
 0x533   : > { %p13_p8 = scmp.ge.s32.totalorder %s16_s19, 10   ;;  %s12818_s13 = smov %s11246_s14 }
 0x534   : > { %s12819_s14 = smov %s11362_s5  ;;  %s12820_s15 = smov %s11258_s17 }
 0x535   : > { %s12821_s16 = smov %s11262_s18  ;;  %s12822_s17 = smov %s12825_s21 }
 0x536   : > { %s12823_s18 = smov %s12829_s22  ;;  %15 = sbr.rel (!%p13_p8) target bundleno = 5 (0x5), region = 86 }
 0x53d   :  { %8284 = vsyncpa [#allocation3], 1 }
 0x53e   :  { %8286 = vsyncpa [#allocation3 + $0x1], 1 }

</bundles_post_ra>
